<compile_context>
chip_gen: v7x
topology: tpu7x:2x2x1
jax: 0.10.0
libtpu: 0.0.40
codegen_flags: <defaults>
</compile_context>

<pallas_src>
import math

import jax
import jax.numpy as jnp
import numpy as np
from jax.experimental import pallas as pl
from jax.experimental.pallas import tpu as pltpu

_BN_EPS = 1e-5


def _vmem_spec():
    return pl.BlockSpec(memory_space=pltpu.MemorySpace.VMEM)


def _make_fused_kernel(block_cfg):
    """block_cfg: tuple of (H, W, Cin, Cout) per dense block (static shapes)."""
    n_blocks = len(block_cfg)

    def kernel(*args):
        x_ref = args[0]
        blk_refs = args[1:1 + 3 * n_blocks]        # (w_2d, gamma, beta) per block
        wh_ref = args[1 + 3 * n_blocks]            # (Hf, Wf, Cf, out)
        bh_ref = args[2 + 3 * n_blocks]            # (1, out)
        out_ref = args[3 + 3 * n_blocks]           # (N, out)
        scr = args[4 + 3 * n_blocks:]              # 3 scratch refs per block

        x = x_ref[...].astype(jnp.float32)         # current activation (N,H,W,Cin)
        N = x.shape[0]

        for bi, (H, W, Cin, Cout) in enumerate(block_cfg):
            w2d = blk_refs[3 * bi][...]            # (9*Cin, Cout)
            gamma = blk_refs[3 * bi + 1][...]      # (1, Cout)
            beta = blk_refs[3 * bi + 2][...]       # (1, Cout)
            pad_ref, y_ref, wp_ref = scr[3 * bi:3 * bi + 3]
            H2, W2 = H // 2, W // 2

            # ---- zero padding inside the kernel (no jnp.pad / HBM round trip)
            pad_ref[...] = jnp.zeros_like(pad_ref)
            pad_ref[:, 1:H + 1, 1:W + 1, :] = x

            # ---- im2col: one (N*H*W, 9*Cin) patch matrix, single MXU matmul
            taps = [pad_ref[:, dh:dh + H, dw:dw + W, :]
                    for dh in range(3) for dw in range(3)]
            patches = jnp.concatenate(taps, axis=-1).reshape(N * H * W, 9 * Cin)
            acc = jnp.dot(patches, w2d, preferred_element_type=jnp.float32)

            # ---- BatchNorm2d (training mode, biased batch stats): single
            #      stats pass (sum & sum-of-squares), one scale/shift pass.
            inv_cnt = 1.0 / float(N * H * W)
            s1 = jnp.sum(acc, axis=0, keepdims=True)
            s2 = jnp.sum(acc * acc, axis=0, keepdims=True)
            mean = s1 * inv_cnt
            var = s2 * inv_cnt - mean * mean
            scale = gamma * jax.lax.rsqrt(var + _BN_EPS)
            shift = beta - mean * scale
            y = jnp.maximum(acc * scale + shift, 0.0)          # BN + ReLU
            y = y.reshape(N, H, W, Cout)

            # ---- cat([block(x), identity], channel) + MaxPool2d(2,2):
            #      pooled halves written into channel slices of one small
            #      scratch; identity is reused from pad_ref's interior, so no
            #      full-resolution concat buffer is ever materialized.
            y_ref[...] = y
            wp_ref[:, :, :, :Cout] = jnp.maximum(
                y_ref[:, :, pl.ds(0, W2, stride=2), :],
                y_ref[:, :, pl.ds(1, W2, stride=2), :])
            wp_ref[:, :, :, Cout:] = jnp.maximum(
                pad_ref[:, 1:H + 1, pl.ds(1, W2, stride=2), :],
                pad_ref[:, 1:H + 1, pl.ds(2, W2, stride=2), :])
            x = jnp.maximum(wp_ref[:, pl.ds(0, H2, stride=2), :, :],
                            wp_ref[:, pl.ds(1, H2, stride=2), :, :])  # (N,H2,W2,C)

        # ---- head: Conv2d(kernel = remaining spatial size) == accumulate a
        #      per-position (N,Cf)@(Cf,out) matmul over the tiny spatial grid,
        #      then log_softmax over channels.
        Hf, Wf = x.shape[1], x.shape[2]
        logits = jnp.broadcast_to(bh_ref[...].astype(jnp.float32), out_ref.shape)
        for hh in range(Hf):
            for ww in range(Wf):
                logits = logits + jnp.dot(x[:, hh, ww, :], wh_ref[hh, ww],
                                          preferred_element_type=jnp.float32)
        m = jnp.max(logits, axis=-1, keepdims=True)
        z = logits - m
        lse = jnp.log(jnp.sum(jnp.exp(z), axis=-1, keepdims=True))
        out_ref[...] = z - lse

    return kernel


def model_e_forward(x_nchw, params):
    # PyTorch NCHW -> NHWC (channels on the TPU lane dim); single transpose.
    x = jnp.transpose(x_nchw, (0, 2, 3, 1)).astype(jnp.float32)
    N, H, W, Cin = x.shape

    block_cfg = []
    flat_inputs = [x]
    h, w, cin = H, W, Cin
    for (wk, gamma, beta) in params["blocks"]:
        cout = wk.shape[-1]
        block_cfg.append((h, w, cin, cout))
        flat_inputs += [wk.reshape(9 * cin, cout), gamma, beta]  # im2col weight layout
        cin, h, w = cin + cout, h // 2, w // 2

    w_head, b_head = params["head"]                # (h, w, c, out), (1, out)
    out_c = w_head.shape[-1]
    flat_inputs += [w_head, b_head]

    scratch = []
    for (bh_, bw_, ci, co) in block_cfg:
        scratch += [
            pltpu.VMEM((N, bh_ + 2, bw_ + 2, ci), jnp.float32),    # padded input
            pltpu.VMEM((N, bh_, bw_, co), jnp.float32),            # conv+BN+ReLU out
            pltpu.VMEM((N, bh_, bw_ // 2, ci + co), jnp.float32),  # W-pooled [y|id]
        ]

    # TODO(synk): to use both v7x TensorCores, shard the batch over a grid axis
    # with dimension_semantics=("parallel",); that needs a cross-core exchange
    # (or a two-pass scheme) for the BatchNorm batch statistics, so it is left
    # out at these tiny shapes where the whole model fits one core's VMEM.
    out = pl.pallas_call(
        _make_fused_kernel(tuple(block_cfg)),
        out_shape=jax.ShapeDtypeStruct((N, out_c), jnp.float32),
        in_specs=[_vmem_spec()] * len(flat_inputs),
        out_specs=_vmem_spec(),
        scratch_shapes=scratch,
    )(*flat_inputs)
    # Match PyTorch output shape (N, out_channel, 1, 1)
    return out.reshape(N, out_c, 1, 1)


def init_params(key, in_channel, hidden_channels, out_channel, image_size, ksize=3):
    """Deterministic synthetic parameters (shapes follow ModelE.__init__).

    NOTE: if real PyTorch weights are loaded, they must be permuted:
      conv weight (out,in,kh,kw) -> (kh,kw,in,out);
      head conv weight (out, C, kh, kw) -> (kh, kw, C, out);
      and the concat channel order [block_out, identity] must be preserved.
    """
    params = {"blocks": [], "head": None}
    prev = in_channel
    for c in hidden_channels:
        key, k1, k2, k3 = jax.random.split(key, 4)
        bound = 1.0 / math.sqrt(prev * ksize * ksize)
        wk = jax.random.uniform(k1, (ksize, ksize, prev, c), jnp.float32, -bound, bound)
        gamma = jax.random.uniform(k2, (1, c), jnp.float32, 0.5, 1.5)
        beta = jax.random.uniform(k3, (1, c), jnp.float32, -0.5, 0.5)
        params["blocks"].append((wk, gamma, beta))
        prev = c + prev                            # dense-style channel growth
    s_final = image_size // (2 ** len(hidden_channels))
    key, k1, k2 = jax.random.split(key, 3)
    bound = 1.0 / math.sqrt(prev * s_final * s_final)
    w_head = jax.random.uniform(k1, (s_final, s_final, prev, out_channel),
                                jnp.float32, -bound, bound)
    b_head = jax.random.uniform(k2, (1, out_channel), jnp.float32, -bound, bound)
    params["head"] = (w_head, b_head)
    return params


if __name__ == "__main__":
    # Small shapes consistent with the module's forward.
    BATCH, IN_CH, IMG = 2, 4, 16
    HIDDEN = [8, 16]
    OUT_CH = 6

    key = jax.random.PRNGKey(0)
    kx, kp = jax.random.split(key)
    x = jax.random.normal(kx, (BATCH, IN_CH, IMG, IMG), jnp.float32)  # NCHW like PyTorch
    params = init_params(kp, IN_CH, HIDDEN, OUT_CH, IMG)

    fwd = jax.jit(model_e_forward)
    out = jax.block_until_ready(fwd(x, params))

    assert out.shape == (BATCH, OUT_CH, 1, 1), out.shape
    probs_sum = np.asarray(jnp.sum(jnp.exp(out), axis=1)).reshape(-1)
    assert np.allclose(probs_sum, 1.0, atol=1e-4), probs_sum  # valid log_softmax
    print("KERNEL_OK")
</pallas_src>

<mosaic_0001>
module attributes {stable_mosaic.version = 11 : i64} {
  func.func @kernel(%arg0: memref<2x16x16x4xf32, #tpu.memory_space<vmem>>, %arg1: memref<36x8xf32, #tpu.memory_space<vmem>>, %arg2: memref<1x8xf32, #tpu.memory_space<vmem>>, %arg3: memref<1x8xf32, #tpu.memory_space<vmem>>, %arg4: memref<108x16xf32, #tpu.memory_space<vmem>>, %arg5: memref<1x16xf32, #tpu.memory_space<vmem>>, %arg6: memref<1x16xf32, #tpu.memory_space<vmem>>, %arg7: memref<4x4x28x6xf32, #tpu.memory_space<vmem>>, %arg8: memref<1x6xf32, #tpu.memory_space<vmem>>, %arg9: memref<2x6xf32, #tpu.memory_space<vmem>>, %arg10: memref<2x18x18x4xf32, #tpu.memory_space<vmem>>, %arg11: memref<2x16x16x8xf32, #tpu.memory_space<vmem>>, %arg12: memref<2x16x8x12xf32, #tpu.memory_space<vmem>>, %arg13: memref<2x10x10x12xf32, #tpu.memory_space<vmem>>, %arg14: memref<2x8x8x16xf32, #tpu.memory_space<vmem>>, %arg15: memref<2x8x4x28xf32, #tpu.memory_space<vmem>>) attributes {dimension_semantics = [], scalar_prefetch = 0 : i64, scratch_operands = 6 : i64, tpu.core_type = #tpu.core_type<tc>} {
    %c0 = arith.constant 0 : index
    %c0_0 = arith.constant 0 : index
    %c0_1 = arith.constant 0 : index
    %c0_2 = arith.constant 0 : index
    %0 = vector.load %arg0[%c0, %c0_0, %c0_1, %c0_2] : memref<2x16x16x4xf32, #tpu.memory_space<vmem>>, vector<2x16x16x4xf32>
    %c0_3 = arith.constant 0 : index
    %c0_4 = arith.constant 0 : index
    %1 = vector.load %arg1[%c0_3, %c0_4] : memref<36x8xf32, #tpu.memory_space<vmem>>, vector<36x8xf32>
    %c0_5 = arith.constant 0 : index
    %c0_6 = arith.constant 0 : index
    %2 = vector.load %arg2[%c0_5, %c0_6] : memref<1x8xf32, #tpu.memory_space<vmem>>, vector<1x8xf32>
    %c0_7 = arith.constant 0 : index
    %c0_8 = arith.constant 0 : index
    %3 = vector.load %arg3[%c0_7, %c0_8] : memref<1x8xf32, #tpu.memory_space<vmem>>, vector<1x8xf32>
    %cst = arith.constant 0.000000e+00 : f32
    %4 = vector.broadcast %cst : f32 to vector<2x18x18x4xf32>
    %c0_9 = arith.constant 0 : index
    %c0_10 = arith.constant 0 : index
    %c0_11 = arith.constant 0 : index
    %c0_12 = arith.constant 0 : index
    %5 = vector.load %arg10[%c0_9, %c0_10, %c0_11, %c0_12] : memref<2x18x18x4xf32, #tpu.memory_space<vmem>>, vector<2x18x18x4xf32>
    tpu.vector_store %arg10[%c0_9, %c0_10, %c0_11, %c0_12], %4 {strides = array<i32>} : memref<2x18x18x4xf32, #tpu.memory_space<vmem>>, vector<2x18x18x4xf32>,
    %c0_13 = arith.constant 0 : index
    %c1 = arith.constant 1 : index
    %c1_14 = arith.constant 1 : index
    %c0_15 = arith.constant 0 : index
    %6 = vector.load %arg10[%c0_13, %c1, %c1_14, %c0_15] : memref<2x18x18x4xf32, #tpu.memory_space<vmem>>, vector<2x16x16x4xf32>
    tpu.vector_store %arg10[%c0_13, %c1, %c1_14, %c0_15], %0 {strides = array<i32>} : memref<2x18x18x4xf32, #tpu.memory_space<vmem>>, vector<2x16x16x4xf32>,
    %c0_16 = arith.constant 0 : index
    %c0_17 = arith.constant 0 : index
    %c0_18 = arith.constant 0 : index
    %c0_19 = arith.constant 0 : index
    %7 = vector.load %arg10[%c0_16, %c0_17, %c0_18, %c0_19] : memref<2x18x18x4xf32, #tpu.memory_space<vmem>>, vector<2x16x16x4xf32>
    %c0_20 = arith.constant 0 : index
    %c0_21 = arith.constant 0 : index
    %c1_22 = arith.constant 1 : index
    %c0_23 = arith.constant 0 : index
    %8 = vector.load %arg10[%c0_20, %c0_21, %c1_22, %c0_23] : memref<2x18x18x4xf32, #tpu.memory_space<vmem>>, vector<2x16x16x4xf32>
    %c0_24 = arith.constant 0 : index
    %c0_25 = arith.constant 0 : index
    %c2 = arith.constant 2 : index
    %c0_26 = arith.constant 0 : index
    %9 = vector.load %arg10[%c0_24, %c0_25, %c2, %c0_26] : memref<2x18x18x4xf32, #tpu.memory_space<vmem>>, vector<2x16x16x4xf32>
    %c0_27 = arith.constant 0 : index
    %c1_28 = arith.constant 1 : index
    %c0_29 = arith.constant 0 : index
    %c0_30 = arith.constant 0 : index
    %10 = vector.load %arg10[%c0_27, %c1_28, %c0_29, %c0_30] : memref<2x18x18x4xf32, #tpu.memory_space<vmem>>, vector<2x16x16x4xf32>
    %c0_31 = arith.constant 0 : index
    %c1_32 = arith.constant 1 : index
    %c1_33 = arith.constant 1 : index
    %c0_34 = arith.constant 0 : index
    %11 = vector.load %arg10[%c0_31, %c1_32, %c1_33, %c0_34] : memref<2x18x18x4xf32, #tpu.memory_space<vmem>>, vector<2x16x16x4xf32>
    %c0_35 = arith.constant 0 : index
    %c1_36 = arith.constant 1 : index
    %c2_37 = arith.constant 2 : index
    %c0_38 = arith.constant 0 : index
    %12 = vector.load %arg10[%c0_35, %c1_36, %c2_37, %c0_38] : memref<2x18x18x4xf32, #tpu.memory_space<vmem>>, vector<2x16x16x4xf32>
    %c0_39 = arith.constant 0 : index
    %c2_40 = arith.constant 2 : index
    %c0_41 = arith.constant 0 : index
    %c0_42 = arith.constant 0 : index
    %13 = vector.load %arg10[%c0_39, %c2_40, %c0_41, %c0_42] : memref<2x18x18x4xf32, #tpu.memory_space<vmem>>, vector<2x16x16x4xf32>
    %c0_43 = arith.constant 0 : index
    %c2_44 = arith.constant 2 : index
    %c1_45 = arith.constant 1 : index
    %c0_46 = arith.constant 0 : index
    %14 = vector.load %arg10[%c0_43, %c2_44, %c1_45, %c0_46] : memref<2x18x18x4xf32, #tpu.memory_space<vmem>>, vector<2x16x16x4xf32>
    %c0_47 = arith.constant 0 : index
    %c2_48 = arith.constant 2 : index
    %c2_49 = arith.constant 2 : index
    %c0_50 = arith.constant 0 : index
    %15 = vector.load %arg10[%c0_47, %c2_48, %c2_49, %c0_50] : memref<2x18x18x4xf32, #tpu.memory_space<vmem>>, vector<2x16x16x4xf32>
    %16 = tpu.concatenate %7, %8, %9, %10, %11, %12, %13, %14, %15 in 3 : vector<2x16x16x4xf32>, vector<2x16x16x4xf32>, vector<2x16x16x4xf32>, vector<2x16x16x4xf32>, vector<2x16x16x4xf32>, vector<2x16x16x4xf32>, vector<2x16x16x4xf32>, vector<2x16x16x4xf32>, vector<2x16x16x4xf32> -> vector<2x16x16x36xf32>
    %17 = vector.shape_cast %16 : vector<2x16x16x36xf32> to vector<512x36xf32>
    %cst_51 = arith.constant dense<0.000000e+00> : vector<512x8xf32>
    %18 = tpu.matmul %17, %1, %cst_51 {dimension_numbers = #tpu.dot_dimension_numbers<[1], [0], [0], [1], [0, 0, 1, 1], [], []>} : vector<512x36xf32>, vector<36x8xf32>, vector<512x8xf32> -> vector<512x8xf32>
    %cst_52 = arith.constant dense<0.000000e+00> : vector<8xf32>
    %19 = vector.multi_reduction <add>, %18, %cst_52 [0] : vector<512x8xf32> to vector<8xf32>
    %20 = vector.shape_cast %19 : vector<8xf32> to vector<1x8xf32>
    %21 = arith.mulf %18, %18 : vector<512x8xf32>
    %cst_53 = arith.constant dense<0.000000e+00> : vector<8xf32>
    %22 = vector.multi_reduction <add>, %21, %cst_53 [0] : vector<512x8xf32> to vector<8xf32>
    %23 = vector.shape_cast %22 : vector<8xf32> to vector<1x8xf32>
    %cst_54 = arith.constant 0.001953125 : f32
    %24 = vector.broadcast %cst_54 : f32 to vector<1x8xf32>
    %25 = arith.mulf %20, %24 : vector<1x8xf32>
    %cst_55 = arith.constant 0.001953125 : f32
    %26 = vector.broadcast %cst_55 : f32 to vector<1x8xf32>
    %27 = arith.mulf %23, %26 : vector<1x8xf32>
    %28 = arith.mulf %25, %25 : vector<1x8xf32>
    %29 = arith.subf %27, %28 : vector<1x8xf32>
    %cst_56 = arith.constant 9.99999974E-6 : f32
    %30 = vector.broadcast %cst_56 : f32 to vector<1x8xf32>
    %31 = arith.addf %29, %30 : vector<1x8xf32>
    %32 = math.rsqrt %31 : vector<1x8xf32>
    %33 = arith.mulf %2, %32 : vector<1x8xf32>
    %34 = arith.mulf %25, %33 : vector<1x8xf32>
    %35 = arith.subf %3, %34 : vector<1x8xf32>
    %36 = vector.broadcast %33 : vector<1x8xf32> to vector<512x8xf32>
    %37 = arith.mulf %18, %36 : vector<512x8xf32>
    %38 = vector.broadcast %35 : vector<1x8xf32> to vector<512x8xf32>
    %39 = arith.addf %37, %38 : vector<512x8xf32>
    %cst_57 = arith.constant 0.000000e+00 : f32
    %40 = vector.broadcast %cst_57 : f32 to vector<512x8xf32>
    %41 = arith.maximumf %39, %40 : vector<512x8xf32>
    %42 = vector.shape_cast %41 : vector<512x8xf32> to vector<2x16x16x8xf32>
    %c0_58 = arith.constant 0 : index
    %c0_59 = arith.constant 0 : index
    %c0_60 = arith.constant 0 : index
    %c0_61 = arith.constant 0 : index
    %43 = vector.load %arg11[%c0_58, %c0_59, %c0_60, %c0_61] : memref<2x16x16x8xf32, #tpu.memory_space<vmem>>, vector<2x16x16x8xf32>
    tpu.vector_store %arg11[%c0_58, %c0_59, %c0_60, %c0_61], %42 {strides = array<i32>} : memref<2x16x16x8xf32, #tpu.memory_space<vmem>>, vector<2x16x16x8xf32>,
    %c0_62 = arith.constant 0 : index
    %c0_63 = arith.constant 0 : index
    %c0_64 = arith.constant 0 : index
    %c0_65 = arith.constant 0 : index
    %44 = tpu.strided_load %arg11[%c0_62, %c0_63, %c0_64, %c0_65] {strides = array<i32: 1, 1, 2, 1>} : memref<2x16x16x8xf32, #tpu.memory_space<vmem>>, vector<2x16x8x8xf32>
    %c0_66 = arith.constant 0 : index
    %c0_67 = arith.constant 0 : index
    %c1_68 = arith.constant 1 : index
    %c0_69 = arith.constant 0 : index
    %45 = tpu.strided_load %arg11[%c0_66, %c0_67, %c1_68, %c0_69] {strides = array<i32: 1, 1, 2, 1>} : memref<2x16x16x8xf32, #tpu.memory_space<vmem>>, vector<2x16x8x8xf32>
    %46 = arith.maximumf %44, %45 : vector<2x16x8x8xf32>
    %c0_70 = arith.constant 0 : index
    %c0_71 = arith.constant 0 : index
    %c0_72 = arith.constant 0 : index
    %c0_73 = arith.constant 0 : index
    %47 = vector.load %arg12[%c0_70, %c0_71, %c0_72, %c0_73] : memref<2x16x8x12xf32, #tpu.memory_space<vmem>>, vector<2x16x8x8xf32>
    tpu.vector_store %arg12[%c0_70, %c0_71, %c0_72, %c0_73], %46 {strides = array<i32>} : memref<2x16x8x12xf32, #tpu.memory_space<vmem>>, vector<2x16x8x8xf32>,
    %c0_74 = arith.constant 0 : index
    %c1_75 = arith.constant 1 : index
    %c1_76 = arith.constant 1 : index
    %c0_77 = arith.constant 0 : index
    %48 = tpu.strided_load %arg10[%c0_74, %c1_75, %c1_76, %c0_77] {strides = array<i32: 1, 1, 2, 1>} : memref<2x18x18x4xf32, #tpu.memory_space<vmem>>, vector<2x16x8x4xf32>
    %c0_78 = arith.constant 0 : index
    %c1_79 = arith.constant 1 : index
    %c2_80 = arith.constant 2 : index
    %c0_81 = arith.constant 0 : index
    %49 = tpu.strided_load %arg10[%c0_78, %c1_79, %c2_80, %c0_81] {strides = array<i32: 1, 1, 2, 1>} : memref<2x18x18x4xf32, #tpu.memory_space<vmem>>, vector<2x16x8x4xf32>
    %50 = arith.maximumf %48, %49 : vector<2x16x8x4xf32>
    %c0_82 = arith.constant 0 : index
    %c0_83 = arith.constant 0 : index
    %c0_84 = arith.constant 0 : index
    %c8 = arith.constant 8 : index
    %51 = vector.load %arg12[%c0_82, %c0_83, %c0_84, %c8] : memref<2x16x8x12xf32, #tpu.memory_space<vmem>>, vector<2x16x8x4xf32>
    tpu.vector_store %arg12[%c0_82, %c0_83, %c0_84, %c8], %50 {strides = array<i32>} : memref<2x16x8x12xf32, #tpu.memory_space<vmem>>, vector<2x16x8x4xf32>,
    %c0_85 = arith.constant 0 : index
    %c0_86 = arith.constant 0 : index
    %c0_87 = arith.constant 0 : index
    %c0_88 = arith.constant 0 : index
    %52 = tpu.strided_load %arg12[%c0_85, %c0_86, %c0_87, %c0_88] {strides = array<i32: 1, 2, 1, 1>} : memref<2x16x8x12xf32, #tpu.memory_space<vmem>>, vector<2x8x8x12xf32>
    %c0_89 = arith.constant 0 : index
    %c1_90 = arith.constant 1 : index
    %c0_91 = arith.constant 0 : index
    %c0_92 = arith.constant 0 : index
    %53 = tpu.strided_load %arg12[%c0_89, %c1_90, %c0_91, %c0_92] {strides = array<i32: 1, 2, 1, 1>} : memref<2x16x8x12xf32, #tpu.memory_space<vmem>>, vector<2x8x8x12xf32>
    %54 = arith.maximumf %52, %53 : vector<2x8x8x12xf32>
    %c0_93 = arith.constant 0 : index
    %c0_94 = arith.constant 0 : index
    %55 = vector.load %arg4[%c0_93, %c0_94] : memref<108x16xf32, #tpu.memory_space<vmem>>, vector<108x16xf32>
    %c0_95 = arith.constant 0 : index
    %c0_96 = arith.constant 0 : index
    %56 = vector.load %arg5[%c0_95, %c0_96] : memref<1x16xf32, #tpu.memory_space<vmem>>, vector<1x16xf32>
    %c0_97 = arith.constant 0 : index
    %c0_98 = arith.constant 0 : index
    %57 = vector.load %arg6[%c0_97, %c0_98] : memref<1x16xf32, #tpu.memory_space<vmem>>, vector<1x16xf32>
    %cst_99 = arith.constant 0.000000e+00 : f32
    %58 = vector.broadcast %cst_99 : f32 to vector<2x10x10x12xf32>
    %c0_100 = arith.constant 0 : index
    %c0_101 = arith.constant 0 : index
    %c0_102 = arith.constant 0 : index
    %c0_103 = arith.constant 0 : index
    %59 = vector.load %arg13[%c0_100, %c0_101, %c0_102, %c0_103] : memref<2x10x10x12xf32, #tpu.memory_space<vmem>>, vector<2x10x10x12xf32>
    tpu.vector_store %arg13[%c0_100, %c0_101, %c0_102, %c0_103], %58 {strides = array<i32>} : memref<2x10x10x12xf32, #tpu.memory_space<vmem>>, vector<2x10x10x12xf32>,
    %c0_104 = arith.constant 0 : index
    %c1_105 = arith.constant 1 : index
    %c1_106 = arith.constant 1 : index
    %c0_107 = arith.constant 0 : index
    %60 = vector.load %arg13[%c0_104, %c1_105, %c1_106, %c0_107] : memref<2x10x10x12xf32, #tpu.memory_space<vmem>>, vector<2x8x8x12xf32>
    tpu.vector_store %arg13[%c0_104, %c1_105, %c1_106, %c0_107], %54 {strides = array<i32>} : memref<2x10x10x12xf32, #tpu.memory_space<vmem>>, vector<2x8x8x12xf32>,
    %c0_108 = arith.constant 0 : index
    %c0_109 = arith.constant 0 : index
    %c0_110 = arith.constant 0 : index
    %c0_111 = arith.constant 0 : index
    %61 = vector.load %arg13[%c0_108, %c0_109, %c0_110, %c0_111] : memref<2x10x10x12xf32, #tpu.memory_space<vmem>>, vector<2x8x8x12xf32>
    %c0_112 = arith.constant 0 : index
    %c0_113 = arith.constant 0 : index
    %c1_114 = arith.constant 1 : index
    %c0_115 = arith.constant 0 : index
    %62 = vector.load %arg13[%c0_112, %c0_113, %c1_114, %c0_115] : memref<2x10x10x12xf32, #tpu.memory_space<vmem>>, vector<2x8x8x12xf32>
    %c0_116 = arith.constant 0 : index
    %c0_117 = arith.constant 0 : index
    %c2_118 = arith.constant 2 : index
    %c0_119 = arith.constant 0 : index
    %63 = vector.load %arg13[%c0_116, %c0_117, %c2_118, %c0_119] : memref<2x10x10x12xf32, #tpu.memory_space<vmem>>, vector<2x8x8x12xf32>
    %c0_120 = arith.constant 0 : index
    %c1_121 = arith.constant 1 : index
    %c0_122 = arith.constant 0 : index
    %c0_123 = arith.constant 0 : index
    %64 = vector.load %arg13[%c0_120, %c1_121, %c0_122, %c0_123] : memref<2x10x10x12xf32, #tpu.memory_space<vmem>>, vector<2x8x8x12xf32>
    %c0_124 = arith.constant 0 : index
    %c1_125 = arith.constant 1 : index
    %c1_126 = arith.constant 1 : index
    %c0_127 = arith.constant 0 : index
    %65 = vector.load %arg13[%c0_124, %c1_125, %c1_126, %c0_127] : memref<2x10x10x12xf32, #tpu.memory_space<vmem>>, vector<2x8x8x12xf32>
    %c0_128 = arith.constant 0 : index
    %c1_129 = arith.constant 1 : index
    %c2_130 = arith.constant 2 : index
    %c0_131 = arith.constant 0 : index
    %66 = vector.load %arg13[%c0_128, %c1_129, %c2_130, %c0_131] : memref<2x10x10x12xf32, #tpu.memory_space<vmem>>, vector<2x8x8x12xf32>
    %c0_132 = arith.constant 0 : index
    %c2_133 = arith.constant 2 : index
    %c0_134 = arith.constant 0 : index
    %c0_135 = arith.constant 0 : index
    %67 = vector.load %arg13[%c0_132, %c2_133, %c0_134, %c0_135] : memref<2x10x10x12xf32, #tpu.memory_space<vmem>>, vector<2x8x8x12xf32>
    %c0_136 = arith.constant 0 : index
    %c2_137 = arith.constant 2 : index
    %c1_138 = arith.constant 1 : index
    %c0_139 = arith.constant 0 : index
    %68 = vector.load %arg13[%c0_136, %c2_137, %c1_138, %c0_139] : memref<2x10x10x12xf32, #tpu.memory_space<vmem>>, vector<2x8x8x12xf32>
    %c0_140 = arith.constant 0 : index
    %c2_141 = arith.constant 2 : index
    %c2_142 = arith.constant 2 : index
    %c0_143 = arith.constant 0 : index
    %69 = vector.load %arg13[%c0_140, %c2_141, %c2_142, %c0_143] : memref<2x10x10x12xf32, #tpu.memory_space<vmem>>, vector<2x8x8x12xf32>
    %70 = tpu.concatenate %61, %62, %63, %64, %65, %66, %67, %68, %69 in 3 : vector<2x8x8x12xf32>, vector<2x8x8x12xf32>, vector<2x8x8x12xf32>, vector<2x8x8x12xf32>, vector<2x8x8x12xf32>, vector<2x8x8x12xf32>, vector<2x8x8x12xf32>, vector<2x8x8x12xf32>, vector<2x8x8x12xf32> -> vector<2x8x8x108xf32>
    %71 = vector.shape_cast %70 : vector<2x8x8x108xf32> to vector<128x108xf32>
    %cst_144 = arith.constant dense<0.000000e+00> : vector<128x16xf32>
    %72 = tpu.matmul %71, %55, %cst_144 {dimension_numbers = #tpu.dot_dimension_numbers<[1], [0], [0], [1], [0, 0, 1, 1], [], []>} : vector<128x108xf32>, vector<108x16xf32>, vector<128x16xf32> -> vector<128x16xf32>
    %cst_145 = arith.constant dense<0.000000e+00> : vector<16xf32>
    %73 = vector.multi_reduction <add>, %72, %cst_145 [0] : vector<128x16xf32> to vector<16xf32>
    %74 = vector.shape_cast %73 : vector<16xf32> to vector<1x16xf32>
    %75 = arith.mulf %72, %72 : vector<128x16xf32>
    %cst_146 = arith.constant dense<0.000000e+00> : vector<16xf32>
    %76 = vector.multi_reduction <add>, %75, %cst_146 [0] : vector<128x16xf32> to vector<16xf32>
    %77 = vector.shape_cast %76 : vector<16xf32> to vector<1x16xf32>
    %cst_147 = arith.constant 7.812500e-03 : f32
    %78 = vector.broadcast %cst_147 : f32 to vector<1x16xf32>
    %79 = arith.mulf %74, %78 : vector<1x16xf32>
    %cst_148 = arith.constant 7.812500e-03 : f32
    %80 = vector.broadcast %cst_148 : f32 to vector<1x16xf32>
    %81 = arith.mulf %77, %80 : vector<1x16xf32>
    %82 = arith.mulf %79, %79 : vector<1x16xf32>
    %83 = arith.subf %81, %82 : vector<1x16xf32>
    %cst_149 = arith.constant 9.99999974E-6 : f32
    %84 = vector.broadcast %cst_149 : f32 to vector<1x16xf32>
    %85 = arith.addf %83, %84 : vector<1x16xf32>
    %86 = math.rsqrt %85 : vector<1x16xf32>
    %87 = arith.mulf %56, %86 : vector<1x16xf32>
    %88 = arith.mulf %79, %87 : vector<1x16xf32>
    %89 = arith.subf %57, %88 : vector<1x16xf32>
    %90 = vector.broadcast %87 : vector<1x16xf32> to vector<128x16xf32>
    %91 = arith.mulf %72, %90 : vector<128x16xf32>
    %92 = vector.broadcast %89 : vector<1x16xf32> to vector<128x16xf32>
    %93 = arith.addf %91, %92 : vector<128x16xf32>
    %cst_150 = arith.constant 0.000000e+00 : f32
    %94 = vector.broadcast %cst_150 : f32 to vector<128x16xf32>
    %95 = arith.maximumf %93, %94 : vector<128x16xf32>
    %96 = vector.shape_cast %95 : vector<128x16xf32> to vector<2x8x8x16xf32>
    %c0_151 = arith.constant 0 : index
    %c0_152 = arith.constant 0 : index
    %c0_153 = arith.constant 0 : index
    %c0_154 = arith.constant 0 : index
    %97 = vector.load %arg14[%c0_151, %c0_152, %c0_153, %c0_154] : memref<2x8x8x16xf32, #tpu.memory_space<vmem>>, vector<2x8x8x16xf32>
    tpu.vector_store %arg14[%c0_151, %c0_152, %c0_153, %c0_154], %96 {strides = array<i32>} : memref<2x8x8x16xf32, #tpu.memory_space<vmem>>, vector<2x8x8x16xf32>,
    %c0_155 = arith.constant 0 : index
    %c0_156 = arith.constant 0 : index
    %c0_157 = arith.constant 0 : index
    %c0_158 = arith.constant 0 : index
    %98 = tpu.strided_load %arg14[%c0_155, %c0_156, %c0_157, %c0_158] {strides = array<i32: 1, 1, 2, 1>} : memref<2x8x8x16xf32, #tpu.memory_space<vmem>>, vector<2x8x4x16xf32>
    %c0_159 = arith.constant 0 : index
    %c0_160 = arith.constant 0 : index
    %c1_161 = arith.constant 1 : index
    %c0_162 = arith.constant 0 : index
    %99 = tpu.strided_load %arg14[%c0_159, %c0_160, %c1_161, %c0_162] {strides = array<i32: 1, 1, 2, 1>} : memref<2x8x8x16xf32, #tpu.memory_space<vmem>>, vector<2x8x4x16xf32>
    %100 = arith.maximumf %98, %99 : vector<2x8x4x16xf32>
    %c0_163 = arith.constant 0 : index
    %c0_164 = arith.constant 0 : index
    %c0_165 = arith.constant 0 : index
    %c0_166 = arith.constant 0 : index
    %101 = vector.load %arg15[%c0_163, %c0_164, %c0_165, %c0_166] : memref<2x8x4x28xf32, #tpu.memory_space<vmem>>, vector<2x8x4x16xf32>
    tpu.vector_store %arg15[%c0_163, %c0_164, %c0_165, %c0_166], %100 {strides = array<i32>} : memref<2x8x4x28xf32, #tpu.memory_space<vmem>>, vector<2x8x4x16xf32>,
    %c0_167 = arith.constant 0 : index
    %c1_168 = arith.constant 1 : index
    %c1_169 = arith.constant 1 : index
    %c0_170 = arith.constant 0 : index
    %102 = tpu.strided_load %arg13[%c0_167, %c1_168, %c1_169, %c0_170] {strides = array<i32: 1, 1, 2, 1>} : memref<2x10x10x12xf32, #tpu.memory_space<vmem>>, vector<2x8x4x12xf32>
    %c0_171 = arith.constant 0 : index
    %c1_172 = arith.constant 1 : index
    %c2_173 = arith.constant 2 : index
    %c0_174 = arith.constant 0 : index
    %103 = tpu.strided_load %arg13[%c0_171, %c1_172, %c2_173, %c0_174] {strides = array<i32: 1, 1, 2, 1>} : memref<2x10x10x12xf32, #tpu.memory_space<vmem>>, vector<2x8x4x12xf32>
    %104 = arith.maximumf %102, %103 : vector<2x8x4x12xf32>
    %c0_175 = arith.constant 0 : index
    %c0_176 = arith.constant 0 : index
    %c0_177 = arith.constant 0 : index
    %c16 = arith.constant 16 : index
    %105 = vector.load %arg15[%c0_175, %c0_176, %c0_177, %c16] : memref<2x8x4x28xf32, #tpu.memory_space<vmem>>, vector<2x8x4x12xf32>
    tpu.vector_store %arg15[%c0_175, %c0_176, %c0_177, %c16], %104 {strides = array<i32>} : memref<2x8x4x28xf32, #tpu.memory_space<vmem>>, vector<2x8x4x12xf32>,
    %c0_178 = arith.constant 0 : index
    %c0_179 = arith.constant 0 : index
    %c0_180 = arith.constant 0 : index
    %c0_181 = arith.constant 0 : index
    %106 = tpu.strided_load %arg15[%c0_178, %c0_179, %c0_180, %c0_181] {strides = array<i32: 1, 2, 1, 1>} : memref<2x8x4x28xf32, #tpu.memory_space<vmem>>, vector<2x4x4x28xf32>
    %c0_182 = arith.constant 0 : index
    %c1_183 = arith.constant 1 : index
    %c0_184 = arith.constant 0 : index
    %c0_185 = arith.constant 0 : index
    %107 = tpu.strided_load %arg15[%c0_182, %c1_183, %c0_184, %c0_185] {strides = array<i32: 1, 2, 1, 1>} : memref<2x8x4x28xf32, #tpu.memory_space<vmem>>, vector<2x4x4x28xf32>
    %108 = arith.maximumf %106, %107 : vector<2x4x4x28xf32>
    %c0_186 = arith.constant 0 : index
    %c0_187 = arith.constant 0 : index
    %109 = vector.load %arg8[%c0_186, %c0_187] : memref<1x6xf32, #tpu.memory_space<vmem>>, vector<1x6xf32>
    %110 = vector.shape_cast %109 : vector<1x6xf32> to vector<1x6xf32>
    %111 = vector.broadcast %110 : vector<1x6xf32> to vector<2x6xf32>
    %112 = vector.extract_strided_slice %108 {offsets = [0, 0, 0, 0], sizes = [2, 1, 1, 28], strides = [1, 1, 1, 1]} : vector<2x4x4x28xf32> to vector<2x1x1x28xf32>
    %113 = vector.shape_cast %112 : vector<2x1x1x28xf32> to vector<2x28xf32>
    %c0_188 = arith.constant 0 : index
    %c0_189 = arith.constant 0 : index
    %c0_190 = arith.constant 0 : index
    %c0_191 = arith.constant 0 : index
    %114 = vector.load %arg7[%c0_188, %c0_189, %c0_190, %c0_191] : memref<4x4x28x6xf32, #tpu.memory_space<vmem>>, vector<1x1x28x6xf32>
    %115 = vector.shape_cast %114 : vector<1x1x28x6xf32> to vector<28x6xf32>
    %cst_192 = arith.constant dense<0.000000e+00> : vector<2x6xf32>
    %116 = tpu.matmul %113, %115, %cst_192 {dimension_numbers = #tpu.dot_dimension_numbers<[1], [0], [0], [1], [0, 0, 1, 1], [], []>} : vector<2x28xf32>, vector<28x6xf32>, vector<2x6xf32> -> vector<2x6xf32>
    %117 = arith.addf %111, %116 : vector<2x6xf32>
    %118 = vector.extract_strided_slice %108 {offsets = [0, 0, 1, 0], sizes = [2, 1, 1, 28], strides = [1, 1, 1, 1]} : vector<2x4x4x28xf32> to vector<2x1x1x28xf32>
    %119 = vector.shape_cast %118 : vector<2x1x1x28xf32> to vector<2x28xf32>
    %c0_193 = arith.constant 0 : index
    %c1_194 = arith.constant 1 : index
    %c0_195 = arith.constant 0 : index
    %c0_196 = arith.constant 0 : index
    %120 = vector.load %arg7[%c0_193, %c1_194, %c0_195, %c0_196] : memref<4x4x28x6xf32, #tpu.memory_space<vmem>>, vector<1x1x28x6xf32>
    %121 = vector.shape_cast %120 : vector<1x1x28x6xf32> to vector<28x6xf32>
    %cst_197 = arith.constant dense<0.000000e+00> : vector<2x6xf32>
    %122 = tpu.matmul %119, %121, %cst_197 {dimension_numbers = #tpu.dot_dimension_numbers<[1], [0], [0], [1], [0, 0, 1, 1], [], []>} : vector<2x28xf32>, vector<28x6xf32>, vector<2x6xf32> -> vector<2x6xf32>
    %123 = arith.addf %117, %122 : vector<2x6xf32>
    %124 = vector.extract_strided_slice %108 {offsets = [0, 0, 2, 0], sizes = [2, 1, 1, 28], strides = [1, 1, 1, 1]} : vector<2x4x4x28xf32> to vector<2x1x1x28xf32>
    %125 = vector.shape_cast %124 : vector<2x1x1x28xf32> to vector<2x28xf32>
    %c0_198 = arith.constant 0 : index
    %c2_199 = arith.constant 2 : index
    %c0_200 = arith.constant 0 : index
    %c0_201 = arith.constant 0 : index
    %126 = vector.load %arg7[%c0_198, %c2_199, %c0_200, %c0_201] : memref<4x4x28x6xf32, #tpu.memory_space<vmem>>, vector<1x1x28x6xf32>
    %127 = vector.shape_cast %126 : vector<1x1x28x6xf32> to vector<28x6xf32>
    %cst_202 = arith.constant dense<0.000000e+00> : vector<2x6xf32>
    %128 = tpu.matmul %125, %127, %cst_202 {dimension_numbers = #tpu.dot_dimension_numbers<[1], [0], [0], [1], [0, 0, 1, 1], [], []>} : vector<2x28xf32>, vector<28x6xf32>, vector<2x6xf32> -> vector<2x6xf32>
    %129 = arith.addf %123, %128 : vector<2x6xf32>
    %130 = vector.extract_strided_slice %108 {offsets = [0, 0, 3, 0], sizes = [2, 1, 1, 28], strides = [1, 1, 1, 1]} : vector<2x4x4x28xf32> to vector<2x1x1x28xf32>
    %131 = vector.shape_cast %130 : vector<2x1x1x28xf32> to vector<2x28xf32>
    %c0_203 = arith.constant 0 : index
    %c3 = arith.constant 3 : index
    %c0_204 = arith.constant 0 : index
    %c0_205 = arith.constant 0 : index
    %132 = vector.load %arg7[%c0_203, %c3, %c0_204, %c0_205] : memref<4x4x28x6xf32, #tpu.memory_space<vmem>>, vector<1x1x28x6xf32>
    %133 = vector.shape_cast %132 : vector<1x1x28x6xf32> to vector<28x6xf32>
    %cst_206 = arith.constant dense<0.000000e+00> : vector<2x6xf32>
    %134 = tpu.matmul %131, %133, %cst_206 {dimension_numbers = #tpu.dot_dimension_numbers<[1], [0], [0], [1], [0, 0, 1, 1], [], []>} : vector<2x28xf32>, vector<28x6xf32>, vector<2x6xf32> -> vector<2x6xf32>
    %135 = arith.addf %129, %134 : vector<2x6xf32>
    %136 = vector.extract_strided_slice %108 {offsets = [0, 1, 0, 0], sizes = [2, 1, 1, 28], strides = [1, 1, 1, 1]} : vector<2x4x4x28xf32> to vector<2x1x1x28xf32>
    %137 = vector.shape_cast %136 : vector<2x1x1x28xf32> to vector<2x28xf32>
    %c1_207 = arith.constant 1 : index
    %c0_208 = arith.constant 0 : index
    %c0_209 = arith.constant 0 : index
    %c0_210 = arith.constant 0 : index
    %138 = vector.load %arg7[%c1_207, %c0_208, %c0_209, %c0_210] : memref<4x4x28x6xf32, #tpu.memory_space<vmem>>, vector<1x1x28x6xf32>
    %139 = vector.shape_cast %138 : vector<1x1x28x6xf32> to vector<28x6xf32>
    %cst_211 = arith.constant dense<0.000000e+00> : vector<2x6xf32>
    %140 = tpu.matmul %137, %139, %cst_211 {dimension_numbers = #tpu.dot_dimension_numbers<[1], [0], [0], [1], [0, 0, 1, 1], [], []>} : vector<2x28xf32>, vector<28x6xf32>, vector<2x6xf32> -> vector<2x6xf32>
    %141 = arith.addf %135, %140 : vector<2x6xf32>
    %142 = vector.extract_strided_slice %108 {offsets = [0, 1, 1, 0], sizes = [2, 1, 1, 28], strides = [1, 1, 1, 1]} : vector<2x4x4x28xf32> to vector<2x1x1x28xf32>
    %143 = vector.shape_cast %142 : vector<2x1x1x28xf32> to vector<2x28xf32>
    %c1_212 = arith.constant 1 : index
    %c1_213 = arith.constant 1 : index
    %c0_214 = arith.constant 0 : index
    %c0_215 = arith.constant 0 : index
    %144 = vector.load %arg7[%c1_212, %c1_213, %c0_214, %c0_215] : memref<4x4x28x6xf32, #tpu.memory_space<vmem>>, vector<1x1x28x6xf32>
    %145 = vector.shape_cast %144 : vector<1x1x28x6xf32> to vector<28x6xf32>
    %cst_216 = arith.constant dense<0.000000e+00> : vector<2x6xf32>
    %146 = tpu.matmul %143, %145, %cst_216 {dimension_numbers = #tpu.dot_dimension_numbers<[1], [0], [0], [1], [0, 0, 1, 1], [], []>} : vector<2x28xf32>, vector<28x6xf32>, vector<2x6xf32> -> vector<2x6xf32>
    %147 = arith.addf %141, %146 : vector<2x6xf32>
    %148 = vector.extract_strided_slice %108 {offsets = [0, 1, 2, 0], sizes = [2, 1, 1, 28], strides = [1, 1, 1, 1]} : vector<2x4x4x28xf32> to vector<2x1x1x28xf32>
    %149 = vector.shape_cast %148 : vector<2x1x1x28xf32> to vector<2x28xf32>
    %c1_217 = arith.constant 1 : index
    %c2_218 = arith.constant 2 : index
    %c0_219 = arith.constant 0 : index
    %c0_220 = arith.constant 0 : index
    %150 = vector.load %arg7[%c1_217, %c2_218, %c0_219, %c0_220] : memref<4x4x28x6xf32, #tpu.memory_space<vmem>>, vector<1x1x28x6xf32>
    %151 = vector.shape_cast %150 : vector<1x1x28x6xf32> to vector<28x6xf32>
    %cst_221 = arith.constant dense<0.000000e+00> : vector<2x6xf32>
    %152 = tpu.matmul %149, %151, %cst_221 {dimension_numbers = #tpu.dot_dimension_numbers<[1], [0], [0], [1], [0, 0, 1, 1], [], []>} : vector<2x28xf32>, vector<28x6xf32>, vector<2x6xf32> -> vector<2x6xf32>
    %153 = arith.addf %147, %152 : vector<2x6xf32>
    %154 = vector.extract_strided_slice %108 {offsets = [0, 1, 3, 0], sizes = [2, 1, 1, 28], strides = [1, 1, 1, 1]} : vector<2x4x4x28xf32> to vector<2x1x1x28xf32>
    %155 = vector.shape_cast %154 : vector<2x1x1x28xf32> to vector<2x28xf32>
    %c1_222 = arith.constant 1 : index
    %c3_223 = arith.constant 3 : index
    %c0_224 = arith.constant 0 : index
    %c0_225 = arith.constant 0 : index
    %156 = vector.load %arg7[%c1_222, %c3_223, %c0_224, %c0_225] : memref<4x4x28x6xf32, #tpu.memory_space<vmem>>, vector<1x1x28x6xf32>
    %157 = vector.shape_cast %156 : vector<1x1x28x6xf32> to vector<28x6xf32>
    %cst_226 = arith.constant dense<0.000000e+00> : vector<2x6xf32>
    %158 = tpu.matmul %155, %157, %cst_226 {dimension_numbers = #tpu.dot_dimension_numbers<[1], [0], [0], [1], [0, 0, 1, 1], [], []>} : vector<2x28xf32>, vector<28x6xf32>, vector<2x6xf32> -> vector<2x6xf32>
    %159 = arith.addf %153, %158 : vector<2x6xf32>
    %160 = vector.extract_strided_slice %108 {offsets = [0, 2, 0, 0], sizes = [2, 1, 1, 28], strides = [1, 1, 1, 1]} : vector<2x4x4x28xf32> to vector<2x1x1x28xf32>
    %161 = vector.shape_cast %160 : vector<2x1x1x28xf32> to vector<2x28xf32>
    %c2_227 = arith.constant 2 : index
    %c0_228 = arith.constant 0 : index
    %c0_229 = arith.constant 0 : index
    %c0_230 = arith.constant 0 : index
    %162 = vector.load %arg7[%c2_227, %c0_228, %c0_229, %c0_230] : memref<4x4x28x6xf32, #tpu.memory_space<vmem>>, vector<1x1x28x6xf32>
    %163 = vector.shape_cast %162 : vector<1x1x28x6xf32> to vector<28x6xf32>
    %cst_231 = arith.constant dense<0.000000e+00> : vector<2x6xf32>
    %164 = tpu.matmul %161, %163, %cst_231 {dimension_numbers = #tpu.dot_dimension_numbers<[1], [0], [0], [1], [0, 0, 1, 1], [], []>} : vector<2x28xf32>, vector<28x6xf32>, vector<2x6xf32> -> vector<2x6xf32>
    %165 = arith.addf %159, %164 : vector<2x6xf32>
    %166 = vector.extract_strided_slice %108 {offsets = [0, 2, 1, 0], sizes = [2, 1, 1, 28], strides = [1, 1, 1, 1]} : vector<2x4x4x28xf32> to vector<2x1x1x28xf32>
    %167 = vector.shape_cast %166 : vector<2x1x1x28xf32> to vector<2x28xf32>
    %c2_232 = arith.constant 2 : index
    %c1_233 = arith.constant 1 : index
    %c0_234 = arith.constant 0 : index
    %c0_235 = arith.constant 0 : index
    %168 = vector.load %arg7[%c2_232, %c1_233, %c0_234, %c0_235] : memref<4x4x28x6xf32, #tpu.memory_space<vmem>>, vector<1x1x28x6xf32>
    %169 = vector.shape_cast %168 : vector<1x1x28x6xf32> to vector<28x6xf32>
    %cst_236 = arith.constant dense<0.000000e+00> : vector<2x6xf32>
    %170 = tpu.matmul %167, %169, %cst_236 {dimension_numbers = #tpu.dot_dimension_numbers<[1], [0], [0], [1], [0, 0, 1, 1], [], []>} : vector<2x28xf32>, vector<28x6xf32>, vector<2x6xf32> -> vector<2x6xf32>
    %171 = arith.addf %165, %170 : vector<2x6xf32>
    %172 = vector.extract_strided_slice %108 {offsets = [0, 2, 2, 0], sizes = [2, 1, 1, 28], strides = [1, 1, 1, 1]} : vector<2x4x4x28xf32> to vector<2x1x1x28xf32>
    %173 = vector.shape_cast %172 : vector<2x1x1x28xf32> to vector<2x28xf32>
    %c2_237 = arith.constant 2 : index
    %c2_238 = arith.constant 2 : index
    %c0_239 = arith.constant 0 : index
    %c0_240 = arith.constant 0 : index
    %174 = vector.load %arg7[%c2_237, %c2_238, %c0_239, %c0_240] : memref<4x4x28x6xf32, #tpu.memory_space<vmem>>, vector<1x1x28x6xf32>
    %175 = vector.shape_cast %174 : vector<1x1x28x6xf32> to vector<28x6xf32>
    %cst_241 = arith.constant dense<0.000000e+00> : vector<2x6xf32>
    %176 = tpu.matmul %173, %175, %cst_241 {dimension_numbers = #tpu.dot_dimension_numbers<[1], [0], [0], [1], [0, 0, 1, 1], [], []>} : vector<2x28xf32>, vector<28x6xf32>, vector<2x6xf32> -> vector<2x6xf32>
    %177 = arith.addf %171, %176 : vector<2x6xf32>
    %178 = vector.extract_strided_slice %108 {offsets = [0, 2, 3, 0], sizes = [2, 1, 1, 28], strides = [1, 1, 1, 1]} : vector<2x4x4x28xf32> to vector<2x1x1x28xf32>
    %179 = vector.shape_cast %178 : vector<2x1x1x28xf32> to vector<2x28xf32>
    %c2_242 = arith.constant 2 : index
    %c3_243 = arith.constant 3 : index
    %c0_244 = arith.constant 0 : index
    %c0_245 = arith.constant 0 : index
    %180 = vector.load %arg7[%c2_242, %c3_243, %c0_244, %c0_245] : memref<4x4x28x6xf32, #tpu.memory_space<vmem>>, vector<1x1x28x6xf32>
    %181 = vector.shape_cast %180 : vector<1x1x28x6xf32> to vector<28x6xf32>
    %cst_246 = arith.constant dense<0.000000e+00> : vector<2x6xf32>
    %182 = tpu.matmul %179, %181, %cst_246 {dimension_numbers = #tpu.dot_dimension_numbers<[1], [0], [0], [1], [0, 0, 1, 1], [], []>} : vector<2x28xf32>, vector<28x6xf32>, vector<2x6xf32> -> vector<2x6xf32>
    %183 = arith.addf %177, %182 : vector<2x6xf32>
    %184 = vector.extract_strided_slice %108 {offsets = [0, 3, 0, 0], sizes = [2, 1, 1, 28], strides = [1, 1, 1, 1]} : vector<2x4x4x28xf32> to vector<2x1x1x28xf32>
    %185 = vector.shape_cast %184 : vector<2x1x1x28xf32> to vector<2x28xf32>
    %c3_247 = arith.constant 3 : index
    %c0_248 = arith.constant 0 : index
    %c0_249 = arith.constant 0 : index
    %c0_250 = arith.constant 0 : index
    %186 = vector.load %arg7[%c3_247, %c0_248, %c0_249, %c0_250] : memref<4x4x28x6xf32, #tpu.memory_space<vmem>>, vector<1x1x28x6xf32>
    %187 = vector.shape_cast %186 : vector<1x1x28x6xf32> to vector<28x6xf32>
    %cst_251 = arith.constant dense<0.000000e+00> : vector<2x6xf32>
    %188 = tpu.matmul %185, %187, %cst_251 {dimension_numbers = #tpu.dot_dimension_numbers<[1], [0], [0], [1], [0, 0, 1, 1], [], []>} : vector<2x28xf32>, vector<28x6xf32>, vector<2x6xf32> -> vector<2x6xf32>
    %189 = arith.addf %183, %188 : vector<2x6xf32>
    %190 = vector.extract_strided_slice %108 {offsets = [0, 3, 1, 0], sizes = [2, 1, 1, 28], strides = [1, 1, 1, 1]} : vector<2x4x4x28xf32> to vector<2x1x1x28xf32>
    %191 = vector.shape_cast %190 : vector<2x1x1x28xf32> to vector<2x28xf32>
    %c3_252 = arith.constant 3 : index
    %c1_253 = arith.constant 1 : index
    %c0_254 = arith.constant 0 : index
    %c0_255 = arith.constant 0 : index
    %192 = vector.load %arg7[%c3_252, %c1_253, %c0_254, %c0_255] : memref<4x4x28x6xf32, #tpu.memory_space<vmem>>, vector<1x1x28x6xf32>
    %193 = vector.shape_cast %192 : vector<1x1x28x6xf32> to vector<28x6xf32>
    %cst_256 = arith.constant dense<0.000000e+00> : vector<2x6xf32>
    %194 = tpu.matmul %191, %193, %cst_256 {dimension_numbers = #tpu.dot_dimension_numbers<[1], [0], [0], [1], [0, 0, 1, 1], [], []>} : vector<2x28xf32>, vector<28x6xf32>, vector<2x6xf32> -> vector<2x6xf32>
    %195 = arith.addf %189, %194 : vector<2x6xf32>
    %196 = vector.extract_strided_slice %108 {offsets = [0, 3, 2, 0], sizes = [2, 1, 1, 28], strides = [1, 1, 1, 1]} : vector<2x4x4x28xf32> to vector<2x1x1x28xf32>
    %197 = vector.shape_cast %196 : vector<2x1x1x28xf32> to vector<2x28xf32>
    %c3_257 = arith.constant 3 : index
    %c2_258 = arith.constant 2 : index
    %c0_259 = arith.constant 0 : index
    %c0_260 = arith.constant 0 : index
    %198 = vector.load %arg7[%c3_257, %c2_258, %c0_259, %c0_260] : memref<4x4x28x6xf32, #tpu.memory_space<vmem>>, vector<1x1x28x6xf32>
    %199 = vector.shape_cast %198 : vector<1x1x28x6xf32> to vector<28x6xf32>
    %cst_261 = arith.constant dense<0.000000e+00> : vector<2x6xf32>
    %200 = tpu.matmul %197, %199, %cst_261 {dimension_numbers = #tpu.dot_dimension_numbers<[1], [0], [0], [1], [0, 0, 1, 1], [], []>} : vector<2x28xf32>, vector<28x6xf32>, vector<2x6xf32> -> vector<2x6xf32>
    %201 = arith.addf %195, %200 : vector<2x6xf32>
    %202 = vector.extract_strided_slice %108 {offsets = [0, 3, 3, 0], sizes = [2, 1, 1, 28], strides = [1, 1, 1, 1]} : vector<2x4x4x28xf32> to vector<2x1x1x28xf32>
    %203 = vector.shape_cast %202 : vector<2x1x1x28xf32> to vector<2x28xf32>
    %c3_262 = arith.constant 3 : index
    %c3_263 = arith.constant 3 : index
    %c0_264 = arith.constant 0 : index
    %c0_265 = arith.constant 0 : index
    %204 = vector.load %arg7[%c3_262, %c3_263, %c0_264, %c0_265] : memref<4x4x28x6xf32, #tpu.memory_space<vmem>>, vector<1x1x28x6xf32>
    %205 = vector.shape_cast %204 : vector<1x1x28x6xf32> to vector<28x6xf32>
    %cst_266 = arith.constant dense<0.000000e+00> : vector<2x6xf32>
    %206 = tpu.matmul %203, %205, %cst_266 {dimension_numbers = #tpu.dot_dimension_numbers<[1], [0], [0], [1], [0, 0, 1, 1], [], []>} : vector<2x28xf32>, vector<28x6xf32>, vector<2x6xf32> -> vector<2x6xf32>
    %207 = arith.addf %201, %206 : vector<2x6xf32>
    %cst_267 = arith.constant dense<0xFF800000> : vector<2xf32>
    %208 = vector.multi_reduction <maximumf>, %207, %cst_267 [1] : vector<2x6xf32> to vector<2xf32>
    %209 = vector.shape_cast %208 : vector<2xf32> to vector<2x1xf32>
    %210 = vector.broadcast %209 : vector<2x1xf32> to vector<2x6xf32>
    %211 = arith.subf %207, %210 : vector<2x6xf32>
    %212 = math.exp %211 : vector<2x6xf32>
    %cst_268 = arith.constant dense<0.000000e+00> : vector<2xf32>
    %213 = vector.multi_reduction <add>, %212, %cst_268 [1] : vector<2x6xf32> to vector<2xf32>
    %214 = vector.shape_cast %213 : vector<2xf32> to vector<2x1xf32>
    %215 = math.log %214 : vector<2x1xf32>
    %216 = vector.broadcast %215 : vector<2x1xf32> to vector<2x6xf32>
    %217 = arith.subf %211, %216 : vector<2x6xf32>
    %c0_269 = arith.constant 0 : index
    %c0_270 = arith.constant 0 : index
    %218 = vector.load %arg9[%c0_269, %c0_270] : memref<2x6xf32, #tpu.memory_space<vmem>>, vector<2x6xf32>
    tpu.vector_store %arg9[%c0_269, %c0_270], %217 {strides = array<i32>} : memref<2x6xf32, #tpu.memory_space<vmem>>, vector<2x6xf32>,
    return
  }
}

</mosaic_0001>

<bundles_post_ra>
// kernel: model_e_forward.1
= control target key start
LH: loop header
LB: loop body
LE: loop exit
PB: predicated region body
PF: predicated region fallthrough
CT: control target
= control target key end

     0   :  { %vm104_vm0 = vcmask 31744   ;;  %vm107_vm1 = vcmask 25600   ;;  %v14267_v2 = vmov 0.0   ;;  %s14257_s0 = inlined_call_operand.vmem [shape: f32[2,16,16,4], index: 0, kind: input, shape index: {}]   ;;  %s14258_s1 = inlined_call_operand.vmem [shape: f32[36,8], index: 1, kind: input, shape index: {}]   ;;  %s14259_s2 = inlined_call_operand.vmem [shape: f32[1,8], index: 2, kind: input, shape index: {}]   ;;  %s14260_s3 = inlined_call_operand.vmem [shape: f32[1,8], index: 3, kind: input, shape index: {}]   ;;  %s14261_s4 = inlined_call_operand.vmem [shape: f32[108,16], index: 4, kind: input, shape index: {}]   ;;  %s14262_s5 = inlined_call_operand.vmem [shape: f32[1,16], index: 5, kind: input, shape index: {}]   ;;  %s14263_s6 = inlined_call_operand.vmem [shape: f32[1,16], index: 6, kind: input, shape index: {}]   ;;  %s14264_s7 = inlined_call_operand.vmem [shape: f32[4,4,28,6], index: 7, kind: input, shape index: {}]   ;;  %s14265_s8 = inlined_call_operand.vmem [shape: f32[1,6], index: 8, kind: input, shape index: {}]   ;;  %s14266_s9 = inlined_call_operand.hbm [shape: f32[2,6], index: 9, kind: output, shape index: {}]  }
   0x1   :  { %v9172_v0 = vld [vmem:[%s14257_s0] sm:$0xff]  ;;  %v9177_v1 = vld [vmem:[%s14257_s0 + $0x8] sm:$0xff]  ;;  %105 = vst.msk [vmem:[#allocation2] sm:$0xff] %vm104_vm0, %v14267_v2  ;;  %106 = vst.msk [vmem:[#allocation2 + $0x8] sm:$0xff] %vm104_vm0, %v14267_v2 }
   0x2   :  { %109 = vst.msk [vmem:[#allocation2 + $0x18] sm:$0xff] %vm104_vm0, %v14267_v2  ;;  %110 = vst.msk [vmem:[#allocation2 + $0x20] sm:$0xff] %vm104_vm0, %v14267_v2  ;;  %v35_v3 = vld [vmem:[%s14257_s0 + $0x10] sm:$0xff]  ;;  %v36_v4 = vld [vmem:[%s14257_s0 + $0x18] sm:$0xff] }
   0x3   :  { %112 = vst.msk [vmem:[#allocation2 + $0x30] sm:$0xff] %vm104_vm0, %v14267_v2  ;;  %113 = vst.msk [vmem:[#allocation2 + $0x38] sm:$0xff] %vm104_vm0, %v14267_v2  ;;  %v37_v5 = vld [vmem:[%s14257_s0 + $0x20] sm:$0xff]  ;;  %v38_v6 = vld [vmem:[%s14257_s0 + $0x28] sm:$0xff] }
   0x4   :  { %115 = vst.msk [vmem:[#allocation2 + $0x48] sm:$0xff] %vm104_vm0, %v14267_v2  ;;  %116 = vst.msk [vmem:[#allocation2 + $0x50] sm:$0xff] %vm104_vm0, %v14267_v2  ;;  %v39_v7 = vld [vmem:[%s14257_s0 + $0x30] sm:$0xff]  ;;  %v40_v8 = vld [vmem:[%s14257_s0 + $0x38] sm:$0xff] }
   0x5   :  { %118 = vst.msk [vmem:[#allocation2 + $0x60] sm:$0xff] %vm104_vm0, %v14267_v2  ;;  %119 = vst.msk [vmem:[#allocation2 + $0x68] sm:$0xff] %vm104_vm0, %v14267_v2  ;;  %v41_v9 = vld [vmem:[%s14257_s0 + $0x40] sm:$0xff]  ;;  %v42_v10 = vld [vmem:[%s14257_s0 + $0x48] sm:$0xff] }
   0x6   :  { %121 = vst.msk [vmem:[#allocation2 + $0x78] sm:$0xff] %vm104_vm0, %v14267_v2  ;;  %122 = vst.msk [vmem:[#allocation2 + $0x80] sm:$0xff] %vm104_vm0, %v14267_v2 }
   0x7   :  { %124 = vst.msk [vmem:[#allocation2 + $0x90] sm:$0xff] %vm104_vm0, %v14267_v2  ;;  %125 = vst.msk [vmem:[#allocation2 + $0x98] sm:$0xff] %vm104_vm0, %v14267_v2 }
   0x8   :  { %127 = vst.msk [vmem:[#allocation2 + $0xa8] sm:$0xff] %vm104_vm0, %v14267_v2  ;;  %128 = vst.msk [vmem:[#allocation2 + $0xb0] sm:$0xff] %vm104_vm0, %v14267_v2 }
   0x9   :  { %130 = vst.msk [vmem:[#allocation2 + $0xc0] sm:$0xff] %vm104_vm0, %v14267_v2  ;;  %131 = vst.msk [vmem:[#allocation2 + $0xc8] sm:$0xff] %vm104_vm0, %v14267_v2 }
   0xa   :  { %133 = vst.msk [vmem:[#allocation2 + $0xd8] sm:$0xff] %vm104_vm0, %v14267_v2  ;;  %134 = vst.msk [vmem:[#allocation2 + $0xe0] sm:$0xff] %vm104_vm0, %v14267_v2 }
   0xb   :  { %136 = vst.msk [vmem:[#allocation2 + $0xf0] sm:$0xff] %vm104_vm0, %v14267_v2  ;;  %137 = vst.msk [vmem:[#allocation2 + $0xf8] sm:$0xff] %vm104_vm0, %v14267_v2 }
   0xc   :  { %139 = vst.msk [vmem:[#allocation2 + $0x108] sm:$0xff] %vm104_vm0, %v14267_v2  ;;  %140 = vst.msk [vmem:[#allocation2 + $0x110] sm:$0xff] %vm104_vm0, %v14267_v2 }
   0xd   :  { %142 = vst.msk [vmem:[#allocation2 + $0x120] sm:$0xff] %vm104_vm0, %v14267_v2  ;;  %143 = vst.msk [vmem:[#allocation2 + $0x128] sm:$0xff] %vm104_vm0, %v14267_v2 }
   0xe   :  { %145 = vst.msk [vmem:[#allocation2 + $0x138] sm:$0xff] %vm104_vm0, %v14267_v2  ;;  %146 = vst.msk [vmem:[#allocation2 + $0x140] sm:$0xff] %vm104_vm0, %v14267_v2 }
   0xf   :  { %148 = vst.msk [vmem:[#allocation2 + $0x150] sm:$0xff] %vm104_vm0, %v14267_v2  ;;  %149 = vst.msk [vmem:[#allocation2 + $0x158] sm:$0xff] %vm104_vm0, %v14267_v2 }
  0x10   :  { %151 = vst.msk [vmem:[#allocation2 + $0x168] sm:$0xff] %vm104_vm0, %v14267_v2  ;;  %152 = vst.msk [vmem:[#allocation2 + $0x170] sm:$0xff] %vm104_vm0, %v14267_v2 }
  0x11   :  { %154 = vst.msk [vmem:[#allocation2 + $0x180] sm:$0xff] %vm104_vm0, %v14267_v2  ;;  %155 = vst.msk [vmem:[#allocation2 + $0x188] sm:$0xff] %vm104_vm0, %v14267_v2 }
  0x12   :  { %157 = vst.msk [vmem:[#allocation2 + $0x198] sm:$0xff] %vm104_vm0, %v14267_v2  ;;  %158 = vst.msk [vmem:[#allocation2 + $0x1a0] sm:$0xff] %vm104_vm0, %v14267_v2 }
  0x13   :  { %160 = vst.msk [vmem:[#allocation2 + $0x1b0] sm:$0xff] %vm104_vm0, %v14267_v2  ;;  %161 = vst.msk [vmem:[#allocation2 + $0x1b8] sm:$0xff] %vm104_vm0, %v14267_v2 }
  0x14   :  { %163 = vst.msk [vmem:[#allocation2 + $0x1c8] sm:$0xff] %vm104_vm0, %v14267_v2  ;;  %164 = vst.msk [vmem:[#allocation2 + $0x1d0] sm:$0xff] %vm104_vm0, %v14267_v2 }
  0x15   :  { %166 = vst.msk [vmem:[#allocation2 + $0x1e0] sm:$0xff] %vm104_vm0, %v14267_v2  ;;  %167 = vst.msk [vmem:[#allocation2 + $0x1e8] sm:$0xff] %vm104_vm0, %v14267_v2 }
  0x16   :  { %169 = vst.msk [vmem:[#allocation2 + $0x1f8] sm:$0xff] %vm104_vm0, %v14267_v2  ;;  %170 = vst.msk [vmem:[#allocation2 + $0x200] sm:$0xff] %vm104_vm0, %v14267_v2 }
  0x17   :  { %172 = vst.msk [vmem:[#allocation2 + $0x210] sm:$0xff] %vm104_vm0, %v14267_v2  ;;  %173 = vst.msk [vmem:[#allocation2 + $0x218] sm:$0xff] %vm104_vm0, %v14267_v2 }
  0x18   :  { %175 = vst.msk [vmem:[#allocation2 + $0x228] sm:$0xff] %vm104_vm0, %v14267_v2  ;;  %176 = vst.msk [vmem:[#allocation2 + $0x230] sm:$0xff] %vm104_vm0, %v14267_v2 }
  0x19   :  { %178 = vst.msk [vmem:[#allocation2 + $0x240] sm:$0xff] %vm104_vm0, %v14267_v2  ;;  %179 = vst.msk [vmem:[#allocation2 + $0x248] sm:$0xff] %vm104_vm0, %v14267_v2 }
  0x1a   :  { %181 = vst.msk [vmem:[#allocation2 + $0x258] sm:$0xff] %vm104_vm0, %v14267_v2  ;;  %182 = vst.msk [vmem:[#allocation2 + $0x260] sm:$0xff] %vm104_vm0, %v14267_v2 }
  0x1b   :  { %184 = vst.msk [vmem:[#allocation2 + $0x270] sm:$0xff] %vm104_vm0, %v14267_v2  ;;  %185 = vst.msk [vmem:[#allocation2 + $0x278] sm:$0xff] %vm104_vm0, %v14267_v2 }
  0x1c   :  { %187 = vst.msk [vmem:[#allocation2 + $0x288] sm:$0xff] %vm104_vm0, %v14267_v2  ;;  %188 = vst.msk [vmem:[#allocation2 + $0x290] sm:$0xff] %vm104_vm0, %v14267_v2 }
  0x1d   :  { %190 = vst.msk [vmem:[#allocation2 + $0x2a0] sm:$0xff] %vm104_vm0, %v14267_v2  ;;  %191 = vst.msk [vmem:[#allocation2 + $0x2a8] sm:$0xff] %vm104_vm0, %v14267_v2 }
  0x1e   :  { %193 = vst.msk [vmem:[#allocation2 + $0x2b8] sm:$0xff] %vm104_vm0, %v14267_v2  ;;  %194 = vst.msk [vmem:[#allocation2 + $0x2c0] sm:$0xff] %vm104_vm0, %v14267_v2 }
  0x1f   :  { %196 = vst.msk [vmem:[#allocation2 + $0x2d0] sm:$0xff] %vm104_vm0, %v14267_v2  ;;  %197 = vst.msk [vmem:[#allocation2 + $0x2d8] sm:$0xff] %vm104_vm0, %v14267_v2 }
  0x20   :  { %199 = vst.msk [vmem:[#allocation2 + $0x2e8] sm:$0xff] %vm104_vm0, %v14267_v2  ;;  %200 = vst.msk [vmem:[#allocation2 + $0x2f0] sm:$0xff] %vm104_vm0, %v14267_v2 }
  0x21   :  { %202 = vst.msk [vmem:[#allocation2 + $0x300] sm:$0xff] %vm104_vm0, %v14267_v2  ;;  %203 = vst.msk [vmem:[#allocation2 + $0x308] sm:$0xff] %vm104_vm0, %v14267_v2 }
  0x22   :  { %205 = vst.msk [vmem:[#allocation2 + $0x318] sm:$0xff] %vm104_vm0, %v14267_v2  ;;  %206 = vst.msk [vmem:[#allocation2 + $0x320] sm:$0xff] %vm104_vm0, %v14267_v2 }
  0x23   :  { %208 = vst.msk [vmem:[#allocation2 + $0x330] sm:$0xff] %vm104_vm0, %v14267_v2  ;;  %209 = vst.msk [vmem:[#allocation2 + $0x338] sm:$0xff] %vm104_vm0, %v14267_v2 }
  0x24   :  { %211 = vst.msk [vmem:[#allocation2 + $0x348] sm:$0xff] %vm104_vm0, %v14267_v2  ;;  %212 = vst.msk [vmem:[#allocation2 + $0x350] sm:$0xff] %vm104_vm0, %v14267_v2 }
  0x25   :  { %108 = vst.msk [vmem:[#allocation2 + $0x10] sm:$0x3] %vm107_vm1, %v14267_v2  ;;  %111 = vst.msk [vmem:[#allocation2 + $0x28] sm:$0x3] %vm107_vm1, %v14267_v2 }
  0x26   :  { %114 = vst.msk [vmem:[#allocation2 + $0x40] sm:$0x3] %vm107_vm1, %v14267_v2  ;;  %117 = vst.msk [vmem:[#allocation2 + $0x58] sm:$0x3] %vm107_vm1, %v14267_v2 }
  0x27   :  { %120 = vst.msk [vmem:[#allocation2 + $0x70] sm:$0x3] %vm107_vm1, %v14267_v2  ;;  %123 = vst.msk [vmem:[#allocation2 + $0x88] sm:$0x3] %vm107_vm1, %v14267_v2 }
  0x28   :  { %126 = vst.msk [vmem:[#allocation2 + $0xa0] sm:$0x3] %vm107_vm1, %v14267_v2  ;;  %129 = vst.msk [vmem:[#allocation2 + $0xb8] sm:$0x3] %vm107_vm1, %v14267_v2 }
  0x29   :  { %132 = vst.msk [vmem:[#allocation2 + $0xd0] sm:$0x3] %vm107_vm1, %v14267_v2  ;;  %135 = vst.msk [vmem:[#allocation2 + $0xe8] sm:$0x3] %vm107_vm1, %v14267_v2 }
  0x2a   :  { %138 = vst.msk [vmem:[#allocation2 + $0x100] sm:$0x3] %vm107_vm1, %v14267_v2  ;;  %141 = vst.msk [vmem:[#allocation2 + $0x118] sm:$0x3] %vm107_vm1, %v14267_v2 }
  0x2b   :  { %144 = vst.msk [vmem:[#allocation2 + $0x130] sm:$0x3] %vm107_vm1, %v14267_v2  ;;  %147 = vst.msk [vmem:[#allocation2 + $0x148] sm:$0x3] %vm107_vm1, %v14267_v2 }
  0x2c   :  { %150 = vst.msk [vmem:[#allocation2 + $0x160] sm:$0x3] %vm107_vm1, %v14267_v2  ;;  %153 = vst.msk [vmem:[#allocation2 + $0x178] sm:$0x3] %vm107_vm1, %v14267_v2 }
  0x2d   :  { %156 = vst.msk [vmem:[#allocation2 + $0x190] sm:$0x3] %vm107_vm1, %v14267_v2  ;;  %159 = vst.msk [vmem:[#allocation2 + $0x1a8] sm:$0x3] %vm107_vm1, %v14267_v2 }
  0x2e   :  { %162 = vst.msk [vmem:[#allocation2 + $0x1c0] sm:$0x3] %vm107_vm1, %v14267_v2  ;;  %165 = vst.msk [vmem:[#allocation2 + $0x1d8] sm:$0x3] %vm107_vm1, %v14267_v2 }
  0x2f   :  { %168 = vst.msk [vmem:[#allocation2 + $0x1f0] sm:$0x3] %vm107_vm1, %v14267_v2  ;;  %171 = vst.msk [vmem:[#allocation2 + $0x208] sm:$0x3] %vm107_vm1, %v14267_v2 }
  0x30   :  { %174 = vst.msk [vmem:[#allocation2 + $0x220] sm:$0x3] %vm107_vm1, %v14267_v2  ;;  %177 = vst.msk [vmem:[#allocation2 + $0x238] sm:$0x3] %vm107_vm1, %v14267_v2 }
  0x31   :  { %180 = vst.msk [vmem:[#allocation2 + $0x250] sm:$0x3] %vm107_vm1, %v14267_v2  ;;  %183 = vst.msk [vmem:[#allocation2 + $0x268] sm:$0x3] %vm107_vm1, %v14267_v2 }
  0x32   :  { %186 = vst.msk [vmem:[#allocation2 + $0x280] sm:$0x3] %vm107_vm1, %v14267_v2  ;;  %189 = vst.msk [vmem:[#allocation2 + $0x298] sm:$0x3] %vm107_vm1, %v14267_v2 }
  0x33   :  { %192 = vst.msk [vmem:[#allocation2 + $0x2b0] sm:$0x3] %vm107_vm1, %v14267_v2  ;;  %195 = vst.msk [vmem:[#allocation2 + $0x2c8] sm:$0x3] %vm107_vm1, %v14267_v2 }
  0x34   :  { %198 = vst.msk [vmem:[#allocation2 + $0x2e0] sm:$0x3] %vm107_vm1, %v14267_v2  ;;  %201 = vst.msk [vmem:[#allocation2 + $0x2f8] sm:$0x3] %vm107_vm1, %v14267_v2 }
  0x35   :  { %204 = vst.msk [vmem:[#allocation2 + $0x310] sm:$0x3] %vm107_vm1, %v14267_v2  ;;  %207 = vst.msk [vmem:[#allocation2 + $0x328] sm:$0x3] %vm107_vm1, %v14267_v2 }
  0x36   :  { %210 = vst.msk [vmem:[#allocation2 + $0x340] sm:$0x3] %vm107_vm1, %v14267_v2  ;;  %213 = vst.msk [vmem:[#allocation2 + $0x358] sm:$0x3] %vm107_vm1, %v14267_v2 }
  0x37   :  { %215 = vst.msk [vmem:[#allocation2 + $0x19] sm:$0xff] %vm104_vm0, %v9172_v0  ;;  %216 = vst.msk [vmem:[#allocation2 + $0x21] sm:$0xff] %vm104_vm0, %v9177_v1 }
  0x38   :  { %217 = vst.msk [vmem:[#allocation2 + $0x31] sm:$0xff] %vm104_vm0, %v35_v3  ;;  %218 = vst.msk [vmem:[#allocation2 + $0x39] sm:$0xff] %vm104_vm0, %v36_v4 }
  0x39   :  { %219 = vst.msk [vmem:[#allocation2 + $0x49] sm:$0xff] %vm104_vm0, %v37_v5  ;;  %220 = vst.msk [vmem:[#allocation2 + $0x51] sm:$0xff] %vm104_vm0, %v38_v6 }
  0x3a   :  { %221 = vst.msk [vmem:[#allocation2 + $0x61] sm:$0xff] %vm104_vm0, %v39_v7  ;;  %222 = vst.msk [vmem:[#allocation2 + $0x69] sm:$0xff] %vm104_vm0, %v40_v8 }
  0x3b   :  { %14 = vsyncpa [#allocation9], 0  ;;  %223 = vst.msk [vmem:[#allocation2 + $0x79] sm:$0xff] %vm104_vm0, %v41_v9  ;;  %v343_v11 = vld [vmem:[#allocation2 + $0x1] sm:$0xff]  ;;  %s9101_s29 = smov 4   ;;  %v344_v13 = vld [vmem:[#allocation2 + $0x9] sm:$0xff] }
  0x3c   :  { %224 = vst.msk [vmem:[#allocation2 + $0x81] sm:$0xff] %vm104_vm0, %v42_v10  ;;  %920 = vrot.lane.b32.xlu0 %v343_v11, %s9101_s29  ;;  %vm3033_vm2 = vcmask 97280   ;;  %v43_v21 = vld [vmem:[%s14257_s0 + $0x50] sm:$0xff]  ;;  %v407_v24 = vld [vmem:[#allocation2 + $0x2] sm:$0xff]  ;;  %v44_v26 = vld [vmem:[%s14257_s0 + $0x58] sm:$0xff]  ;;  %s9102_s13 = smov 8  }
  0x3d   :  { %5189 = vst.msk [vmem:[#allocation5] sm:$0xff] %vm3033_vm2, %v14267_v2  ;;  %5192 = vst.msk [vmem:[#allocation5 + $0x10] sm:$0xff] %vm3033_vm2, %v14267_v2  ;;  %v408_v25 = vld [vmem:[#allocation2 + $0xa] sm:$0xff]  ;;  %s9103_s14 = smov 12   ;;  %s9104_s15 = smov 16   ;;  %v97_v32 = vld [vmem:[%s14258_s1] sm:$0xff] }
  0x3e   :  { %v345_v12 = vld [vmem:[#allocation2 + $0x19] sm:$0xff]  ;;  %v346_v14 = vld [vmem:[#allocation2 + $0x21] sm:$0xff]  ;;  %5194 = vst.msk [vmem:[#allocation5 + $0x20] sm:$0xff] %vm3033_vm2, %v14267_v2  ;;  %5196 = vst.msk [vmem:[#allocation5 + $0x30] sm:$0xff] %vm3033_vm2, %v14267_v2  ;;  %s9105_s16 = smov 20   ;;  %s9106_s21 = smov 24  }
  0x3f   :  { %924 = vrot.lane.b32.xlu1 %v345_v12, %s9101_s29  ;;  %v9435_v15 = vld [vmem:[#allocation2 + $0x31] sm:$0xff]  ;;  %v9437_v16 = vld [vmem:[#allocation2 + $0x39] sm:$0xff]  ;;  %5198 = vst.msk [vmem:[#allocation5 + $0x40] sm:$0xff] %vm3033_vm2, %v14267_v2  ;;  %5200 = vst.msk [vmem:[#allocation5 + $0x50] sm:$0xff] %vm3033_vm2, %v14267_v2  ;;  %s9107_s28 = smov 28   ;;  %vm3616_vm3 = vcmask 1043456  }
  0x40   :  { %922 = vrot.lane.b32.xlu0 %v344_v13, %s9101_s29  ;;  %v9443_v17 = vld [vmem:[#allocation2 + $0x49] sm:$0xff]  ;;  %v9445_v18 = vld [vmem:[#allocation2 + $0x51] sm:$0xff]  ;;  %5202 = vst.msk [vmem:[#allocation5 + $0x60] sm:$0xff] %vm3033_vm2, %v14267_v2  ;;  %5204 = vst.msk [vmem:[#allocation5 + $0x70] sm:$0xff] %vm3033_vm2, %v14267_v2  ;;  %vm2968_vm4 = vcmask 64512   ;;  %vm3098_vm5 = vcmask 130048  }
  0x41   :  { %v9451_v19 = vld [vmem:[#allocation2 + $0x61] sm:$0xff]  ;;  %v9453_v20 = vld [vmem:[#allocation2 + $0x69] sm:$0xff]  ;;  %5206 = vst.msk [vmem:[#allocation5 + $0x80] sm:$0xff] %vm3033_vm2, %v14267_v2  ;;  %5208 = vst.msk [vmem:[#allocation5 + $0x90] sm:$0xff] %vm3033_vm2, %v14267_v2  ;;  %vm3163_vm6 = vcmask 162816   ;;  %vm3228_vm7 = vcmask 195584  }
  0x42   :  { %5210 = vst.msk [vmem:[#allocation5 + $0xa0] sm:$0xff] %vm3033_vm2, %v14267_v2  ;;  %5212 = vst.msk [vmem:[#allocation5 + $0xb0] sm:$0xff] %vm3033_vm2, %v14267_v2  ;;  %v9502_v22 = vld [vmem:[#allocation2 + $0x79] sm:$0xff]  ;;  %v600_v30 = vld [vmem:[#allocation2 + $0x22] sm:$0xff]  ;;  %vm3293_vm8 = vcmask 228352   ;;  %vm3358_vm9 = vcmask 261120  }
  0x43   :  { %926 = vrot.lane.b32.xlu1 %v346_v14, %s9101_s29  ;;  %5214 = vst.msk [vmem:[#allocation5 + $0xc0] sm:$0xff] %vm3033_vm2, %v14267_v2  ;;  %5216 = vst.msk [vmem:[#allocation5 + $0xd0] sm:$0xff] %vm3033_vm2, %v14267_v2  ;;  %v9505_v23 = vld [vmem:[#allocation2 + $0x81] sm:$0xff]  ;;  %v9517_v27 = vld [vmem:[#allocation2 + $0x18] sm:$0xff]  ;;  %vm3423_vm10 = vcmask 293888   ;;  %vm5190_vm11 = vcmask 91136  }
  0x44   :  { %928 = vrot.lane.b32.xlu0 %v9435_v15, %s9101_s29  ;;  %5218 = vst.msk [vmem:[#allocation5 + $0xe0] sm:$0xff] %vm3033_vm2, %v14267_v2  ;;  %5220 = vst.msk [vmem:[#allocation5 + $0xf0] sm:$0xff] %vm3033_vm2, %v14267_v2  ;;  %v9519_v28 = vld [vmem:[#allocation2 + $0x20] sm:$0xff]  ;;  %v9529_v31 = vld [vmem:[#allocation2 + $0x30] sm:$0xff]  ;;  %vm5091_vm12 = vcmask 97344   ;;  %s9112_s12 = smov 72  }
  0x45   :  { %5222 = vst.msk [vmem:[#allocation5 + $0x100] sm:$0xff] %vm3033_vm2, %v14267_v2  ;;  %5224 = vst.msk [vmem:[#allocation5 + $0x110] sm:$0xff] %vm3033_vm2, %v14267_v2  ;;  %v599_v29 = vld [vmem:[#allocation2 + $0x1a] sm:$0xff]  ;;  %v98_v33 = vld [vmem:[%s14258_s1 + $0x8] sm:$0xff]  ;;  %s9113_s20 = smov 84   ;;  %vm9114_vm13 = vmmov 1  }
  0x46   :  { %5226 = vst.msk [vmem:[#allocation5 + $0x120] sm:$0xff] %vm3033_vm2, %v14267_v2  ;;  %5228 = vst.msk [vmem:[#allocation5 + $0x130] sm:$0xff] %vm3033_vm2, %v14267_v2  ;;  %v8854_v34 = vpack.c.bf16 %v98_v33, %v97_v32  ;;  %v99_v35 = vld [vmem:[%s14258_s1 + $0x10] sm:$0xff]  ;;  %v100_v36 = vld [vmem:[%s14258_s1 + $0x18] sm:$0xff]  ;;  %s9115_s11 = smov 96   ;;  %vm5952_vm15 = vcmask 392192  }
  0x47   :  { %930 = vrot.lane.b32.xlu1 %v9437_v16, %s9101_s29  ;;  %225 = vst.msk [vmem:[#allocation2 + $0x91] sm:$0xff] %vm104_vm0, %v43_v21  ;;  %226 = vst.msk [vmem:[#allocation2 + $0x99] sm:$0xff] %vm104_vm0, %v44_v26  ;;  %v8858_v37 = vpack.c.bf16 %v100_v36, %v99_v35  ;;  %v9549_v38 = vld [vmem:[#allocation2 + $0x38] sm:$0xff]  ;;  %v45_v39 = vld [vmem:[%s14257_s0 + $0x60] sm:$0xff]  ;;  %vm5986_vm1 = vcmask 588800   ;;  %s9118_s24 = smov [#allocation8]  }
  0x48   :  { %932 = vrot.lane.b32.xlu0 %v9443_v17, %s9101_s29  ;;  %8855 = vmatprep.subr.bf16.mxu0 %v8854_v34  ;;  %v101_v40 = vld [vmem:[%s14258_s1 + $0x20] sm:$0xf]  ;;  %227 = vst.msk [vmem:[#allocation2 + $0xa9] sm:$0xff] %vm104_vm0, %v45_v39  ;;  %v792_v41 = vld [vmem:[#allocation2 + $0x32] sm:$0xff]  ;;  %v46_v42 = vld [vmem:[%s14257_s0 + $0x68] sm:$0xff]  ;;  %s9108_s1 = smov 32  }
  0x49   :  { %8857 = vmatpush3.bf16.msra.mxu0 %v8854_v34  ;;  %228 = vst.msk [vmem:[#allocation2 + $0xb1] sm:$0xff] %vm104_vm0, %v46_v42  ;;  %v793_v43 = vld [vmem:[#allocation2 + $0x3a] sm:$0xff]  ;;  %v9580_v44 = vld [vmem:[#allocation2 + $0x48] sm:$0xff]  ;;  %v9588_v45 = vld [vmem:[#allocation2 + $0x50] sm:$0xff] }
  0x4a   :  { %8859 = vmatprep.subr.bf16.mxu0 %v8858_v37  ;;  %v47_v46 = vld [vmem:[%s14257_s0 + $0x70] sm:$0xff]  ;;  %v48_v48 = vld [vmem:[%s14257_s0 + $0x78] sm:$0xff]  ;;  %v9614_v50 = vld [vmem:[#allocation2 + $0x60] sm:$0xff] }
  0x4b   :  { %934 = vrot.lane.b32.xlu1 %v9445_v18, %s9101_s29  ;;  %229 = vst.msk [vmem:[#allocation2 + $0xc1] sm:$0xff] %vm104_vm0, %v47_v46  ;;  %v794_v47 = vld [vmem:[#allocation2 + $0x4a] sm:$0xff]  ;;  %230 = vst.msk [vmem:[#allocation2 + $0xc9] sm:$0xff] %vm104_vm0, %v48_v48  ;;  %v795_v49 = vld [vmem:[#allocation2 + $0x52] sm:$0xff] }
  0x4c   :  { %936 = vrot.lane.b32.xlu0 %v9451_v19, %s9101_s29  ;;  %v9622_v51 = vld [vmem:[#allocation2 + $0x68] sm:$0xff]  ;;  %v49_v53 = vld [vmem:[%s14257_s0 + $0x80] sm:$0xff]  ;;  %v9658_v61 = vld [vmem:[#allocation2 + $0x78] sm:$0xff] }
  0x4d   :  { %8861 = vmatpush3.bf16.msra.mxu0 %v8858_v37  ;;  %v796_v52 = vld [vmem:[#allocation2 + $0x62] sm:$0xff]  ;;  %231 = vst.msk [vmem:[#allocation2 + $0xd9] sm:$0xff] %vm104_vm0, %v49_v53  ;;  %v797_v56 = vld [vmem:[#allocation2 + $0x6a] sm:$0xff]  ;;  %v798_v8 = vld [vmem:[#allocation2 + $0x7a] sm:$0xff] }
  0x4e   :  { %8528 = vmatprep.subr.msk.mxu0 %vm3616_vm3, %v101_v40  ;;  %v50_v59 = vld [vmem:[%s14257_s0 + $0x88] sm:$0xff]  ;;  %v9672_v1 = vld [vmem:[#allocation2 + $0x80] sm:$0xff]  ;;  %v800_v36 = vld [vmem:[#allocation2 + $0x92] sm:$0xff] }
  0x4f   :  { %938 = vrot.lane.b32.xlu1 %v9453_v20, %s9101_s29  ;;  %232 = vst.msk [vmem:[#allocation2 + $0xe1] sm:$0xff] %vm104_vm0, %v50_v59  ;;  %v799_v13 = vld [vmem:[#allocation2 + $0x82] sm:$0xff]  ;;  %v737_v33 = vld [vmem:[#allocation2 + $0x99] sm:$0xff]  ;;  %vm13235_vm14 = vmpackc.low %vm3616_vm3, %vm9114_vm13 }
  0x50   :  { %940 = vrot.lane.b32.xlu0 %v9502_v22, %s9101_s29  ;;  %v279_v26 = vld [vmem:[#allocation2] sm:$0xff] }
  0x51   :  { %8529 = vmatpush3.msk.msra.mxu0 %vm3616_vm3, %v101_v40  ;;  %v801_v59 = vld [vmem:[#allocation2 + $0x9a] sm:$0xff]  ;;  %vm6003_vm3 = vcmask 687104  }
  0x53   :  { %942 = vrot.lane.b32.xlu1 %v9505_v23, %s9101_s29 }
  0x54   :  { %1176 = vrot.lane.b32.xlu0 %v407_v24, %s9102_s13  ;;  %v736_v24 = vld [vmem:[#allocation2 + $0x91] sm:$0xff] }
  0x57   :  { %1178 = vrot.lane.b32.xlu1 %v408_v25, %s9102_s13 }
  0x58   :  { %1432 = vrot.lane.b32.xlu0 %v9517_v27, %s9103_s14 }
  0x5b   :  { %1434 = vrot.lane.b32.xlu1 %v9519_v28, %s9103_s14 }
  0x5c   :  { %1688 = vrot.lane.b32.xlu0 %v345_v12, %s9104_s15  ;;  %v51_v12 = vld [vmem:[%s14257_s0 + $0x90] sm:$0xff] }
  0x5d   :  { %233 = vst.msk [vmem:[#allocation2 + $0xf1] sm:$0xff] %vm104_vm0, %v51_v12 }
  0x5f   :  { %1690 = vrot.lane.b32.xlu1 %v346_v14, %s9104_s15 }
  0x60   :  { %1944 = vrot.lane.b32.xlu0 %v599_v29, %s9105_s16 }
  0x63   :  { %1180 = vrot.lane.b32.xlu1 %v599_v29, %s9102_s13 }
  0x64   :  { %1946 = vrot.lane.b32.xlu0 %v600_v30, %s9105_s16 }
  0x67   :  { %2200 = vrot.lane.b32.xlu1 %v9529_v31, %s9106_s21 }
  0x68   :  { %1182 = vrot.lane.b32.xlu0 %v600_v30, %s9102_s13 }
  0x6b   :  { %1436 = vrot.lane.b32.xlu1 %v9529_v31, %s9103_s14 }
  0x6c   :  { %2202 = vrot.lane.b32.xlu0 %v9549_v38, %s9106_s21 }
  0x6f   :  { %2456 = vrot.lane.b32.xlu1 %v9435_v15, %s9107_s28 }
  0x70   :  { %1438 = vrot.lane.b32.xlu0 %v9549_v38, %s9103_s14 }
  0x73   :  { %1692 = vrot.lane.b32.xlu1 %v9435_v15, %s9104_s15 }
  0x74   :  { %2458 = vrot.lane.b32.xlu0 %v9437_v16, %s9107_s28 }
  0x77   :  { %2712 = vrot.lane.b32.xlu1 %v792_v41, %s9108_s1 }
  0x78   :  { %1694 = vrot.lane.b32.xlu0 %v9437_v16, %s9104_s15 }
  0x7b   :  { %1948 = vrot.lane.b32.xlu1 %v792_v41, %s9105_s16 }
  0x7c   :  { %2714 = vrot.lane.b32.xlu0 %v793_v43, %s9108_s1 }
  0x7f   :  { %1184 = vrot.lane.b32.xlu1 %v792_v41, %s9102_s13  ;;  %v280_v41 = vld [vmem:[#allocation2 + $0x8] sm:$0xff] }
  0x80   :  { %1950 = vrot.lane.b32.xlu0 %v793_v43, %s9105_s16 }
  0x83   :  { %2204 = vrot.lane.b32.xlu1 %v9580_v44, %s9106_s21 }
  0x84   :  { %1186 = vrot.lane.b32.xlu0 %v793_v43, %s9102_s13 }
  0x87   :  { %1440 = vrot.lane.b32.xlu1 %v9580_v44, %s9103_s14 }
  0x88   :  { %2206 = vrot.lane.b32.xlu0 %v9588_v45, %s9106_s21 }
  0x8b   :  { %2460 = vrot.lane.b32.xlu1 %v9443_v17, %s9107_s28 }
  0x8c   :  { %1442 = vrot.lane.b32.xlu0 %v9588_v45, %s9103_s14 }
  0x8f   :  { %1696 = vrot.lane.b32.xlu1 %v9443_v17, %s9104_s15  ;;  %v9704_v17 = vld [vmem:[#allocation2 + $0x90] sm:$0xff] }
  0x90   :  { %2462 = vrot.lane.b32.xlu0 %v9445_v18, %s9107_s28 }
  0x93   :  { %2716 = vrot.lane.b32.xlu1 %v794_v47, %s9108_s1 }
  0x94   :  { %1698 = vrot.lane.b32.xlu0 %v9445_v18, %s9104_s15 }
  0x97   :  { %1952 = vrot.lane.b32.xlu1 %v794_v47, %s9105_s16 }
  0x98   :  { %2718 = vrot.lane.b32.xlu0 %v795_v49, %s9108_s1 }
  0x9b   :  { %1188 = vrot.lane.b32.xlu1 %v794_v47, %s9102_s13 }
  0x9c   :  { %1954 = vrot.lane.b32.xlu0 %v795_v49, %s9105_s16 }
  0x9f   :  { %2208 = vrot.lane.b32.xlu1 %v9614_v50, %s9106_s21 }
  0xa0   :  { %1190 = vrot.lane.b32.xlu0 %v795_v49, %s9102_s13 }
  0xa3   :  { %1444 = vrot.lane.b32.xlu1 %v9614_v50, %s9103_s14 }
  0xa4   :  { %2210 = vrot.lane.b32.xlu0 %v9622_v51, %s9106_s21 }
  0xa7   :  { %2464 = vrot.lane.b32.xlu1 %v9451_v19, %s9107_s28 }
  0xa8   :  { %1446 = vrot.lane.b32.xlu0 %v9622_v51, %s9103_s14 }
  0xab   :  { %1700 = vrot.lane.b32.xlu1 %v9451_v19, %s9104_s15  ;;  %v52_v19 = vld [vmem:[%s14257_s0 + $0x98] sm:$0xff] }
  0xac   :  { %2466 = vrot.lane.b32.xlu0 %v9453_v20, %s9107_s28  ;;  %234 = vst.msk [vmem:[#allocation2 + $0xf9] sm:$0xff] %vm104_vm0, %v52_v19 }
  0xae   :  { %v9639_v54 = vpop.permute.xlu0 %920 }
  0xaf   :  { %2720 = vrot.lane.b32.xlu1 %v796_v52, %s9108_s1  ;;  %v2904_v32 = vsel %vm104_vm0, %v279_v26, %v9639_v54  ;;  %v9783_v26 = vld [vmem:[#allocation2 + $0xb0] sm:$0xff] }
  0xb0   :  { %1702 = vrot.lane.b32.xlu0 %v9453_v20, %s9104_s15 }
  0xb1   :  { %v9641_v55 = vpop.permute.xlu1 %924 }
  0xb2   :  { %v9646_v57 = vpop.permute.xlu0 %922 }
  0xb3   :  { %1956 = vrot.lane.b32.xlu1 %v796_v52, %s9105_s16  ;;  %v2905_v49 = vsel %vm104_vm0, %v280_v41, %v9646_v57 }
  0xb4   :  { %2722 = vrot.lane.b32.xlu0 %v797_v56, %s9108_s1 }
  0xb5   :  { %v9648_v58 = vpop.permute.xlu1 %926 }
  0xb6   :  { %v9656_v60 = vpop.permute.xlu0 %928 }
  0xb7   :  { %1192 = vrot.lane.b32.xlu1 %v796_v52, %s9102_s13 }
  0xb8   :  { %1958 = vrot.lane.b32.xlu0 %v797_v56, %s9105_s16 }
  0xb9   :  { %v9660_v62 = vpop.permute.xlu1 %930 }
  0xba   :  { %v9665_v63 = vpop.permute.xlu0 %932 }
  0xbb   :  { %2212 = vrot.lane.b32.xlu1 %v9658_v61, %s9106_s21 }
  0xbc   :  { %1194 = vrot.lane.b32.xlu0 %v797_v56, %s9102_s13 }
  0xbd   :  { %v9667_v0 = vpop.permute.xlu1 %934 }
  0xbe   :  { %v9674_v3 = vpop.permute.xlu0 %936 }
  0xbf   :  { %1448 = vrot.lane.b32.xlu1 %v9658_v61, %s9103_s14 }
  0xc0   :  { %2214 = vrot.lane.b32.xlu0 %v9672_v1, %s9106_s21 }
  0xc1   :  { %v9676_v4 = vpop.permute.xlu1 %938 }
  0xc2   :  { %v9682_v5 = vpop.permute.xlu0 %940 }
  0xc3   :  { %2468 = vrot.lane.b32.xlu1 %v9502_v22, %s9107_s28 }
  0xc4   :  { %1450 = vrot.lane.b32.xlu0 %v9672_v1, %s9103_s14 }
  0xc5   :  { %v9684_v6 = vpop.permute.xlu1 %942 }
  0xc6   :  { %v1177_v7 = vpop.permute.xlu0 %1176 }
  0xc7   :  { %1704 = vrot.lane.b32.xlu1 %v9502_v22, %s9104_s15  ;;  %v9718_v22 = vld [vmem:[#allocation2 + $0x98] sm:$0xff]  ;;  %v2969_v34 = vsel %vm2968_vm4, %v2904_v32, %v1177_v7 }
  0xc8   :  { %2470 = vrot.lane.b32.xlu0 %v9505_v23, %s9107_s28 }
  0xc9   :  { %v9690_v9 = vpop.permute.xlu1 %1178 }
  0xca   :  { %v1433_v10 = vpop.permute.xlu0 %1432  ;;  %v2970_v53 = vsel %vm2968_vm4, %v2905_v49, %v9690_v9 }
  0xcb   :  { %2724 = vrot.lane.b32.xlu1 %v798_v8, %s9108_s1  ;;  %v3034_v37 = vsel %vm3033_vm2, %v2969_v34, %v1433_v10  ;;  %v53_v10 = vld [vmem:[%s14257_s0 + $0xa0] sm:$0xff] }
  0xcc   :  { %1706 = vrot.lane.b32.xlu0 %v9505_v23, %s9104_s15  ;;  %235 = vst.msk [vmem:[#allocation2 + $0x109] sm:$0xff] %vm104_vm0, %v53_v10 }
  0xcd   :  { %v1435_v11 = vpop.permute.xlu1 %1434 }
  0xce   :  { %v1689_v14 = vpop.permute.xlu0 %1688  ;;  %v3035_v54 = vsel %vm3033_vm2, %v2970_v53, %v1435_v11 }
  0xcf   :  { %1960 = vrot.lane.b32.xlu1 %v798_v8, %s9105_s16  ;;  %v3099_v40 = vsel %vm3098_vm5, %v3034_v37, %v1689_v14 }
  0xd0   :  { %2726 = vrot.lane.b32.xlu0 %v799_v13, %s9108_s1 }
  0xd1   :  { %v1691_v15 = vpop.permute.xlu1 %1690 }
  0xd2   :  { %v1945_v16 = vpop.permute.xlu0 %1944  ;;  %v3100_v7 = vsel %vm3098_vm5, %v3035_v54, %v1691_v15 }
  0xd3   :  { %1196 = vrot.lane.b32.xlu1 %v798_v8, %s9102_s13  ;;  %v3164_v42 = vsel %vm3163_vm6, %v3099_v40, %v1945_v16  ;;  %v9767_v16 = vld [vmem:[#allocation2 + $0xa8] sm:$0xff] }
  0xd4   :  { %1962 = vrot.lane.b32.xlu0 %v799_v13, %s9105_s16 }
  0xd5   :  { %v9706_v18 = vpop.permute.xlu1 %1180 }
  0xd6   :  { %v1947_v20 = vpop.permute.xlu0 %1946 }
  0xd7   :  { %2216 = vrot.lane.b32.xlu1 %v9704_v17, %s9106_s21  ;;  %v3165_v57 = vsel %vm3163_vm6, %v3100_v7, %v1947_v20  ;;  %v54_v20 = vld [vmem:[%s14257_s0 + $0xa8] sm:$0xff]  ;;  %v803_v7 = vld [vmem:[#allocation2 + $0xb2] sm:$0xff] }
  0xd8   :  { %1198 = vrot.lane.b32.xlu0 %v799_v13, %s9102_s13  ;;  %236 = vst.msk [vmem:[#allocation2 + $0x111] sm:$0xff] %vm104_vm0, %v54_v20  ;;  %v2908_v20 = vsel %vm104_vm0, %v9529_v31, %v9656_v60 }
  0xd9   :  { %v2201_v21 = vpop.permute.xlu1 %2200 }
  0xda   :  { %v9720_v23 = vpop.permute.xlu0 %1182  ;;  %v3229_v43 = vsel %vm3228_vm7, %v3164_v42, %v2201_v21 }
  0xdb   :  { %1452 = vrot.lane.b32.xlu1 %v9704_v17, %s9103_s14 }
  0xdc   :  { %2218 = vrot.lane.b32.xlu0 %v9718_v22, %s9106_s21 }
  0xdd   :  { %v9722_v25 = vpop.permute.xlu1 %1436 }
  0xde   :  { %v2203_v29 = vpop.permute.xlu0 %2202 }
  0xdf   :  { %2472 = vrot.lane.b32.xlu1 %v736_v24, %s9107_s28  ;;  %v3230_v9 = vsel %vm3228_vm7, %v3165_v57, %v2203_v29 }
  0xe0   :  { %1454 = vrot.lane.b32.xlu0 %v9718_v22, %s9103_s14 }
  0xe1   :  { %v2457_v30 = vpop.permute.xlu1 %2456 }
  0xe2   :  { %v9733_v35 = vpop.permute.xlu0 %1438  ;;  %v3294_v47 = vsel %vm3293_vm8, %v3229_v43, %v2457_v30  ;;  %v738_v30 = vld [vmem:[#allocation2 + $0xa9] sm:$0xff] }
  0xe3   :  { %1708 = vrot.lane.b32.xlu1 %v736_v24, %s9104_s15 }
  0xe4   :  { %2474 = vrot.lane.b32.xlu0 %v737_v33, %s9107_s28 }
  0xe5   :  { %v1693_v39 = vpop.permute.xlu1 %1692 }
  0xe6   :  { %v2459_v46 = vpop.permute.xlu0 %2458 }
  0xe7   :  { %2728 = vrot.lane.b32.xlu1 %v800_v36, %s9108_s1  ;;  %v3295_v11 = vsel %vm3293_vm8, %v3230_v9, %v2459_v46 }
  0xe8   :  { %944 = vrot.lane.b32.xlu0 %v736_v24, %s9101_s29 }
  0xe9   :  { %v2713_v48 = vpop.permute.xlu1 %2712 }
  0xea   :  { %v3359_v52 = vsel %vm3358_vm9, %v3294_v47, %v2713_v48  ;;  %v1695_v56 = vpop.permute.xlu0 %1694 }
  0xeb   :  { %1710 = vrot.lane.b32.xlu1 %v737_v33, %s9104_s15  ;;  %8530 = vmatprep.mubr.msk.f32.mxu0 %vm3423_vm10, %v3359_v52 }
  0xec   :  { %1964 = vrot.lane.b32.xlu0 %v800_v36, %s9105_s16 }
  0xed   :  { %v1949_v8 = vpop.permute.xlu1 %1948 }
  0xee   :  { %v2715_v12 = vpop.permute.xlu0 %2714 }
  0xef   :  { %2730 = vrot.lane.b32.xlu1 %v801_v59, %s9108_s1  ;;  %v3360_v13 = vsel %vm3358_vm9, %v3295_v11, %v2715_v12  ;;  %v9835_v11 = vld [vmem:[#allocation2 + $0xc0] sm:$0xff] }
  0xf0   :  { %946 = vrot.lane.b32.xlu0 %v737_v33, %s9101_s29  ;;  %8531 = vmatmul.mubr.msk.f32.vlgmr.msra.gmra.mrb[0].mxu0 %vm3423_vm10, %v3360_v13  ;;  %v2906_v33 = vsel %vm104_vm0, %v9517_v27, %v9641_v55  ;;  %v739_v27 = vld [vmem:[#allocation2 + $0xb1] sm:$0xff] }
  0xf1   :  { %v9762_v14 = vpop.permute.xlu1 %1184  ;;  %v2971_v34 = vsel %vm2968_vm4, %v2906_v33, %v9706_v18  ;;  %v802_v18 = vld [vmem:[#allocation2 + $0xaa] sm:$0xff]  ;;  %v56_v13 = vld [vmem:[%s14257_s0 + $0xb8] sm:$0xff]  ;;  %v740_v33 = vld [vmem:[#allocation2 + $0xc1] sm:$0xff] }
  0xf2   :  { %v1951_v15 = vpop.permute.xlu0 %1950  ;;  %v3036_v37 = vsel %vm3033_vm2, %v2971_v34, %v9722_v25  ;;  %v2907_v25 = vsel %vm104_vm0, %v9519_v28, %v9648_v58  ;;  %238 = vst.msk [vmem:[#allocation2 + $0x129] sm:$0xff] %vm104_vm0, %v56_v13 }
  0xf3   :  { %1200 = vrot.lane.b32.xlu1 %v800_v36, %s9102_s13  ;;  %v3101_v41 = vsel %vm3098_vm5, %v3036_v37, %v1693_v39  ;;  %v2972_v48 = vsel %vm2968_vm4, %v2907_v25, %v9720_v23 }
  0xf4   :  { %1966 = vrot.lane.b32.xlu0 %v801_v59, %s9105_s16  ;;  %v3166_v42 = vsel %vm3163_vm6, %v3101_v41, %v1949_v8  ;;  %v3037_v49 = vsel %vm3033_vm2, %v2972_v48, %v9733_v35  ;;  %v55_v35 = vld [vmem:[%s14257_s0 + $0xb0] sm:$0xff] }
  0xf5   :  { %v2205_v19 = vpop.permute.xlu1 %2204  ;;  %v3102_v53 = vsel %vm3098_vm5, %v3037_v49, %v1695_v56  ;;  %237 = vst.msk [vmem:[#allocation2 + $0x121] sm:$0xff] %vm104_vm0, %v55_v35  ;;  %v58_v35 = vld [vmem:[%s14257_s0 + $0xc8] sm:$0xff] }
  0xf6   :  { %v9776_v21 = vpop.permute.xlu0 %1186  ;;  %v3231_v55 = vsel %vm3228_vm7, %v3166_v42, %v2205_v19  ;;  %v3167_v28 = vsel %vm3163_vm6, %v3102_v53, %v1951_v15  ;;  %240 = vst.msk [vmem:[#allocation2 + $0x141] sm:$0xff] %vm104_vm0, %v58_v35 }
  0xf7   :  { %2220 = vrot.lane.b32.xlu1 %v9767_v16, %s9106_s21 }
  0xf8   :  { %1202 = vrot.lane.b32.xlu0 %v801_v59, %s9102_s13 }
  0xf9   :  { %v9778_v24 = vpop.permute.xlu1 %1440 }
  0xfa   :  { %v2207_v29 = vpop.permute.xlu0 %2206 }
  0xfb   :  { %1456 = vrot.lane.b32.xlu1 %v9767_v16, %s9103_s14  ;;  %v3232_v58 = vsel %vm3228_vm7, %v3167_v28, %v2207_v29  ;;  %v9852_v29 = vld [vmem:[#allocation2 + $0xc8] sm:$0xff]  ;;  %v57_v28 = vld [vmem:[%s14257_s0 + $0xc0] sm:$0xff] }
  0xfc   :  { %2222 = vrot.lane.b32.xlu0 %v9783_v26, %s9106_s21  ;;  %239 = vst.msk [vmem:[#allocation2 + $0x139] sm:$0xff] %vm104_vm0, %v57_v28 }
  0xfd   :  { %v2461_v32 = vpop.permute.xlu1 %2460 }
  0xfe   :  { %v9793_v36 = vpop.permute.xlu0 %1442  ;;  %v3296_v46 = vsel %vm3293_vm8, %v3231_v55, %v2461_v32 }
  0xff   :  { %2476 = vrot.lane.b32.xlu1 %v738_v30, %s9107_s28 }
 0x100   :  { %1458 = vrot.lane.b32.xlu0 %v9783_v26, %s9103_s14 }
 0x101   :  { %v1697_v40 = vpop.permute.xlu1 %1696 }
 0x102   :  { %v2463_v43 = vpop.permute.xlu0 %2462 }
 0x103   :  { %1712 = vrot.lane.b32.xlu1 %v738_v30, %s9104_s15  ;;  %v3297_v23 = vsel %vm3293_vm8, %v3232_v58, %v2463_v43  ;;  %v741_v43 = vld [vmem:[#allocation2 + $0xc9] sm:$0xff] }
 0x104   :  { %2478 = vrot.lane.b32.xlu0 %v739_v27, %s9107_s28 }
 0x105   :  { %v2717_v47 = vpop.permute.xlu1 %2716 }
 0x106   :  { %v3361_v39 = vsel %vm3358_vm9, %v3296_v46, %v2717_v47  ;;  %v1699_v52 = vpop.permute.xlu0 %1698  ;;  %v804_v47 = vld [vmem:[#allocation2 + $0xc2] sm:$0xff] }
 0x107   :  { %2732 = vrot.lane.b32.xlu1 %v802_v18, %s9108_s1  ;;  %8533 = vmatprep.mubr.msk.f32.mxu0 %vm3423_vm10, %v3361_v39 }
 0x108   :  { %948 = vrot.lane.b32.xlu0 %v738_v30, %s9101_s29  ;;  %v2973_v30 = vsel %vm2968_vm4, %v2908_v20, %v9762_v14 }
 0x109   :  { %v1953_v54 = vpop.permute.xlu1 %1952  ;;  %v3038_v34 = vsel %vm3033_vm2, %v2973_v30, %v9778_v24  ;;  %v2909_v24 = vsel %vm104_vm0, %v9549_v38, %v9660_v62 }
 0x10a   :  { %v2719_v59 = vpop.permute.xlu0 %2718  ;;  %v3103_v41 = vsel %vm3098_vm5, %v3038_v34, %v1697_v40  ;;  %v2974_v40 = vsel %vm2968_vm4, %v2909_v24, %v9776_v21 }
 0x10b   :  { %1714 = vrot.lane.b32.xlu1 %v739_v27, %s9104_s15  ;;  %v3362_v8 = vsel %vm3358_vm9, %v3297_v23, %v2719_v59  ;;  %v3168_v31 = vsel %vm3163_vm6, %v3103_v41, %v1953_v54 }
 0x10c   :  { %1968 = vrot.lane.b32.xlu0 %v802_v18, %s9105_s16  ;;  %8534 = vmatmul.mubr.msk.f32.gmra.mrb[2].mxu0 %vm3423_vm10, %v3362_v8 }
 0x10d   :  { %v9822_v57 = vpop.permute.xlu1 %1188 }
 0x10e   :  { %v1955_v56 = vpop.permute.xlu0 %1954 }
 0x10f   :  { %2734 = vrot.lane.b32.xlu1 %v803_v7, %s9108_s1 }
 0x110   :  { %950 = vrot.lane.b32.xlu0 %v739_v27, %s9101_s29 }
 0x111   :  { %v2209_v10 = vpop.permute.xlu1 %2208 }
 0x112   :  { %v9833_v9 = vpop.permute.xlu0 %1190  ;;  %v3233_v60 = vsel %vm3228_vm7, %v3168_v31, %v2209_v10 }
 0x113   :  { %1204 = vrot.lane.b32.xlu1 %v802_v18, %s9102_s13  ;;  %v3039_v18 = vsel %vm3033_vm2, %v2974_v40, %v9793_v36  ;;  %v806_v40 = vld [vmem:[#allocation2 + $0xda] sm:$0xff] }
 0x114   :  { %1970 = vrot.lane.b32.xlu0 %v803_v7, %s9105_s16  ;;  %v3104_v38 = vsel %vm3098_vm5, %v3039_v18, %v1699_v52  ;;  %v805_v52 = vld [vmem:[#allocation2 + $0xca] sm:$0xff] }
 0x115   :  { %v9837_v12 = vpop.permute.xlu1 %1444  ;;  %v3169_v25 = vsel %vm3163_vm6, %v3104_v38, %v1955_v56  ;;  %v2910_v56 = vsel %vm104_vm0, %v9580_v44, %v9665_v63  ;;  %v9926_v44 = vld [vmem:[#allocation2 + $0xe0] sm:$0xff] }
 0x116   :  { %v2211_v15 = vpop.permute.xlu0 %2210  ;;  %v2975_v10 = vsel %vm2968_vm4, %v2910_v56, %v9822_v57  ;;  %v807_v38 = vld [vmem:[#allocation2 + $0xe2] sm:$0xff] }
 0x117   :  { %2224 = vrot.lane.b32.xlu1 %v9835_v11, %s9106_s21  ;;  %v3234_v39 = vsel %vm3228_vm7, %v3169_v25, %v2211_v15  ;;  %v3040_v15 = vsel %vm3033_vm2, %v2975_v10, %v9837_v12  ;;  %v2911_v12 = vsel %vm104_vm0, %v9588_v45, %v9667_v0  ;;  %v59_v25 = vld [vmem:[%s14257_s0 + $0xd0] sm:$0xff]  ;;  %v2913_v10 = vsel %vm104_vm0, %v9622_v51, %v9676_v4 }
 0x118   :  { %1206 = vrot.lane.b32.xlu0 %v803_v7, %s9102_s13  ;;  %v9903_v7 = vld [vmem:[#allocation2 + $0xd8] sm:$0xff]  ;;  %v2976_v31 = vsel %vm2968_vm4, %v2911_v12, %v9833_v9  ;;  %v743_v9 = vld [vmem:[#allocation2 + $0xe1] sm:$0xff]  ;;  %241 = vst.msk [vmem:[#allocation2 + $0x151] sm:$0xff] %vm104_vm0, %v59_v25 }
 0x119   :  { %v2465_v19 = vpop.permute.xlu1 %2464 }
 0x11a   :  { %v9856_v32 = vpop.permute.xlu0 %1446  ;;  %v3298_v14 = vsel %vm3293_vm8, %v3233_v60, %v2465_v19 }
 0x11b   :  { %1460 = vrot.lane.b32.xlu1 %v9835_v11, %s9103_s14  ;;  %v3041_v60 = vsel %vm3033_vm2, %v2976_v31, %v9856_v32  ;;  %v808_v31 = vld [vmem:[#allocation2 + $0xf2] sm:$0xff] }
 0x11c   :  { %2226 = vrot.lane.b32.xlu0 %v9852_v29, %s9106_s21 }
 0x11d   :  { %v1701_v37 = vpop.permute.xlu1 %1700 }
 0x11e   :  { %v2467_v42 = vpop.permute.xlu0 %2466  ;;  %v3105_v20 = vsel %vm3098_vm5, %v3040_v15, %v1701_v37  ;;  %v10001_v15 = vld [vmem:[#allocation2 + $0xf8] sm:$0xff] }
 0x11f   :  { %2480 = vrot.lane.b32.xlu1 %v740_v33, %s9107_s28  ;;  %v3299_v21 = vsel %vm3293_vm8, %v3234_v39, %v2467_v42 }
 0x120   :  { %1462 = vrot.lane.b32.xlu0 %v9852_v29, %s9103_s14 }
 0x121   :  { %v2721_v27 = vpop.permute.xlu1 %2720 }
 0x122   :  { %v3363_v55 = vsel %vm3358_vm9, %v3298_v14, %v2721_v27  ;;  %v1703_v46 = vpop.permute.xlu0 %1702 }
 0x123   :  { %1716 = vrot.lane.b32.xlu1 %v740_v33, %s9104_s15  ;;  %8536 = vmatprep.mubr.msk.f32.mxu0 %vm3423_vm10, %v3363_v55  ;;  %v3106_v14 = vsel %vm3098_vm5, %v3041_v60, %v1703_v46 }
 0x124   :  { %2482 = vrot.lane.b32.xlu0 %v741_v43, %s9107_s28 }
 0x125   :  { %v1957_v62 = vpop.permute.xlu1 %1956 }
 0x126   :  { %v2723_v48 = vpop.permute.xlu0 %2722  ;;  %v3170_v30 = vsel %vm3163_vm6, %v3105_v20, %v1957_v62 }
 0x127   :  { %2736 = vrot.lane.b32.xlu1 %v804_v47, %s9108_s1  ;;  %v3364_v49 = vsel %vm3358_vm9, %v3299_v21, %v2723_v48  ;;  %v2912_v48 = vsel %vm104_vm0, %v9614_v50, %v9674_v3 }
 0x128   :  { %952 = vrot.lane.b32.xlu0 %v740_v33, %s9101_s29  ;;  %8537 = vmatmul.mubr.msk.f32.gmra.mrb[4].mxu0 %vm3423_vm10, %v3364_v49  ;;  %v742_v33 = vld [vmem:[#allocation2 + $0xd9] sm:$0xff] }
 0x129   :  { %v9886_v53 = vpop.permute.xlu1 %1192 }
 0x12a   :  { %v1959_v36 = vpop.permute.xlu0 %1958  ;;  %v2977_v49 = vsel %vm2968_vm4, %v2912_v48, %v9886_v53 }
 0x12b   :  { %1718 = vrot.lane.b32.xlu1 %v741_v43, %s9104_s15  ;;  %v3171_v45 = vsel %vm3163_vm6, %v3106_v14, %v1959_v36 }
 0x12c   :  { %1972 = vrot.lane.b32.xlu0 %v804_v47, %s9105_s16 }
 0x12d   :  { %v2213_v54 = vpop.permute.xlu1 %2212 }
 0x12e   :  { %v9897_v58 = vpop.permute.xlu0 %1194  ;;  %v3235_v63 = vsel %vm3228_vm7, %v3170_v30, %v2213_v54  ;;  %v744_v30 = vld [vmem:[#allocation2 + $0xf1] sm:$0xff] }
 0x12f   :  { %2738 = vrot.lane.b32.xlu1 %v805_v52, %s9108_s1 }
 0x130   :  { %954 = vrot.lane.b32.xlu0 %v741_v43, %s9101_s29 }
 0x131   :  { %v9899_v23 = vpop.permute.xlu1 %1448 }
 0x132   :  { %v2215_v59 = vpop.permute.xlu0 %2214  ;;  %v3042_v54 = vsel %vm3033_vm2, %v2977_v49, %v9899_v23 }
 0x133   :  { %1208 = vrot.lane.b32.xlu1 %v804_v47, %s9102_s13  ;;  %v3236_v0 = vsel %vm3228_vm7, %v3171_v45, %v2215_v59  ;;  %v60_v59 = vld [vmem:[%s14257_s0 + $0xd8] sm:$0xff] }
 0x134   :  { %1974 = vrot.lane.b32.xlu0 %v805_v52, %s9105_s16  ;;  %242 = vst.msk [vmem:[#allocation2 + $0x159] sm:$0xff] %vm104_vm0, %v60_v59  ;;  %v809_v45 = vld [vmem:[#allocation2 + $0xfa] sm:$0xff] }
 0x135   :  { %v2469_v8 = vpop.permute.xlu1 %2468 }
 0x136   :  { %v9917_v13 = vpop.permute.xlu0 %1450  ;;  %v3300_v34 = vsel %vm3293_vm8, %v3235_v63, %v2469_v8 }
 0x137   :  { %2228 = vrot.lane.b32.xlu1 %v9903_v7, %s9106_s21 }
 0x138   :  { %1210 = vrot.lane.b32.xlu0 %v805_v52, %s9102_s13  ;;  %v9976_v52 = vld [vmem:[#allocation2 + $0xf0] sm:$0xff] }
 0x139   :  { %v1705_v19 = vpop.permute.xlu1 %1704 }
 0x13a   :  { %v2471_v57 = vpop.permute.xlu0 %2470  ;;  %v3107_v50 = vsel %vm3098_vm5, %v3042_v54, %v1705_v19  ;;  %v2978_v19 = vsel %vm2968_vm4, %v2913_v10, %v9897_v58  ;;  %v2915_v54 = vsel %vm104_vm0, %v9672_v1, %v9684_v6 }
 0x13b   :  { %1464 = vrot.lane.b32.xlu1 %v9903_v7, %s9103_s14  ;;  %v3301_v24 = vsel %vm3293_vm8, %v3236_v0, %v2471_v57  ;;  %v3043_v63 = vsel %vm3033_vm2, %v2978_v19, %v9917_v13  ;;  %v745_v13 = vld [vmem:[#allocation2 + $0xf9] sm:$0xff] }
 0x13c   :  { %2230 = vrot.lane.b32.xlu0 %v9926_v44, %s9106_s21 }
 0x13d   :  { %v2725_v41 = vpop.permute.xlu1 %2724 }
 0x13e   :  { %v3365_v37 = vsel %vm3358_vm9, %v3300_v34, %v2725_v41  ;;  %v1707_v42 = vpop.permute.xlu0 %1706 }
 0x13f   :  { %2484 = vrot.lane.b32.xlu1 %v742_v33, %s9107_s28  ;;  %8539 = vmatprep.mubr.msk.f32.mxu0 %vm3423_vm10, %v3365_v37 }
 0x140   :  { %1466 = vrot.lane.b32.xlu0 %v9926_v44, %s9103_s14 }
 0x141   :  { %v1961_v27 = vpop.permute.xlu1 %1960 }
 0x142   :  { %v2727_v55 = vpop.permute.xlu0 %2726  ;;  %v3172_v3 = vsel %vm3163_vm6, %v3107_v50, %v1961_v27 }
 0x143   :  { %1720 = vrot.lane.b32.xlu1 %v742_v33, %s9104_s15  ;;  %v3366_v32 = vsel %vm3358_vm9, %v3301_v24, %v2727_v55 }
 0x144   :  { %2486 = vrot.lane.b32.xlu0 %v743_v9, %s9107_s28  ;;  %8540 = vmatmul.mubr.msk.f32.gmra.mrb[6].mxu0 %vm3423_vm10, %v3366_v32 }
 0x145   :  { %v9950_v43 = vpop.permute.xlu1 %1196 }
 0x146   :  { %v1963_v18 = vpop.permute.xlu0 %1962 }
 0x147   :  { %2740 = vrot.lane.b32.xlu1 %v806_v40, %s9108_s1 }
 0x148   :  { %956 = vrot.lane.b32.xlu0 %v742_v33, %s9101_s29  ;;  %v3108_v33 = vsel %vm3098_vm5, %v3043_v63, %v1707_v42 }
 0x149   :  { %v2217_v46 = vpop.permute.xlu1 %2216  ;;  %v3173_v51 = vsel %vm3163_vm6, %v3108_v33, %v1963_v18 }
 0x14a   :  { %v9957_v47 = vpop.permute.xlu0 %1198  ;;  %v3237_v53 = vsel %vm3228_vm7, %v3172_v3, %v2217_v46  ;;  %v10048_v46 = vld [vmem:[#allocation2 + $0x108] sm:$0xff] }
 0x14b   :  { %1722 = vrot.lane.b32.xlu1 %v743_v9, %s9104_s15  ;;  %v2980_v59 = vsel %vm2968_vm4, %v2915_v54, %v9957_v47  ;;  %v746_v3 = vld [vmem:[#allocation2 + $0x109] sm:$0xff] }
 0x14c   :  { %1976 = vrot.lane.b32.xlu0 %v806_v40, %s9105_s16 }
 0x14d   :  { %v9959_v62 = vpop.permute.xlu1 %1452 }
 0x14e   :  { %v2219_v39 = vpop.permute.xlu0 %2218 }
 0x14f   :  { %2742 = vrot.lane.b32.xlu1 %v807_v38, %s9108_s1  ;;  %v3238_v4 = vsel %vm3228_vm7, %v3173_v51, %v2219_v39  ;;  %v62_v39 = vld [vmem:[%s14257_s0 + $0xe8] sm:$0xff] }
 0x150   :  { %958 = vrot.lane.b32.xlu0 %v743_v9, %s9101_s29  ;;  %v61_v9 = vld [vmem:[%s14257_s0 + $0xe0] sm:$0xff]  ;;  %244 = vst.msk [vmem:[#allocation2 + $0x171] sm:$0xff] %vm104_vm0, %v62_v39 }
 0x151   :  { %v2473_v21 = vpop.permute.xlu1 %2472  ;;  %243 = vst.msk [vmem:[#allocation2 + $0x169] sm:$0xff] %vm104_vm0, %v61_v9 }
 0x152   :  { %v9974_v36 = vpop.permute.xlu0 %1454  ;;  %v3302_v8 = vsel %vm3293_vm8, %v3237_v53, %v2473_v21 }
 0x153   :  { %1212 = vrot.lane.b32.xlu1 %v806_v40, %s9102_s13  ;;  %v2914_v40 = vsel %vm104_vm0, %v9658_v61, %v9682_v5  ;;  %v3045_v53 = vsel %vm3033_vm2, %v2980_v59, %v9974_v36  ;;  %v747_v36 = vld [vmem:[#allocation2 + $0x111] sm:$0xff] }
 0x154   :  { %1978 = vrot.lane.b32.xlu0 %v807_v38, %s9105_s16  ;;  %v2979_v32 = vsel %vm2968_vm4, %v2914_v40, %v9950_v43 }
 0x155   :  { %v9980_v28 = vpop.permute.xlu1 %1708 }
 0x156   :  { %v2475_v23 = vpop.permute.xlu0 %2474 }
 0x157   :  { %2232 = vrot.lane.b32.xlu1 %v9976_v52, %s9106_s21  ;;  %v3303_v58 = vsel %vm3293_vm8, %v3238_v4, %v2475_v23  ;;  %v811_v4 = vld [vmem:[#allocation2 + $0x112] sm:$0xff] }
 0x158   :  { %1214 = vrot.lane.b32.xlu0 %v807_v38, %s9102_s13  ;;  %v3044_v38 = vsel %vm3033_vm2, %v2979_v32, %v9959_v62 }
 0x159   :  { %v2729_v35 = vpop.permute.xlu1 %2728  ;;  %v3109_v61 = vsel %vm3098_vm5, %v3044_v38, %v9980_v28  ;;  %v10074_v28 = vld [vmem:[#allocation2 + $0x110] sm:$0xff] }
 0x15a   :  { %v3367_v56 = vsel %vm3358_vm9, %v3302_v8, %v2729_v35  ;;  %v10005_v20 = vpop.permute.xlu0 %944 }
 0x15b   :  { %1468 = vrot.lane.b32.xlu1 %v9976_v52, %s9103_s14  ;;  %8542 = vmatprep.mubr.msk.f32.mxu0 %vm3423_vm10, %v3367_v56 }
 0x15c   :  { %2234 = vrot.lane.b32.xlu0 %v10001_v15, %s9106_s21 }
 0x15d   :  { %v1711_v57 = vpop.permute.xlu1 %1710 }
 0x15e   :  { %v1965_v34 = vpop.permute.xlu0 %1964  ;;  %v3110_v8 = vsel %vm3098_vm5, %v3045_v53, %v1711_v57 }
 0x15f   :  { %2488 = vrot.lane.b32.xlu1 %v744_v30, %s9107_s28  ;;  %v3174_v5 = vsel %vm3163_vm6, %v3109_v61, %v1965_v34 }
 0x160   :  { %1470 = vrot.lane.b32.xlu0 %v10001_v15, %s9103_s14 }
 0x161   :  { %v2731_v41 = vpop.permute.xlu1 %2730 }
 0x162   :  { %v3368_v12 = vsel %vm3358_vm9, %v3303_v58, %v2731_v41  ;;  %v10021_v37 = vpop.permute.xlu0 %946  ;;  %v63_v58 = vld [vmem:[%s14257_s0 + $0xf0] sm:$0xff] }
 0x163   :  { %1724 = vrot.lane.b32.xlu1 %v744_v30, %s9104_s15  ;;  %8543 = vmatmul.mubr.msk.f32.gmra.mrb[8].mxu0 %vm3423_vm10, %v3368_v12  ;;  %245 = vst.msk [vmem:[#allocation2 + $0x181] sm:$0xff] %vm104_vm0, %v63_v58  ;;  %v2917_v38 = vsel %vm104_vm0, %v9718_v22, %v10021_v37 }
 0x164   :  { %2490 = vrot.lane.b32.xlu0 %v745_v13, %s9107_s28 }
 0x165   :  { %v10023_v60 = vpop.permute.xlu1 %1200 }
 0x166   :  { %v1967_v42 = vpop.permute.xlu0 %1966 }
 0x167   :  { %2744 = vrot.lane.b32.xlu1 %v808_v31, %s9108_s1  ;;  %v3175_v1 = vsel %vm3163_vm6, %v3110_v8, %v1967_v42 }
 0x168   :  { %960 = vrot.lane.b32.xlu0 %v744_v30, %s9101_s29  ;;  %v810_v30 = vld [vmem:[#allocation2 + $0x10a] sm:$0xff] }
 0x169   :  { %v2221_v14 = vpop.permute.xlu1 %2220 }
 0x16a   :  { %v10029_v27 = vpop.permute.xlu0 %1202  ;;  %v3239_v43 = vsel %vm3228_vm7, %v3174_v5, %v2221_v14  ;;  %v10121_v14 = vld [vmem:[#allocation2 + $0x120] sm:$0xff] }
 0x16b   :  { %1726 = vrot.lane.b32.xlu1 %v745_v13, %s9104_s15  ;;  %v2982_v39 = vsel %vm2968_vm4, %v2917_v38, %v10029_v27  ;;  %v748_v5 = vld [vmem:[#allocation2 + $0x121] sm:$0xff] }
 0x16c   :  { %1980 = vrot.lane.b32.xlu0 %v808_v31, %s9105_s16 }
 0x16d   :  { %v10031_v0 = vpop.permute.xlu1 %1456 }
 0x16e   :  { %v2223_v24 = vpop.permute.xlu0 %2222 }
 0x16f   :  { %2746 = vrot.lane.b32.xlu1 %v809_v45, %s9108_s1  ;;  %v3240_v6 = vsel %vm3228_vm7, %v3175_v1, %v2223_v24  ;;  %v64_v24 = vld [vmem:[%s14257_s0 + $0xf8] sm:$0xff] }
 0x170   :  { %962 = vrot.lane.b32.xlu0 %v745_v13, %s9101_s29  ;;  %v2916_v13 = vsel %vm104_vm0, %v9704_v17, %v10005_v20  ;;  %246 = vst.msk [vmem:[#allocation2 + $0x189] sm:$0xff] %vm104_vm0, %v64_v24 }
 0x171   :  { %v2477_v55 = vpop.permute.xlu1 %2476 }
 0x172   :  { %v10046_v18 = vpop.permute.xlu0 %1458  ;;  %v3304_v21 = vsel %vm3293_vm8, %v3239_v43, %v2477_v55 }
 0x173   :  { %1216 = vrot.lane.b32.xlu1 %v808_v31, %s9102_s13  ;;  %v2981_v31 = vsel %vm2968_vm4, %v2916_v13, %v10023_v60  ;;  %v3047_v43 = vsel %vm3033_vm2, %v2982_v39, %v10046_v18  ;;  %v749_v18 = vld [vmem:[#allocation2 + $0x129] sm:$0xff] }
 0x174   :  { %1982 = vrot.lane.b32.xlu0 %v809_v45, %s9105_s16 }
 0x175   :  { %v10052_v25 = vpop.permute.xlu1 %1712 }
 0x176   :  { %v2479_v62 = vpop.permute.xlu0 %2478 }
 0x177   :  { %2236 = vrot.lane.b32.xlu1 %v10048_v46, %s9106_s21  ;;  %v3305_v47 = vsel %vm3293_vm8, %v3240_v6, %v2479_v62  ;;  %v813_v6 = vld [vmem:[#allocation2 + $0x12a] sm:$0xff] }
 0x178   :  { %1218 = vrot.lane.b32.xlu0 %v809_v45, %s9102_s13  ;;  %v3046_v45 = vsel %vm3033_vm2, %v2981_v31, %v10031_v0 }
 0x179   :  { %v2733_v48 = vpop.permute.xlu1 %2732  ;;  %v3111_v17 = vsel %vm3098_vm5, %v3046_v45, %v10052_v25  ;;  %v10145_v25 = vld [vmem:[#allocation2 + $0x128] sm:$0xff] }
 0x17a   :  { %v3369_v49 = vsel %vm3358_vm9, %v3304_v21, %v2733_v48  ;;  %v10078_v50 = vpop.permute.xlu0 %948 }
 0x17b   :  { %1472 = vrot.lane.b32.xlu1 %v10048_v46, %s9103_s14  ;;  %8545 = vmatprep.mubr.msk.f32.mxu0 %vm3423_vm10, %v3369_v49 }
 0x17c   :  { %2238 = vrot.lane.b32.xlu0 %v10074_v28, %s9106_s21 }
 0x17d   :  { %v1715_v23 = vpop.permute.xlu1 %1714 }
 0x17e   :  { %v1969_v35 = vpop.permute.xlu0 %1968  ;;  %v3112_v21 = vsel %vm3098_vm5, %v3047_v43, %v1715_v23 }
 0x17f   :  { %2492 = vrot.lane.b32.xlu1 %v746_v3, %s9107_s28  ;;  %v3176_v20 = vsel %vm3163_vm6, %v3111_v17, %v1969_v35 }
 0x180   :  { %1474 = vrot.lane.b32.xlu0 %v10074_v28, %s9103_s14 }
 0x181   :  { %v2735_v56 = vpop.permute.xlu1 %2734 }
 0x182   :  { %v3370_v10 = vsel %vm3358_vm9, %v3305_v47, %v2735_v56  ;;  %v10094_v19 = vpop.permute.xlu0 %950 }
 0x183   :  { %1728 = vrot.lane.b32.xlu1 %v746_v3, %s9104_s15  ;;  %8546 = vmatmul.mubr.msk.f32.gmra.mrb[10].mxu0 %vm3423_vm10, %v3370_v10  ;;  %v65_v10 = vld [vmem:[%s14257_s0 + $0x100] sm:$0xff]  ;;  %v2919_v45 = vsel %vm104_vm0, %v9783_v26, %v10094_v19 }
 0x184   :  { %2494 = vrot.lane.b32.xlu0 %v747_v36, %s9107_s28  ;;  %247 = vst.msk [vmem:[#allocation2 + $0x1c9] sm:$0xff] %vm104_vm0, %v65_v10  ;;  %v67_v10 = vld [vmem:[%s14257_s0 + $0x110] sm:$0xff] }
 0x185   :  { %v10096_v63 = vpop.permute.xlu1 %1204  ;;  %249 = vst.msk [vmem:[#allocation2 + $0x1e1] sm:$0xff] %vm104_vm0, %v67_v10 }
 0x186   :  { %v1971_v57 = vpop.permute.xlu0 %1970 }
 0x187   :  { %2748 = vrot.lane.b32.xlu1 %v810_v30, %s9108_s1  ;;  %v3177_v22 = vsel %vm3163_vm6, %v3112_v21, %v1971_v57 }
 0x188   :  { %964 = vrot.lane.b32.xlu0 %v746_v3, %s9101_s29  ;;  %v812_v3 = vld [vmem:[#allocation2 + $0x122] sm:$0xff] }
 0x189   :  { %v2225_v33 = vpop.permute.xlu1 %2224 }
 0x18a   :  { %v10102_v51 = vpop.permute.xlu0 %1206  ;;  %v3241_v60 = vsel %vm3228_vm7, %v3176_v20, %v2225_v33  ;;  %v10192_v33 = vld [vmem:[#allocation2 + $0x138] sm:$0xff] }
 0x18b   :  { %1730 = vrot.lane.b32.xlu1 %v747_v36, %s9104_s15  ;;  %v2984_v24 = vsel %vm2968_vm4, %v2919_v45, %v10102_v51  ;;  %v750_v20 = vld [vmem:[#allocation2 + $0x139] sm:$0xff] }
 0x18c   :  { %1984 = vrot.lane.b32.xlu0 %v810_v30, %s9105_s16 }
 0x18d   :  { %v10104_v34 = vpop.permute.xlu1 %1460 }
 0x18e   :  { %v2227_v41 = vpop.permute.xlu0 %2226 }
 0x18f   :  { %2750 = vrot.lane.b32.xlu1 %v811_v4, %s9108_s1  ;;  %v3242_v37 = vsel %vm3228_vm7, %v3177_v22, %v2227_v41 }
 0x190   :  { %966 = vrot.lane.b32.xlu0 %v747_v36, %s9101_s29  ;;  %v2918_v36 = vsel %vm104_vm0, %v9767_v16, %v10078_v50 }
 0x191   :  { %v2481_v12 = vpop.permute.xlu1 %2480 }
 0x192   :  { %v10119_v42 = vpop.permute.xlu0 %1462  ;;  %v3306_v55 = vsel %vm3293_vm8, %v3241_v60, %v2481_v12 }
 0x193   :  { %1220 = vrot.lane.b32.xlu1 %v810_v30, %s9102_s13  ;;  %v2983_v30 = vsel %vm2968_vm4, %v2918_v36, %v10096_v63  ;;  %v3049_v60 = vsel %vm3033_vm2, %v2984_v24, %v10119_v42  ;;  %v751_v42 = vld [vmem:[#allocation2 + $0x141] sm:$0xff]  ;;  %v10310_v24 = vld [vmem:[#allocation2 + $0x158] sm:$0xff] }
 0x194   :  { %1986 = vrot.lane.b32.xlu0 %v811_v4, %s9105_s16 }
 0x195   :  { %v1717_v9 = vpop.permute.xlu1 %1716 }
 0x196   :  { %v2483_v0 = vpop.permute.xlu0 %2482 }
 0x197   :  { %2240 = vrot.lane.b32.xlu1 %v10121_v14, %s9106_s21  ;;  %v3307_v27 = vsel %vm3293_vm8, %v3242_v37, %v2483_v0 }
 0x198   :  { %1222 = vrot.lane.b32.xlu0 %v811_v4, %s9102_s13  ;;  %v3048_v4 = vsel %vm3033_vm2, %v2983_v30, %v10104_v34  ;;  %v66_v34 = vld [vmem:[%s14257_s0 + $0x108] sm:$0xff] }
 0x199   :  { %v2737_v40 = vpop.permute.xlu1 %2736  ;;  %v3113_v41 = vsel %vm3098_vm5, %v3048_v4, %v1717_v9  ;;  %248 = vst.msk [vmem:[#allocation2 + $0x1d1] sm:$0xff] %vm104_vm0, %v66_v34  ;;  %v10217_v9 = vld [vmem:[#allocation2 + $0x140] sm:$0xff] }
 0x19a   :  { %v3371_v32 = vsel %vm3358_vm9, %v3306_v55, %v2737_v40  ;;  %v10149_v61 = vpop.permute.xlu0 %952 }
 0x19b   :  { %1476 = vrot.lane.b32.xlu1 %v10121_v14, %s9103_s14  ;;  %8548 = vmatprep.mubr.msk.f32.mxu0 %vm3423_vm10, %v3371_v32  ;;  %v2920_v4 = vsel %vm104_vm0, %v9835_v11, %v10149_v61 }
 0x19c   :  { %2242 = vrot.lane.b32.xlu0 %v10145_v25, %s9106_s21 }
 0x19d   :  { %v1719_v62 = vpop.permute.xlu1 %1718 }
 0x19e   :  { %v1973_v48 = vpop.permute.xlu0 %1972  ;;  %v3114_v26 = vsel %vm3098_vm5, %v3049_v60, %v1719_v62 }
 0x19f   :  { %2496 = vrot.lane.b32.xlu1 %v748_v5, %s9107_s28  ;;  %v3178_v16 = vsel %vm3163_vm6, %v3113_v41, %v1973_v48 }
 0x1a0   :  { %1478 = vrot.lane.b32.xlu0 %v10145_v25, %s9103_s14 }
 0x1a1   :  { %v2739_v49 = vpop.permute.xlu1 %2738 }
 0x1a2   :  { %v3372_v54 = vsel %vm3358_vm9, %v3307_v27, %v2739_v49  ;;  %v10165_v59 = vpop.permute.xlu0 %954 }
 0x1a3   :  { %1732 = vrot.lane.b32.xlu1 %v748_v5, %s9104_s15  ;;  %8549 = vmatmul.mubr.msk.f32.gmra.mrb[12].mxu0 %vm3423_vm10, %v3372_v54 }
 0x1a4   :  { %2498 = vrot.lane.b32.xlu0 %v749_v18, %s9107_s28 }
 0x1a5   :  { %v10167_v53 = vpop.permute.xlu1 %1208 }
 0x1a6   :  { %v1975_v23 = vpop.permute.xlu0 %1974  ;;  %v2985_v41 = vsel %vm2968_vm4, %v2920_v4, %v10167_v53 }
 0x1a7   :  { %2752 = vrot.lane.b32.xlu1 %v812_v3, %s9108_s1  ;;  %v3179_v19 = vsel %vm3163_vm6, %v3114_v26, %v1975_v23  ;;  %v752_v26 = vld [vmem:[#allocation2 + $0x151] sm:$0xff] }
 0x1a8   :  { %968 = vrot.lane.b32.xlu0 %v748_v5, %s9101_s29  ;;  %v814_v5 = vld [vmem:[#allocation2 + $0x13a] sm:$0xff] }
 0x1a9   :  { %v2229_v8 = vpop.permute.xlu1 %2228 }
 0x1aa   :  { %v10173_v1 = vpop.permute.xlu0 %1210  ;;  %v3243_v50 = vsel %vm3228_vm7, %v3178_v16, %v2229_v8 }
 0x1ab   :  { %1734 = vrot.lane.b32.xlu1 %v749_v18, %s9104_s15 }
 0x1ac   :  { %1988 = vrot.lane.b32.xlu0 %v812_v3, %s9105_s16 }
 0x1ad   :  { %v10175_v35 = vpop.permute.xlu1 %1464 }
 0x1ae   :  { %v2231_v47 = vpop.permute.xlu0 %2230 }
 0x1af   :  { %2754 = vrot.lane.b32.xlu1 %v813_v6, %s9108_s1  ;;  %v3244_v55 = vsel %vm3228_vm7, %v3179_v19, %v2231_v47  ;;  %v815_v47 = vld [vmem:[#allocation2 + $0x142] sm:$0xff] }
 0x1b0   :  { %970 = vrot.lane.b32.xlu0 %v749_v18, %s9101_s29 }
 0x1b1   :  { %v2485_v56 = vpop.permute.xlu1 %2484 }
 0x1b2   :  { %v10190_v57 = vpop.permute.xlu0 %1466  ;;  %v3308_v12 = vsel %vm3293_vm8, %v3243_v50, %v2485_v56  ;;  %v10284_v50 = vld [vmem:[#allocation2 + $0x150] sm:$0xff] }
 0x1b3   :  { %1224 = vrot.lane.b32.xlu1 %v812_v3, %s9102_s13 }
 0x1b4   :  { %1990 = vrot.lane.b32.xlu0 %v813_v6, %s9105_s16 }
 0x1b5   :  { %v10196_v58 = vpop.permute.xlu1 %1720 }
 0x1b6   :  { %v2487_v63 = vpop.permute.xlu0 %2486 }
 0x1b7   :  { %2244 = vrot.lane.b32.xlu1 %v10192_v33, %s9106_s21  ;;  %v3309_v40 = vsel %vm3293_vm8, %v3244_v55, %v2487_v63  ;;  %v3050_v63 = vsel %vm3033_vm2, %v2985_v41, %v10175_v35 }
 0x1b8   :  { %1226 = vrot.lane.b32.xlu0 %v813_v6, %s9102_s13  ;;  %v3115_v11 = vsel %vm3098_vm5, %v3050_v63, %v10196_v58  ;;  %v2921_v58 = vsel %vm104_vm0, %v9852_v29, %v10165_v59  ;;  %v817_v63 = vld [vmem:[#allocation2 + $0x15a] sm:$0xff] }
 0x1b9   :  { %v2741_v13 = vpop.permute.xlu1 %2740 }
 0x1ba   :  { %v3373_v31 = vsel %vm3358_vm9, %v3308_v12, %v2741_v13  ;;  %v10221_v17 = vpop.permute.xlu0 %956  ;;  %v68_v13 = vld [vmem:[%s14257_s0 + $0x118] sm:$0xff] }
 0x1bb   :  { %1480 = vrot.lane.b32.xlu1 %v10192_v33, %s9103_s14  ;;  %8551 = vmatprep.mubr.msk.f32.mxu0 %vm3423_vm10, %v3373_v31  ;;  %250 = vst.msk [vmem:[#allocation2 + $0x1e9] sm:$0xff] %vm104_vm0, %v68_v13 }
 0x1bc   :  { %2246 = vrot.lane.b32.xlu0 %v10217_v9, %s9106_s21 }
 0x1bd   :  { %v10225_v0 = vpop.permute.xlu1 %1722 }
 0x1be   :  { %v1977_v51 = vpop.permute.xlu0 %1976 }
 0x1bf   :  { %2500 = vrot.lane.b32.xlu1 %v750_v20, %s9107_s28  ;;  %v3180_v61 = vsel %vm3163_vm6, %v3115_v11, %v1977_v51 }
 0x1c0   :  { %1482 = vrot.lane.b32.xlu0 %v10217_v9, %s9103_s14 }
 0x1c1   :  { %v2743_v32 = vpop.permute.xlu1 %2742 }
 0x1c2   :  { %v3374_v38 = vsel %vm3358_vm9, %v3309_v40, %v2743_v32  ;;  %v10239_v39 = vpop.permute.xlu0 %958 }
 0x1c3   :  { %1736 = vrot.lane.b32.xlu1 %v750_v20, %s9104_s15  ;;  %8552 = vmatmul.mubr.msk.f32.gmra.mrb[14].mxu0 %vm3423_vm10, %v3374_v38  ;;  %v10241_v43 = vpop.f32.mrb[0].mxu0 }
 0x1c4   :  { %v4006_v21 = vsel %vm2968_vm4, %v10241_v43, 0.0  ;;  %v4139_v22 = vmul.f32 %v10241_v43, %v10241_v43  ;;  %2502 = vrot.lane.b32.xlu0 %v751_v42, %s9107_s28  ;;  %v10250_v37 = vpop.f32.mrb[1].mxu0 }
 0x1c5   :  { %v10243_v62 = vpop.permute.xlu1 %1212  ;;  %v4005_v48 = vsel %vm2968_vm4, %v10250_v37, 0.0  ;;  %v4138_v27 = vmul.f32 %v10250_v37, %v10250_v37 }
 0x1c6   :  { %v4203_v49 = vsel %vm2968_vm4, %v4139_v22, 0.0  ;;  %v10258_v54 = vadd.f32 %v4006_v21, %v4005_v48  ;;  %v1979_v18 = vpop.permute.xlu0 %1978  ;;  %v753_v22 = vld [vmem:[#allocation2 + $0x159] sm:$0xff] }
 0x1c7   :  { %2756 = vrot.lane.b32.xlu1 %v814_v5, %s9108_s1  ;;  %v4202_v3 = vsel %vm2968_vm4, %v4138_v27, 0.0 }
 0x1c8   :  { %v10261_v8 = vadd.f32 %v4203_v49, %v4202_v3  ;;  %972 = vrot.lane.b32.xlu0 %v750_v20, %s9101_s29  ;;  %v2986_v20 = vsel %vm2968_vm4, %v2921_v58, %v10173_v1  ;;  %v816_v49 = vld [vmem:[#allocation2 + $0x152] sm:$0xff] }
 0x1c9   :  { %v2233_v23 = vpop.permute.xlu1 %2232  ;;  %v3051_v19 = vsel %vm3033_vm2, %v2986_v20, %v10190_v57  ;;  %v70_v20 = vld [vmem:[%s14257_s0 + $0x128] sm:$0xff] }
 0x1ca   :  { %v10265_v6 = vpop.permute.xlu0 %1214  ;;  %v3245_v53 = vsel %vm3228_vm7, %v3180_v61, %v2233_v23  ;;  %v3116_v29 = vsel %vm3098_vm5, %v3051_v19, %v10225_v0  ;;  %252 = vst.msk [vmem:[#allocation2 + $0x201] sm:$0xff] %vm104_vm0, %v70_v20  ;;  %v819_v20 = vld [vmem:[#allocation2 + $0x172] sm:$0xff] }
 0x1cb   :  { %1738 = vrot.lane.b32.xlu1 %v751_v42, %s9104_s15  ;;  %v3181_v59 = vsel %vm3163_vm6, %v3116_v29, %v1979_v18 }
 0x1cc   :  { %1992 = vrot.lane.b32.xlu0 %v814_v5, %s9105_s16 }
 0x1cd   :  { %v10267_v56 = vpop.permute.xlu1 %1468 }
 0x1ce   :  { %v2235_v36 = vpop.permute.xlu0 %2234 }
 0x1cf   :  { %2758 = vrot.lane.b32.xlu1 %v815_v47, %s9108_s1  ;;  %v3246_v1 = vsel %vm3228_vm7, %v3181_v59, %v2235_v36  ;;  %v10402_v59 = vld [vmem:[#allocation2 + $0x170] sm:$0xff] }
 0x1d0   :  { %974 = vrot.lane.b32.xlu0 %v751_v42, %s9101_s29 }
 0x1d1   :  { %v2489_v30 = vpop.permute.xlu1 %2488 }
 0x1d2   :  { %v10282_v16 = vpop.permute.xlu0 %1470  ;;  %v3310_v34 = vsel %vm3293_vm8, %v3245_v53, %v2489_v30  ;;  %v2922_v53 = vsel %vm104_vm0, %v9903_v7, %v10221_v17 }
 0x1d3   :  { %1228 = vrot.lane.b32.xlu1 %v814_v5, %s9102_s13 }
 0x1d4   :  { %1994 = vrot.lane.b32.xlu0 %v815_v47, %s9105_s16 }
 0x1d5   :  { %v10288_v12 = vpop.permute.xlu1 %1724 }
 0x1d6   :  { %v2491_v35 = vpop.permute.xlu0 %2490 }
 0x1d7   :  { %2248 = vrot.lane.b32.xlu1 %v10284_v50, %s9106_s21  ;;  %v3311_v40 = vsel %vm3293_vm8, %v3246_v1, %v2491_v35  ;;  %v2987_v35 = vsel %vm2968_vm4, %v2922_v53, %v10243_v62 }
 0x1d8   :  { %1230 = vrot.lane.b32.xlu0 %v815_v47, %s9102_s13 }
 0x1d9   :  { %v2745_v31 = vpop.permute.xlu1 %2744 }
 0x1da   :  { %v3375_v45 = vsel %vm3358_vm9, %v3310_v34, %v2745_v31  ;;  %v10314_v60 = vpop.permute.xlu0 %960  ;;  %v10376_v31 = vld [vmem:[#allocation2 + $0x168] sm:$0xff] }
 0x1db   :  { %1484 = vrot.lane.b32.xlu1 %v10284_v50, %s9103_s14  ;;  %8554 = vmatprep.mubr.msk.f32.mxu0 %vm3423_vm10, %v3375_v45  ;;  %v3052_v45 = vsel %vm3033_vm2, %v2987_v35, %v10267_v56 }
 0x1dc   :  { %2250 = vrot.lane.b32.xlu0 %v10310_v24, %s9106_s21  ;;  %v3117_v7 = vsel %vm3098_vm5, %v3052_v45, %v10288_v12  ;;  %v2923_v12 = vsel %vm104_vm0, %v9926_v44, %v10239_v39 }
 0x1dd   :  { %v10318_v55 = vpop.permute.xlu1 %1726  ;;  %v2988_v1 = vsel %vm2968_vm4, %v2923_v12, %v10265_v6  ;;  %v692_v12 = vld [vmem:[#allocation2 + $0x180] sm:$0xff] }
 0x1de   :  { %v1981_v51 = vpop.permute.xlu0 %1980 }
 0x1df   :  { %2504 = vrot.lane.b32.xlu1 %v752_v26, %s9107_s28  ;;  %v10328_v38 = vpop.f32.mrb[2].mxu0  ;;  %v3182_v17 = vsel %vm3163_vm6, %v3117_v7, %v1981_v51 }
 0x1e0   :  { %1486 = vrot.lane.b32.xlu0 %v10310_v24, %s9103_s14  ;;  %v10333_v0 = vpop.f32.mrb[3].mxu0  ;;  %v4141_v42 = vmul.f32 %v10328_v38, %v10328_v38  ;;  %v4010_v18 = vsel %vm2968_vm4, %v10328_v38, 0.0 }
 0x1e1   :  { %v2747_v32 = vpop.permute.xlu1 %2746  ;;  %v4008_v5 = vsel %vm2968_vm4, %v10333_v0, 0.0  ;;  %v4140_v21 = vmul.f32 %v10333_v0, %v10333_v0 }
 0x1e2   :  { %v3376_v57 = vsel %vm3358_vm9, %v3311_v40, %v2747_v32  ;;  %v4009_v48 = vadd.f32 %v4008_v5, %v10258_v54  ;;  %v10344_v27 = vpop.permute.xlu0 %962  ;;  %v4207_v36 = vsel %vm2968_vm4, %v4141_v42, 0.0  ;;  %v754_v40 = vld [vmem:[#allocation2 + $0x169] sm:$0xff]  ;;  %v3053_v32 = vsel %vm3033_vm2, %v2988_v1, %v10282_v16 }
 0x1e3   :  { %1740 = vrot.lane.b32.xlu1 %v752_v26, %s9104_s15  ;;  %8555 = vmatmul.mubr.msk.f32.gmra.mrb[16].mxu0 %vm3423_vm10, %v3376_v57  ;;  %v4205_v3 = vsel %vm2968_vm4, %v4140_v21, 0.0  ;;  %v3118_v44 = vsel %vm3098_vm5, %v3053_v32, %v10318_v55  ;;  %v72_v32 = vld [vmem:[%s14257_s0 + $0x138] sm:$0xff] }
 0x1e4   :  { %v4011_v47 = vadd.f32 %v4010_v18, %v4009_v48  ;;  %v4206_v10 = vadd.f32 %v4205_v3, %v10261_v8  ;;  %2506 = vrot.lane.b32.xlu0 %v753_v22, %s9107_s28  ;;  %v69_v8 = vld [vmem:[%s14257_s0 + $0x120] sm:$0xff]  ;;  %254 = vst.msk [vmem:[#allocation2 + $0x219] sm:$0xff] %vm104_vm0, %v72_v32 }
 0x1e5   :  { %v10349_v23 = vpop.permute.xlu1 %1216  ;;  %251 = vst.msk [vmem:[#allocation2 + $0x1f9] sm:$0xff] %vm104_vm0, %v69_v8 }
 0x1e6   :  { %v4208_v54 = vadd.f32 %v4207_v36, %v4206_v10  ;;  %v1983_v30 = vpop.permute.xlu0 %1982 }
 0x1e7   :  { %2760 = vrot.lane.b32.xlu1 %v816_v49, %s9108_s1  ;;  %v3183_v6 = vsel %vm3163_vm6, %v3118_v44, %v1983_v30 }
 0x1e8   :  { %976 = vrot.lane.b32.xlu0 %v752_v26, %s9101_s29 }
 0x1e9   :  { %v2237_v4 = vpop.permute.xlu1 %2236 }
 0x1ea   :  { %v10357_v41 = vpop.permute.xlu0 %1218  ;;  %v3247_v62 = vsel %vm3228_vm7, %v3182_v17, %v2237_v4  ;;  %v71_v17 = vld [vmem:[%s14257_s0 + $0x130] sm:$0xff] }
 0x1eb   :  { %1742 = vrot.lane.b32.xlu1 %v753_v22, %s9104_s15  ;;  %253 = vst.msk [vmem:[#allocation2 + $0x211] sm:$0xff] %vm104_vm0, %v71_v17 }
 0x1ec   :  { %1996 = vrot.lane.b32.xlu0 %v816_v49, %s9105_s16 }
 0x1ed   :  { %v10359_v13 = vpop.permute.xlu1 %1472 }
 0x1ee   :  { %v2239_v11 = vpop.permute.xlu0 %2238 }
 0x1ef   :  { %2762 = vrot.lane.b32.xlu1 %v817_v63, %s9108_s1  ;;  %v3248_v55 = vsel %vm3228_vm7, %v3183_v6, %v2239_v11  ;;  %v818_v11 = vld [vmem:[#allocation2 + $0x16a] sm:$0xff] }
 0x1f0   :  { %978 = vrot.lane.b32.xlu0 %v753_v22, %s9101_s29 }
 0x1f1   :  { %v2493_v61 = vpop.permute.xlu1 %2492 }
 0x1f2   :  { %v10374_v34 = vpop.permute.xlu0 %1474  ;;  %v3312_v26 = vsel %vm3293_vm8, %v3247_v62, %v2493_v61 }
 0x1f3   :  { %1232 = vrot.lane.b32.xlu1 %v816_v49, %s9102_s13 }
 0x1f4   :  { %1998 = vrot.lane.b32.xlu0 %v817_v63, %s9105_s16 }
 0x1f5   :  { %v10380_v58 = vpop.permute.xlu1 %1728 }
 0x1f6   :  { %v2495_v56 = vpop.permute.xlu0 %2494 }
 0x1f7   :  { %2252 = vrot.lane.b32.xlu1 %v10376_v31, %s9106_s21  ;;  %v3313_v49 = vsel %vm3293_vm8, %v3248_v55, %v2495_v56 }
 0x1f8   :  { %1234 = vrot.lane.b32.xlu0 %v817_v63, %s9102_s13 }
 0x1f9   :  { %v2749_v19 = vpop.permute.xlu1 %2748 }
 0x1fa   :  { %v3377_v29 = vsel %vm3358_vm9, %v3312_v26, %v2749_v19  ;;  %v10406_v51 = vpop.permute.xlu0 %964  ;;  %v2924_v26 = vsel %vm104_vm0, %v9976_v52, %v10314_v60 }
 0x1fb   :  { %1488 = vrot.lane.b32.xlu1 %v10376_v31, %s9103_s14  ;;  %8557 = vmatprep.mubr.msk.f32.mxu0 %vm3423_vm10, %v3377_v29  ;;  %v10412_v42 = vpop.f32.mrb[4].mxu0  ;;  %v2989_v19 = vsel %vm2968_vm4, %v2924_v26, %v10349_v23 }
 0x1fc   :  { %2254 = vrot.lane.b32.xlu0 %v10402_v59, %s9106_s21  ;;  %v10418_v39 = vpop.f32.mrb[5].mxu0  ;;  %v4143_v5 = vmul.f32 %v10412_v42, %v10412_v42  ;;  %v4014_v18 = vsel %vm2968_vm4, %v10412_v42, 0.0  ;;  %v3054_v1 = vsel %vm3033_vm2, %v2989_v19, %v10359_v13 }
 0x1fd   :  { %v10410_v57 = vpop.permute.xlu1 %1730  ;;  %v4012_v16 = vsel %vm2968_vm4, %v10418_v39, 0.0  ;;  %v4142_v21 = vmul.f32 %v10418_v39, %v10418_v39  ;;  %v3119_v52 = vsel %vm3098_vm5, %v3054_v1, %v10380_v58 }
 0x1fe   :  { %v4013_v22 = vadd.f32 %v4012_v16, %v4011_v47  ;;  %v1985_v48 = vpop.permute.xlu0 %1984  ;;  %v4211_v63 = vsel %vm2968_vm4, %v4143_v5, 0.0  ;;  %v755_v47 = vld [vmem:[#allocation2 + $0x171] sm:$0xff] }
 0x1ff   :  { %2508 = vrot.lane.b32.xlu1 %v754_v40, %s9107_s28  ;;  %v4209_v3 = vsel %vm2968_vm4, %v4142_v21, 0.0  ;;  %v3184_v60 = vsel %vm3163_vm6, %v3119_v52, %v1985_v48  ;;  %v2925_v21 = vsel %vm104_vm0, %v10001_v15, %v10344_v27  ;;  %v756_v15 = vld [vmem:[#allocation2 + $0x181] sm:$0xff] }
 0x200   :  { %v4210_v36 = vadd.f32 %v4209_v3, %v4208_v54  ;;  %1490 = vrot.lane.b32.xlu0 %v10402_v59, %s9103_s14  ;;  %v4015_v4 = vadd.f32 %v4014_v18, %v4013_v22  ;;  %v2990_v18 = vsel %vm2968_vm4, %v2925_v21, %v10357_v41 }
 0x201   :  { %v2751_v10 = vpop.permute.xlu1 %2750  ;;  %v3055_v27 = vsel %vm3033_vm2, %v2990_v18, %v10374_v34 }
 0x202   :  { %v3378_v30 = vsel %vm3358_vm9, %v3313_v49, %v2751_v10  ;;  %v10439_v8 = vpop.permute.xlu0 %966  ;;  %v4212_v61 = vadd.f32 %v4211_v63, %v4210_v36  ;;  %v693_v49 = vld [vmem:[#allocation2 + $0x188] sm:$0xff] }
 0x203   :  { %1744 = vrot.lane.b32.xlu1 %v754_v40, %s9104_s15  ;;  %8558 = vmatmul.mubr.msk.f32.gmra.mrb[18].mxu0 %vm3423_vm10, %v3378_v30 }
 0x204   :  { %2510 = vrot.lane.b32.xlu0 %v755_v47, %s9107_s28 }
 0x205   :  { %v10441_v53 = vpop.permute.xlu1 %1220 }
 0x206   :  { %v1987_v54 = vpop.permute.xlu0 %1986 }
 0x207   :  { %2764 = vrot.lane.b32.xlu1 %v818_v11, %s9108_s1 }
 0x208   :  { %980 = vrot.lane.b32.xlu0 %v754_v40, %s9101_s29 }
 0x209   :  { %v2241_v35 = vpop.permute.xlu1 %2240 }
 0x20a   :  { %v10447_v45 = vpop.permute.xlu0 %1222  ;;  %v3249_v23 = vsel %vm3228_vm7, %v3184_v60, %v2241_v35  ;;  %v821_v60 = vld [vmem:[#allocation2 + $0x18a] sm:$0xff] }
 0x20b   :  { %1746 = vrot.lane.b32.xlu1 %v755_v47, %s9104_s15 }
 0x20c   :  { %2000 = vrot.lane.b32.xlu0 %v818_v11, %s9105_s16 }
 0x20d   :  { %v10449_v7 = vpop.permute.xlu1 %1476 }
 0x20e   :  { %v2243_v62 = vpop.permute.xlu0 %2242 }
 0x20f   :  { %2766 = vrot.lane.b32.xlu1 %v819_v20, %s9108_s1 }
 0x210   :  { %982 = vrot.lane.b32.xlu0 %v755_v47, %s9101_s29  ;;  %v3120_v47 = vsel %vm3098_vm5, %v3055_v27, %v10410_v57  ;;  %v757_v57 = vld [vmem:[#allocation2 + $0x189] sm:$0xff]  ;;  %v440_v27 = vld [vmem:[#allocation2 + $0x1ba] sm:$0xff] }
 0x211   :  { %v2497_v56 = vpop.permute.xlu1 %2496 }
 0x212   :  { %v10464_v29 = vpop.permute.xlu0 %1478  ;;  %v3314_v44 = vsel %vm3293_vm8, %v3249_v23, %v2497_v56 }
 0x213   :  { %1236 = vrot.lane.b32.xlu1 %v818_v11, %s9102_s13 }
 0x214   :  { %2002 = vrot.lane.b32.xlu0 %v819_v20, %s9105_s16 }
 0x215   :  { %v10468_v40 = vpop.permute.xlu1 %1732 }
 0x216   :  { %v2499_v13 = vpop.permute.xlu0 %2498 }
 0x217   :  { %2256 = vrot.lane.b32.xlu1 %v692_v12, %s9106_s21  ;;  %v10481_v5 = vpop.f32.mrb[6].mxu0 }
 0x218   :  { %1238 = vrot.lane.b32.xlu0 %v819_v20, %s9102_s13  ;;  %v10485_v58 = vpop.f32.mrb[7].mxu0  ;;  %v4145_v55 = vmul.f32 %v10481_v5, %v10481_v5  ;;  %v4018_v36 = vsel %vm2968_vm4, %v10481_v5, 0.0 }
 0x219   :  { %v2753_v6 = vpop.permute.xlu1 %2752  ;;  %v4016_v22 = vsel %vm2968_vm4, %v10485_v58, 0.0  ;;  %v4144_v48 = vmul.f32 %v10485_v58, %v10485_v58 }
 0x21a   :  { %v3379_v16 = vsel %vm3358_vm9, %v3314_v44, %v2753_v6  ;;  %v4017_v3 = vadd.f32 %v4016_v22, %v4015_v4  ;;  %v10500_v10 = vpop.permute.xlu0 %968  ;;  %v3185_v4 = vsel %vm3163_vm6, %v3120_v47, %v1987_v54  ;;  %v4215_v35 = vsel %vm2968_vm4, %v4145_v55, 0.0  ;;  %v820_v54 = vld [vmem:[#allocation2 + $0x182] sm:$0xff]  ;;  %v376_v44 = vld [vmem:[#allocation2 + $0x1b9] sm:$0xff] }
 0x21b   :  { %1492 = vrot.lane.b32.xlu1 %v692_v12, %s9103_s14  ;;  %8560 = vmatprep.mubr.msk.f32.mxu0 %vm3423_vm10, %v3379_v16  ;;  %v4213_v30 = vsel %vm2968_vm4, %v4144_v48, 0.0  ;;  %v3250_v34 = vsel %vm3228_vm7, %v3185_v4, %v2243_v62  ;;  %v375_v62 = vld [vmem:[#allocation2 + $0x1b1] sm:$0xff]  ;;  %v2926_v55 = vsel %vm104_vm0, %v10048_v46, %v10406_v51  ;;  %v10572_v4 = vld [vmem:[#allocation2 + $0x1c8] sm:$0xff] }
 0x21c   :  { %v4214_v11 = vadd.f32 %v4213_v30, %v4212_v61  ;;  %2258 = vrot.lane.b32.xlu0 %v693_v49, %s9106_s21  ;;  %v4019_v41 = vadd.f32 %v4018_v36, %v4017_v3  ;;  %v3315_v56 = vsel %vm3293_vm8, %v3250_v34, %v2499_v13  ;;  %v73_v13 = vld [vmem:[%s14257_s0 + $0x140] sm:$0xff]  ;;  %v439_v16 = vld [vmem:[#allocation2 + $0x1b2] sm:$0xff]  ;;  %v2991_v22 = vsel %vm2968_vm4, %v2926_v55, %v10441_v53 }
 0x21d   :  { %v10507_v63 = vpop.permute.xlu1 %1734  ;;  %255 = vst.msk [vmem:[#allocation2 + $0x229] sm:$0xff] %vm104_vm0, %v73_v13  ;;  %v3056_v18 = vsel %vm3033_vm2, %v2991_v22, %v10449_v7 }
 0x21e   :  { %v1989_v20 = vpop.permute.xlu0 %1988  ;;  %v4216_v17 = vadd.f32 %v4215_v35, %v4214_v11  ;;  %v3121_v46 = vsel %vm3098_vm5, %v3056_v18, %v10468_v40 }
 0x21f   :  { %2512 = vrot.lane.b32.xlu1 %v756_v15, %s9107_s28  ;;  %v3186_v53 = vsel %vm3163_vm6, %v3121_v46, %v1989_v20  ;;  %v822_v46 = vld [vmem:[#allocation2 + $0x19a] sm:$0xff] }
 0x220   :  { %1494 = vrot.lane.b32.xlu0 %v693_v49, %s9103_s14  ;;  %v694_v49 = vld [vmem:[#allocation2 + $0x198] sm:$0xff] }
 0x221   :  { %v2755_v26 = vpop.permute.xlu1 %2754 }
 0x222   :  { %v3380_v19 = vsel %vm3358_vm9, %v3315_v56, %v2755_v26  ;;  %v10521_v61 = vpop.permute.xlu0 %970 }
 0x223   :  { %1748 = vrot.lane.b32.xlu1 %v756_v15, %s9104_s15  ;;  %8561 = vmatmul.mubr.msk.f32.gmra.mrb[20].mxu0 %vm3423_vm10, %v3380_v19  ;;  %v74_v15 = vld [vmem:[%s14257_s0 + $0x148] sm:$0xff] }
 0x224   :  { %2514 = vrot.lane.b32.xlu0 %v757_v57, %s9107_s28  ;;  %256 = vst.msk [vmem:[#allocation2 + $0x231] sm:$0xff] %vm104_vm0, %v74_v15 }
 0x225   :  { %v10523_v12 = vpop.permute.xlu1 %1224 }
 0x226   :  { %v1991_v1 = vpop.permute.xlu0 %1990 }
 0x227   :  { %2768 = vrot.lane.b32.xlu1 %v820_v54, %s9108_s1 }
 0x228   :  { %984 = vrot.lane.b32.xlu0 %v375_v62, %s9101_s29 }
 0x229   :  { %v2245_v32 = vpop.permute.xlu1 %2244 }
 0x22a   :  { %v10529_v52 = vpop.permute.xlu0 %1226  ;;  %v3251_v36 = vsel %vm3228_vm7, %v3186_v53, %v2245_v32 }
 0x22b   :  { %1750 = vrot.lane.b32.xlu1 %v757_v57, %s9104_s15  ;;  %v2927_v57 = vsel %vm104_vm0, %v10074_v28, %v10439_v8 }
 0x22c   :  { %2004 = vrot.lane.b32.xlu0 %v820_v54, %s9105_s16  ;;  %v2992_v32 = vsel %vm2968_vm4, %v2927_v57, %v10447_v45  ;;  %v10604_v45 = vld [vmem:[#allocation2 + $0x1d0] sm:$0xff] }
 0x22d   :  { %v10531_v23 = vpop.permute.xlu1 %1480  ;;  %v3057_v28 = vsel %vm3033_vm2, %v2992_v32, %v10464_v29 }
 0x22e   :  { %v2247_v6 = vpop.permute.xlu0 %2246 }
 0x22f   :  { %2770 = vrot.lane.b32.xlu1 %v821_v60, %s9108_s1 }
 0x230   :  { %986 = vrot.lane.b32.xlu0 %v376_v44, %s9101_s29  ;;  %v758_v44 = vld [vmem:[#allocation2 + $0x199] sm:$0xff] }
 0x231   :  { %v2501_v21 = vpop.permute.xlu1 %2500 }
 0x232   :  { %v10546_v48 = vpop.permute.xlu0 %1482  ;;  %v3316_v35 = vsel %vm3293_vm8, %v3251_v36, %v2501_v21 }
 0x233   :  { %1240 = vrot.lane.b32.xlu1 %v439_v16, %s9102_s13  ;;  %v3122_v16 = vsel %vm3098_vm5, %v3057_v28, %v10507_v63  ;;  %v759_v63 = vld [vmem:[#allocation2 + $0x1a1] sm:$0xff] }
 0x234   :  { %2006 = vrot.lane.b32.xlu0 %v821_v60, %s9105_s16  ;;  %v3187_v21 = vsel %vm3163_vm6, %v3122_v16, %v1991_v1 }
 0x235   :  { %v10550_v3 = vpop.permute.xlu1 %1736  ;;  %v3252_v55 = vsel %vm3228_vm7, %v3187_v21, %v2247_v6 }
 0x236   :  { %v10558_v51 = vpop.f32.mrb[8].mxu0  ;;  %v2503_v11 = vpop.permute.xlu0 %2502 }
 0x237   :  { %2260 = vrot.lane.b32.xlu1 %v694_v49, %s9106_s21  ;;  %v10563_v7 = vpop.f32.mrb[9].mxu0  ;;  %v4147_v30 = vmul.f32 %v10558_v51, %v10558_v51  ;;  %v4022_v56 = vsel %vm2968_vm4, %v10558_v51, 0.0  ;;  %v567_v49 = vld [vmem:[#allocation2 + $0x1c9] sm:$0xff]  ;;  %v3317_v29 = vsel %vm3293_vm8, %v3252_v55, %v2503_v11 }
 0x238   :  { %v4020_v40 = vsel %vm2968_vm4, %v10563_v7, 0.0  ;;  %v4146_v47 = vmul.f32 %v10563_v7, %v10563_v7  ;;  %1242 = vrot.lane.b32.xlu0 %v440_v27, %s9102_s13  ;;  %v568_v27 = vld [vmem:[#allocation2 + $0x1d1] sm:$0xff] }
 0x239   :  { %v4021_v34 = vadd.f32 %v4020_v40, %v4019_v41  ;;  %v2757_v20 = vpop.permute.xlu1 %2756  ;;  %v695_v41 = vld [vmem:[#allocation2 + $0x1a0] sm:$0xff]  ;;  %v4219_v60 = vsel %vm2968_vm4, %v4147_v30, 0.0  ;;  %v631_v30 = vld [vmem:[#allocation2 + $0x1ca] sm:$0xff] }
 0x23a   :  { %v4217_v26 = vsel %vm2968_vm4, %v4146_v47, 0.0  ;;  %v3381_v19 = vsel %vm3358_vm9, %v3316_v35, %v2757_v20  ;;  %v10591_v13 = vpop.permute.xlu0 %972  ;;  %v823_v47 = vld [vmem:[#allocation2 + $0x1a2] sm:$0xff]  ;;  %v75_v35 = vld [vmem:[%s14257_s0 + $0x150] sm:$0xff] }
 0x23b   :  { %v4218_v54 = vadd.f32 %v4217_v26, %v4216_v17  ;;  %1496 = vrot.lane.b32.xlu1 %v10572_v4, %s9103_s14  ;;  %8563 = vmatprep.mubr.msk.f32.mxu0 %vm3423_vm10, %v3381_v19  ;;  %v10586_v62 = vadd.f32 %v4022_v56, %v4021_v34  ;;  %257 = vst.msk [vmem:[#allocation2 + $0x241] sm:$0xff] %vm104_vm0, %v75_v35  ;;  %v632_v26 = vld [vmem:[#allocation2 + $0x1d2] sm:$0xff]  ;;  %v760_v35 = vld [vmem:[#allocation2 + $0x1e1] sm:$0xff] }
 0x23c   :  { %2262 = vrot.lane.b32.xlu0 %v695_v41, %s9106_s21  ;;  %v2928_v56 = vsel %vm104_vm0, %v10121_v14, %v10500_v10 }
 0x23d   :  { %v10595_v8 = vpop.permute.xlu1 %1738  ;;  %v10597_v17 = vadd.f32 %v4219_v60, %v4218_v54  ;;  %v2993_v19 = vsel %vm2968_vm4, %v2928_v56, %v10523_v12  ;;  %v10640_v54 = vld [vmem:[#allocation2 + $0x1e0] sm:$0xff]  ;;  %v76_v60 = vld [vmem:[%s14257_s0 + $0x158] sm:$0xff] }
 0x23e   :  { %v1993_v22 = vpop.permute.xlu0 %1992  ;;  %v3058_v41 = vsel %vm3033_vm2, %v2993_v19, %v10531_v23  ;;  %258 = vst.msk [vmem:[#allocation2 + $0x249] sm:$0xff] %vm104_vm0, %v76_v60 }
 0x23f   :  { %2516 = vrot.lane.b32.xlu1 %v758_v44, %s9107_s28  ;;  %v3123_v14 = vsel %vm3098_vm5, %v3058_v41, %v10550_v3 }
 0x240   :  { %1498 = vrot.lane.b32.xlu0 %v10604_v45, %s9103_s14  ;;  %v3188_v12 = vsel %vm3163_vm6, %v3123_v14, %v1993_v22 }
 0x241   :  { %v2759_v18 = vpop.permute.xlu1 %2758 }
 0x242   :  { %v3382_v15 = vsel %vm3358_vm9, %v3317_v29, %v2759_v18  ;;  %v10613_v1 = vpop.permute.xlu0 %974 }
 0x243   :  { %1752 = vrot.lane.b32.xlu1 %v567_v49, %s9104_s15  ;;  %8564 = vmatmul.mubr.msk.f32.gmra.mrb[22].mxu0 %vm3423_vm10, %v3382_v15 }
 0x244   :  { %2518 = vrot.lane.b32.xlu0 %v759_v63, %s9107_s28  ;;  %v2929_v63 = vsel %vm104_vm0, %v10145_v25, %v10521_v61 }
 0x245   :  { %v10615_v53 = vpop.permute.xlu1 %1228 }
 0x246   :  { %v1995_v6 = vpop.permute.xlu0 %1994 }
 0x247   :  { %2772 = vrot.lane.b32.xlu1 %v822_v46, %s9108_s1 }
 0x248   :  { %988 = vrot.lane.b32.xlu0 %v567_v49, %s9101_s29 }
 0x249   :  { %v2249_v36 = vpop.permute.xlu1 %2248 }
 0x24a   :  { %v10621_v40 = vpop.permute.xlu0 %1230  ;;  %v3253_v44 = vsel %vm3228_vm7, %v3188_v12, %v2249_v36  ;;  %v2994_v36 = vsel %vm2968_vm4, %v2929_v63, %v10529_v52 }
 0x24b   :  { %1754 = vrot.lane.b32.xlu1 %v568_v27, %s9104_s15  ;;  %v3059_v25 = vsel %vm3033_vm2, %v2994_v36, %v10546_v48 }
 0x24c   :  { %2008 = vrot.lane.b32.xlu0 %v631_v30, %s9105_s16 }
 0x24d   :  { %v10623_v11 = vpop.permute.xlu1 %1484 }
 0x24e   :  { %v2251_v34 = vpop.permute.xlu0 %2250 }
 0x24f   :  { %2774 = vrot.lane.b32.xlu1 %v823_v47, %s9108_s1 }
 0x250   :  { %990 = vrot.lane.b32.xlu0 %v568_v27, %s9101_s29 }
 0x251   :  { %v2505_v20 = vpop.permute.xlu1 %2504 }
 0x252   :  { %v10638_v57 = vpop.permute.xlu0 %1486  ;;  %v3318_v55 = vsel %vm3293_vm8, %v3253_v44, %v2505_v20  ;;  %v3124_v20 = vsel %vm3098_vm5, %v3059_v25, %v10595_v8  ;;  %v761_v8 = vld [vmem:[#allocation2 + $0x1e9] sm:$0xff] }
 0x253   :  { %1244 = vrot.lane.b32.xlu1 %v631_v30, %s9102_s13  ;;  %v3189_v56 = vsel %vm3163_vm6, %v3124_v20, %v1995_v6  ;;  %v824_v6 = vld [vmem:[#allocation2 + $0x1e2] sm:$0xff] }
 0x254   :  { %2010 = vrot.lane.b32.xlu0 %v632_v26, %s9105_s16  ;;  %v3254_v52 = vsel %vm3228_vm7, %v3189_v56, %v2251_v34 }
 0x255   :  { %v10644_v32 = vpop.permute.xlu1 %1740 }
 0x256   :  { %v10652_v10 = vpop.f32.mrb[10].mxu0  ;;  %v2507_v21 = vpop.permute.xlu0 %2506 }
 0x257   :  { %2264 = vrot.lane.b32.xlu1 %v10640_v54, %s9106_s21  ;;  %v10658_v23 = vpop.f32.mrb[11].mxu0  ;;  %v4149_v28 = vmul.f32 %v10652_v10, %v10652_v10  ;;  %v4026_v29 = vsel %vm2968_vm4, %v10652_v10, 0.0  ;;  %v3319_v19 = vsel %vm3293_vm8, %v3254_v52, %v2507_v21 }
 0x258   :  { %v4024_v3 = vsel %vm2968_vm4, %v10658_v23, 0.0  ;;  %v4148_v16 = vmul.f32 %v10658_v23, %v10658_v23  ;;  %1246 = vrot.lane.b32.xlu0 %v632_v26, %s9102_s13 }
 0x259   :  { %v4025_v22 = vadd.f32 %v4024_v3, %v10586_v62  ;;  %v2761_v49 = vpop.permute.xlu1 %2760  ;;  %v10681_v62 = vld [vmem:[#allocation2 + $0x1e8] sm:$0xff]  ;;  %v4223_v30 = vsel %vm2968_vm4, %v4149_v28, 0.0 }
 0x25a   :  { %v4221_v18 = vsel %vm2968_vm4, %v4148_v16, 0.0  ;;  %v3383_v15 = vsel %vm3358_vm9, %v3318_v55, %v2761_v49  ;;  %v10686_v47 = vpop.permute.xlu0 %976  ;;  %v825_v28 = vld [vmem:[#allocation2 + $0x1ea] sm:$0xff]  ;;  %v77_v16 = vld [vmem:[%s14257_s0 + $0x160] sm:$0xff] }
 0x25b   :  { %v4222_v46 = vadd.f32 %v4221_v18, %v10597_v17  ;;  %1500 = vrot.lane.b32.xlu1 %v10640_v54, %s9103_s14  ;;  %8566 = vmatprep.mubr.msk.f32.mxu0 %vm3423_vm10, %v3383_v15  ;;  %v4027_v27 = vadd.f32 %v4026_v29, %v4025_v22  ;;  %259 = vst.msk [vmem:[#allocation2 + $0x259] sm:$0xff] %vm104_vm0, %v77_v16  ;;  %v10732_v18 = vld [vmem:[#allocation2 + $0x1f8] sm:$0xff] }
 0x25c   :  { %2266 = vrot.lane.b32.xlu0 %v10681_v62, %s9106_s21  ;;  %v2930_v22 = vsel %vm104_vm0, %v10192_v33, %v10591_v13 }
 0x25d   :  { %v10690_v61 = vpop.permute.xlu1 %1742  ;;  %v4224_v17 = vadd.f32 %v4223_v30, %v4222_v46  ;;  %v2995_v49 = vsel %vm2968_vm4, %v2930_v22, %v10615_v53  ;;  %v78_v46 = vld [vmem:[%s14257_s0 + $0x168] sm:$0xff] }
 0x25e   :  { %v1997_v26 = vpop.permute.xlu0 %1996  ;;  %v3060_v15 = vsel %vm3033_vm2, %v2995_v49, %v10623_v11  ;;  %260 = vst.msk [vmem:[#allocation2 + $0x261] sm:$0xff] %vm104_vm0, %v78_v46 }
 0x25f   :  { %2520 = vrot.lane.b32.xlu1 %v760_v35, %s9107_s28  ;;  %v3125_v33 = vsel %vm3098_vm5, %v3060_v15, %v10644_v32 }
 0x260   :  { %1502 = vrot.lane.b32.xlu0 %v10681_v62, %s9103_s14  ;;  %v3190_v53 = vsel %vm3163_vm6, %v3125_v33, %v1997_v26 }
 0x261   :  { %v2763_v41 = vpop.permute.xlu1 %2762 }
 0x262   :  { %v3384_v48 = vsel %vm3358_vm9, %v3319_v19, %v2763_v41  ;;  %v10705_v60 = vpop.permute.xlu0 %978 }
 0x263   :  { %1756 = vrot.lane.b32.xlu1 %v760_v35, %s9104_s15  ;;  %8567 = vmatmul.mubr.msk.f32.gmra.mrb[24].mxu0 %vm3423_vm10, %v3384_v48  ;;  %v2931_v48 = vsel %vm104_vm0, %v10217_v9, %v10613_v1 }
 0x264   :  { %2522 = vrot.lane.b32.xlu0 %v761_v8, %s9107_s28 }
 0x265   :  { %v10707_v14 = vpop.permute.xlu1 %1232 }
 0x266   :  { %v1999_v34 = vpop.permute.xlu0 %1998 }
 0x267   :  { %2776 = vrot.lane.b32.xlu1 %v824_v6, %s9108_s1 }
 0x268   :  { %992 = vrot.lane.b32.xlu0 %v760_v35, %s9101_s29 }
 0x269   :  { %v2253_v12 = vpop.permute.xlu1 %2252 }
 0x26a   :  { %v10713_v44 = vpop.permute.xlu0 %1234  ;;  %v3255_v36 = vsel %vm3228_vm7, %v3190_v53, %v2253_v12  ;;  %v2996_v12 = vsel %vm2968_vm4, %v2931_v48, %v10621_v40  ;;  %v10822_v48 = vld [vmem:[#allocation2 + $0x210] sm:$0xff] }
 0x26b   :  { %1758 = vrot.lane.b32.xlu1 %v761_v8, %s9104_s15  ;;  %v3061_v9 = vsel %vm3033_vm2, %v2996_v12, %v10638_v57 }
 0x26c   :  { %2012 = vrot.lane.b32.xlu0 %v824_v6, %s9105_s16  ;;  %v3126_v22 = vsel %vm3098_vm5, %v3061_v9, %v10690_v61  ;;  %v763_v61 = vld [vmem:[#allocation2 + $0x201] sm:$0xff] }
 0x26d   :  { %v10715_v3 = vpop.permute.xlu1 %1488  ;;  %v3191_v49 = vsel %vm3163_vm6, %v3126_v22, %v1999_v34  ;;  %v826_v34 = vld [vmem:[#allocation2 + $0x1fa] sm:$0xff] }
 0x26e   :  { %v2255_v21 = vpop.permute.xlu0 %2254 }
 0x26f   :  { %2778 = vrot.lane.b32.xlu1 %v825_v28, %s9108_s1  ;;  %v3256_v40 = vsel %vm3228_vm7, %v3191_v49, %v2255_v21 }
 0x270   :  { %994 = vrot.lane.b32.xlu0 %v761_v8, %s9101_s29 }
 0x271   :  { %v2509_v55 = vpop.permute.xlu1 %2508 }
 0x272   :  { %v10730_v29 = vpop.permute.xlu0 %1490  ;;  %v3320_v20 = vsel %vm3293_vm8, %v3255_v36, %v2509_v55 }
 0x273   :  { %1248 = vrot.lane.b32.xlu1 %v824_v6, %s9102_s13 }
 0x274   :  { %2014 = vrot.lane.b32.xlu0 %v825_v28, %s9105_s16 }
 0x275   :  { %v10736_v63 = vpop.permute.xlu1 %1744 }
 0x276   :  { %v10744_v13 = vpop.f32.mrb[12].mxu0  ;;  %v2511_v25 = vpop.permute.xlu0 %2510 }
 0x277   :  { %2268 = vrot.lane.b32.xlu1 %v10732_v18, %s9106_s21  ;;  %v10750_v11 = vpop.f32.mrb[13].mxu0  ;;  %v4151_v30 = vmul.f32 %v10744_v13, %v10744_v13  ;;  %v4030_v26 = vsel %vm2968_vm4, %v10744_v13, 0.0  ;;  %v3321_v46 = vsel %vm3293_vm8, %v3256_v40, %v2511_v25 }
 0x278   :  { %v4028_v32 = vsel %vm2968_vm4, %v10750_v11, 0.0  ;;  %v4150_v35 = vmul.f32 %v10750_v11, %v10750_v11  ;;  %1250 = vrot.lane.b32.xlu0 %v825_v28, %s9102_s13  ;;  %v762_v28 = vld [vmem:[#allocation2 + $0x1f9] sm:$0xff] }
 0x279   :  { %v4029_v56 = vadd.f32 %v4028_v32, %v4027_v27  ;;  %v2765_v52 = vpop.permute.xlu1 %2764  ;;  %v10771_v27 = vld [vmem:[#allocation2 + $0x200] sm:$0xff]  ;;  %v4227_v16 = vsel %vm2968_vm4, %v4151_v30, 0.0 }
 0x27a   :  { %v4225_v19 = vsel %vm2968_vm4, %v4150_v35, 0.0  ;;  %v3385_v41 = vsel %vm3358_vm9, %v3320_v20, %v2765_v52  ;;  %v10776_v55 = vpop.permute.xlu0 %980  ;;  %v827_v35 = vld [vmem:[#allocation2 + $0x202] sm:$0xff]  ;;  %v79_v20 = vld [vmem:[%s14257_s0 + $0x170] sm:$0xff] }
 0x27b   :  { %v4226_v8 = vadd.f32 %v4225_v19, %v4224_v17  ;;  %1504 = vrot.lane.b32.xlu1 %v10732_v18, %s9103_s14  ;;  %8569 = vmatprep.mubr.msk.f32.mxu0 %vm3423_vm10, %v3385_v41  ;;  %v4031_v6 = vadd.f32 %v4030_v26, %v4029_v56  ;;  %261 = vst.msk [vmem:[#allocation2 + $0x271] sm:$0xff] %vm104_vm0, %v79_v20 }
 0x27c   :  { %2270 = vrot.lane.b32.xlu0 %v10771_v27, %s9106_s21  ;;  %v2932_v26 = vsel %vm104_vm0, %v10284_v50, %v10686_v47 }
 0x27d   :  { %v10780_v1 = vpop.permute.xlu1 %1746  ;;  %v4228_v17 = vadd.f32 %v4227_v16, %v4226_v8  ;;  %v2997_v19 = vsel %vm2968_vm4, %v2932_v26, %v10707_v14  ;;  %v80_v16 = vld [vmem:[%s14257_s0 + $0x178] sm:$0xff] }
 0x27e   :  { %v2001_v15 = vpop.permute.xlu0 %2000  ;;  %v3062_v8 = vsel %vm3033_vm2, %v2997_v19, %v10715_v3  ;;  %262 = vst.msk [vmem:[#allocation2 + $0x279] sm:$0xff] %vm104_vm0, %v80_v16 }
 0x27f   :  { %2524 = vrot.lane.b32.xlu1 %v762_v28, %s9107_s28  ;;  %v3127_v50 = vsel %vm3098_vm5, %v3062_v8, %v10736_v63 }
 0x280   :  { %1506 = vrot.lane.b32.xlu0 %v10771_v27, %s9103_s14  ;;  %v3192_v14 = vsel %vm3163_vm6, %v3127_v50, %v2001_v15 }
 0x281   :  { %v2767_v33 = vpop.permute.xlu1 %2766 }
 0x282   :  { %v3386_v57 = vsel %vm3358_vm9, %v3321_v46, %v2767_v33  ;;  %v10795_v53 = vpop.permute.xlu0 %982 }
 0x283   :  { %1760 = vrot.lane.b32.xlu1 %v762_v28, %s9104_s15  ;;  %8570 = vmatmul.mubr.msk.f32.gmra.mrb[26].mxu0 %vm3423_vm10, %v3386_v57 }
 0x284   :  { %2526 = vrot.lane.b32.xlu0 %v763_v61, %s9107_s28 }
 0x285   :  { %v10797_v36 = vpop.permute.xlu1 %1236 }
 0x286   :  { %v2003_v21 = vpop.permute.xlu0 %2002 }
 0x287   :  { %2780 = vrot.lane.b32.xlu1 %v826_v34, %s9108_s1 }
 0x288   :  { %996 = vrot.lane.b32.xlu0 %v762_v28, %s9101_s29 }
 0x289   :  { %v2257_v30 = vpop.permute.xlu1 %2256 }
 0x28a   :  { %v10803_v32 = vpop.permute.xlu0 %1238  ;;  %v3257_v28 = vsel %vm3228_vm7, %v3192_v14, %v2257_v30 }
 0x28b   :  { %1762 = vrot.lane.b32.xlu1 %v763_v61, %s9104_s15 }
 0x28c   :  { %2016 = vrot.lane.b32.xlu0 %v826_v34, %s9105_s16 }
 0x28d   :  { %v10805_v25 = vpop.permute.xlu1 %1492 }
 0x28e   :  { %v2259_v56 = vpop.permute.xlu0 %2258 }
 0x28f   :  { %2782 = vrot.lane.b32.xlu1 %v827_v35, %s9108_s1 }
 0x290   :  { %998 = vrot.lane.b32.xlu0 %v763_v61, %s9101_s29 }
 0x291   :  { %v2513_v52 = vpop.permute.xlu1 %2512 }
 0x292   :  { %v10820_v41 = vpop.permute.xlu0 %1494  ;;  %v3322_v40 = vsel %vm3293_vm8, %v3257_v28, %v2513_v52 }
 0x293   :  { %1252 = vrot.lane.b32.xlu1 %v826_v34, %s9102_s13  ;;  %v2933_v34 = vsel %vm104_vm0, %v10310_v24, %v10705_v60 }
 0x294   :  { %2018 = vrot.lane.b32.xlu0 %v827_v35, %s9105_s16  ;;  %v2998_v52 = vsel %vm2968_vm4, %v2933_v34, %v10713_v44 }
 0x295   :  { %v10826_v12 = vpop.permute.xlu1 %1748  ;;  %v3063_v24 = vsel %vm3033_vm2, %v2998_v52, %v10730_v29  ;;  %v10912_v52 = vld [vmem:[#allocation2 + $0x228] sm:$0xff] }
 0x296   :  { %v10834_v47 = vpop.f32.mrb[14].mxu0  ;;  %v2515_v49 = vpop.permute.xlu0 %2514  ;;  %v3128_v8 = vsel %vm3098_vm5, %v3063_v24, %v10780_v1  ;;  %v765_v1 = vld [vmem:[#allocation2 + $0x219] sm:$0xff]  ;;  %v82_v24 = vld [vmem:[%s14257_s0 + $0x188] sm:$0xff] }
 0x297   :  { %2272 = vrot.lane.b32.xlu1 %v10822_v48, %s9106_s21  ;;  %v10840_v3 = vpop.f32.mrb[15].mxu0  ;;  %v4153_v9 = vmul.f32 %v10834_v47, %v10834_v47  ;;  %v4034_v33 = vsel %vm2968_vm4, %v10834_v47, 0.0  ;;  %v3193_v16 = vsel %vm3163_vm6, %v3128_v8, %v2003_v21  ;;  %v828_v21 = vld [vmem:[#allocation2 + $0x212] sm:$0xff]  ;;  %264 = vst.msk [vmem:[#allocation2 + $0x291] sm:$0xff] %vm104_vm0, %v82_v24  ;;  %v766_v24 = vld [vmem:[#allocation2 + $0x229] sm:$0xff] }
 0x298   :  { %v4032_v63 = vsel %vm2968_vm4, %v10840_v3, 0.0  ;;  %v4152_v22 = vmul.f32 %v10840_v3, %v10840_v3  ;;  %1254 = vrot.lane.b32.xlu0 %v827_v35, %s9102_s13  ;;  %v764_v35 = vld [vmem:[#allocation2 + $0x211] sm:$0xff]  ;;  %v3258_v44 = vsel %vm3228_vm7, %v3193_v16, %v2259_v56 }
 0x299   :  { %v4033_v15 = vadd.f32 %v4032_v63, %v4031_v6  ;;  %v2769_v46 = vpop.permute.xlu1 %2768  ;;  %v10861_v6 = vld [vmem:[#allocation2 + $0x218] sm:$0xff]  ;;  %v4231_v26 = vsel %vm2968_vm4, %v4153_v9, 0.0  ;;  %v3323_v14 = vsel %vm3293_vm8, %v3258_v44, %v2515_v49 }
 0x29a   :  { %v4229_v57 = vsel %vm2968_vm4, %v4152_v22, 0.0  ;;  %v3387_v61 = vsel %vm3358_vm9, %v3322_v40, %v2769_v46  ;;  %v10866_v19 = vpop.permute.xlu0 %984  ;;  %v829_v40 = vld [vmem:[#allocation2 + $0x21a] sm:$0xff] }
 0x29b   :  { %v4230_v30 = vadd.f32 %v4229_v57, %v4228_v17  ;;  %1508 = vrot.lane.b32.xlu1 %v10822_v48, %s9103_s14  ;;  %8572 = vmatprep.mubr.msk.f32.mxu0 %vm3423_vm10, %v3387_v61  ;;  %v4035_v20 = vadd.f32 %v4034_v33, %v4033_v15  ;;  %v81_v46 = vld [vmem:[%s14257_s0 + $0x180] sm:$0xff]  ;;  %v2934_v61 = vsel %vm104_vm0, %v10376_v31, %v10776_v55 }
 0x29c   :  { %2274 = vrot.lane.b32.xlu0 %v10861_v6, %s9106_s21  ;;  %263 = vst.msk [vmem:[#allocation2 + $0x289] sm:$0xff] %vm104_vm0, %v81_v46  ;;  %v2999_v34 = vsel %vm2968_vm4, %v2934_v61, %v10797_v36  ;;  %v2935_v46 = vsel %vm104_vm0, %v10402_v59, %v10795_v53 }
 0x29d   :  { %v10870_v60 = vpop.permute.xlu1 %1750  ;;  %v4232_v17 = vadd.f32 %v4231_v26, %v4230_v30  ;;  %v3064_v26 = vsel %vm3033_vm2, %v2999_v34, %v10805_v25  ;;  %v3000_v34 = vsel %vm2968_vm4, %v2935_v46, %v10803_v32 }
 0x29e   :  { %v2005_v50 = vpop.permute.xlu0 %2004  ;;  %v3129_v31 = vsel %vm3098_vm5, %v3064_v26, %v10826_v12  ;;  %v3065_v59 = vsel %vm3033_vm2, %v3000_v34, %v10820_v41 }
 0x29f   :  { %2528 = vrot.lane.b32.xlu1 %v764_v35, %s9107_s28  ;;  %v3194_v36 = vsel %vm3163_vm6, %v3129_v31, %v2005_v50  ;;  %v3130_v31 = vsel %vm3098_vm5, %v3065_v59, %v10870_v60  ;;  %v767_v60 = vld [vmem:[#allocation2 + $0x231] sm:$0xff]  ;;  %v11005_v59 = vld [vmem:[#allocation2 + $0x240] sm:$0xff] }
 0x2a0   :  { %1510 = vrot.lane.b32.xlu0 %v10861_v6, %s9103_s14 }
 0x2a1   :  { %v2771_v28 = vpop.permute.xlu1 %2770 }
 0x2a2   :  { %v3388_v29 = vsel %vm3358_vm9, %v3323_v14, %v2771_v28  ;;  %v10885_v9 = vpop.permute.xlu0 %986 }
 0x2a3   :  { %1764 = vrot.lane.b32.xlu1 %v764_v35, %s9104_s15  ;;  %8573 = vmatmul.mubr.msk.f32.gmra.mrb[28].mxu0 %vm3423_vm10, %v3388_v29 }
 0x2a4   :  { %2530 = vrot.lane.b32.xlu0 %v765_v1, %s9107_s28 }
 0x2a5   :  { %v10887_v63 = vpop.permute.xlu1 %1240 }
 0x2a6   :  { %v2007_v56 = vpop.permute.xlu0 %2006 }
 0x2a7   :  { %2784 = vrot.lane.b32.xlu1 %v828_v21, %s9108_s1  ;;  %v3195_v32 = vsel %vm3163_vm6, %v3130_v31, %v2007_v56  ;;  %v830_v56 = vld [vmem:[#allocation2 + $0x22a] sm:$0xff] }
 0x2a8   :  { %1000 = vrot.lane.b32.xlu0 %v764_v35, %s9101_s29 }
 0x2a9   :  { %v2261_v22 = vpop.permute.xlu1 %2260 }
 0x2aa   :  { %v10893_v49 = vpop.permute.xlu0 %1242  ;;  %v3259_v8 = vsel %vm3228_vm7, %v3194_v36, %v2261_v22 }
 0x2ab   :  { %1766 = vrot.lane.b32.xlu1 %v765_v1, %s9104_s15 }
 0x2ac   :  { %2020 = vrot.lane.b32.xlu0 %v828_v21, %s9105_s16 }
 0x2ad   :  { %v10895_v15 = vpop.permute.xlu1 %1496 }
 0x2ae   :  { %v2263_v33 = vpop.permute.xlu0 %2262 }
 0x2af   :  { %2786 = vrot.lane.b32.xlu1 %v829_v40, %s9108_s1  ;;  %v3260_v36 = vsel %vm3228_vm7, %v3195_v32, %v2263_v33 }
 0x2b0   :  { %1002 = vrot.lane.b32.xlu0 %v765_v1, %s9101_s29 }
 0x2b1   :  { %v2517_v57 = vpop.permute.xlu1 %2516 }
 0x2b2   :  { %v10910_v30 = vpop.permute.xlu0 %1498  ;;  %v3324_v28 = vsel %vm3293_vm8, %v3259_v8, %v2517_v57 }
 0x2b3   :  { %1256 = vrot.lane.b32.xlu1 %v828_v21, %s9102_s13 }
 0x2b4   :  { %2022 = vrot.lane.b32.xlu0 %v829_v40, %s9105_s16 }
 0x2b5   :  { %v10916_v35 = vpop.permute.xlu1 %1752 }
 0x2b6   :  { %v10924_v55 = vpop.f32.mrb[16].mxu0  ;;  %v2519_v14 = vpop.permute.xlu0 %2518 }
 0x2b7   :  { %2276 = vrot.lane.b32.xlu1 %v10912_v52, %s9106_s21  ;;  %v10930_v25 = vpop.f32.mrb[17].mxu0  ;;  %v4155_v16 = vmul.f32 %v10924_v55, %v10924_v55  ;;  %v4038_v1 = vsel %vm2968_vm4, %v10924_v55, 0.0 }
 0x2b8   :  { %v4036_v12 = vsel %vm2968_vm4, %v10930_v25, 0.0  ;;  %v4154_v44 = vmul.f32 %v10930_v25, %v10930_v25  ;;  %1258 = vrot.lane.b32.xlu0 %v829_v40, %s9102_s13 }
 0x2b9   :  { %v4037_v50 = vadd.f32 %v4036_v12, %v4035_v20  ;;  %v2773_v29 = vpop.permute.xlu1 %2772  ;;  %v10951_v20 = vld [vmem:[#allocation2 + $0x230] sm:$0xff]  ;;  %v4235_v26 = vsel %vm2968_vm4, %v4155_v16, 0.0  ;;  %v3325_v16 = vsel %vm3293_vm8, %v3260_v36, %v2519_v14  ;;  %v84_v36 = vld [vmem:[%s14257_s0 + $0x198] sm:$0xff] }
 0x2ba   :  { %v4233_v21 = vsel %vm2968_vm4, %v4154_v44, 0.0  ;;  %v3389_v22 = vsel %vm3358_vm9, %v3324_v28, %v2773_v29  ;;  %v10958_v40 = vpop.permute.xlu0 %988  ;;  %v831_v29 = vld [vmem:[#allocation2 + $0x232] sm:$0xff]  ;;  %266 = vst.msk [vmem:[#allocation2 + $0x2a9] sm:$0xff] %vm104_vm0, %v84_v36 }
 0x2bb   :  { %v4234_v61 = vadd.f32 %v4233_v21, %v4232_v17  ;;  %1512 = vrot.lane.b32.xlu1 %v10912_v52, %s9103_s14  ;;  %8575 = vmatprep.mubr.msk.f32.mxu0 %vm3423_vm10, %v3389_v22  ;;  %v10953_v57 = vadd.f32 %v4038_v1, %v4037_v50  ;;  %v83_v21 = vld [vmem:[%s14257_s0 + $0x190] sm:$0xff] }
 0x2bc   :  { %2278 = vrot.lane.b32.xlu0 %v10951_v20, %s9106_s21  ;;  %265 = vst.msk [vmem:[#allocation2 + $0x2a1] sm:$0xff] %vm104_vm0, %v83_v21  ;;  %v311_v22 = vld [vmem:[#allocation2 + $0x1b0] sm:$0xff] }
 0x2bd   :  { %v10962_v53 = vpop.permute.xlu1 %1754  ;;  %v10964_v17 = vadd.f32 %v4235_v26, %v4234_v61  ;;  %v2936_v34 = vsel %vm104_vm0, %v311_v22, %v10866_v19 }
 0x2be   :  { %v2009_v8 = vpop.permute.xlu0 %2008  ;;  %v3001_v26 = vsel %vm2968_vm4, %v2936_v34, %v10887_v63 }
 0x2bf   :  { %2532 = vrot.lane.b32.xlu1 %v766_v24, %s9107_s28  ;;  %v3066_v31 = vsel %vm3033_vm2, %v3001_v26, %v10895_v15 }
 0x2c0   :  { %1514 = vrot.lane.b32.xlu0 %v10951_v20, %s9103_s14  ;;  %v3131_v19 = vsel %vm3098_vm5, %v3066_v31, %v10916_v35 }
 0x2c1   :  { %v2775_v41 = vpop.permute.xlu1 %2774  ;;  %v3196_v63 = vsel %vm3163_vm6, %v3131_v19, %v2009_v8 }
 0x2c2   :  { %v3390_v12 = vsel %vm3358_vm9, %v3325_v16, %v2775_v41  ;;  %v10979_v44 = vpop.permute.xlu0 %990  ;;  %v312_v41 = vld [vmem:[#allocation2 + $0x1b8] sm:$0xff] }
 0x2c3   :  { %1768 = vrot.lane.b32.xlu1 %v766_v24, %s9104_s15  ;;  %8576 = vmatmul.mubr.msk.f32.gmra.mrb[30].mxu0 %vm3423_vm10, %v3390_v12  ;;  %v2937_v36 = vsel %vm104_vm0, %v312_v41, %v10885_v9 }
 0x2c4   :  { %2534 = vrot.lane.b32.xlu0 %v767_v60, %s9107_s28 }
 0x2c5   :  { %v10981_v28 = vpop.permute.xlu1 %1244 }
 0x2c6   :  { %v2011_v33 = vpop.permute.xlu0 %2010 }
 0x2c7   :  { %2788 = vrot.lane.b32.xlu1 %v830_v56, %s9108_s1 }
 0x2c8   :  { %1004 = vrot.lane.b32.xlu0 %v766_v24, %s9101_s29 }
 0x2c9   :  { %v2265_v14 = vpop.permute.xlu1 %2264 }
 0x2ca   :  { %v10987_v50 = vpop.permute.xlu0 %1246  ;;  %v3261_v12 = vsel %vm3228_vm7, %v3196_v63, %v2265_v14  ;;  %v3002_v63 = vsel %vm2968_vm4, %v2937_v36, %v10893_v49  ;;  %v833_v36 = vld [vmem:[#allocation2 + $0x24a] sm:$0xff] }
 0x2cb   :  { %1770 = vrot.lane.b32.xlu1 %v767_v60, %s9104_s15  ;;  %v3067_v9 = vsel %vm3033_vm2, %v3002_v63, %v10910_v30  ;;  %v85_v63 = vld [vmem:[%s14257_s0 + $0x1a0] sm:$0xff] }
 0x2cc   :  { %2024 = vrot.lane.b32.xlu0 %v830_v56, %s9105_s16  ;;  %267 = vst.msk [vmem:[#allocation2 + $0x2b9] sm:$0xff] %vm104_vm0, %v85_v63 }
 0x2cd   :  { %v10989_v1 = vpop.permute.xlu1 %1500 }
 0x2ce   :  { %v2267_v46 = vpop.permute.xlu0 %2266 }
 0x2cf   :  { %2790 = vrot.lane.b32.xlu1 %v831_v29, %s9108_s1 }
 0x2d0   :  { %1006 = vrot.lane.b32.xlu0 %v767_v60, %s9101_s29 }
 0x2d1   :  { %v2521_v61 = vpop.permute.xlu1 %2520 }
 0x2d2   :  { %v11003_v24 = vpop.permute.xlu0 %1502  ;;  %v3326_v8 = vsel %vm3293_vm8, %v3261_v12, %v2521_v61 }
 0x2d3   :  { %1260 = vrot.lane.b32.xlu1 %v830_v56, %s9102_s13 }
 0x2d4   :  { %2026 = vrot.lane.b32.xlu0 %v831_v29, %s9105_s16 }
 0x2d5   :  { %v11009_v32 = vpop.permute.xlu1 %1756 }
 0x2d6   :  { %v11017_v16 = vpop.f32.mrb[18].mxu0  ;;  %v2523_v21 = vpop.permute.xlu0 %2522 }
 0x2d7   :  { %2280 = vrot.lane.b32.xlu1 %v11005_v59, %s9106_s21  ;;  %v11023_v15 = vpop.f32.mrb[19].mxu0  ;;  %v4157_v60 = vmul.f32 %v11017_v16, %v11017_v16  ;;  %v4042_v26 = vsel %vm2968_vm4, %v11017_v16, 0.0 }
 0x2d8   :  { %v4040_v35 = vsel %vm2968_vm4, %v11023_v15, 0.0  ;;  %v4156_v56 = vmul.f32 %v11023_v15, %v11023_v15  ;;  %1262 = vrot.lane.b32.xlu0 %v831_v29, %s9102_s13  ;;  %v768_v29 = vld [vmem:[#allocation2 + $0x241] sm:$0xff] }
 0x2d9   :  { %v4041_v22 = vadd.f32 %v4040_v35, %v10953_v57  ;;  %v2777_v34 = vpop.permute.xlu1 %2776  ;;  %v11045_v57 = vld [vmem:[#allocation2 + $0x248] sm:$0xff]  ;;  %v4239_v12 = vsel %vm2968_vm4, %v4157_v60, 0.0 }
 0x2da   :  { %v4237_v14 = vsel %vm2968_vm4, %v4156_v56, 0.0  ;;  %v3391_v31 = vsel %vm3358_vm9, %v3326_v8, %v2777_v34  ;;  %v11050_v35 = vpop.permute.xlu0 %992  ;;  %v3132_v56 = vsel %vm3098_vm5, %v3067_v9, %v10962_v53  ;;  %v769_v53 = vld [vmem:[#allocation2 + $0x249] sm:$0xff] }
 0x2db   :  { %v4238_v19 = vadd.f32 %v4237_v14, %v10964_v17  ;;  %1516 = vrot.lane.b32.xlu1 %v11005_v59, %s9103_s14  ;;  %8578 = vmatprep.mubr.msk.f32.mxu0 %vm3423_vm10, %v3391_v31  ;;  %v4043_v61 = vadd.f32 %v4042_v26, %v4041_v22  ;;  %v3197_v8 = vsel %vm3163_vm6, %v3132_v56, %v2011_v33  ;;  %v832_v33 = vld [vmem:[#allocation2 + $0x242] sm:$0xff] }
 0x2dc   :  { %2282 = vrot.lane.b32.xlu0 %v11045_v57, %s9106_s21  ;;  %v3262_v49 = vsel %vm3228_vm7, %v3197_v8, %v2267_v46 }
 0x2dd   :  { %v11054_v17 = vpop.permute.xlu1 %1758  ;;  %v4240_v41 = vadd.f32 %v4239_v12, %v4238_v19  ;;  %v3327_v22 = vsel %vm3293_vm8, %v3262_v49, %v2523_v21  ;;  %v11096_v49 = vld [vmem:[#allocation2 + $0x258] sm:$0xff] }
 0x2de   :  { %v2013_v60 = vpop.permute.xlu0 %2012 }
 0x2df   :  { %2536 = vrot.lane.b32.xlu1 %v768_v29, %s9107_s28 }
 0x2e0   :  { %1518 = vrot.lane.b32.xlu0 %v11045_v57, %s9103_s14 }
 0x2e1   :  { %v2779_v34 = vpop.permute.xlu1 %2778 }
 0x2e2   :  { %v3392_v30 = vsel %vm3358_vm9, %v3327_v22, %v2779_v34  ;;  %v11069_v26 = vpop.permute.xlu0 %994 }
 0x2e3   :  { %1772 = vrot.lane.b32.xlu1 %v768_v29, %s9104_s15  ;;  %8579 = vmatmul.mubr.msk.f32.gmra.mrb[32].mxu0 %vm3423_vm10, %v3392_v30  ;;  %v86_v30 = vld [vmem:[%s14257_s0 + $0x1a8] sm:$0xff] }
 0x2e4   :  { %2538 = vrot.lane.b32.xlu0 %v769_v53, %s9107_s28  ;;  %268 = vst.msk [vmem:[#allocation2 + $0x2c1] sm:$0xff] %vm104_vm0, %v86_v30 }
 0x2e5   :  { %v11071_v14 = vpop.permute.xlu1 %1248 }
 0x2e6   :  { %v2015_v46 = vpop.permute.xlu0 %2014 }
 0x2e7   :  { %2792 = vrot.lane.b32.xlu1 %v832_v33, %s9108_s1 }
 0x2e8   :  { %1008 = vrot.lane.b32.xlu0 %v768_v29, %s9101_s29  ;;  %v2938_v29 = vsel %vm104_vm0, %v10572_v4, %v10958_v40 }
 0x2e9   :  { %v2269_v21 = vpop.permute.xlu1 %2268  ;;  %v3003_v56 = vsel %vm2968_vm4, %v2938_v29, %v10981_v28 }
 0x2ea   :  { %v11077_v31 = vpop.permute.xlu0 %1250  ;;  %v3068_v22 = vsel %vm3033_vm2, %v3003_v56, %v10989_v1 }
 0x2eb   :  { %1774 = vrot.lane.b32.xlu1 %v769_v53, %s9104_s15  ;;  %v3133_v4 = vsel %vm3098_vm5, %v3068_v22, %v11009_v32 }
 0x2ec   :  { %2028 = vrot.lane.b32.xlu0 %v832_v33, %s9105_s16  ;;  %v3198_v28 = vsel %vm3163_vm6, %v3133_v4, %v2013_v60 }
 0x2ed   :  { %v11079_v19 = vpop.permute.xlu1 %1504 }
 0x2ee   :  { %v2271_v12 = vpop.permute.xlu0 %2270 }
 0x2ef   :  { %2794 = vrot.lane.b32.xlu1 %v833_v36, %s9108_s1 }
 0x2f0   :  { %1010 = vrot.lane.b32.xlu0 %v769_v53, %s9101_s29  ;;  %v3263_v53 = vsel %vm3228_vm7, %v3198_v28, %v2269_v21  ;;  %v2939_v28 = vsel %vm104_vm0, %v10604_v45, %v10979_v44 }
 0x2f1   :  { %v2525_v9 = vpop.permute.xlu1 %2524 }
 0x2f2   :  { %v11094_v8 = vpop.permute.xlu0 %1506  ;;  %v3328_v56 = vsel %vm3293_vm8, %v3263_v53, %v2525_v9  ;;  %v3004_v53 = vsel %vm2968_vm4, %v2939_v28, %v10987_v50  ;;  %v835_v28 = vld [vmem:[#allocation2 + $0x262] sm:$0xff] }
 0x2f3   :  { %1264 = vrot.lane.b32.xlu1 %v832_v33, %s9102_s13  ;;  %v3069_v45 = vsel %vm3033_vm2, %v3004_v53, %v11003_v24 }
 0x2f4   :  { %2030 = vrot.lane.b32.xlu0 %v833_v36, %s9105_s16 }
 0x2f5   :  { %v11100_v34 = vpop.permute.xlu1 %1760 }
 0x2f6   :  { %v11108_v40 = vpop.f32.mrb[20].mxu0  ;;  %v2527_v29 = vpop.permute.xlu0 %2526 }
 0x2f7   :  { %14296 = vst [vmem:[#allocation11_spill] sm:$0xff] %v11108_v40  ;;  %2284 = vrot.lane.b32.xlu1 %v11096_v49, %s9106_s21  ;;  %v11114_v1 = vpop.f32.mrb[21].mxu0  ;;  %v4159_v33 = vmul.f32 %v11108_v40, %v11108_v40  ;;  %v4046_v30 = vsel %vm2968_vm4, %v11108_v40, 0.0 }
 0x2f8   :  { %14297 = vst [vmem:[#allocation12_spill] sm:$0xff] %v11114_v1  ;;  %v4044_v32 = vsel %vm2968_vm4, %v11114_v1, 0.0  ;;  %v4158_v63 = vmul.f32 %v11114_v1, %v11114_v1  ;;  %1266 = vrot.lane.b32.xlu0 %v833_v36, %s9102_s13  ;;  %v770_v36 = vld [vmem:[#allocation2 + $0x259] sm:$0xff] }
 0x2f9   :  { %v4045_v60 = vadd.f32 %v4044_v32, %v4043_v61  ;;  %v2781_v22 = vpop.permute.xlu1 %2780  ;;  %v11135_v61 = vld [vmem:[#allocation2 + $0x260] sm:$0xff]  ;;  %v4243_v32 = vsel %vm2968_vm4, %v4159_v33, 0.0 }
 0x2fa   :  { %v4241_v4 = vsel %vm2968_vm4, %v4158_v63, 0.0  ;;  %v3393_v21 = vsel %vm3358_vm9, %v3328_v56, %v2781_v22  ;;  %v11140_v63 = vpop.permute.xlu0 %996  ;;  %v3134_v56 = vsel %vm3098_vm5, %v3069_v45, %v11054_v17 }
 0x2fb   :  { %v4242_v2 = vadd.f32 %v4241_v4, %v4240_v41  ;;  %1520 = vrot.lane.b32.xlu1 %v11096_v49, %s9103_s14  ;;  %8581 = vmatprep.mubr.msk.f32.mxu0 %vm3423_vm10, %v3393_v21  ;;  %v4047_v9 = vadd.f32 %v4046_v30, %v4045_v60  ;;  %v3199_v60 = vsel %vm3163_vm6, %v3134_v56, %v2015_v46  ;;  %v834_v46 = vld [vmem:[#allocation2 + $0x25a] sm:$0xff] }
 0x2fc   :  { %2286 = vrot.lane.b32.xlu0 %v11135_v61, %s9106_s21  ;;  %v3264_v50 = vsel %vm3228_vm7, %v3199_v60, %v2271_v12 }
 0x2fd   :  { %v11144_v44 = vpop.permute.xlu1 %1762  ;;  %v4244_v41 = vadd.f32 %v4243_v32, %v4242_v2  ;;  %v3329_v22 = vsel %vm3293_vm8, %v3264_v50, %v2527_v29  ;;  %v771_v2 = vld [vmem:[#allocation2 + $0x261] sm:$0xff]  ;;  %v87_v32 = vld [vmem:[%s14257_s0 + $0x1b0] sm:$0xff] }
 0x2fe   :  { %v2017_v33 = vpop.permute.xlu0 %2016  ;;  %269 = vst.msk [vmem:[#allocation2 + $0x2d1] sm:$0xff] %vm104_vm0, %v87_v32 }
 0x2ff   :  { %2540 = vrot.lane.b32.xlu1 %v770_v36, %s9107_s28 }
 0x300   :  { %1522 = vrot.lane.b32.xlu0 %v11135_v61, %s9103_s14 }
 0x301   :  { %v2783_v30 = vpop.permute.xlu1 %2782 }
 0x302   :  { %v3394_v24 = vsel %vm3358_vm9, %v3329_v22, %v2783_v30  ;;  %v11159_v17 = vpop.permute.xlu0 %998  ;;  %v11186_v22 = vld [vmem:[#allocation2 + $0x270] sm:$0xff] }
 0x303   :  { %1776 = vrot.lane.b32.xlu1 %v770_v36, %s9104_s15  ;;  %8582 = vmatmul.mubr.msk.f32.gmra.mrb[34].mxu0 %vm3423_vm10, %v3394_v24 }
 0x304   :  { %2542 = vrot.lane.b32.xlu0 %v771_v2, %s9107_s28 }
 0x305   :  { %v11161_v4 = vpop.permute.xlu1 %1252 }
 0x306   :  { %v2019_v12 = vpop.permute.xlu0 %2018 }
 0x307   :  { %2796 = vrot.lane.b32.xlu1 %v834_v46, %s9108_s1 }
 0x308   :  { %1012 = vrot.lane.b32.xlu0 %v770_v36, %s9101_s29  ;;  %v2940_v36 = vsel %vm104_vm0, %v10640_v54, %v11050_v35 }
 0x309   :  { %v2273_v29 = vpop.permute.xlu1 %2272  ;;  %v3005_v60 = vsel %vm2968_vm4, %v2940_v36, %v11071_v14 }
 0x30a   :  { %v11167_v21 = vpop.permute.xlu0 %1254  ;;  %v3070_v30 = vsel %vm3033_vm2, %v3005_v60, %v11079_v19 }
 0x30b   :  { %1778 = vrot.lane.b32.xlu1 %v771_v2, %s9104_s15  ;;  %v3135_v54 = vsel %vm3098_vm5, %v3070_v30, %v11100_v34 }
 0x30c   :  { %2032 = vrot.lane.b32.xlu0 %v834_v46, %s9105_s16  ;;  %v3200_v14 = vsel %vm3163_vm6, %v3135_v54, %v2017_v33 }
 0x30d   :  { %v11169_v53 = vpop.permute.xlu1 %1508 }
 0x30e   :  { %v2275_v45 = vpop.permute.xlu0 %2274 }
 0x30f   :  { %2798 = vrot.lane.b32.xlu1 %v835_v28, %s9108_s1 }
 0x310   :  { %1014 = vrot.lane.b32.xlu0 %v771_v2, %s9101_s29  ;;  %v88_v2 = vld [vmem:[%s14257_s0 + $0x1b8] sm:$0xff] }
 0x311   :  { %v2529_v56 = vpop.permute.xlu1 %2528  ;;  %270 = vst.msk [vmem:[#allocation2 + $0x2d9] sm:$0xff] %vm104_vm0, %v88_v2 }
 0x312   :  { %v11184_v50 = vpop.permute.xlu0 %1510 }
 0x313   :  { %1268 = vrot.lane.b32.xlu1 %v834_v46, %s9102_s13  ;;  %v3265_v46 = vsel %vm3228_vm7, %v3200_v14, %v2273_v29  ;;  %v2941_v14 = vsel %vm104_vm0, %v10681_v62, %v11069_v26 }
 0x314   :  { %2034 = vrot.lane.b32.xlu0 %v835_v28, %s9105_s16  ;;  %v3330_v30 = vsel %vm3293_vm8, %v3265_v46, %v2529_v56  ;;  %v3006_v46 = vsel %vm2968_vm4, %v2941_v14, %v11077_v31  ;;  %v837_v14 = vld [vmem:[#allocation2 + $0x27a] sm:$0xff] }
 0x315   :  { %v11190_v24 = vpop.permute.xlu1 %1764  ;;  %v3071_v62 = vsel %vm3033_vm2, %v3006_v46, %v11094_v8 }
 0x316   :  { %v11198_v35 = vpop.f32.mrb[22].mxu0  ;;  %v2531_v60 = vpop.permute.xlu0 %2530 }
 0x317   :  { %14298 = vst [vmem:[#allocation13_spill] sm:$0xff] %v11198_v35  ;;  %2288 = vrot.lane.b32.xlu1 %v11186_v22, %s9106_s21  ;;  %v11204_v19 = vpop.f32.mrb[23].mxu0  ;;  %v4161_v32 = vmul.f32 %v11198_v35, %v11198_v35  ;;  %v4050_v54 = vsel %vm2968_vm4, %v11198_v35, 0.0 }
 0x318   :  { %14299 = vst [vmem:[#allocation14_spill] sm:$0xff] %v11204_v19  ;;  %v4048_v34 = vsel %vm2968_vm4, %v11204_v19, 0.0  ;;  %v4160_v36 = vmul.f32 %v11204_v19, %v11204_v19  ;;  %1270 = vrot.lane.b32.xlu0 %v835_v28, %s9102_s13  ;;  %v772_v28 = vld [vmem:[#allocation2 + $0x271] sm:$0xff] }
 0x319   :  { %v4049_v33 = vadd.f32 %v4048_v34, %v4047_v9  ;;  %v2785_v2 = vpop.permute.xlu1 %2784  ;;  %v11225_v9 = vld [vmem:[#allocation2 + $0x278] sm:$0xff]  ;;  %v4247_v34 = vsel %vm2968_vm4, %v4161_v32, 0.0 }
 0x31a   :  { %v4245_v40 = vsel %vm2968_vm4, %v4160_v36, 0.0  ;;  %v3395_v29 = vsel %vm3358_vm9, %v3330_v30, %v2785_v2  ;;  %v11230_v36 = vpop.permute.xlu0 %1000 }
 0x31b   :  { %v4246_v1 = vadd.f32 %v4245_v40, %v4244_v41  ;;  %1524 = vrot.lane.b32.xlu1 %v11186_v22, %s9103_s14  ;;  %8584 = vmatprep.mubr.msk.f32.mxu0 %vm3423_vm10, %v3395_v29  ;;  %v4051_v56 = vadd.f32 %v4050_v54, %v4049_v33  ;;  %v3136_v41 = vsel %vm3098_vm5, %v3071_v62, %v11144_v44 }
 0x31c   :  { %2290 = vrot.lane.b32.xlu0 %v11225_v9, %s9106_s21  ;;  %v3201_v30 = vsel %vm3163_vm6, %v3136_v41, %v2019_v12  ;;  %v836_v12 = vld [vmem:[#allocation2 + $0x272] sm:$0xff] }
 0x31d   :  { %v11234_v26 = vpop.permute.xlu1 %1766  ;;  %v4248_v40 = vadd.f32 %v4247_v34, %v4246_v1  ;;  %v3266_v31 = vsel %vm3228_vm7, %v3201_v30, %v2275_v45  ;;  %v773_v1 = vld [vmem:[#allocation2 + $0x279] sm:$0xff] }
 0x31e   :  { %v2021_v32 = vpop.permute.xlu0 %2020  ;;  %v3331_v33 = vsel %vm3293_vm8, %v3266_v31, %v2531_v60  ;;  %v89_v34 = vld [vmem:[%s14257_s0 + $0x1c0] sm:$0xff] }
 0x31f   :  { %2544 = vrot.lane.b32.xlu1 %v772_v28, %s9107_s28  ;;  %271 = vst.msk [vmem:[#allocation2 + $0x2e9] sm:$0xff] %vm104_vm0, %v89_v34 }
 0x320   :  { %1526 = vrot.lane.b32.xlu0 %v11225_v9, %s9103_s14 }
 0x321   :  { %v2787_v2 = vpop.permute.xlu1 %2786 }
 0x322   :  { %v3396_v8 = vsel %vm3358_vm9, %v3331_v33, %v2787_v2  ;;  %v11249_v44 = vpop.permute.xlu0 %1002  ;;  %v11276_v33 = vld [vmem:[#allocation2 + $0x288] sm:$0xff] }
 0x323   :  { %1780 = vrot.lane.b32.xlu1 %v772_v28, %s9104_s15  ;;  %8585 = vmatmul.mubr.msk.f32.gmra.mrb[36].mxu0 %vm3423_vm10, %v3396_v8 }
 0x324   :  { %2546 = vrot.lane.b32.xlu0 %v773_v1, %s9107_s28 }
 0x325   :  { %v11251_v54 = vpop.permute.xlu1 %1256 }
 0x326   :  { %v2023_v45 = vpop.permute.xlu0 %2022 }
 0x327   :  { %2800 = vrot.lane.b32.xlu1 %v836_v12, %s9108_s1 }
 0x328   :  { %1016 = vrot.lane.b32.xlu0 %v772_v28, %s9101_s29  ;;  %v2942_v28 = vsel %vm104_vm0, %v10732_v18, %v11140_v63 }
 0x329   :  { %v2277_v60 = vpop.permute.xlu1 %2276  ;;  %v3007_v30 = vsel %vm2968_vm4, %v2942_v28, %v11161_v4 }
 0x32a   :  { %v11257_v29 = vpop.permute.xlu0 %1258  ;;  %v3072_v2 = vsel %vm3033_vm2, %v3007_v30, %v11169_v53 }
 0x32b   :  { %1782 = vrot.lane.b32.xlu1 %v773_v1, %s9104_s15  ;;  %v3137_v18 = vsel %vm3098_vm5, %v3072_v2, %v11190_v24 }
 0x32c   :  { %2036 = vrot.lane.b32.xlu0 %v836_v12, %s9105_s16  ;;  %v3202_v4 = vsel %vm3163_vm6, %v3137_v18, %v2021_v32 }
 0x32d   :  { %v11259_v46 = vpop.permute.xlu1 %1512 }
 0x32e   :  { %v2279_v62 = vpop.permute.xlu0 %2278 }
 0x32f   :  { %2802 = vrot.lane.b32.xlu1 %v837_v14, %s9108_s1 }
 0x330   :  { %1018 = vrot.lane.b32.xlu0 %v773_v1, %s9101_s29  ;;  %v90_v1 = vld [vmem:[%s14257_s0 + $0x1c8] sm:$0xff] }
 0x331   :  { %v2533_v41 = vpop.permute.xlu1 %2532  ;;  %272 = vst.msk [vmem:[#allocation2 + $0x2f1] sm:$0xff] %vm104_vm0, %v90_v1 }
 0x332   :  { %v11274_v31 = vpop.permute.xlu0 %1514 }
 0x333   :  { %1272 = vrot.lane.b32.xlu1 %v836_v12, %s9102_s13  ;;  %v3267_v12 = vsel %vm3228_vm7, %v3202_v4, %v2277_v60  ;;  %v2943_v4 = vsel %vm104_vm0, %v10771_v27, %v11159_v17 }
 0x334   :  { %2038 = vrot.lane.b32.xlu0 %v837_v14, %s9105_s16  ;;  %v3332_v2 = vsel %vm3293_vm8, %v3267_v12, %v2533_v41  ;;  %v3008_v12 = vsel %vm2968_vm4, %v2943_v4, %v11167_v21  ;;  %v839_v4 = vld [vmem:[#allocation2 + $0x292] sm:$0xff] }
 0x335   :  { %v11280_v8 = vpop.permute.xlu1 %1768  ;;  %v3073_v27 = vsel %vm3033_vm2, %v3008_v12, %v11184_v50 }
 0x336   :  { %v11288_v63 = vpop.f32.mrb[24].mxu0  ;;  %v2535_v30 = vpop.permute.xlu0 %2534 }
 0x337   :  { %14300 = vst [vmem:[#allocation15_spill] sm:$0xff] %v11288_v63  ;;  %2292 = vrot.lane.b32.xlu1 %v11276_v33, %s9106_s21  ;;  %v11294_v53 = vpop.f32.mrb[25].mxu0  ;;  %v4163_v34 = vmul.f32 %v11288_v63, %v11288_v63  ;;  %v4054_v18 = vsel %vm2968_vm4, %v11288_v63, 0.0 }
 0x338   :  { %14301 = vst [vmem:[#allocation16_spill] sm:$0xff] %v11294_v53  ;;  %v4052_v24 = vsel %vm2968_vm4, %v11294_v53, 0.0  ;;  %v4162_v28 = vmul.f32 %v11294_v53, %v11294_v53  ;;  %1274 = vrot.lane.b32.xlu0 %v837_v14, %s9102_s13  ;;  %v774_v14 = vld [vmem:[#allocation2 + $0x289] sm:$0xff] }
 0x339   :  { %v4053_v32 = vadd.f32 %v4052_v24, %v4051_v56  ;;  %v2789_v1 = vpop.permute.xlu1 %2788  ;;  %v11315_v56 = vld [vmem:[#allocation2 + $0x290] sm:$0xff]  ;;  %v4251_v24 = vsel %vm2968_vm4, %v4163_v34, 0.0 }
 0x33a   :  { %v4249_v35 = vsel %vm2968_vm4, %v4162_v28, 0.0  ;;  %v3397_v60 = vsel %vm3358_vm9, %v3332_v2, %v2789_v1  ;;  %v11320_v28 = vpop.permute.xlu0 %1004 }
 0x33b   :  { %v4250_v19 = vadd.f32 %v4249_v35, %v4248_v40  ;;  %1528 = vrot.lane.b32.xlu1 %v11276_v33, %s9103_s14  ;;  %8587 = vmatprep.mubr.msk.f32.mxu0 %vm3423_vm10, %v3397_v60  ;;  %v4055_v41 = vadd.f32 %v4054_v18, %v4053_v32  ;;  %v3138_v40 = vsel %vm3098_vm5, %v3073_v27, %v11234_v26 }
 0x33c   :  { %2294 = vrot.lane.b32.xlu0 %v11315_v56, %s9106_s21  ;;  %v3203_v2 = vsel %vm3163_vm6, %v3138_v40, %v2023_v45  ;;  %v838_v45 = vld [vmem:[#allocation2 + $0x28a] sm:$0xff] }
 0x33d   :  { %v11324_v17 = vpop.permute.xlu1 %1770  ;;  %v4252_v35 = vadd.f32 %v4251_v24, %v4250_v19  ;;  %v3268_v21 = vsel %vm3228_vm7, %v3203_v2, %v2279_v62  ;;  %v775_v19 = vld [vmem:[#allocation2 + $0x291] sm:$0xff] }
 0x33e   :  { %v2025_v34 = vpop.permute.xlu0 %2024  ;;  %v3333_v32 = vsel %vm3293_vm8, %v3268_v21, %v2535_v30  ;;  %v91_v24 = vld [vmem:[%s14257_s0 + $0x1d0] sm:$0xff] }
 0x33f   :  { %2548 = vrot.lane.b32.xlu1 %v774_v14, %s9107_s28  ;;  %273 = vst.msk [vmem:[#allocation2 + $0x301] sm:$0xff] %vm104_vm0, %v91_v24 }
 0x340   :  { %1530 = vrot.lane.b32.xlu0 %v11315_v56, %s9103_s14 }
 0x341   :  { %v2791_v1 = vpop.permute.xlu1 %2790 }
 0x342   :  { %v3398_v50 = vsel %vm3358_vm9, %v3333_v32, %v2791_v1  ;;  %v11339_v26 = vpop.permute.xlu0 %1006  ;;  %v11366_v32 = vld [vmem:[#allocation2 + $0x2a0] sm:$0xff] }
 0x343   :  { %1784 = vrot.lane.b32.xlu1 %v774_v14, %s9104_s15  ;;  %8588 = vmatmul.mubr.msk.f32.gmra.mrb[38].mxu0 %vm3423_vm10, %v3398_v50 }
 0x344   :  { %2550 = vrot.lane.b32.xlu0 %v775_v19, %s9107_s28 }
 0x345   :  { %v11341_v18 = vpop.permute.xlu1 %1260 }
 0x346   :  { %v2027_v62 = vpop.permute.xlu0 %2026 }
 0x347   :  { %2804 = vrot.lane.b32.xlu1 %v838_v45, %s9108_s1 }
 0x348   :  { %1020 = vrot.lane.b32.xlu0 %v774_v14, %s9101_s29  ;;  %v2944_v14 = vsel %vm104_vm0, %v10822_v48, %v11230_v36 }
 0x349   :  { %v2281_v30 = vpop.permute.xlu1 %2280  ;;  %v3009_v2 = vsel %vm2968_vm4, %v2944_v14, %v11251_v54 }
 0x34a   :  { %v11347_v60 = vpop.permute.xlu0 %1262  ;;  %v3074_v1 = vsel %vm3033_vm2, %v3009_v2, %v11259_v46 }
 0x34b   :  { %1786 = vrot.lane.b32.xlu1 %v775_v19, %s9104_s15  ;;  %v3139_v48 = vsel %vm3098_vm5, %v3074_v1, %v11280_v8 }
 0x34c   :  { %2040 = vrot.lane.b32.xlu0 %v838_v45, %s9105_s16  ;;  %v3204_v54 = vsel %vm3163_vm6, %v3139_v48, %v2025_v34 }
 0x34d   :  { %v11349_v12 = vpop.permute.xlu1 %1516 }
 0x34e   :  { %v2283_v27 = vpop.permute.xlu0 %2282 }
 0x34f   :  { %2806 = vrot.lane.b32.xlu1 %v839_v4, %s9108_s1 }
 0x350   :  { %1022 = vrot.lane.b32.xlu0 %v775_v19, %s9101_s29  ;;  %v92_v19 = vld [vmem:[%s14257_s0 + $0x1d8] sm:$0xff] }
 0x351   :  { %v2537_v40 = vpop.permute.xlu1 %2536  ;;  %274 = vst.msk [vmem:[#allocation2 + $0x309] sm:$0xff] %vm104_vm0, %v92_v19 }
 0x352   :  { %v11364_v21 = vpop.permute.xlu0 %1518 }
 0x353   :  { %1276 = vrot.lane.b32.xlu1 %v838_v45, %s9102_s13  ;;  %v3269_v45 = vsel %vm3228_vm7, %v3204_v54, %v2281_v30  ;;  %v2945_v54 = vsel %vm104_vm0, %v10861_v6, %v11249_v44 }
 0x354   :  { %2042 = vrot.lane.b32.xlu0 %v839_v4, %s9105_s16  ;;  %v3334_v1 = vsel %vm3293_vm8, %v3269_v45, %v2537_v40  ;;  %v3010_v45 = vsel %vm2968_vm4, %v2945_v54, %v11257_v29  ;;  %v841_v54 = vld [vmem:[#allocation2 + $0x2aa] sm:$0xff] }
 0x355   :  { %v11370_v50 = vpop.permute.xlu1 %1772  ;;  %v3075_v6 = vsel %vm3033_vm2, %v3010_v45, %v11274_v31 }
 0x356   :  { %v11378_v36 = vpop.f32.mrb[26].mxu0  ;;  %v2539_v2 = vpop.permute.xlu0 %2538 }
 0x357   :  { %14302 = vst [vmem:[#allocation17_spill] sm:$0xff] %v11378_v36  ;;  %2296 = vrot.lane.b32.xlu1 %v11366_v32, %s9106_s21  ;;  %v11384_v46 = vpop.f32.mrb[27].mxu0  ;;  %v4165_v24 = vmul.f32 %v11378_v36, %v11378_v36  ;;  %v4058_v48 = vsel %vm2968_vm4, %v11378_v36, 0.0 }
 0x358   :  { %14303 = vst [vmem:[#allocation18_spill] sm:$0xff] %v11384_v46  ;;  %v4056_v8 = vsel %vm2968_vm4, %v11384_v46, 0.0  ;;  %v4164_v14 = vmul.f32 %v11384_v46, %v11384_v46  ;;  %1278 = vrot.lane.b32.xlu0 %v839_v4, %s9102_s13  ;;  %v776_v4 = vld [vmem:[#allocation2 + $0x2a1] sm:$0xff] }
 0x359   :  { %v4057_v34 = vadd.f32 %v4056_v8, %v4055_v41  ;;  %v2793_v19 = vpop.permute.xlu1 %2792  ;;  %v11405_v41 = vld [vmem:[#allocation2 + $0x2a8] sm:$0xff]  ;;  %v4255_v8 = vsel %vm2968_vm4, %v4165_v24, 0.0 }
 0x35a   :  { %v4253_v63 = vsel %vm2968_vm4, %v4164_v14, 0.0  ;;  %v3399_v30 = vsel %vm3358_vm9, %v3334_v1, %v2793_v19  ;;  %v11410_v14 = vpop.permute.xlu0 %1008 }
 0x35b   :  { %v4254_v53 = vadd.f32 %v4253_v63, %v4252_v35  ;;  %1532 = vrot.lane.b32.xlu1 %v11366_v32, %s9103_s14  ;;  %8590 = vmatprep.mubr.msk.f32.mxu0 %vm3423_vm10, %v3399_v30  ;;  %v4059_v40 = vadd.f32 %v4058_v48, %v4057_v34  ;;  %v3140_v35 = vsel %vm3098_vm5, %v3075_v6, %v11324_v17 }
 0x35c   :  { %2298 = vrot.lane.b32.xlu0 %v11405_v41, %s9106_s21  ;;  %v3205_v1 = vsel %vm3163_vm6, %v3140_v35, %v2027_v62  ;;  %v840_v62 = vld [vmem:[#allocation2 + $0x2a2] sm:$0xff] }
 0x35d   :  { %v11414_v44 = vpop.permute.xlu1 %1774  ;;  %v4256_v63 = vadd.f32 %v4255_v8, %v4254_v53  ;;  %v3270_v29 = vsel %vm3228_vm7, %v3205_v1, %v2283_v27  ;;  %v777_v53 = vld [vmem:[#allocation2 + $0x2a9] sm:$0xff]  ;;  %v93_v8 = vld [vmem:[%s14257_s0 + $0x1e0] sm:$0xff] }
 0x35e   :  { %v2029_v24 = vpop.permute.xlu0 %2028  ;;  %v3335_v34 = vsel %vm3293_vm8, %v3270_v29, %v2539_v2  ;;  %275 = vst.msk [vmem:[#allocation2 + $0x319] sm:$0xff] %vm104_vm0, %v93_v8 }
 0x35f   :  { %2552 = vrot.lane.b32.xlu1 %v776_v4, %s9107_s28 }
 0x360   :  { %1534 = vrot.lane.b32.xlu0 %v11405_v41, %s9103_s14 }
 0x361   :  { %v2795_v19 = vpop.permute.xlu1 %2794 }
 0x362   :  { %v3400_v31 = vsel %vm3358_vm9, %v3335_v34, %v2795_v19  ;;  %v11429_v17 = vpop.permute.xlu0 %1010  ;;  %v11456_v34 = vld [vmem:[#allocation2 + $0x2b8] sm:$0xff] }
 0x363   :  { %1788 = vrot.lane.b32.xlu1 %v776_v4, %s9104_s15  ;;  %8591 = vmatmul.mubr.msk.f32.gmra.mrb[40].mxu0 %vm3423_vm10, %v3400_v31 }
 0x364   :  { %2554 = vrot.lane.b32.xlu0 %v777_v53, %s9107_s28 }
 0x365   :  { %v11431_v48 = vpop.permute.xlu1 %1264 }
 0x366   :  { %v2031_v27 = vpop.permute.xlu0 %2030 }
 0x367   :  { %2808 = vrot.lane.b32.xlu1 %v840_v62, %s9108_s1 }
 0x368   :  { %1024 = vrot.lane.b32.xlu0 %v776_v4, %s9101_s29  ;;  %v2946_v4 = vsel %vm104_vm0, %v10912_v52, %v11320_v28 }
 0x369   :  { %v2285_v2 = vpop.permute.xlu1 %2284  ;;  %v3011_v1 = vsel %vm2968_vm4, %v2946_v4, %v11341_v18 }
 0x36a   :  { %v11437_v30 = vpop.permute.xlu0 %1266  ;;  %v3076_v19 = vsel %vm3033_vm2, %v3011_v1, %v11349_v12 }
 0x36b   :  { %1790 = vrot.lane.b32.xlu1 %v777_v53, %s9104_s15  ;;  %v3141_v52 = vsel %vm3098_vm5, %v3076_v19, %v11370_v50 }
 0x36c   :  { %2044 = vrot.lane.b32.xlu0 %v840_v62, %s9105_s16  ;;  %v3206_v18 = vsel %vm3163_vm6, %v3141_v52, %v2029_v24 }
 0x36d   :  { %v11439_v45 = vpop.permute.xlu1 %1520 }
 0x36e   :  { %v2287_v6 = vpop.permute.xlu0 %2286 }
 0x36f   :  { %2810 = vrot.lane.b32.xlu1 %v841_v54, %s9108_s1 }
 0x370   :  { %1026 = vrot.lane.b32.xlu0 %v777_v53, %s9101_s29  ;;  %v94_v53 = vld [vmem:[%s14257_s0 + $0x1e8] sm:$0xff] }
 0x371   :  { %v2541_v35 = vpop.permute.xlu1 %2540  ;;  %276 = vst.msk [vmem:[#allocation2 + $0x321] sm:$0xff] %vm104_vm0, %v94_v53 }
 0x372   :  { %v11454_v29 = vpop.permute.xlu0 %1522 }
 0x373   :  { %1280 = vrot.lane.b32.xlu1 %v840_v62, %s9102_s13  ;;  %v3271_v62 = vsel %vm3228_vm7, %v3206_v18, %v2285_v2  ;;  %v2947_v18 = vsel %vm104_vm0, %v10951_v20, %v11339_v26 }
 0x374   :  { %2046 = vrot.lane.b32.xlu0 %v841_v54, %s9105_s16  ;;  %v3336_v19 = vsel %vm3293_vm8, %v3271_v62, %v2541_v35  ;;  %v3012_v62 = vsel %vm2968_vm4, %v2947_v18, %v11347_v60  ;;  %v843_v18 = vld [vmem:[#allocation2 + $0x2c2] sm:$0xff] }
 0x375   :  { %v11460_v31 = vpop.permute.xlu1 %1776  ;;  %v3077_v20 = vsel %vm3033_vm2, %v3012_v62, %v11364_v21 }
 0x376   :  { %v11468_v28 = vpop.f32.mrb[28].mxu0  ;;  %v2543_v1 = vpop.permute.xlu0 %2542 }
 0x377   :  { %14304 = vst [vmem:[#allocation19_spill] sm:$0xff] %v11468_v28  ;;  %2300 = vrot.lane.b32.xlu1 %v11456_v34, %s9106_s21  ;;  %v11474_v12 = vpop.f32.mrb[29].mxu0  ;;  %v4167_v8 = vmul.f32 %v11468_v28, %v11468_v28  ;;  %v4062_v52 = vsel %vm2968_vm4, %v11468_v28, 0.0 }
 0x378   :  { %14305 = vst [vmem:[#allocation20_spill] sm:$0xff] %v11474_v12  ;;  %v4060_v50 = vsel %vm2968_vm4, %v11474_v12, 0.0  ;;  %v4166_v4 = vmul.f32 %v11474_v12, %v11474_v12  ;;  %1282 = vrot.lane.b32.xlu0 %v841_v54, %s9102_s13  ;;  %v778_v54 = vld [vmem:[#allocation2 + $0x2b9] sm:$0xff] }
 0x379   :  { %v4061_v24 = vadd.f32 %v4060_v50, %v4059_v40  ;;  %v2797_v53 = vpop.permute.xlu1 %2796  ;;  %v11495_v40 = vld [vmem:[#allocation2 + $0x2c0] sm:$0xff]  ;;  %v4259_v50 = vsel %vm2968_vm4, %v4167_v8, 0.0 }
 0x37a   :  { %v4257_v36 = vsel %vm2968_vm4, %v4166_v4, 0.0  ;;  %v3401_v2 = vsel %vm3358_vm9, %v3336_v19, %v2797_v53  ;;  %v11500_v4 = vpop.permute.xlu0 %1012 }
 0x37b   :  { %v4258_v46 = vadd.f32 %v4257_v36, %v4256_v63  ;;  %1536 = vrot.lane.b32.xlu1 %v11456_v34, %s9103_s14  ;;  %8593 = vmatprep.mubr.msk.f32.mxu0 %vm3423_vm10, %v3401_v2  ;;  %v4063_v35 = vadd.f32 %v4062_v52, %v4061_v24  ;;  %v3142_v63 = vsel %vm3098_vm5, %v3077_v20, %v11414_v44 }
 0x37c   :  { %2302 = vrot.lane.b32.xlu0 %v11495_v40, %s9106_s21  ;;  %v3207_v19 = vsel %vm3163_vm6, %v3142_v63, %v2031_v27  ;;  %v842_v27 = vld [vmem:[#allocation2 + $0x2ba] sm:$0xff] }
 0x37d   :  { %v11504_v26 = vpop.permute.xlu1 %1778  ;;  %v4260_v36 = vadd.f32 %v4259_v50, %v4258_v46  ;;  %v3272_v60 = vsel %vm3228_vm7, %v3207_v19, %v2287_v6  ;;  %v779_v46 = vld [vmem:[#allocation2 + $0x2c1] sm:$0xff]  ;;  %v95_v50 = vld [vmem:[%s14257_s0 + $0x1f0] sm:$0xff] }
 0x37e   :  { %v2033_v8 = vpop.permute.xlu0 %2032  ;;  %v3337_v24 = vsel %vm3293_vm8, %v3272_v60, %v2543_v1  ;;  %277 = vst.msk [vmem:[#allocation2 + $0x331] sm:$0xff] %vm104_vm0, %v95_v50 }
 0x37f   :  { %2556 = vrot.lane.b32.xlu1 %v778_v54, %s9107_s28 }
 0x380   :  { %1538 = vrot.lane.b32.xlu0 %v11495_v40, %s9103_s14 }
 0x381   :  { %v2799_v53 = vpop.permute.xlu1 %2798 }
 0x382   :  { %v3402_v21 = vsel %vm3358_vm9, %v3337_v24, %v2799_v53  ;;  %v11519_v44 = vpop.permute.xlu0 %1014  ;;  %v11546_v24 = vld [vmem:[#allocation2 + $0x2d0] sm:$0xff] }
 0x383   :  { %1792 = vrot.lane.b32.xlu1 %v778_v54, %s9104_s15  ;;  %8594 = vmatmul.mubr.msk.f32.gmra.mrb[42].mxu0 %vm3423_vm10, %v3402_v21 }
 0x384   :  { %2558 = vrot.lane.b32.xlu0 %v779_v46, %s9107_s28 }
 0x385   :  { %v11521_v52 = vpop.permute.xlu1 %1268 }
 0x386   :  { %v2035_v6 = vpop.permute.xlu0 %2034 }
 0x387   :  { %2812 = vrot.lane.b32.xlu1 %v842_v27, %s9108_s1 }
 0x388   :  { %1028 = vrot.lane.b32.xlu0 %v778_v54, %s9101_s29  ;;  %v2948_v54 = vsel %vm104_vm0, %v11005_v59, %v11410_v14 }
 0x389   :  { %v2289_v1 = vpop.permute.xlu1 %2288  ;;  %v3013_v19 = vsel %vm2968_vm4, %v2948_v54, %v11431_v48 }
 0x38a   :  { %v11527_v2 = vpop.permute.xlu0 %1270  ;;  %v3078_v53 = vsel %vm3033_vm2, %v3013_v19, %v11439_v45 }
 0x38b   :  { %1794 = vrot.lane.b32.xlu1 %v779_v46, %s9104_s15  ;;  %v3143_v59 = vsel %vm3098_vm5, %v3078_v53, %v11460_v31 }
 0x38c   :  { %2048 = vrot.lane.b32.xlu0 %v842_v27, %s9105_s16  ;;  %v3208_v48 = vsel %vm3163_vm6, %v3143_v59, %v2033_v8 }
 0x38d   :  { %v11529_v62 = vpop.permute.xlu1 %1524 }
 0x38e   :  { %v2291_v20 = vpop.permute.xlu0 %2290 }
 0x38f   :  { %2814 = vrot.lane.b32.xlu1 %v843_v18, %s9108_s1 }
 0x390   :  { %1030 = vrot.lane.b32.xlu0 %v779_v46, %s9101_s29  ;;  %v96_v46 = vld [vmem:[%s14257_s0 + $0x1f8] sm:$0xff] }
 0x391   :  { %v2545_v63 = vpop.permute.xlu1 %2544  ;;  %278 = vst.msk [vmem:[#allocation2 + $0x339] sm:$0xff] %vm104_vm0, %v96_v46 }
 0x392   :  { %v11544_v60 = vpop.permute.xlu0 %1526 }
 0x393   :  { %1284 = vrot.lane.b32.xlu1 %v842_v27, %s9102_s13  ;;  %v3273_v27 = vsel %vm3228_vm7, %v3208_v48, %v2289_v1  ;;  %v2949_v48 = vsel %vm104_vm0, %v11045_v57, %v11429_v17 }
 0x394   :  { %2050 = vrot.lane.b32.xlu0 %v843_v18, %s9105_s16  ;;  %v3338_v53 = vsel %vm3293_vm8, %v3273_v27, %v2545_v63  ;;  %v3014_v27 = vsel %vm2968_vm4, %v2949_v48, %v11437_v30  ;;  %v845_v48 = vld [vmem:[#allocation2 + $0x2da] sm:$0xff] }
 0x395   :  { %v11550_v21 = vpop.permute.xlu1 %1780  ;;  %v3079_v57 = vsel %vm3033_vm2, %v3014_v27, %v11454_v29 }
 0x396   :  { %v11558_v14 = vpop.f32.mrb[30].mxu0  ;;  %v2547_v19 = vpop.permute.xlu0 %2546 }
 0x397   :  { %14306 = vst [vmem:[#allocation21_spill] sm:$0xff] %v11558_v14  ;;  %2304 = vrot.lane.b32.xlu1 %v11546_v24, %s9106_s21  ;;  %v11564_v45 = vpop.f32.mrb[31].mxu0  ;;  %v4169_v50 = vmul.f32 %v11558_v14, %v11558_v14  ;;  %v4066_v59 = vsel %vm2968_vm4, %v11558_v14, 0.0 }
 0x398   :  { %14307 = vst [vmem:[#allocation22_spill] sm:$0xff] %v11564_v45  ;;  %v4064_v31 = vsel %vm2968_vm4, %v11564_v45, 0.0  ;;  %v4168_v54 = vmul.f32 %v11564_v45, %v11564_v45  ;;  %1286 = vrot.lane.b32.xlu0 %v843_v18, %s9102_s13  ;;  %v780_v18 = vld [vmem:[#allocation2 + $0x2d1] sm:$0xff] }
 0x399   :  { %v4065_v8 = vadd.f32 %v4064_v31, %v4063_v35  ;;  %v2801_v46 = vpop.permute.xlu1 %2800  ;;  %v11585_v35 = vld [vmem:[#allocation2 + $0x2d8] sm:$0xff]  ;;  %v4263_v31 = vsel %vm2968_vm4, %v4169_v50, 0.0 }
 0x39a   :  { %v4261_v28 = vsel %vm2968_vm4, %v4168_v54, 0.0  ;;  %v3403_v1 = vsel %vm3358_vm9, %v3338_v53, %v2801_v46  ;;  %v11590_v54 = vpop.permute.xlu0 %1016 }
 0x39b   :  { %v4262_v12 = vadd.f32 %v4261_v28, %v4260_v36  ;;  %1540 = vrot.lane.b32.xlu1 %v11546_v24, %s9103_s14  ;;  %8596 = vmatprep.mubr.msk.f32.mxu0 %vm3423_vm10, %v3403_v1  ;;  %v4067_v63 = vadd.f32 %v4066_v59, %v4065_v8  ;;  %v3144_v36 = vsel %vm3098_vm5, %v3079_v57, %v11504_v26 }
 0x39c   :  { %2306 = vrot.lane.b32.xlu0 %v11585_v35, %s9106_s21  ;;  %v3209_v53 = vsel %vm3163_vm6, %v3144_v36, %v2035_v6  ;;  %v844_v6 = vld [vmem:[#allocation2 + $0x2d2] sm:$0xff]  ;;  %v2950_v36 = vsel %vm104_vm0, %v11096_v49, %v11500_v4 }
 0x39d   :  { %v11594_v17 = vpop.permute.xlu1 %1782  ;;  %v4264_v28 = vadd.f32 %v4263_v31, %v4262_v12  ;;  %v3274_v30 = vsel %vm3228_vm7, %v3209_v53, %v2291_v20  ;;  %v781_v12 = vld [vmem:[#allocation2 + $0x2d9] sm:$0xff] }
 0x39e   :  { %v2037_v50 = vpop.permute.xlu0 %2036  ;;  %v3339_v8 = vsel %vm3293_vm8, %v3274_v30, %v2547_v19  ;;  %v11632_v30 = vld [vmem:[#allocation2 + $0x2e8] sm:$0xff] }
 0x39f   :  { %2560 = vrot.lane.b32.xlu1 %v780_v18, %s9107_s28 }
 0x3a0   :  { %1542 = vrot.lane.b32.xlu0 %v11585_v35, %s9103_s14 }
 0x3a1   :  { %v2803_v46 = vpop.permute.xlu1 %2802 }
 0x3a2   :  { %v3404_v29 = vsel %vm3358_vm9, %v3339_v8, %v2803_v46  ;;  %v11609_v26 = vpop.permute.xlu0 %1018 }
 0x3a3   :  { %1796 = vrot.lane.b32.xlu1 %v780_v18, %s9104_s15  ;;  %8597 = vmatmul.mubr.msk.f32.gmra.mrb[44].mxu0 %vm3423_vm10, %v3404_v29 }
 0x3a4   :  { %2562 = vrot.lane.b32.xlu0 %v781_v12, %s9107_s28 }
 0x3a5   :  { %v11611_v59 = vpop.permute.xlu1 %1272 }
 0x3a6   :  { %v2039_v20 = vpop.permute.xlu0 %2038 }
 0x3a7   :  { %2816 = vrot.lane.b32.xlu1 %v844_v6, %s9108_s1 }
 0x3a8   :  { %1032 = vrot.lane.b32.xlu0 %v780_v18, %s9101_s29  ;;  %v3015_v18 = vsel %vm2968_vm4, %v2950_v36, %v11521_v52 }
 0x3a9   :  { %v2293_v19 = vpop.permute.xlu1 %2292  ;;  %v3080_v8 = vsel %vm3033_vm2, %v3015_v18, %v11529_v62 }
 0x3aa   :  { %v11617_v1 = vpop.permute.xlu0 %1274  ;;  %v3145_v29 = vsel %vm3098_vm5, %v3080_v8, %v11550_v21 }
 0x3ab   :  { %1798 = vrot.lane.b32.xlu1 %v781_v12, %s9104_s15  ;;  %v3210_v4 = vsel %vm3163_vm6, %v3145_v29, %v2037_v50 }
 0x3ac   :  { %2052 = vrot.lane.b32.xlu0 %v844_v6, %s9105_s16 }
 0x3ad   :  { %v11619_v27 = vpop.permute.xlu1 %1528 }
 0x3ae   :  { %v2295_v31 = vpop.permute.xlu0 %2294 }
 0x3af   :  { %2818 = vrot.lane.b32.xlu1 %v845_v48, %s9108_s1 }
 0x3b0   :  { %1034 = vrot.lane.b32.xlu0 %v781_v12, %s9101_s29  ;;  %v3275_v12 = vsel %vm3228_vm7, %v3210_v4, %v2293_v19  ;;  %v2951_v4 = vsel %vm104_vm0, %v11135_v61, %v11519_v44 }
 0x3b1   :  { %v2549_v57 = vpop.permute.xlu1 %2548 }
 0x3b2   :  { %v11630_v53 = vpop.permute.xlu0 %1530  ;;  %v3340_v18 = vsel %vm3293_vm8, %v3275_v12, %v2549_v57  ;;  %v3016_v12 = vsel %vm2968_vm4, %v2951_v4, %v11527_v2  ;;  %v847_v4 = vld [vmem:[#allocation2 + $0x2f2] sm:$0xff] }
 0x3b3   :  { %1288 = vrot.lane.b32.xlu1 %v844_v6, %s9102_s13  ;;  %v3081_v61 = vsel %vm3033_vm2, %v3016_v12, %v11544_v60 }
 0x3b4   :  { %2054 = vrot.lane.b32.xlu0 %v845_v48, %s9105_s16 }
 0x3b5   :  { %v11636_v46 = vpop.permute.xlu1 %1784 }
 0x3b6   :  { %v11641_v49 = vpop.f32.mrb[32].mxu0  ;;  %v2551_v36 = vpop.permute.xlu0 %2550 }
 0x3b7   :  { %14308 = vst [vmem:[#allocation23_spill] sm:$0xff] %v11641_v49  ;;  %2308 = vrot.lane.b32.xlu1 %v11632_v30, %s9106_s21  ;;  %v11646_v52 = vpop.f32.mrb[33].mxu0  ;;  %v4171_v62 = vmul.f32 %v11641_v49, %v11641_v49  ;;  %v4070_v29 = vsel %vm2968_vm4, %v11641_v49, 0.0 }
 0x3b8   :  { %14309 = vst [vmem:[#allocation24_spill] sm:$0xff] %v11646_v52  ;;  %v4068_v6 = vsel %vm2968_vm4, %v11646_v52, 0.0  ;;  %v4170_v21 = vmul.f32 %v11646_v52, %v11646_v52  ;;  %1290 = vrot.lane.b32.xlu0 %v845_v48, %s9102_s13  ;;  %v782_v48 = vld [vmem:[#allocation2 + $0x2e9] sm:$0xff] }
 0x3b9   :  { %v4069_v50 = vadd.f32 %v4068_v6, %v4067_v63  ;;  %v2805_v8 = vpop.permute.xlu1 %2804  ;;  %v11667_v63 = vld [vmem:[#allocation2 + $0x2f0] sm:$0xff]  ;;  %v4267_v6 = vsel %vm2968_vm4, %v4171_v62, 0.0 }
 0x3ba   :  { %v4265_v14 = vsel %vm2968_vm4, %v4170_v21, 0.0  ;;  %v3405_v19 = vsel %vm3358_vm9, %v3340_v18, %v2805_v8  ;;  %v11672_v21 = vpop.permute.xlu0 %1020 }
 0x3bb   :  { %v4266_v45 = vadd.f32 %v4265_v14, %v4264_v28  ;;  %1544 = vrot.lane.b32.xlu1 %v11632_v30, %s9103_s14  ;;  %8599 = vmatprep.mubr.msk.f32.mxu0 %vm3423_vm10, %v3405_v19  ;;  %v4071_v57 = vadd.f32 %v4070_v29, %v4069_v50  ;;  %v3146_v28 = vsel %vm3098_vm5, %v3081_v61, %v11594_v17 }
 0x3bc   :  { %2310 = vrot.lane.b32.xlu0 %v11667_v63, %s9106_s21  ;;  %v3211_v18 = vsel %vm3163_vm6, %v3146_v28, %v2039_v20  ;;  %v846_v20 = vld [vmem:[#allocation2 + $0x2ea] sm:$0xff]  ;;  %v2952_v28 = vsel %vm104_vm0, %v11186_v22, %v11590_v54 }
 0x3bd   :  { %v11676_v44 = vpop.permute.xlu1 %1786  ;;  %v4268_v14 = vadd.f32 %v4267_v6, %v4266_v45  ;;  %v3276_v2 = vsel %vm3228_vm7, %v3211_v18, %v2295_v31  ;;  %v783_v45 = vld [vmem:[#allocation2 + $0x2f1] sm:$0xff] }
 0x3be   :  { %v2041_v62 = vpop.permute.xlu0 %2040  ;;  %v3341_v50 = vsel %vm3293_vm8, %v3276_v2, %v2551_v36  ;;  %v11714_v2 = vld [vmem:[#allocation2 + $0x300] sm:$0xff] }
 0x3bf   :  { %2564 = vrot.lane.b32.xlu1 %v782_v48, %s9107_s28 }
 0x3c0   :  { %1546 = vrot.lane.b32.xlu0 %v11667_v63, %s9103_s14 }
 0x3c1   :  { %v2807_v8 = vpop.permute.xlu1 %2806 }
 0x3c2   :  { %v3406_v60 = vsel %vm3358_vm9, %v3341_v50, %v2807_v8  ;;  %v11691_v17 = vpop.permute.xlu0 %1022 }
 0x3c3   :  { %1800 = vrot.lane.b32.xlu1 %v782_v48, %s9104_s15  ;;  %8600 = vmatmul.mubr.msk.f32.gmra.mrb[46].mxu0 %vm3423_vm10, %v3406_v60 }
 0x3c4   :  { %2566 = vrot.lane.b32.xlu0 %v783_v45, %s9107_s28 }
 0x3c5   :  { %v11693_v29 = vpop.permute.xlu1 %1276 }
 0x3c6   :  { %v2043_v31 = vpop.permute.xlu0 %2042 }
 0x3c7   :  { %2820 = vrot.lane.b32.xlu1 %v846_v20, %s9108_s1 }
 0x3c8   :  { %1036 = vrot.lane.b32.xlu0 %v782_v48, %s9101_s29  ;;  %v3017_v48 = vsel %vm2968_vm4, %v2952_v28, %v11611_v59 }
 0x3c9   :  { %v2297_v36 = vpop.permute.xlu1 %2296  ;;  %v3082_v50 = vsel %vm3033_vm2, %v3017_v48, %v11619_v27 }
 0x3ca   :  { %v11699_v19 = vpop.permute.xlu0 %1278  ;;  %v3147_v60 = vsel %vm3098_vm5, %v3082_v50, %v11636_v46 }
 0x3cb   :  { %1802 = vrot.lane.b32.xlu1 %v783_v45, %s9104_s15  ;;  %v3212_v54 = vsel %vm3163_vm6, %v3147_v60, %v2041_v62 }
 0x3cc   :  { %2056 = vrot.lane.b32.xlu0 %v846_v20, %s9105_s16 }
 0x3cd   :  { %v11701_v12 = vpop.permute.xlu1 %1532 }
 0x3ce   :  { %v2299_v6 = vpop.permute.xlu0 %2298 }
 0x3cf   :  { %2822 = vrot.lane.b32.xlu1 %v847_v4, %s9108_s1 }
 0x3d0   :  { %1038 = vrot.lane.b32.xlu0 %v783_v45, %s9101_s29  ;;  %v3277_v45 = vsel %vm3228_vm7, %v3212_v54, %v2297_v36  ;;  %v2953_v54 = vsel %vm104_vm0, %v11225_v9, %v11609_v26 }
 0x3d1   :  { %v2553_v61 = vpop.permute.xlu1 %2552 }
 0x3d2   :  { %v11712_v18 = vpop.permute.xlu0 %1534  ;;  %v3342_v48 = vsel %vm3293_vm8, %v3277_v45, %v2553_v61  ;;  %v3018_v45 = vsel %vm2968_vm4, %v2953_v54, %v11617_v1  ;;  %v849_v54 = vld [vmem:[#allocation2 + $0x30a] sm:$0xff] }
 0x3d3   :  { %1292 = vrot.lane.b32.xlu1 %v846_v20, %s9102_s13  ;;  %v3083_v9 = vsel %vm3033_vm2, %v3018_v45, %v11630_v53 }
 0x3d4   :  { %2058 = vrot.lane.b32.xlu0 %v847_v4, %s9105_s16 }
 0x3d5   :  { %v11718_v8 = vpop.permute.xlu1 %1788 }
 0x3d6   :  { %v11723_v22 = vpop.f32.mrb[34].mxu0  ;;  %v2555_v28 = vpop.permute.xlu0 %2554 }
 0x3d7   :  { %14310 = vst [vmem:[#allocation25_spill] sm:$0xff] %v11723_v22  ;;  %2312 = vrot.lane.b32.xlu1 %v11714_v2, %s9106_s21  ;;  %v11728_v59 = vpop.f32.mrb[35].mxu0  ;;  %v4173_v27 = vmul.f32 %v11723_v22, %v11723_v22  ;;  %v4074_v60 = vsel %vm2968_vm4, %v11723_v22, 0.0 }
 0x3d8   :  { %14311 = vst [vmem:[#allocation26_spill] sm:$0xff] %v11728_v59  ;;  %v4072_v20 = vsel %vm2968_vm4, %v11728_v59, 0.0  ;;  %v4172_v46 = vmul.f32 %v11728_v59, %v11728_v59  ;;  %1294 = vrot.lane.b32.xlu0 %v847_v4, %s9102_s13  ;;  %v784_v4 = vld [vmem:[#allocation2 + $0x301] sm:$0xff] }
 0x3d9   :  { %v4073_v62 = vadd.f32 %v4072_v20, %v4071_v57  ;;  %v2809_v50 = vpop.permute.xlu1 %2808  ;;  %v11749_v57 = vld [vmem:[#allocation2 + $0x308] sm:$0xff]  ;;  %v4271_v20 = vsel %vm2968_vm4, %v4173_v27, 0.0 }
 0x3da   :  { %v4269_v49 = vsel %vm2968_vm4, %v4172_v46, 0.0  ;;  %v3407_v36 = vsel %vm3358_vm9, %v3342_v48, %v2809_v50  ;;  %v11754_v46 = vpop.permute.xlu0 %1024 }
 0x3db   :  { %v4270_v52 = vadd.f32 %v4269_v49, %v4268_v14  ;;  %1548 = vrot.lane.b32.xlu1 %v11714_v2, %s9103_s14  ;;  %8602 = vmatprep.mubr.msk.f32.mxu0 %vm3423_vm10, %v3407_v36  ;;  %v4075_v61 = vadd.f32 %v4074_v60, %v4073_v62  ;;  %v3148_v14 = vsel %vm3098_vm5, %v3083_v9, %v11676_v44 }
 0x3dc   :  { %2314 = vrot.lane.b32.xlu0 %v11749_v57, %s9106_s21  ;;  %v3213_v48 = vsel %vm3163_vm6, %v3148_v14, %v2043_v31  ;;  %v848_v31 = vld [vmem:[#allocation2 + $0x302] sm:$0xff]  ;;  %v2954_v14 = vsel %vm104_vm0, %v11276_v33, %v11672_v21 }
 0x3dd   :  { %v11758_v26 = vpop.permute.xlu1 %1790  ;;  %v4272_v49 = vadd.f32 %v4271_v20, %v4270_v52  ;;  %v3278_v1 = vsel %vm3228_vm7, %v3213_v48, %v2299_v6  ;;  %v785_v52 = vld [vmem:[#allocation2 + $0x309] sm:$0xff] }
 0x3de   :  { %v2045_v27 = vpop.permute.xlu0 %2044  ;;  %v3343_v62 = vsel %vm3293_vm8, %v3278_v1, %v2555_v28  ;;  %v11796_v1 = vld [vmem:[#allocation2 + $0x318] sm:$0xff] }
 0x3df   :  { %2568 = vrot.lane.b32.xlu1 %v784_v4, %s9107_s28 }
 0x3e0   :  { %1550 = vrot.lane.b32.xlu0 %v11749_v57, %s9103_s14 }
 0x3e1   :  { %v2811_v50 = vpop.permute.xlu1 %2810 }
 0x3e2   :  { %v3408_v53 = vsel %vm3358_vm9, %v3343_v62, %v2811_v50  ;;  %v11773_v44 = vpop.permute.xlu0 %1026 }
 0x3e3   :  { %1804 = vrot.lane.b32.xlu1 %v784_v4, %s9104_s15  ;;  %8603 = vmatmul.mubr.msk.f32.gmra.mrb[48].mxu0 %vm3423_vm10, %v3408_v53 }
 0x3e4   :  { %2570 = vrot.lane.b32.xlu0 %v785_v52, %s9107_s28 }
 0x3e5   :  { %v11775_v60 = vpop.permute.xlu1 %1280 }
 0x3e6   :  { %v2047_v6 = vpop.permute.xlu0 %2046 }
 0x3e7   :  { %2824 = vrot.lane.b32.xlu1 %v848_v31, %s9108_s1 }
 0x3e8   :  { %1040 = vrot.lane.b32.xlu0 %v784_v4, %s9101_s29  ;;  %v3019_v4 = vsel %vm2968_vm4, %v2954_v14, %v11693_v29 }
 0x3e9   :  { %v2301_v28 = vpop.permute.xlu1 %2300  ;;  %v3084_v62 = vsel %vm3033_vm2, %v3019_v4, %v11701_v12 }
 0x3ea   :  { %v11781_v36 = vpop.permute.xlu0 %1282  ;;  %v3149_v53 = vsel %vm3098_vm5, %v3084_v62, %v11718_v8 }
 0x3eb   :  { %1806 = vrot.lane.b32.xlu1 %v785_v52, %s9104_s15  ;;  %v3214_v21 = vsel %vm3163_vm6, %v3149_v53, %v2045_v27 }
 0x3ec   :  { %2060 = vrot.lane.b32.xlu0 %v848_v31, %s9105_s16 }
 0x3ed   :  { %v11783_v45 = vpop.permute.xlu1 %1536 }
 0x3ee   :  { %v2303_v20 = vpop.permute.xlu0 %2302 }
 0x3ef   :  { %2826 = vrot.lane.b32.xlu1 %v849_v54, %s9108_s1 }
 0x3f0   :  { %1042 = vrot.lane.b32.xlu0 %v785_v52, %s9101_s29  ;;  %v3279_v52 = vsel %vm3228_vm7, %v3214_v21, %v2301_v28  ;;  %v2955_v21 = vsel %vm104_vm0, %v11315_v56, %v11691_v17 }
 0x3f1   :  { %v2557_v9 = vpop.permute.xlu1 %2556 }
 0x3f2   :  { %v11794_v48 = vpop.permute.xlu0 %1538  ;;  %v3344_v4 = vsel %vm3293_vm8, %v3279_v52, %v2557_v9  ;;  %v3020_v52 = vsel %vm2968_vm4, %v2955_v21, %v11699_v19  ;;  %v851_v21 = vld [vmem:[#allocation2 + $0x322] sm:$0xff] }
 0x3f3   :  { %1296 = vrot.lane.b32.xlu1 %v848_v31, %s9102_s13  ;;  %v3085_v56 = vsel %vm3033_vm2, %v3020_v52, %v11712_v18 }
 0x3f4   :  { %2062 = vrot.lane.b32.xlu0 %v849_v54, %s9105_s16 }
 0x3f5   :  { %v11800_v50 = vpop.permute.xlu1 %1792 }
 0x3f6   :  { %v11805_v33 = vpop.f32.mrb[36].mxu0  ;;  %v2559_v14 = vpop.permute.xlu0 %2558 }
 0x3f7   :  { %14312 = vst [vmem:[#allocation27_spill] sm:$0xff] %v11805_v33  ;;  %2316 = vrot.lane.b32.xlu1 %v11796_v1, %s9106_s21  ;;  %v11810_v29 = vpop.f32.mrb[37].mxu0  ;;  %v4175_v12 = vmul.f32 %v11805_v33, %v11805_v33  ;;  %v4078_v53 = vsel %vm2968_vm4, %v11805_v33, 0.0 }
 0x3f8   :  { %14313 = vst [vmem:[#allocation28_spill] sm:$0xff] %v11810_v29  ;;  %v4076_v31 = vsel %vm2968_vm4, %v11810_v29, 0.0  ;;  %v4174_v8 = vmul.f32 %v11810_v29, %v11810_v29  ;;  %1298 = vrot.lane.b32.xlu0 %v849_v54, %s9102_s13  ;;  %v786_v54 = vld [vmem:[#allocation2 + $0x319] sm:$0xff] }
 0x3f9   :  { %v4077_v27 = vadd.f32 %v4076_v31, %v4075_v61  ;;  %v2813_v62 = vpop.permute.xlu1 %2812  ;;  %v11831_v61 = vld [vmem:[#allocation2 + $0x320] sm:$0xff]  ;;  %v4275_v31 = vsel %vm2968_vm4, %v4175_v12, 0.0 }
 0x3fa   :  { %v4273_v22 = vsel %vm2968_vm4, %v4174_v8, 0.0  ;;  %v3409_v28 = vsel %vm3358_vm9, %v3344_v4, %v2813_v62  ;;  %v11836_v8 = vpop.permute.xlu0 %1028 }
 0x3fb   :  { %v4274_v59 = vadd.f32 %v4273_v22, %v4272_v49  ;;  %1552 = vrot.lane.b32.xlu1 %v11796_v1, %s9103_s14  ;;  %8605 = vmatprep.mubr.msk.f32.mxu0 %vm3423_vm10, %v3409_v28  ;;  %v4079_v9 = vadd.f32 %v4078_v53, %v4077_v27  ;;  %v3150_v49 = vsel %vm3098_vm5, %v3085_v56, %v11758_v26 }
 0x3fc   :  { %2318 = vrot.lane.b32.xlu0 %v11831_v61, %s9106_s21  ;;  %v3215_v4 = vsel %vm3163_vm6, %v3150_v49, %v2047_v6  ;;  %v850_v6 = vld [vmem:[#allocation2 + $0x31a] sm:$0xff]  ;;  %v2956_v49 = vsel %vm104_vm0, %v11366_v32, %v11754_v46 }
 0x3fd   :  { %v11840_v17 = vpop.permute.xlu1 %1794  ;;  %v4276_v22 = vadd.f32 %v4275_v31, %v4274_v59  ;;  %v3280_v19 = vsel %vm3228_vm7, %v3215_v4, %v2303_v20  ;;  %v787_v59 = vld [vmem:[#allocation2 + $0x321] sm:$0xff] }
 0x3fe   :  { %v2049_v12 = vpop.permute.xlu0 %2048  ;;  %v3345_v27 = vsel %vm3293_vm8, %v3280_v19, %v2559_v14  ;;  %v724_v19 = vld [vmem:[#allocation2 + $0x330] sm:$0xff] }
 0x3ff   :  { %2572 = vrot.lane.b32.xlu1 %v786_v54, %s9107_s28 }
 0x400   :  { %1554 = vrot.lane.b32.xlu0 %v11831_v61, %s9103_s14 }
 0x401   :  { %v2815_v62 = vpop.permute.xlu1 %2814 }
 0x402   :  { %v3410_v18 = vsel %vm3358_vm9, %v3345_v27, %v2815_v62  ;;  %v11855_v26 = vpop.permute.xlu0 %1030 }
 0x403   :  { %1808 = vrot.lane.b32.xlu1 %v786_v54, %s9104_s15  ;;  %8606 = vmatmul.mubr.msk.f32.gmra.mrb[50].mxu0 %vm3423_vm10, %v3410_v18 }
 0x404   :  { %2574 = vrot.lane.b32.xlu0 %v787_v59, %s9107_s28 }
 0x405   :  { %v11857_v53 = vpop.permute.xlu1 %1284 }
 0x406   :  { %v2051_v20 = vpop.permute.xlu0 %2050 }
 0x407   :  { %2828 = vrot.lane.b32.xlu1 %v850_v6, %s9108_s1 }
 0x408   :  { %1044 = vrot.lane.b32.xlu0 %v786_v54, %s9101_s29  ;;  %v3021_v54 = vsel %vm2968_vm4, %v2956_v49, %v11775_v60 }
 0x409   :  { %v2305_v14 = vpop.permute.xlu1 %2304  ;;  %v3086_v27 = vsel %vm3033_vm2, %v3021_v54, %v11783_v45 }
 0x40a   :  { %v11863_v28 = vpop.permute.xlu0 %1286  ;;  %v3151_v18 = vsel %vm3098_vm5, %v3086_v27, %v11800_v50 }
 0x40b   :  { %1810 = vrot.lane.b32.xlu1 %v787_v59, %s9104_s15  ;;  %v3216_v32 = vsel %vm3163_vm6, %v3151_v18, %v2049_v12 }
 0x40c   :  { %2064 = vrot.lane.b32.xlu0 %v850_v6, %s9105_s16  ;;  %v3281_v60 = vsel %vm3228_vm7, %v3216_v32, %v2305_v14  ;;  %v2957_v32 = vsel %vm104_vm0, %v11405_v41, %v11773_v44 }
 0x40d   :  { %v11865_v52 = vpop.permute.xlu1 %1540 }
 0x40e   :  { %v2307_v31 = vpop.permute.xlu0 %2306 }
 0x40f   :  { %2830 = vrot.lane.b32.xlu1 %v851_v21, %s9108_s1 }
 0x410   :  { %1046 = vrot.lane.b32.xlu0 %v787_v59, %s9101_s29 }
 0x411   :  { %v2561_v56 = vpop.permute.xlu1 %2560 }
 0x412   :  { %v11876_v4 = vpop.permute.xlu0 %1542  ;;  %v3346_v54 = vsel %vm3293_vm8, %v3281_v60, %v2561_v56  ;;  %v3022_v60 = vsel %vm2968_vm4, %v2957_v32, %v11781_v36 }
 0x413   :  { %1300 = vrot.lane.b32.xlu1 %v850_v6, %s9102_s13 }
 0x414   :  { %2066 = vrot.lane.b32.xlu0 %v851_v21, %s9105_s16 }
 0x415   :  { %v11880_v62 = vpop.permute.xlu1 %1796 }
 0x416   :  { %v11885_v59 = vpop.f32.mrb[38].mxu0  ;;  %v2563_v49 = vpop.permute.xlu0 %2562 }
 0x417   :  { %2320 = vrot.lane.b32.xlu1 %v724_v19, %s9106_s21  ;;  %v11889_v46 = vpop.f32.mrb[39].mxu0  ;;  %v4177_v45 = vmul.f32 %v11885_v59, %v11885_v59  ;;  %v4082_v18 = vsel %vm2968_vm4, %v11885_v59, 0.0 }
 0x418   :  { %v4080_v6 = vsel %vm2968_vm4, %v11889_v46, 0.0  ;;  %v4176_v50 = vmul.f32 %v11889_v46, %v11889_v46  ;;  %1302 = vrot.lane.b32.xlu0 %v851_v21, %s9102_s13  ;;  %v788_v21 = vld [vmem:[#allocation2 + $0x331] sm:$0xff] }
 0x419   :  { %v4081_v27 = vadd.f32 %v4080_v6, %v4079_v9  ;;  %v2817_v12 = vpop.permute.xlu1 %2816  ;;  %v725_v9 = vld [vmem:[#allocation2 + $0x338] sm:$0xff]  ;;  %v4279_v6 = vsel %vm2968_vm4, %v4177_v45, 0.0 }
 0x41a   :  { %v4277_v33 = vsel %vm2968_vm4, %v4176_v50, 0.0  ;;  %v3411_v14 = vsel %vm3358_vm9, %v3346_v54, %v2817_v12  ;;  %v11914_v50 = vpop.permute.xlu0 %1032  ;;  %v3087_v54 = vsel %vm3033_vm2, %v3022_v60, %v11794_v48 }
 0x41b   :  { %v4278_v29 = vadd.f32 %v4277_v33, %v4276_v22  ;;  %1556 = vrot.lane.b32.xlu1 %v724_v19, %s9103_s14  ;;  %8608 = vmatprep.mubr.msk.f32.mxu0 %vm3423_vm10, %v3411_v14  ;;  %v11909_v56 = vadd.f32 %v4082_v18, %v4081_v27  ;;  %v3152_v33 = vsel %vm3098_vm5, %v3087_v54, %v11840_v17  ;;  %v853_v18 = vld [vmem:[#allocation2 + $0x33a] sm:$0xff] }
 0x41c   :  { %2322 = vrot.lane.b32.xlu0 %v725_v9, %s9106_s21  ;;  %v3217_v22 = vsel %vm3163_vm6, %v3152_v33, %v2051_v20  ;;  %v852_v20 = vld [vmem:[#allocation2 + $0x332] sm:$0xff]  ;;  %v2958_v54 = vsel %vm104_vm0, %v11456_v34, %v11836_v8  ;;  %v790_v33 = vld [vmem:[#allocation2 + $0x349] sm:$0xff] }
 0x41d   :  { %v11918_v41 = vpop.permute.xlu1 %1798  ;;  %v11920_v44 = vadd.f32 %v4279_v6, %v4278_v29  ;;  %v3282_v36 = vsel %vm3228_vm7, %v3217_v22, %v2307_v31  ;;  %v789_v29 = vld [vmem:[#allocation2 + $0x339] sm:$0xff]  ;;  %v727_v6 = vld [vmem:[#allocation2 + $0x350] sm:$0xff]  ;;  %v3023_v22 = vsel %vm2968_vm4, %v2958_v54, %v11857_v53 }
 0x41e   :  { %v2053_v19 = vpop.permute.xlu0 %2052  ;;  %v3347_v45 = vsel %vm3293_vm8, %v3282_v36, %v2563_v49  ;;  %v854_v53 = vld [vmem:[#allocation2 + $0x34a] sm:$0xff]  ;;  %v855_v54 = vld [vmem:[#allocation2 + $0x352] sm:$0xff] }
 0x41f   :  { %2576 = vrot.lane.b32.xlu1 %v788_v21, %s9107_s28 }
 0x420   :  { %1558 = vrot.lane.b32.xlu0 %v725_v9, %s9103_s14  ;;  %v726_v9 = vld [vmem:[#allocation2 + $0x348] sm:$0xff] }
 0x421   :  { %v2819_v27 = vpop.permute.xlu1 %2818 }
 0x422   :  { %v3412_v48 = vsel %vm3358_vm9, %v3347_v45, %v2819_v27  ;;  %v11933_v17 = vpop.permute.xlu0 %1034  ;;  %v791_v45 = vld [vmem:[#allocation2 + $0x351] sm:$0xff]  ;;  %v3088_v27 = vsel %vm3033_vm2, %v3023_v22, %v11865_v52 }
 0x423   :  { %1812 = vrot.lane.b32.xlu1 %v788_v21, %s9104_s15  ;;  %8609 = vmatmul.mubr.msk.f32.gmra.mrb[52].mxu0 %vm3423_vm10, %v3412_v48 }
 0x424   :  { %2578 = vrot.lane.b32.xlu0 %v789_v29, %s9107_s28 }
 0x425   :  { %v11935_v12 = vpop.permute.xlu1 %1288 }
 0x426   :  { %v2055_v31 = vpop.permute.xlu0 %2054 }
 0x427   :  { %2832 = vrot.lane.b32.xlu1 %v852_v20, %s9108_s1 }
 0x428   :  { %1814 = vrot.lane.b32.xlu0 %v789_v29, %s9104_s15  ;;  %v3153_v29 = vsel %vm3098_vm5, %v3088_v27, %v11880_v62 }
 0x429   :  { %v2309_v49 = vpop.permute.xlu1 %2308  ;;  %v3218_v34 = vsel %vm3163_vm6, %v3153_v29, %v2053_v19  ;;  %v2959_v29 = vsel %vm104_vm0, %v11495_v40, %v11855_v26 }
 0x42a   :  { %v11941_v14 = vpop.permute.xlu0 %1290 }
 0x42b   :  { %2068 = vrot.lane.b32.xlu1 %v852_v20, %s9105_s16 }
 0x42c   :  { %2834 = vrot.lane.b32.xlu0 %v853_v18, %s9108_s1 }
 0x42d   :  { %v11943_v32 = vpop.permute.xlu1 %1544 }
 0x42e   :  { %v2311_v60 = vpop.permute.xlu0 %2310 }
 0x42f   :  { %2070 = vrot.lane.b32.xlu1 %v853_v18, %s9105_s16  ;;  %v3283_v18 = vsel %vm3228_vm7, %v3218_v34, %v2309_v49 }
 0x430   :  { %2324 = vrot.lane.b32.xlu0 %v726_v9, %s9106_s21 }
 0x431   :  { %v2565_v21 = vpop.permute.xlu1 %2564 }
 0x432   :  { %v11954_v36 = vpop.permute.xlu0 %1546  ;;  %v3348_v19 = vsel %vm3293_vm8, %v3283_v18, %v2565_v21  ;;  %v3024_v21 = vsel %vm2968_vm4, %v2959_v29, %v11863_v28 }
 0x433   :  { %2326 = vrot.lane.b32.xlu1 %v727_v6, %s9106_s21 }
 0x434   :  { %2580 = vrot.lane.b32.xlu0 %v790_v33, %s9107_s28 }
 0x435   :  { %v1801_v48 = vpop.permute.xlu1 %1800 }
 0x436   :  { %v11961_v20 = vpop.f32.mrb[40].mxu0  ;;  %v2567_v6 = vpop.permute.xlu0 %2566 }
 0x437   :  { %2582 = vrot.lane.b32.xlu1 %v791_v45, %s9107_s28  ;;  %v11965_v8 = vpop.f32.mrb[41].mxu0  ;;  %v4179_v52 = vmul.f32 %v11961_v20, %v11961_v20  ;;  %v4086_v45 = vsel %vm2968_vm4, %v11961_v20, 0.0  ;;  %s9111_s28 = smov 60  }
 0x438   :  { %v4084_v9 = vsel %vm2968_vm4, %v11965_v8, 0.0  ;;  %v4178_v62 = vmul.f32 %v11965_v8, %v11965_v8  ;;  %2836 = vrot.lane.b32.xlu0 %v854_v53, %s9108_s1  ;;  %v3089_v53 = vsel %vm3033_vm2, %v3024_v21, %v11876_v4 }
 0x439   :  { %v4085_v33 = vadd.f32 %v4084_v9, %v11909_v56  ;;  %v2821_v22 = vpop.permute.xlu1 %2820  ;;  %v4283_v18 = vsel %vm2968_vm4, %v4179_v52, 0.0  ;;  %v3154_v40 = vsel %vm3098_vm5, %v3089_v53, %v11918_v41 }
 0x43a   :  { %v4281_v49 = vsel %vm2968_vm4, %v4178_v62, 0.0  ;;  %v3413_v27 = vsel %vm3358_vm9, %v3348_v19, %v2821_v22  ;;  %v11990_v9 = vpop.permute.xlu0 %1036  ;;  %v3219_v26 = vsel %vm3163_vm6, %v3154_v40, %v2055_v31 }
 0x43b   :  { %v4282_v34 = vadd.f32 %v4281_v49, %v11920_v44  ;;  %2838 = vrot.lane.b32.xlu1 %v855_v54, %s9108_s1  ;;  %8611 = vmatprep.mubr.msk.f32.mxu0 %vm3423_vm10, %v3413_v27  ;;  %v4087_v56 = vadd.f32 %v4086_v45, %v4085_v33  ;;  %v3284_v44 = vsel %vm3228_vm7, %v3219_v26, %v2311_v60 }
 0x43c   :  { %v3349_v33 = vsel %vm3293_vm8, %v3284_v44, %v2567_v6  ;;  %v2960_v60 = vsel %vm104_vm0, %v11546_v24, %v11914_v50 }
 0x43d   :  { %v1803_v62 = vpop.permute.xlu1 %1802  ;;  %v4284_v19 = vadd.f32 %v4283_v18, %v4282_v34  ;;  %v3025_v6 = vsel %vm2968_vm4, %v2960_v60, %v11935_v12 }
 0x43e   :  { %v2057_v54 = vpop.permute.xlu0 %2056  ;;  %v3090_v21 = vsel %vm3033_vm2, %v3025_v6, %v11943_v32  ;;  %v2961_v6 = vsel %vm104_vm0, %v11585_v35, %v11933_v17 }
 0x43f   :  { %v3155_v53 = vsel %vm3098_vm5, %v3090_v21, %v1801_v48 }
 0x440   :  { %v3220_v26 = vsel %vm3163_vm6, %v3155_v53, %v2057_v54 }
 0x441   :  { %v2823_v28 = vpop.permute.xlu1 %2822 }
 0x442   :  { %v3414_v52 = vsel %vm3358_vm9, %v3349_v33, %v2823_v28  ;;  %v12001_v22 = vpop.permute.xlu0 %1038 }
 0x443   :  { %8612 = vmatmul.mubr.msk.f32.gmra.mrb[54].mxu0 %vm3423_vm10, %v3414_v52 }
 0x445   :  { %v1293_v4 = vpop.permute.xlu1 %1292 }
 0x446   :  { %v2059_v45 = vpop.permute.xlu0 %2058 }
 0x449   :  { %v2313_v49 = vpop.permute.xlu1 %2312 }
 0x44a   :  { %v12003_v27 = vpop.permute.xlu0 %1294  ;;  %v3285_v33 = vsel %vm3228_vm7, %v3220_v26, %v2313_v49 }
 0x44d   :  { %v1549_v41 = vpop.permute.xlu1 %1548 }
 0x44e   :  { %v2315_v29 = vpop.permute.xlu0 %2314 }
 0x451   :  { %v2569_v31 = vpop.permute.xlu1 %2568 }
 0x452   :  { %v12010_v34 = vpop.permute.xlu0 %1550  ;;  %v3350_v48 = vsel %vm3293_vm8, %v3285_v33, %v2569_v31  ;;  %v3026_v31 = vsel %vm2968_vm4, %v2961_v6, %v11941_v14 }
 0x453   :  { %v3091_v33 = vsel %vm3033_vm2, %v3026_v31, %v11954_v36 }
 0x455   :  { %v1805_v18 = vpop.permute.xlu1 %1804 }
 0x456   :  { %v12015_v40 = vpop.f32.mrb[42].mxu0  ;;  %v2571_v32 = vpop.permute.xlu0 %2570 }
 0x457   :  { %v12018_v44 = vpop.f32.mrb[43].mxu0  ;;  %v4181_v24 = vmul.f32 %v12015_v40, %v12015_v40  ;;  %v4090_v54 = vsel %vm2968_vm4, %v12015_v40, 0.0 }
 0x458   :  { %v4088_v50 = vsel %vm2968_vm4, %v12018_v44, 0.0  ;;  %v4180_v12 = vmul.f32 %v12018_v44, %v12018_v44 }
 0x459   :  { %v4089_v28 = vadd.f32 %v4088_v50, %v4087_v56  ;;  %v2825_v52 = vpop.permute.xlu1 %2824  ;;  %v4287_v56 = vsel %vm2968_vm4, %v4181_v24, 0.0 }
 0x45a   :  { %v4285_v60 = vsel %vm2968_vm4, %v4180_v12, 0.0  ;;  %v3415_v49 = vsel %vm3358_vm9, %v3350_v48, %v2825_v52  ;;  %v12039_v26 = vpop.permute.xlu0 %1040  ;;  %v3156_v48 = vsel %vm3098_vm5, %v3091_v33, %v1803_v62 }
 0x45b   :  { %v4286_v21 = vadd.f32 %v4285_v60, %v4284_v19  ;;  %8614 = vmatprep.mubr.msk.f32.mxu0 %vm3423_vm10, %v3415_v49  ;;  %v4091_v53 = vadd.f32 %v4090_v54, %v4089_v28  ;;  %v3221_v35 = vsel %vm3163_vm6, %v3156_v48, %v2059_v45 }
 0x45c   :  { %v3286_v17 = vsel %vm3228_vm7, %v3221_v35, %v2315_v29  ;;  %v2962_v29 = vsel %vm104_vm0, %v11632_v30, %v11990_v9 }
 0x45d   :  { %v1807_v50 = vpop.permute.xlu1 %1806  ;;  %v4288_v12 = vadd.f32 %v4287_v56, %v4286_v21  ;;  %v3351_v28 = vsel %vm3293_vm8, %v3286_v17, %v2571_v32  ;;  %v3027_v32 = vsel %vm2968_vm4, %v2962_v29, %v1293_v4 }
 0x45e   :  { %v2061_v19 = vpop.permute.xlu0 %2060  ;;  %v3092_v31 = vsel %vm3033_vm2, %v3027_v32, %v1549_v41  ;;  %v2963_v32 = vsel %vm104_vm0, %v11667_v63, %v12001_v22 }
 0x45f   :  { %v3157_v33 = vsel %vm3098_vm5, %v3092_v31, %v1805_v18 }
 0x460   :  { %v3222_v35 = vsel %vm3163_vm6, %v3157_v33, %v2061_v19 }
 0x461   :  { %v2827_v52 = vpop.permute.xlu1 %2826 }
 0x462   :  { %v3416_v14 = vsel %vm3358_vm9, %v3351_v28, %v2827_v52  ;;  %v12049_v24 = vpop.permute.xlu0 %1042 }
 0x463   :  { %8615 = vmatmul.mubr.msk.f32.gmra.mrb[56].mxu0 %vm3423_vm10, %v3416_v14 }
 0x465   :  { %v1297_v54 = vpop.permute.xlu1 %1296 }
 0x466   :  { %v2063_v36 = vpop.permute.xlu0 %2062 }
 0x469   :  { %v2317_v60 = vpop.permute.xlu1 %2316 }
 0x46a   :  { %v12051_v49 = vpop.permute.xlu0 %1298  ;;  %v3287_v28 = vsel %vm3228_vm7, %v3222_v35, %v2317_v60 }
 0x46d   :  { %v1553_v62 = vpop.permute.xlu1 %1552 }
 0x46e   :  { %v2319_v6 = vpop.permute.xlu0 %2318 }
 0x471   :  { %v2573_v45 = vpop.permute.xlu1 %2572 }
 0x472   :  { %v12057_v21 = vpop.permute.xlu0 %1554  ;;  %v3352_v18 = vsel %vm3293_vm8, %v3287_v28, %v2573_v45  ;;  %v3028_v45 = vsel %vm2968_vm4, %v2963_v32, %v12003_v27 }
 0x473   :  { %v3093_v28 = vsel %vm3033_vm2, %v3028_v45, %v12010_v34 }
 0x475   :  { %v1809_v56 = vpop.permute.xlu1 %1808 }
 0x476   :  { %v12061_v48 = vpop.f32.mrb[44].mxu0  ;;  %v2575_v41 = vpop.permute.xlu0 %2574 }
 0x477   :  { %v12064_v17 = vpop.f32.mrb[45].mxu0  ;;  %v4183_v30 = vmul.f32 %v12061_v48, %v12061_v48  ;;  %v4094_v19 = vsel %vm2968_vm4, %v12061_v48, 0.0 }
 0x478   :  { %v4092_v9 = vsel %vm2968_vm4, %v12064_v17, 0.0  ;;  %v4182_v4 = vmul.f32 %v12064_v17, %v12064_v17 }
 0x479   :  { %v4093_v52 = vadd.f32 %v4092_v9, %v4091_v53  ;;  %v2829_v14 = vpop.permute.xlu1 %2828  ;;  %v4291_v53 = vsel %vm2968_vm4, %v4183_v30, 0.0 }
 0x47a   :  { %v4289_v29 = vsel %vm2968_vm4, %v4182_v4, 0.0  ;;  %v3417_v60 = vsel %vm3358_vm9, %v3352_v18, %v2829_v14  ;;  %v1045_v35 = vpop.permute.xlu0 %1044  ;;  %v3158_v18 = vsel %vm3098_vm5, %v3093_v28, %v1807_v50 }
 0x47b   :  { %v4290_v31 = vadd.f32 %v4289_v29, %v4288_v12  ;;  %8617 = vmatprep.mubr.msk.f32.mxu0 %vm3423_vm10, %v3417_v60  ;;  %v4095_v33 = vadd.f32 %v4094_v19, %v4093_v52  ;;  %v3223_v14 = vsel %vm3163_vm6, %v3158_v18, %v2063_v36  ;;  %v2964_v36 = vsel %vm104_vm0, %v11714_v2, %v12039_v26 }
 0x47c   :  { %v3288_v63 = vsel %vm3228_vm7, %v3223_v14, %v2319_v6  ;;  %v3029_v6 = vsel %vm2968_vm4, %v2964_v36, %v1297_v54 }
 0x47d   :  { %v1811_v9 = vpop.permute.xlu1 %1810  ;;  %v4292_v4 = vadd.f32 %v4291_v53, %v4290_v31  ;;  %v3353_v12 = vsel %vm3293_vm8, %v3288_v63, %v2575_v41  ;;  %v3094_v45 = vsel %vm3033_vm2, %v3029_v6, %v1553_v62 }
 0x47e   :  { %v2065_v22 = vpop.permute.xlu0 %2064  ;;  %v3159_v28 = vsel %vm3098_vm5, %v3094_v45, %v1809_v56 }
 0x47f   :  { %v3224_v14 = vsel %vm3163_vm6, %v3159_v28, %v2065_v22  ;;  %v2965_v22 = vsel %vm104_vm0, %v11749_v57, %v12049_v24 }
 0x480   :  { %v3030_v45 = vsel %vm2968_vm4, %v2965_v22, %v12051_v49 }
 0x481   :  { %v2831_v52 = vpop.permute.xlu1 %2830 }
 0x482   :  { %v3418_v27 = vsel %vm3358_vm9, %v3353_v12, %v2831_v52  ;;  %v1047_v30 = vpop.permute.xlu0 %1046 }
 0x483   :  { %8618 = vmatmul.mubr.msk.f32.gmra.mrb[58].mxu0 %vm3423_vm10, %v3418_v27 }
 0x485   :  { %v1301_v19 = vpop.permute.xlu1 %1300 }
 0x486   :  { %v2067_v29 = vpop.permute.xlu0 %2066 }
 0x489   :  { %v2321_v34 = vpop.permute.xlu1 %2320 }
 0x48a   :  { %v1303_v60 = vpop.permute.xlu0 %1302  ;;  %v3289_v12 = vsel %vm3228_vm7, %v3224_v14, %v2321_v34 }
 0x48d   :  { %v1557_v32 = vpop.permute.xlu1 %1556 }
 0x48e   :  { %v2323_v31 = vpop.permute.xlu0 %2322 }
 0x491   :  { %v2577_v50 = vpop.permute.xlu1 %2576 }
 0x492   :  { %v1559_v41 = vpop.permute.xlu0 %1558  ;;  %v3354_v62 = vsel %vm3293_vm8, %v3289_v12, %v2577_v50 }
 0x495   :  { %v1813_v53 = vpop.permute.xlu1 %1812 }
 0x496   :  { %v12099_v18 = vpop.f32.mrb[46].mxu0  ;;  %v2579_v54 = vpop.permute.xlu0 %2578 }
 0x497   :  { %v12102_v63 = vpop.f32.mrb[47].mxu0  ;;  %v4185_v52 = vmul.f32 %v12099_v18, %v12099_v18  ;;  %v4098_v34 = vsel %vm2968_vm4, %v12099_v18, 0.0 }
 0x498   :  { %v4096_v2 = vsel %vm2968_vm4, %v12102_v63, 0.0  ;;  %v4184_v26 = vmul.f32 %v12102_v63, %v12102_v63 }
 0x499   :  { %v4097_v56 = vadd.f32 %v4096_v2, %v4095_v33  ;;  %v2833_v27 = vpop.permute.xlu1 %2832  ;;  %v3095_v33 = vsel %vm3033_vm2, %v3030_v45, %v12057_v21  ;;  %v4295_v14 = vsel %vm2968_vm4, %v4185_v52, 0.0  ;;  %v2966_v52 = vsel %vm104_vm0, %v11796_v1, %v1045_v35 }
 0x49a   :  { %v4293_v36 = vsel %vm2968_vm4, %v4184_v26, 0.0  ;;  %v3419_v6 = vsel %vm3358_vm9, %v3354_v62, %v2833_v27  ;;  %v1815_v57 = vpop.permute.xlu0 %1814  ;;  %v3160_v24 = vsel %vm3098_vm5, %v3095_v33, %v1811_v9  ;;  %v2967_v9 = vsel %vm104_vm0, %v11831_v61, %v1047_v30 }
 0x49b   :  { %v4294_v28 = vadd.f32 %v4293_v36, %v4292_v4  ;;  %8620 = vmatprep.mubr.msk.f32.mxu0 %vm3423_vm10, %v3419_v6  ;;  %v4099_v50 = vadd.f32 %v4098_v34, %v4097_v56  ;;  %v3225_v26 = vsel %vm3163_vm6, %v3160_v24, %v2067_v29  ;;  %v3031_v29 = vsel %vm2968_vm4, %v2966_v52, %v1301_v19  ;;  %v4868_v52 = vld [vmem:[#allocation2 + $0x1a] ss:$2 sm:$0xff] }
 0x49c   :  { %v3290_v62 = vsel %vm3228_vm7, %v3225_v26, %v2323_v31  ;;  %v3032_v31 = vsel %vm2968_vm4, %v2967_v9, %v1303_v60  ;;  %v4806_v9 = vld [vmem:[#allocation2 + $0x31] ss:$2 sm:$0xff]  ;;  %vm5969_vm0 = vcmask 490496  }
 0x49d   :  { %v2069_v12 = vpop.permute.xlu1 %2068  ;;  %v4296_v2 = vadd.f32 %v4295_v14, %v4294_v28  ;;  %v3355_v49 = vsel %vm3293_vm8, %v3290_v62, %v2579_v54  ;;  %v3096_v54 = vsel %vm3033_vm2, %v3031_v29, %v1557_v32  ;;  %v3097_v36 = vsel %vm3033_vm2, %v3032_v31, %v1559_v41  ;;  %v4870_v31 = vld [vmem:[#allocation2 + $0x32] ss:$2 sm:$0xff] }
 0x49e   :  { %v2835_v4 = vpop.permute.xlu0 %2834  ;;  %v3161_v6 = vsel %vm3098_vm5, %v3096_v54, %v1813_v53  ;;  %v3162_v28 = vsel %vm3098_vm5, %v3097_v36, %v1815_v57  ;;  %v4808_v54 = vld [vmem:[#allocation2 + $0x49] ss:$2 sm:$0xff] }
 0x49f   :  { %v3420_v27 = vsel %vm3358_vm9, %v3355_v49, %v2835_v4  ;;  %v3226_v33 = vsel %vm3163_vm6, %v3161_v6, %v2069_v12  ;;  %v4932_v6 = vmax.f32 %v4806_v9, %v4870_v31 }
 0x4a0   :  { %8621 = vmatmul.mubr.msk.f32.gmra.mrb[60].mxu0 %vm3423_vm10, %v3420_v27 }
 0x4a1   :  { %v2071_v56 = vpop.permute.xlu1 %2070  ;;  %4997 = vrot.lane.b32.xlu1 %v4932_v6, %s9102_s13  ;;  %v4822_v6 = vld [vmem:[#allocation2 + $0xf1] ss:$2 sm:$0xff] }
 0x4a2   :  { %v2325_v21 = vpop.permute.xlu0 %2324  ;;  %v3227_v1 = vsel %vm3163_vm6, %v3162_v28, %v2071_v56  ;;  %vm6037_vm6 = vcmask 883712  }
 0x4a3   :  { %v3291_v61 = vsel %vm3228_vm7, %v3226_v33, %v2325_v21 }
 0x4a5   :  { %v2327_v22 = vpop.permute.xlu1 %2326 }
 0x4a6   :  { %v2581_v34 = vpop.permute.xlu0 %2580  ;;  %v3292_v35 = vsel %vm3228_vm7, %v3227_v1, %v2327_v22  ;;  %v4804_v22 = vld [vmem:[#allocation2 + $0x19] ss:$2 sm:$0xff]  ;;  %v4876_v1 = vld [vmem:[#allocation2 + $0x7a] ss:$2 sm:$0xff] }
 0x4a7   :  { %v3356_v30 = vsel %vm3293_vm8, %v3291_v61, %v2581_v34  ;;  %v4931_v29 = vmax.f32 %v4804_v22, %v4868_v52  ;;  %v4872_v34 = vld [vmem:[#allocation2 + $0x4a] ss:$2 sm:$0xff]  ;;  %v4814_v61 = vld [vmem:[#allocation2 + $0x91] ss:$2 sm:$0xff]  ;;  %v4818_v22 = vld [vmem:[#allocation2 + $0xc1] ss:$2 sm:$0xff] }
 0x4a8   :  { %v4933_v28 = vmax.f32 %v4808_v54, %v4872_v34  ;;  %v4884_v34 = vld [vmem:[#allocation2 + $0xda] ss:$2 sm:$0xff] }
 0x4a9   :  { %v2583_v45 = vpop.permute.xlu1 %2582  ;;  %4995 = vrot.lane.b32.xlu0 %v4931_v29, %s9102_s13  ;;  %v4882_v29 = vld [vmem:[#allocation2 + $0xc2] ss:$2 sm:$0xff] }
 0x4aa   :  { %v2837_v19 = vpop.permute.xlu0 %2836  ;;  %v3357_v60 = vsel %vm3293_vm8, %v3292_v35, %v2583_v45  ;;  %v4810_v45 = vld [vmem:[#allocation2 + $0x61] ss:$2 sm:$0xff]  ;;  %v4938_v54 = vmax.f32 %v4818_v22, %v4882_v29 }
 0x4ab   :  { %v3421_v32 = vsel %vm3358_vm9, %v3356_v30, %v2837_v19  ;;  %v4878_v19 = vld [vmem:[#allocation2 + $0x92] ss:$2 sm:$0xff] }
 0x4ac   :  { %8623 = vmatprep.mubr.msk.f32.mxu0 %vm3423_vm10, %v3421_v32  ;;  %v4936_v32 = vmax.f32 %v4814_v61, %v4878_v19 }
 0x4ad   :  { %v2839_v41 = vpop.permute.xlu1 %2838  ;;  %4999 = vrot.lane.b32.xlu0 %v4933_v28, %s9102_s13 }
 0x4ae   :  { %v3422_v53 = vsel %vm3358_vm9, %v3357_v60, %v2839_v41  ;;  %vm6649_vm9 = vcmask 224384  }
 0x4af   :  { %8624 = vmatmul.mubr.msk.f32.gmra.mrb[62].mxu0 %vm3423_vm10, %v3422_v53 }
 0x4b6   :  { %v12151_v14 = vpop.f32.mrb[48].mxu0 }
 0x4b7   :  { %v4187_v57 = vmul.f32 %v12151_v14, %v12151_v14  ;;  %v12155_v24 = vpop.f32.mrb[49].mxu0  ;;  %v4102_v49 = vsel %vm2968_vm4, %v12151_v14, 0.0 }
 0x4b8   :  { %v4100_v12 = vsel %vm2968_vm4, %v12155_v24, 0.0  ;;  %v4186_v26 = vmul.f32 %v12155_v24, %v12155_v24 }
 0x4b9   :  { %v4101_v62 = vadd.f32 %v4100_v12, %v4099_v50  ;;  %v4299_v4 = vsel %vm2968_vm4, %v4187_v57, 0.0  ;;  %v4874_v50 = vld [vmem:[#allocation2 + $0x62] ss:$2 sm:$0xff] }
 0x4ba   :  { %v4297_v27 = vsel %vm2968_vm4, %v4186_v26, 0.0  ;;  %v4934_v33 = vmax.f32 %v4810_v45, %v4874_v50  ;;  %v4886_v50 = vld [vmem:[#allocation2 + $0xf2] ss:$2 sm:$0xff] }
 0x4bb   :  { %v4298_v56 = vadd.f32 %v4297_v27, %v4296_v2  ;;  %v4103_v21 = vadd.f32 %v4102_v49, %v4101_v62  ;;  %v4812_v2 = vld [vmem:[#allocation2 + $0x79] ss:$2 sm:$0xff]  ;;  %v4816_v27 = vld [vmem:[#allocation2 + $0xa9] ss:$2 sm:$0xff] }
 0x4bc   :  { %5001 = vrot.lane.b32.xlu1 %v4934_v33, %s9102_s13  ;;  %v4935_v30 = vmax.f32 %v4812_v2, %v4876_v1  ;;  %v4940_v33 = vmax.f32 %v4822_v6, %v4886_v50  ;;  %v4890_v50 = vld [vmem:[#allocation2 + $0x122] ss:$2 sm:$0xff] }
 0x4bd   :  { %v4300_v36 = vadd.f32 %v4299_v4, %v4298_v56  ;;  %v4880_v56 = vld [vmem:[#allocation2 + $0xaa] ss:$2 sm:$0xff] }
 0x4be   :  { %5003 = vrot.lane.b32.xlu0 %v4935_v30, %s9102_s13  ;;  %v4937_v9 = vmax.f32 %v4816_v27, %v4880_v56 }
 0x4c0   :  { %5005 = vrot.lane.b32.xlu1 %v4936_v32, %s9102_s13 }
 0x4c2   :  { %5007 = vrot.lane.b32.xlu0 %v4937_v9, %s9102_s13 }
 0x4c4   :  { %5009 = vrot.lane.b32.xlu1 %v4938_v54, %s9102_s13 }
 0x4c8   :  { %5013 = vrot.lane.b32.xlu1 %v4940_v33, %s9102_s13 }
 0x4d6   :  { %v12169_v35 = vpop.f32.mrb[50].mxu0 }
 0x4d7   :  { %v12171_v60 = vpop.f32.mrb[51].mxu0  ;;  %v4189_v41 = vmul.f32 %v12169_v35, %v12169_v35  ;;  %v4106_v26 = vsel %vm2968_vm4, %v12169_v35, 0.0 }
 0x4d8   :  { %v4104_v53 = vsel %vm2968_vm4, %v12171_v60, 0.0  ;;  %v4188_v57 = vmul.f32 %v12171_v60, %v12171_v60 }
 0x4d9   :  { %v4105_v12 = vadd.f32 %v4104_v53, %v4103_v21  ;;  %v4303_v52 = vsel %vm2968_vm4, %v4189_v41, 0.0  ;;  %v4820_v21 = vld [vmem:[#allocation2 + $0xd9] ss:$2 sm:$0xff] }
 0x4da   :  { %v4301_v62 = vsel %vm2968_vm4, %v4188_v57, 0.0 }
 0x4db   :  { %v4302_v49 = vadd.f32 %v4301_v62, %v4300_v36  ;;  %v4107_v4 = vadd.f32 %v4106_v26, %v4105_v12  ;;  %v4939_v36 = vmax.f32 %v4820_v21, %v4884_v34  ;;  %v4824_v26 = vld [vmem:[#allocation2 + $0x109] ss:$2 sm:$0xff]  ;;  %v4888_v62 = vld [vmem:[#allocation2 + $0x10a] ss:$2 sm:$0xff] }
 0x4dc   :  { %v4941_v27 = vmax.f32 %v4824_v26, %v4888_v62 }
 0x4dd   :  { %v4304_v31 = vadd.f32 %v4303_v52, %v4302_v49  ;;  %5011 = vrot.lane.b32.xlu0 %v4939_v36, %s9102_s13  ;;  %v4826_v36 = vld [vmem:[#allocation2 + $0x121] ss:$2 sm:$0xff] }
 0x4de   :  { %v4942_v33 = vmax.f32 %v4826_v36, %v4890_v50  ;;  %v4836_v50 = vld [vmem:[#allocation2 + $0x1c9] ss:$2 sm:$0xff] }
 0x4e0   :  { %5017 = vrot.lane.b32.xlu1 %v4942_v33, %s9102_s13  ;;  %v4900_v33 = vld [vmem:[#allocation2 + $0x1ca] ss:$2 sm:$0xff] }
 0x4e1   :  { %5015 = vrot.lane.b32.xlu0 %v4941_v27, %s9102_s13  ;;  %v4828_v27 = vld [vmem:[#allocation2 + $0x139] ss:$2 sm:$0xff] }
 0x4f6   :  { %v12187_v45 = vpop.f32.mrb[52].mxu0 }
 0x4f7   :  { %v12189_v28 = vpop.f32.mrb[53].mxu0  ;;  %v4191_v2 = vmul.f32 %v12187_v45, %v12187_v45  ;;  %v4110_v19 = vsel %vm2968_vm4, %v12187_v45, 0.0 }
 0x4f8   :  { %v4108_v1 = vsel %vm2968_vm4, %v12189_v28, 0.0  ;;  %v4190_v61 = vmul.f32 %v12189_v28, %v12189_v28 }
 0x4f9   :  { %v4109_v30 = vadd.f32 %v4108_v1, %v4107_v4  ;;  %v4307_v57 = vsel %vm2968_vm4, %v4191_v2, 0.0 }
 0x4fa   :  { %v4305_v32 = vsel %vm2968_vm4, %v4190_v61, 0.0 }
 0x4fb   :  { %v4306_v41 = vadd.f32 %v4305_v32, %v4304_v31  ;;  %v4111_v53 = vadd.f32 %v4110_v19, %v4109_v30 }
 0x4fd   :  { %v4308_v12 = vadd.f32 %v4307_v57, %v4306_v41 }
 0x516   :  { %v12203_v49 = vpop.f32.mrb[54].mxu0 }
 0x517   :  { %v12205_v56 = vpop.f32.mrb[55].mxu0  ;;  %v4193_v4 = vmul.f32 %v12203_v49, %v12203_v49  ;;  %v4114_v29 = vsel %vm2968_vm4, %v12203_v49, 0.0 }
 0x518   :  { %v4112_v22 = vsel %vm2968_vm4, %v12205_v56, 0.0  ;;  %v4192_v52 = vmul.f32 %v12205_v56, %v12205_v56 }
 0x519   :  { %v4113_v9 = vadd.f32 %v4112_v22, %v4111_v53  ;;  %v4311_v34 = vsel %vm2968_vm4, %v4193_v4, 0.0  ;;  %v4892_v4 = vld [vmem:[#allocation2 + $0x13a] ss:$2 sm:$0xff]  ;;  %v4830_v22 = vld [vmem:[#allocation2 + $0x151] ss:$2 sm:$0xff] }
 0x51a   :  { %v4309_v31 = vsel %vm2968_vm4, %v4192_v52, 0.0  ;;  %v4943_v52 = vmax.f32 %v4828_v27, %v4892_v4 }
 0x51b   :  { %v4310_v54 = vadd.f32 %v4309_v31, %v4308_v12  ;;  %v4115_v21 = vadd.f32 %v4114_v29, %v4113_v9  ;;  %v4894_v9 = vld [vmem:[#allocation2 + $0x152] ss:$2 sm:$0xff]  ;;  %v4832_v31 = vld [vmem:[#allocation2 + $0x169] ss:$2 sm:$0xff] }
 0x51c   :  { %v4944_v29 = vmax.f32 %v4830_v22, %v4894_v9  ;;  %5019 = vrot.lane.b32.xlu0 %v4943_v52, %s9102_s13  ;;  %v4844_v9 = vld [vmem:[#allocation2 + $0x229] ss:$2 sm:$0xff] }
 0x51d   :  { %v4312_v6 = vadd.f32 %v4311_v34, %v4310_v54  ;;  %v4896_v54 = vld [vmem:[#allocation2 + $0x16a] ss:$2 sm:$0xff]  ;;  %v4834_v34 = vld [vmem:[#allocation2 + $0x181] ss:$2 sm:$0xff] }
 0x51e   :  { %5021 = vrot.lane.b32.xlu1 %v4944_v29, %s9102_s13  ;;  %v4908_v29 = vld [vmem:[#allocation2 + $0x22a] ss:$2 sm:$0xff] }
 0x536   :  { %v12219_v2 = vpop.f32.mrb[56].mxu0 }
 0x537   :  { %14314 = vst [vmem:[#allocation29_spill] sm:$0xff] %v12219_v2  ;;  %v12221_v1 = vpop.f32.mrb[57].mxu0  ;;  %v4195_v61 = vmul.f32 %v12219_v2, %v12219_v2  ;;  %v4118_v41 = vsel %vm2968_vm4, %v12219_v2, 0.0 }
 0x538   :  { %v4116_v30 = vsel %vm2968_vm4, %v12221_v1, 0.0  ;;  %v4194_v19 = vmul.f32 %v12221_v1, %v12221_v1 }
 0x539   :  { %v4117_v32 = vadd.f32 %v4116_v30, %v4115_v21  ;;  %v4315_v26 = vsel %vm2968_vm4, %v4195_v61, 0.0  ;;  %v4945_v21 = vmax.f32 %v4832_v31, %v4896_v54  ;;  %v4947_v61 = vmax.f32 %v4836_v50, %v4900_v33  ;;  %v4840_v30 = vld [vmem:[#allocation2 + $0x1f9] ss:$2 sm:$0xff]  ;;  %v4906_v33 = vld [vmem:[#allocation2 + $0x212] ss:$2 sm:$0xff] }
 0x53a   :  { %v4313_v53 = vsel %vm2968_vm4, %v4194_v19, 0.0  ;;  %v4904_v19 = vld [vmem:[#allocation2 + $0x1fa] ss:$2 sm:$0xff]  ;;  %v4951_v54 = vmax.f32 %v4844_v9, %v4908_v29  ;;  %v4842_v50 = vld [vmem:[#allocation2 + $0x211] ss:$2 sm:$0xff] }
 0x53b   :  { %v4314_v57 = vadd.f32 %v4313_v53, %v4312_v6  ;;  %v4119_v12 = vadd.f32 %v4118_v41, %v4117_v32  ;;  %5023 = vrot.lane.b32.xlu0 %v4945_v21, %s9102_s13  ;;  %v4898_v6 = vld [vmem:[#allocation2 + $0x182] ss:$2 sm:$0xff]  ;;  %v4949_v32 = vmax.f32 %v4840_v30, %v4904_v19  ;;  %v4950_v30 = vmax.f32 %v4842_v50, %v4906_v33  ;;  %v4848_v19 = vld [vmem:[#allocation2 + $0x259] ss:$2 sm:$0xff]  ;;  %v4914_v29 = vld [vmem:[#allocation2 + $0x272] ss:$2 sm:$0xff] }
 0x53c   :  { %v4946_v36 = vmax.f32 %v4834_v34, %v4898_v6  ;;  %v4850_v9 = vld [vmem:[#allocation2 + $0x271] ss:$2 sm:$0xff]  ;;  %v4918_v50 = vld [vmem:[#allocation2 + $0x2a2] ss:$2 sm:$0xff] }
 0x53d   :  { %v4316_v62 = vadd.f32 %v4315_v26, %v4314_v57  ;;  %v4838_v57 = vld [vmem:[#allocation2 + $0x1e1] ss:$2 sm:$0xff]  ;;  %v4902_v26 = vld [vmem:[#allocation2 + $0x1e2] ss:$2 sm:$0xff] }
 0x53e   :  { %5025 = vrot.lane.b32.xlu1 %v4946_v36, %s9102_s13  ;;  %v4948_v52 = vmax.f32 %v4838_v57, %v4902_v26  ;;  %v4846_v26 = vld [vmem:[#allocation2 + $0x241] ss:$2 sm:$0xff] }
 0x53f   :  { %5027 = vrot.lane.b32.xlu0 %v4947_v61, %s9102_s13  ;;  %v4860_v33 = vld [vmem:[#allocation2 + $0x2e9] ss:$2 sm:$0xff] }
 0x542   :  { %5029 = vrot.lane.b32.xlu1 %v4948_v52, %s9102_s13  ;;  %v4916_v52 = vld [vmem:[#allocation2 + $0x28a] ss:$2 sm:$0xff] }
 0x543   :  { %5031 = vrot.lane.b32.xlu0 %v4949_v32, %s9102_s13 }
 0x546   :  { %5033 = vrot.lane.b32.xlu1 %v4950_v30, %s9102_s13  ;;  %v4924_v30 = vld [vmem:[#allocation2 + $0x2ea] ss:$2 sm:$0xff] }
 0x547   :  { %5035 = vrot.lane.b32.xlu0 %v4951_v54, %s9102_s13  ;;  %v4856_v54 = vld [vmem:[#allocation2 + $0x2b9] ss:$2 sm:$0xff] }
 0x556   :  { %v12238_v41 = vpop.f32.mrb[58].mxu0 }
 0x557   :  { %14315 = vst [vmem:[#allocation30_spill] sm:$0xff] %v12238_v41  ;;  %v12240_v53 = vpop.f32.mrb[59].mxu0  ;;  %v4197_v27 = vmul.f32 %v12238_v41, %v12238_v41  ;;  %v4122_v21 = vsel %vm2968_vm4, %v12238_v41, 0.0 }
 0x558   :  { %14316 = vst [vmem:[#allocation31_spill] sm:$0xff] %v12240_v53  ;;  %v4120_v4 = vsel %vm2968_vm4, %v12240_v53, 0.0  ;;  %v4196_v22 = vmul.f32 %v12240_v53, %v12240_v53 }
 0x559   :  { %v4121_v31 = vadd.f32 %v4120_v4, %v4119_v12  ;;  %v4319_v61 = vsel %vm2968_vm4, %v4197_v27, 0.0  ;;  %v4912_v12 = vld [vmem:[#allocation2 + $0x25a] ss:$2 sm:$0xff] }
 0x55a   :  { %v4317_v34 = vsel %vm2968_vm4, %v4196_v22, 0.0  ;;  %v4953_v57 = vmax.f32 %v4848_v19, %v4912_v12  ;;  %v4910_v4 = vld [vmem:[#allocation2 + $0x242] ss:$2 sm:$0xff]  ;;  %v4852_v22 = vld [vmem:[#allocation2 + $0x289] ss:$2 sm:$0xff] }
 0x55b   :  { %v4318_v6 = vadd.f32 %v4317_v34, %v4316_v62  ;;  %v12253_v36 = vadd.f32 %v4122_v21, %v4121_v31  ;;  %v4952_v62 = vmax.f32 %v4846_v26, %v4910_v4  ;;  %v4955_v31 = vmax.f32 %v4852_v22, %v4916_v52  ;;  %v4920_v27 = vld [vmem:[#allocation2 + $0x2ba] ss:$2 sm:$0xff]  ;;  %v4858_v19 = vld [vmem:[#allocation2 + $0x2d1] ss:$2 sm:$0xff]  ;;  %v4862_v52 = vld [vmem:[#allocation2 + $0x301] ss:$2 sm:$0xff] }
 0x55c   :  { %5039 = vrot.lane.b32.xlu0 %v4953_v57, %s9102_s13  ;;  %v4954_v21 = vmax.f32 %v4850_v9, %v4914_v29  ;;  %v4957_v34 = vmax.f32 %v4856_v54, %v4920_v27  ;;  %v4922_v12 = vld [vmem:[#allocation2 + $0x2d2] ss:$2 sm:$0xff]  ;;  %v4959_v57 = vmax.f32 %v4860_v33, %v4924_v30  ;;  %v4864_v26 = vld [vmem:[#allocation2 + $0x319] ss:$2 sm:$0xff]  ;;  %v4926_v9 = vld [vmem:[#allocation2 + $0x302] ss:$2 sm:$0xff] }
 0x55d   :  { %v12257_v32 = vadd.f32 %v4319_v61, %v4318_v6  ;;  %5037 = vrot.lane.b32.xlu1 %v4952_v62, %s9102_s13  ;;  %v4854_v6 = vld [vmem:[#allocation2 + $0x2a1] ss:$2 sm:$0xff]  ;;  %v4928_v4 = vld [vmem:[#allocation2 + $0x31a] ss:$2 sm:$0xff]  ;;  %v4958_v22 = vmax.f32 %v4858_v19, %v4922_v12  ;;  %v14317_v29 = vmov 0.0  }
 0x55e   :  { %v4956_v61 = vmax.f32 %v4854_v6, %v4918_v50  ;;  %v4961_v62 = vmax.f32 %v4864_v26, %v4928_v4  ;;  %5191 = vst.msk [vmem:[#allocation5 + $0x8] sm:$0x3] %vm5190_vm11, %v14317_v29  ;;  %5193 = vst.msk [vmem:[#allocation5 + $0x18] sm:$0x3] %vm5190_vm11, %v14317_v29  ;;  %v4866_v54 = vld [vmem:[#allocation2 + $0x331] ss:$2 sm:$0xff] }
 0x55f   :  { %5195 = vst.msk [vmem:[#allocation5 + $0x28] sm:$0x3] %vm5190_vm11, %v14317_v29  ;;  %5197 = vst.msk [vmem:[#allocation5 + $0x38] sm:$0x3] %vm5190_vm11, %v14317_v29  ;;  %v4930_v27 = vld [vmem:[#allocation2 + $0x332] ss:$2 sm:$0xff] }
 0x560   :  { %5043 = vrot.lane.b32.xlu0 %v4955_v31, %s9102_s13  ;;  %5199 = vst.msk [vmem:[#allocation5 + $0x48] sm:$0x3] %vm5190_vm11, %v14317_v29  ;;  %5201 = vst.msk [vmem:[#allocation5 + $0x58] sm:$0x3] %vm5190_vm11, %v14317_v29  ;;  %v4960_v31 = vmax.f32 %v4862_v52, %v4926_v9 }
 0x561   :  { %5041 = vrot.lane.b32.xlu1 %v4954_v21, %s9102_s13  ;;  %5203 = vst.msk [vmem:[#allocation5 + $0x68] sm:$0x3] %vm5190_vm11, %v14317_v29  ;;  %5205 = vst.msk [vmem:[#allocation5 + $0x78] sm:$0x3] %vm5190_vm11, %v14317_v29 }
 0x562   :  { %5207 = vst.msk [vmem:[#allocation5 + $0x88] sm:$0x3] %vm5190_vm11, %v14317_v29  ;;  %5209 = vst.msk [vmem:[#allocation5 + $0x98] sm:$0x3] %vm5190_vm11, %v14317_v29 }
 0x563   :  { %5211 = vst.msk [vmem:[#allocation5 + $0xa8] sm:$0x3] %vm5190_vm11, %v14317_v29  ;;  %5213 = vst.msk [vmem:[#allocation5 + $0xb8] sm:$0x3] %vm5190_vm11, %v14317_v29 }
 0x564   :  { %5047 = vrot.lane.b32.xlu0 %v4957_v34, %s9102_s13  ;;  %5215 = vst.msk [vmem:[#allocation5 + $0xc8] sm:$0x3] %vm5190_vm11, %v14317_v29  ;;  %5217 = vst.msk [vmem:[#allocation5 + $0xd8] sm:$0x3] %vm5190_vm11, %v14317_v29  ;;  %v4962_v34 = vmax.f32 %v4866_v54, %v4930_v27 }
 0x565   :  { %5045 = vrot.lane.b32.xlu1 %v4956_v61, %s9102_s13  ;;  %5219 = vst.msk [vmem:[#allocation5 + $0xe8] sm:$0x3] %vm5190_vm11, %v14317_v29  ;;  %5221 = vst.msk [vmem:[#allocation5 + $0xf8] sm:$0x3] %vm5190_vm11, %v14317_v29  ;;  %v5263_v21 = vld [vmem:[#allocation5 + $0x1] sm:$0xff] }
 0x566   :  { %5223 = vst.msk [vmem:[#allocation5 + $0x108] sm:$0x3] %vm5190_vm11, %v14317_v29  ;;  %5225 = vst.msk [vmem:[#allocation5 + $0x118] sm:$0x3] %vm5190_vm11, %v14317_v29  ;;  %v5279_v6 = vld [vmem:[#allocation5 + $0x2] sm:$0xff] }
 0x567   :  { %5227 = vst.msk [vmem:[#allocation5 + $0x128] sm:$0x3] %vm5190_vm11, %v14317_v29  ;;  %5229 = vst.msk [vmem:[#allocation5 + $0x138] sm:$0x3] %vm5190_vm11, %v14317_v29 }
 0x568   :  { %5051 = vrot.lane.b32.xlu0 %v4959_v57, %s9102_s13 }
 0x569   :  { %5049 = vrot.lane.b32.xlu1 %v4958_v22, %s9102_s13 }
 0x56c   :  { %5055 = vrot.lane.b32.xlu0 %v4961_v62, %s9102_s13 }
 0x56d   :  { %5053 = vrot.lane.b32.xlu1 %v4960_v31, %s9102_s13 }
 0x570   :  { %5408 = vrot.lane.b32.xlu0 %v5263_v21, %s9103_s14 }
 0x571   :  { %5057 = vrot.lane.b32.xlu1 %v4962_v34, %s9102_s13 }
 0x573   :  { %v12311_v50 = vpop.f32.mrb[60].mxu0 }
 0x574   :  { %14318 = vst [vmem:[#allocation32_spill] sm:$0xff] %v12311_v50  ;;  %v12313_v33 = vpop.f32.mrb[61].mxu0  ;;  %v4199_v61 = vmul.f32 %v12311_v50, %v12311_v50  ;;  %5472 = vrot.lane.b32.xlu0 %v5279_v6, %s9106_s21  ;;  %v4126_v57 = vsel %vm2968_vm4, %v12311_v50, 0.0 }
 0x575   :  { %14319 = vst [vmem:[#allocation33_spill] sm:$0xff] %v12313_v33  ;;  %v4124_v30 = vsel %vm2968_vm4, %v12313_v33, 0.0  ;;  %v4198_v19 = vmul.f32 %v12313_v33, %v12313_v33 }
 0x576   :  { %v4125_v12 = vadd.f32 %v4124_v30, %v12253_v36  ;;  %v4323_v62 = vsel %vm2968_vm4, %v4199_v61, 0.0 }
 0x577   :  { %v4321_v26 = vsel %vm2968_vm4, %v4198_v19, 0.0 }
 0x578   :  { %v4322_v4 = vadd.f32 %v4321_v26, %v12257_v32  ;;  %v4127_v22 = vadd.f32 %v4126_v57, %v4125_v12 }
 0x57a   :  { %v4324_v52 = vadd.f32 %v4323_v62, %v4322_v4 }
 0x582   :  { %v12329_v9 = vpop.f32.mrb[62].mxu0 }
 0x583   :  { %14320 = vst [vmem:[#allocation34_spill] sm:$0xff] %v12329_v9  ;;  %v3996_v31 = vpop.f32.mrb[63].mxu0  ;;  %v4201_v54 = vmul.f32 %v12329_v9, %v12329_v9  ;;  %v4130_v34 = vsel %vm2968_vm4, %v12329_v9, 0.0 }
 0x584   :  { %v4128_v27 = vsel %vm2968_vm4, %v3996_v31, 0.0  ;;  %v4200_v36 = vmul.f32 %v3996_v31, %v3996_v31 }
 0x585   :  { %v4129_v21 = vadd.f32 %v4128_v27, %v4127_v22  ;;  %v4327_v61 = vsel %vm2968_vm4, %v4201_v54, 0.0  ;;  %v4345_v54 = vlaneseq }
 0x586   :  { %v4325_v6 = vsel %vm2968_vm4, %v4200_v36, 0.0 }
 0x587   :  { %v4131_v32 = vadd.f32 %v4130_v34, %v4129_v21  ;;  %v4326_v30 = vadd.f32 %v4325_v6, %v4324_v52  ;;  %v4346_v34 = vshrl.u32 %v4345_v54, 7  ;;  %v102_v6 = vld [vmem:[%s14259_s2] sm:$0x1]  ;;  %v14328_v54 = vld [vmem:[#allocation15_spill] sm:$0xff]  ;;  %s9109_s2 = smov 36  }
 0x589   :  { %v4132_v19 = vrot.slane %v4131_v32, 4  ;;  %v4328_v12 = vadd.f32 %v4327_v61, %v4326_v30 }
 0x58b   :  { %v4133_v57 = vadd.f32 %v4132_v19, %v4131_v32  ;;  %v4329_v26 = vrot.slane %v4328_v12, 4  ;;  %v12341_v32 = vsub.s32 0, %v4346_v34 }
 0x58d   :  { %v4134_v4 = vrot.slane %v4133_v57, 2  ;;  %v4330_v62 = vadd.f32 %v4329_v26, %v4328_v12  ;;  %14321 = vst [vmem:[#allocation35_spill] sm:$0xff] %v12341_v32 }
 0x58f   :  { %v4135_v29 = vadd.f32 %v4134_v4, %v4133_v57  ;;  %v4331_v50 = vrot.slane %v4330_v62, 2 }
 0x591   :  { %v4136_v33 = vrot.slane %v4135_v29, 1  ;;  %v4332_v41 = vadd.f32 %v4331_v50, %v4330_v62  ;;  %v14322_v62 = vld [vmem:[#allocation12_spill] sm:$0xff] }
 0x593   :  { %v4137_v22 = vadd.f32 %v4136_v33, %v4135_v29  ;;  %v4333_v27 = vrot.slane %v4332_v41, 1 }
 0x595   :  { %v4334_v53 = vadd.f32 %v4333_v27, %v4332_v41  ;;  %v4335_v9 = vmul.f32 0.001953125, %v4137_v22  ;;  %v103_v41 = vld [vmem:[%s14260_s3] sm:$0x1]  ;;  %s9110_s3 = smov 48  }
 0x596   :  { %v14324_v27 = vld [vmem:[#allocation14_spill] sm:$0xff] }
 0x597   :  { %v4336_v2 = vmul.f32 0.001953125, %v4334_v53  ;;  %v4337_v36 = vmul.f32 %v4335_v9, %v4335_v9 }
 0x599   :  { %v4338_v21 = vsub.f32 %v4336_v2, %v4337_v36  ;;  %v12446_v36 = vpop.permute.xlu0 %4995 }
 0x59a   :  { %14325 = vst [vmem:[#allocation12_spill] sm:$0xff] %v12446_v36  ;;  %v14342_v36 = vld [vmem:[#allocation27_spill] sm:$0xff] }
 0x59b   :  { %v4339_v52 = vadd.f32 1e-05, %v4338_v21 }
 0x59d   :  { %9068 = vrsqrt.f32 %v4339_v52 }
 0x5a7   :  { %v9069_v30 = vpop.eup %9068 }
 0x5a8   :  { %v4341_v61 = vmul.f32 %v9069_v30, %v102_v6  ;;  %v14329_v6 = vld [vmem:[#allocation18_spill] sm:$0xff] }
 0x5aa   :  { %v4342_v29 = vmul.f32 %v4341_v61, %v4335_v9  ;;  %v12347_v53 = vrot.slane %v4341_v61, %v12341_v32  ;;  %v14330_v61 = vld [vmem:[#allocation17_spill] sm:$0xff] }
 0x5ac   :  { %v4343_v2 = vsub.f32 %v103_v41, %v4342_v29  ;;  %v4412_v50 = vmul.f32 %v12347_v53, %v3996_v31  ;;  %v12352_v33 = vmul.f32 %v12347_v53, %v10250_v37  ;;  %v12356_v19 = vmul.f32 %v10241_v43, %v12347_v53  ;;  %v14331_v29 = vld [vmem:[#allocation20_spill] sm:$0xff] }
 0x5ad   :  { %v12360_v12 = vmul.f32 %v12347_v53, %v10333_v0  ;;  %v12364_v9 = vmul.f32 %v10328_v38, %v12347_v53  ;;  %v12368_v57 = vmul.f32 %v12347_v53, %v10418_v39  ;;  %v12372_v37 = vmul.f32 %v10412_v42, %v12347_v53 }
 0x5ae   :  { %v12375_v31 = vrot.slane %v4343_v2, %v12341_v32  ;;  %v12379_v43 = vmul.f32 %v12347_v53, %v10485_v58  ;;  %v12383_v0 = vmul.f32 %v10481_v5, %v12347_v53  ;;  %v12387_v38 = vmul.f32 %v12347_v53, %v10563_v7 }
 0x5af   :  { %v12391_v39 = vmul.f32 %v10558_v51, %v12347_v53  ;;  %v12395_v42 = vmul.f32 %v12347_v53, %v10658_v23  ;;  %v12399_v58 = vmul.f32 %v10652_v10, %v12347_v53  ;;  %v12403_v5 = vmul.f32 %v12347_v53, %v10750_v11 }
 0x5b0   :  { %v4482_v26 = vadd.f32 %v12375_v31, %v4412_v50  ;;  %v12408_v7 = vmul.f32 %v10744_v13, %v12347_v53  ;;  %v12412_v51 = vmul.f32 %v12347_v53, %v10840_v3  ;;  %v12416_v23 = vmul.f32 %v10834_v47, %v12347_v53  ;;  %v14332_v50 = vld [vmem:[#allocation19_spill] sm:$0xff] }
 0x5b1   :  { %v12420_v10 = vmul.f32 %v12347_v53, %v10930_v25  ;;  %v12424_v11 = vmul.f32 %v10924_v55, %v12347_v53  ;;  %v12428_v13 = vmul.f32 %v12347_v53, %v11023_v15  ;;  %v12432_v3 = vmul.f32 %v11017_v16, %v12347_v53  ;;  %v14323_v25 = vld [vmem:[#allocation11_spill] sm:$0xff]  ;;  %v14326_v15 = vld [vmem:[#allocation13_spill] sm:$0xff]  ;;  %v14327_v16 = vld [vmem:[#allocation16_spill] sm:$0xff] }
 0x5b2   :  { %v4546_v4 = vmax.f32 %v4482_v26, 0.0  ;;  %v12436_v47 = vmul.f32 %v12347_v53, %v14322_v62  ;;  %v12440_v22 = vmul.f32 %v14323_v25, %v12347_v53  ;;  %v12444_v55 = vmul.f32 %v12347_v53, %v14324_v27  ;;  %v14333_v62 = vld [vmem:[#allocation22_spill] sm:$0xff]  ;;  %v12481_v27 = vpop.permute.xlu1 %4997 }
 0x5b3   :  { %v12450_v21 = vmul.f32 %v14326_v15, %v12347_v53  ;;  %v12454_v52 = vmul.f32 %v12347_v53, %v14327_v16  ;;  %v12458_v34 = vmul.f32 %v14328_v54, %v12347_v53  ;;  %v12462_v30 = vmul.f32 %v12347_v53, %v14329_v6  ;;  %14334 = vst [vmem:[#allocation11_spill] sm:$0xff] %v12481_v27  ;;  %v14336_v16 = vld [vmem:[#allocation24_spill] sm:$0xff]  ;;  %v14337_v6 = vld [vmem:[#allocation23_spill] sm:$0xff] }
 0x5b4   :  { %4610 = vst.msk [vmem:[#allocation3 + $0x1f0] sm:$0xff] %vm2968_vm4, %v4546_v4  ;;  %v12467_v41 = vmul.f32 %v14330_v61, %v12347_v53  ;;  %v12471_v2 = vmul.f32 %v12347_v53, %v14331_v29  ;;  %v12475_v26 = vmul.f32 %v14332_v50, %v12347_v53  ;;  %v12479_v25 = vmul.f32 %v12347_v53, %v14333_v62  ;;  %v14335_v4 = vld [vmem:[#allocation21_spill] sm:$0xff]  ;;  %v14339_v29 = vld [vmem:[#allocation26_spill] sm:$0xff]  ;;  %v14341_v27 = vld [vmem:[#allocation28_spill] sm:$0xff] }
 0x5b5   :  { %v12485_v15 = vmul.f32 %v14335_v4, %v12347_v53  ;;  %v12489_v54 = vmul.f32 %v12347_v53, %v14336_v16  ;;  %v12493_v61 = vmul.f32 %v14337_v6, %v12347_v53  ;;  %v12497_v50 = vmul.f32 %v12347_v53, %v14339_v29  ;;  %v14340_v62 = vld [vmem:[#allocation25_spill] sm:$0xff] }
 0x5b6   :  { %v12501_v32 = vmul.f32 %v14340_v62, %v12347_v53  ;;  %v12505_v4 = vmul.f32 %v12347_v53, %v14341_v27  ;;  %v12509_v16 = vmul.f32 %v14342_v36, %v12347_v53  ;;  %v12513_v6 = vmul.f32 %v12347_v53, %v11889_v46 }
 0x5b7   :  { %14338 = vst [vmem:[#allocation14_spill] sm:$0xff] %v12493_v61  ;;  %v12515_v61 = vpop.permute.xlu0 %4999  ;;  %v12519_v29 = vmul.f32 %v11885_v59, %v12347_v53  ;;  %v12523_v62 = vmul.f32 %v12347_v53, %v11965_v8  ;;  %v12527_v27 = vmul.f32 %v11961_v20, %v12347_v53  ;;  %v12531_v36 = vmul.f32 %v12347_v53, %v12018_v44 }
 0x5b8   :  { %14343 = vst [vmem:[#allocation13_spill] sm:$0xff] %v12515_v61  ;;  %v12535_v46 = vmul.f32 %v12015_v40, %v12347_v53  ;;  %v12539_v59 = vmul.f32 %v12347_v53, %v12064_v17  ;;  %v12543_v8 = vmul.f32 %v12061_v48, %v12347_v53  ;;  %v12547_v20 = vmul.f32 %v12347_v53, %v12102_v63  ;;  %v12549_v61 = vpop.permute.xlu1 %5001 }
 0x5b9   :  { %14344 = vst [vmem:[#allocation16_spill] sm:$0xff] %v12549_v61  ;;  %v12553_v44 = vmul.f32 %v12099_v18, %v12347_v53  ;;  %v12557_v40 = vmul.f32 %v12347_v53, %v12155_v24  ;;  %v12561_v17 = vmul.f32 %v12151_v14, %v12347_v53  ;;  %v12565_v48 = vmul.f32 %v12347_v53, %v12171_v60  ;;  %v14350_v61 = vld [vmem:[#allocation29_spill] sm:$0xff] }
 0x5ba   :  { %v12569_v63 = vmul.f32 %v12169_v35, %v12347_v53  ;;  %v12573_v18 = vmul.f32 %v12347_v53, %v12189_v28  ;;  %v12577_v24 = vmul.f32 %v12187_v45, %v12347_v53  ;;  %v12581_v14 = vmul.f32 %v12347_v53, %v12205_v56 }
 0x5bb   :  { %v12585_v60 = vmul.f32 %v12203_v49, %v12347_v53  ;;  %v12589_v35 = vmul.f32 %v12347_v53, %v12221_v1  ;;  %v12593_v28 = vmul.f32 %v14350_v61, %v12347_v53 }
 0x5bc   :  { %14345 = vst [vmem:[#allocation15_spill] sm:$0xff] %v12573_v18  ;;  %14346 = vst [vmem:[#allocation18_spill] sm:$0xff] %v12577_v24  ;;  %v14352_v18 = vld [vmem:[#allocation31_spill] sm:$0xff]  ;;  %v14353_v24 = vld [vmem:[#allocation30_spill] sm:$0xff] }
 0x5bd   :  { %14347 = vst [vmem:[#allocation17_spill] sm:$0xff] %v12581_v14  ;;  %14348 = vst [vmem:[#allocation20_spill] sm:$0xff] %v12585_v60  ;;  %v12597_v45 = vmul.f32 %v12347_v53, %v14352_v18  ;;  %v12601_v56 = vmul.f32 %v14353_v24, %v12347_v53  ;;  %v14354_v14 = vld [vmem:[#allocation33_spill] sm:$0xff]  ;;  %v14355_v60 = vld [vmem:[#allocation32_spill] sm:$0xff]  ;;  %v12619_v18 = vadd.f32 %v12375_v31, %v12352_v33 }
 0x5be   :  { %14349 = vst [vmem:[#allocation19_spill] sm:$0xff] %v12589_v35  ;;  %14351 = vst [vmem:[#allocation22_spill] sm:$0xff] %v12593_v28  ;;  %v12605_v49 = vmul.f32 %v12347_v53, %v14354_v14  ;;  %v12609_v1 = vmul.f32 %v14355_v60, %v12347_v53  ;;  %v14356_v35 = vld [vmem:[#allocation34_spill] sm:$0xff]  ;;  %v12615_v28 = vpop.permute.xlu0 %5003  ;;  %v12623_v24 = vadd.f32 %v12375_v31, %v12356_v19 }
 0x5bf   :  { %v12613_v61 = vmul.f32 %v14356_v35, %v12347_v53  ;;  %14357 = vst [vmem:[#allocation21_spill] sm:$0xff] %v12615_v28  ;;  %v12627_v14 = vadd.f32 %v12375_v31, %v12360_v12  ;;  %v12631_v60 = vadd.f32 %v12375_v31, %v12364_v9  ;;  %v12635_v53 = vadd.f32 %v12375_v31, %v12368_v57  ;;  %v12649_v35 = vpop.permute.xlu1 %5005 }
 0x5c0   :  { %v12639_v33 = vadd.f32 %v12375_v31, %v12372_v37  ;;  %v12643_v19 = vadd.f32 %v12375_v31, %v12379_v43  ;;  %v12647_v12 = vadd.f32 %v12375_v31, %v12383_v0  ;;  %14358 = vst [vmem:[#allocation24_spill] sm:$0xff] %v12649_v35  ;;  %v12653_v9 = vadd.f32 %v12375_v31, %v12387_v38 }
 0x5c1   :  { %v12657_v57 = vadd.f32 %v12375_v31, %v12391_v39  ;;  %v12661_v37 = vadd.f32 %v12375_v31, %v12395_v42  ;;  %v12665_v43 = vadd.f32 %v12375_v31, %v12399_v58  ;;  %v12669_v0 = vadd.f32 %v12375_v31, %v12403_v5 }
 0x5c2   :  { %v12673_v38 = vadd.f32 %v12375_v31, %v12408_v7  ;;  %v12677_v39 = vadd.f32 %v12375_v31, %v12412_v51  ;;  %v12681_v42 = vadd.f32 %v12375_v31, %v12416_v23  ;;  %v12683_v35 = vpop.permute.xlu0 %5007  ;;  %v12687_v58 = vadd.f32 %v12375_v31, %v12420_v10 }
 0x5c3   :  { %14359 = vst [vmem:[#allocation23_spill] sm:$0xff] %v12683_v35  ;;  %v12691_v5 = vadd.f32 %v12375_v31, %v12424_v11  ;;  %v12695_v7 = vadd.f32 %v12375_v31, %v12428_v13  ;;  %v12699_v51 = vadd.f32 %v12375_v31, %v12432_v3  ;;  %v12703_v23 = vadd.f32 %v12375_v31, %v12436_v47  ;;  %v12717_v35 = vpop.permute.xlu1 %5009 }
 0x5c4   :  { %v12707_v10 = vadd.f32 %v12375_v31, %v12440_v22  ;;  %v12711_v11 = vadd.f32 %v12375_v31, %v12444_v55  ;;  %v12715_v13 = vadd.f32 %v12375_v31, %v12450_v21  ;;  %14360 = vst [vmem:[#allocation26_spill] sm:$0xff] %v12717_v35  ;;  %v12721_v3 = vadd.f32 %v12375_v31, %v12454_v52 }
 0x5c5   :  { %v12725_v47 = vadd.f32 %v12375_v31, %v12458_v34  ;;  %v12729_v22 = vadd.f32 %v12375_v31, %v12462_v30  ;;  %v12733_v55 = vadd.f32 %v12375_v31, %v12467_v41  ;;  %v12737_v21 = vadd.f32 %v12375_v31, %v12471_v2  ;;  %v14362_v2 = vld [vmem:[#allocation14_spill] sm:$0xff] }
 0x5c6   :  { %v12741_v52 = vadd.f32 %v12375_v31, %v12475_v26  ;;  %v12745_v34 = vadd.f32 %v12375_v31, %v12479_v25  ;;  %v12749_v30 = vadd.f32 %v12375_v31, %v12485_v15  ;;  %v12751_v35 = vpop.permute.xlu0 %5011  ;;  %v12755_v41 = vadd.f32 %v12375_v31, %v12489_v54 }
 0x5c7   :  { %14361 = vst [vmem:[#allocation25_spill] sm:$0xff] %v12751_v35  ;;  %v12759_v28 = vadd.f32 %v12375_v31, %v14362_v2  ;;  %v12763_v26 = vadd.f32 %v12375_v31, %v12497_v50  ;;  %v12767_v25 = vadd.f32 %v12375_v31, %v12501_v32  ;;  %v12771_v15 = vadd.f32 %v12375_v31, %v12505_v4  ;;  %v12785_v35 = vpop.permute.xlu1 %5013 }
 0x5c8   :  { %v12775_v54 = vadd.f32 %v12375_v31, %v12509_v16  ;;  %v12779_v2 = vadd.f32 %v12375_v31, %v12513_v6  ;;  %v12783_v50 = vadd.f32 %v12375_v31, %v12519_v29  ;;  %14363 = vst [vmem:[#allocation28_spill] sm:$0xff] %v12785_v35  ;;  %v12789_v32 = vadd.f32 %v12375_v31, %v12523_v62 }
 0x5c9   :  { %v12793_v4 = vadd.f32 %v12375_v31, %v12527_v27  ;;  %v12797_v16 = vadd.f32 %v12375_v31, %v12531_v36  ;;  %v12801_v6 = vadd.f32 %v12375_v31, %v12535_v46  ;;  %v12805_v29 = vadd.f32 %v12375_v31, %v12539_v59 }
 0x5ca   :  { %v12809_v62 = vadd.f32 %v12375_v31, %v12543_v8  ;;  %v12813_v27 = vadd.f32 %v12375_v31, %v12547_v20  ;;  %v12817_v36 = vadd.f32 %v12375_v31, %v12553_v44  ;;  %v12819_v35 = vpop.permute.xlu0 %5015  ;;  %v12823_v46 = vadd.f32 %v12375_v31, %v12557_v40  ;;  %v14370_v44 = vld [vmem:[#allocation15_spill] sm:$0xff] }
 0x5cb   :  { %14365 = vst [vmem:[#allocation29_spill] sm:$0xff] %v12819_v35  ;;  %v12827_v59 = vadd.f32 %v12375_v31, %v12561_v17  ;;  %v12831_v8 = vadd.f32 %v12375_v31, %v12565_v48  ;;  %v12835_v20 = vadd.f32 %v12375_v31, %v12569_v63  ;;  %v14372_v35 = vld [vmem:[#allocation18_spill] sm:$0xff]  ;;  %v14376_v63 = vld [vmem:[#allocation19_spill] sm:$0xff] }
 0x5cc   :  { %14364 = vst [vmem:[#allocation27_spill] sm:$0xff] %v12817_v36  ;;  %14366 = vst [vmem:[#allocation31_spill] sm:$0xff] %v12823_v46  ;;  %v12839_v36 = vadd.f32 %v12375_v31, %v14370_v44  ;;  %v12843_v40 = vadd.f32 %v12375_v31, %v14372_v35  ;;  %v14373_v46 = vld [vmem:[#allocation17_spill] sm:$0xff]  ;;  %v14377_v44 = vld [vmem:[#allocation22_spill] sm:$0xff]  ;;  %v12865_v35 = vadd.f32 %v12375_v31, %v12597_v45 }
 0x5cd   :  { %14367 = vst [vmem:[#allocation30_spill] sm:$0xff] %v12827_v59  ;;  %14368 = vst [vmem:[#allocation33_spill] sm:$0xff] %v12831_v8  ;;  %v12847_v17 = vadd.f32 %v12375_v31, %v14373_v46  ;;  %v14374_v59 = vld [vmem:[#allocation20_spill] sm:$0xff]  ;;  %v12853_v8 = vpop.permute.xlu1 %5017  ;;  %v12869_v46 = vadd.f32 %v12375_v31, %v12601_v56  ;;  %v4486_v56 = vmax.f32 %v12627_v14, 0.0  ;;  %v4495_v14 = vmax.f32 %v12665_v43, 0.0 }
 0x5ce   :  { %14369 = vst [vmem:[#allocation32_spill] sm:$0xff] %v12835_v20  ;;  %14371 = vst [vmem:[#allocation34_spill] sm:$0xff] %v12839_v36  ;;  %v12851_v48 = vadd.f32 %v12375_v31, %v14374_v59  ;;  %v12857_v20 = vadd.f32 %v12375_v31, %v14376_v63  ;;  %v12861_v36 = vadd.f32 %v12375_v31, %v14377_v44  ;;  %v12884_v45 = vpop.permute.xlu0 %5019  ;;  %v4503_v43 = vmax.f32 %v12699_v51, 0.0 }
 0x5cf   :  { %14375 = vst [vmem:[#allocation14_spill] sm:$0xff] %v12853_v8  ;;  %14378 = vst [vmem:[#allocation15_spill] sm:$0xff] %v12865_v35  ;;  %v12873_v59 = vadd.f32 %v12375_v31, %v12605_v49  ;;  %v12877_v63 = vadd.f32 %v12375_v31, %v12609_v1  ;;  %v12881_v44 = vadd.f32 %v12375_v31, %v12613_v61  ;;  %v4484_v8 = vmax.f32 %v12619_v18, 0.0 }
 0x5d0   :  { %14379 = vst [vmem:[#allocation18_spill] sm:$0xff] %v12869_v46  ;;  %v4485_v35 = vmax.f32 %v12623_v24, 0.0  ;;  %v4487_v46 = vmax.f32 %v12631_v60, 0.0  ;;  %v4488_v49 = vmax.f32 %v12635_v53, 0.0  ;;  %v4490_v1 = vmax.f32 %v12643_v19, 0.0  ;;  %4550 = vst.msk [vmem:[#allocation3 + $0x10] sm:$0xff] %vm2968_vm4, %v4486_v56 }
 0x5d1   :  { %14380 = vst [vmem:[#allocation17_spill] sm:$0xff] %v12873_v59  ;;  %14381 = vst [vmem:[#allocation20_spill] sm:$0xff] %v12877_v63  ;;  %v4489_v59 = vmax.f32 %v12639_v33, 0.0  ;;  %v4491_v63 = vmax.f32 %v12647_v12, 0.0  ;;  %v4492_v31 = vmax.f32 %v12653_v9, 0.0  ;;  %v12895_v61 = vpop.permute.xlu1 %5021  ;;  %v4493_v18 = vmax.f32 %v12657_v57, 0.0 }
 0x5d2   :  { %4548 = vst.msk [vmem:[#allocation3] sm:$0xff] %vm2968_vm4, %v4484_v8  ;;  %v4494_v24 = vmax.f32 %v12661_v37, 0.0  ;;  %v4496_v60 = vmax.f32 %v12669_v0, 0.0  ;;  %4549 = vst.msk [vmem:[#allocation3 + $0x8] sm:$0xff] %vm2968_vm4, %v4485_v35  ;;  %v4497_v53 = vmax.f32 %v12673_v38, 0.0  ;;  %v4498_v33 = vmax.f32 %v12677_v39, 0.0  ;;  %v12913_v9 = vpop.permute.xlu0 %5023 }
 0x5d3   :  { %4551 = vst.msk [vmem:[#allocation3 + $0x18] sm:$0xff] %vm2968_vm4, %v4487_v46  ;;  %4552 = vst.msk [vmem:[#allocation3 + $0x20] sm:$0xff] %vm2968_vm4, %v4488_v49  ;;  %v4499_v19 = vmax.f32 %v12681_v42, 0.0  ;;  %v4500_v12 = vmax.f32 %v12687_v58, 0.0  ;;  %v4501_v57 = vmax.f32 %v12691_v5, 0.0  ;;  %v4502_v37 = vmax.f32 %v12695_v7, 0.0 }
 0x5d4   :  { %4553 = vst.msk [vmem:[#allocation3 + $0x28] sm:$0xff] %vm2968_vm4, %v4489_v59  ;;  %4554 = vst.msk [vmem:[#allocation3 + $0x30] sm:$0xff] %vm2968_vm4, %v4490_v1  ;;  %v4504_v0 = vmax.f32 %v12703_v23, 0.0  ;;  %v4505_v38 = vmax.f32 %v12707_v10, 0.0  ;;  %v4506_v39 = vmax.f32 %v12711_v11, 0.0  ;;  %v4507_v42 = vmax.f32 %v12715_v13, 0.0 }
 0x5d5   :  { %4555 = vst.msk [vmem:[#allocation3 + $0x38] sm:$0xff] %vm2968_vm4, %v4491_v63  ;;  %4556 = vst.msk [vmem:[#allocation3 + $0x40] sm:$0xff] %vm2968_vm4, %v4492_v31  ;;  %v4508_v58 = vmax.f32 %v12721_v3, 0.0  ;;  %v12931_v5 = vpop.permute.xlu1 %5025  ;;  %v4509_v7 = vmax.f32 %v12725_v47, 0.0  ;;  %v4510_v51 = vmax.f32 %v12729_v22, 0.0  ;;  %v4511_v23 = vmax.f32 %v12733_v55, 0.0 }
 0x5d6   :  { %4557 = vst.msk [vmem:[#allocation3 + $0x48] sm:$0xff] %vm2968_vm4, %v4493_v18  ;;  %4558 = vst.msk [vmem:[#allocation3 + $0x50] sm:$0xff] %vm2968_vm4, %v4494_v24  ;;  %v4512_v10 = vmax.f32 %v12737_v21, 0.0  ;;  %v4513_v11 = vmax.f32 %v12741_v52, 0.0  ;;  %v4514_v13 = vmax.f32 %v12745_v34, 0.0  ;;  %v4515_v3 = vmax.f32 %v12749_v30, 0.0 }
 0x5d7   :  { %4559 = vst.msk [vmem:[#allocation3 + $0x58] sm:$0xff] %vm2968_vm4, %v4495_v14  ;;  %4560 = vst.msk [vmem:[#allocation3 + $0x60] sm:$0xff] %vm2968_vm4, %v4496_v60  ;;  %v4516_v47 = vmax.f32 %v12755_v41, 0.0  ;;  %v4517_v22 = vmax.f32 %v12759_v28, 0.0  ;;  %v4518_v55 = vmax.f32 %v12763_v26, 0.0  ;;  %v4519_v21 = vmax.f32 %v12767_v25, 0.0  ;;  %v12965_v26 = vpop.permute.xlu0 %5027 }
 0x5d8   :  { %4561 = vst.msk [vmem:[#allocation3 + $0x68] sm:$0xff] %vm2968_vm4, %v4497_v53  ;;  %4562 = vst.msk [vmem:[#allocation3 + $0x70] sm:$0xff] %vm2968_vm4, %v4498_v33  ;;  %v4520_v52 = vmax.f32 %v12771_v15, 0.0  ;;  %v4521_v34 = vmax.f32 %v12775_v54, 0.0  ;;  %v4522_v30 = vmax.f32 %v12779_v2, 0.0  ;;  %v4523_v28 = vmax.f32 %v12783_v50, 0.0 }
 0x5d9   :  { %4563 = vst.msk [vmem:[#allocation3 + $0x78] sm:$0xff] %vm2968_vm4, %v4499_v19  ;;  %4564 = vst.msk [vmem:[#allocation3 + $0x80] sm:$0xff] %vm2968_vm4, %v4500_v12  ;;  %v4524_v41 = vmax.f32 %v12789_v32, 0.0  ;;  %v12967_v25 = vpop.permute.xlu1 %5029  ;;  %v4525_v15 = vmax.f32 %v12793_v4, 0.0  ;;  %v4526_v54 = vmax.f32 %v12797_v16, 0.0  ;;  %v4527_v2 = vmax.f32 %v12801_v6, 0.0 }
 0x5da   :  { %4565 = vst.msk [vmem:[#allocation3 + $0x88] sm:$0xff] %vm2968_vm4, %v4501_v57  ;;  %4566 = vst.msk [vmem:[#allocation3 + $0x90] sm:$0xff] %vm2968_vm4, %v4502_v37  ;;  %v4528_v50 = vmax.f32 %v12805_v29, 0.0  ;;  %v4612_v32 = vld [vmem:[#allocation3] ss:$2 sm:$0xff]  ;;  %v4529_v35 = vmax.f32 %v12809_v62, 0.0 }
 0x5db   :  { %4567 = vst.msk [vmem:[#allocation3 + $0x98] sm:$0xff] %vm2968_vm4, %v4503_v43  ;;  %4568 = vst.msk [vmem:[#allocation3 + $0xa0] sm:$0xff] %vm2968_vm4, %v4504_v0  ;;  %v4676_v8 = vld [vmem:[#allocation3 + $0x1] ss:$2 sm:$0xff]  ;;  %v4530_v4 = vmax.f32 %v12813_v27, 0.0  ;;  %v14385_v49 = vld [vmem:[#allocation33_spill] sm:$0xff] }
 0x5dc   :  { %4569 = vst.msk [vmem:[#allocation3 + $0xa8] sm:$0xff] %vm2968_vm4, %v4505_v38  ;;  %4570 = vst.msk [vmem:[#allocation3 + $0xb0] sm:$0xff] %vm2968_vm4, %v4506_v39  ;;  %v14382_v46 = vld [vmem:[#allocation27_spill] sm:$0xff]  ;;  %v4614_v29 = vld [vmem:[#allocation3 + $0x10] ss:$2 sm:$0xff]  ;;  %v4534_v1 = vmax.f32 %v14385_v49, 0.0 }
 0x5dd   :  { %4571 = vst.msk [vmem:[#allocation3 + $0xb8] sm:$0xff] %vm2968_vm4, %v4507_v42  ;;  %4572 = vst.msk [vmem:[#allocation3 + $0xc0] sm:$0xff] %vm2968_vm4, %v4508_v58  ;;  %v4531_v16 = vmax.f32 %v14382_v46, 0.0  ;;  %v14383_v59 = vld [vmem:[#allocation31_spill] sm:$0xff]  ;;  %v14384_v63 = vld [vmem:[#allocation30_spill] sm:$0xff]  ;;  %v4537_v14 = vmax.f32 %v12843_v40, 0.0 }
 0x5de   :  { %4573 = vst.msk [vmem:[#allocation3 + $0xc8] sm:$0xff] %vm2968_vm4, %v4509_v7  ;;  %4574 = vst.msk [vmem:[#allocation3 + $0xd0] sm:$0xff] %vm2968_vm4, %v4510_v51  ;;  %v4532_v6 = vmax.f32 %v14383_v59, 0.0  ;;  %v4533_v56 = vmax.f32 %v14384_v63, 0.0  ;;  %v14386_v62 = vld [vmem:[#allocation32_spill] sm:$0xff]  ;;  %v14387_v27 = vld [vmem:[#allocation34_spill] sm:$0xff]  ;;  %v13015_v51 = vpop.permute.xlu0 %5031 }
 0x5df   :  { %4575 = vst.msk [vmem:[#allocation3 + $0xd8] sm:$0xff] %vm2968_vm4, %v4511_v23  ;;  %4576 = vst.msk [vmem:[#allocation3 + $0xe0] sm:$0xff] %vm2968_vm4, %v4512_v10  ;;  %v4535_v31 = vmax.f32 %v14386_v62, 0.0  ;;  %v4536_v18 = vmax.f32 %v14387_v27, 0.0  ;;  %v4678_v24 = vld [vmem:[#allocation3 + $0x11] ss:$2 sm:$0xff]  ;;  %v13017_v23 = vpop.permute.xlu1 %5033 }
 0x5e0   :  { %4577 = vst.msk [vmem:[#allocation3 + $0xe8] sm:$0xff] %vm2968_vm4, %v4513_v11  ;;  %4578 = vst.msk [vmem:[#allocation3 + $0xf0] sm:$0xff] %vm2968_vm4, %v4514_v13  ;;  %v4538_v60 = vmax.f32 %v12847_v17, 0.0  ;;  %v4539_v53 = vmax.f32 %v12851_v48, 0.0  ;;  %v4540_v33 = vmax.f32 %v12857_v20, 0.0  ;;  %v4541_v12 = vmax.f32 %v12861_v36, 0.0 }
 0x5e1   :  { %4579 = vst.msk [vmem:[#allocation3 + $0xf8] sm:$0xff] %vm2968_vm4, %v4515_v3  ;;  %4580 = vst.msk [vmem:[#allocation3 + $0x100] sm:$0xff] %vm2968_vm4, %v4516_v47  ;;  %v4616_v19 = vld [vmem:[#allocation3 + $0x20] ss:$2 sm:$0xff]  ;;  %v14390_v17 = vld [vmem:[#allocation17_spill] sm:$0xff]  ;;  %v4547_v39 = vmax.f32 %v12881_v44, 0.0  ;;  %v4739_v36 = vmax.f32 %v4612_v32, %v4676_v8  ;;  %v4740_v42 = vmax.f32 %v4614_v29, %v4678_v24 }
 0x5e2   :  { %4581 = vst.msk [vmem:[#allocation3 + $0x108] sm:$0xff] %vm2968_vm4, %v4517_v22  ;;  %4582 = vst.msk [vmem:[#allocation3 + $0x110] sm:$0xff] %vm2968_vm4, %v4518_v55  ;;  %v14388_v57 = vld [vmem:[#allocation15_spill] sm:$0xff]  ;;  %v14389_v40 = vld [vmem:[#allocation18_spill] sm:$0xff]  ;;  %v4544_v0 = vmax.f32 %v14390_v17, 0.0 }
 0x5e3   :  { %4583 = vst.msk [vmem:[#allocation3 + $0x118] sm:$0xff] %vm2968_vm4, %v4519_v21  ;;  %4584 = vst.msk [vmem:[#allocation3 + $0x120] sm:$0xff] %vm2968_vm4, %v4520_v52  ;;  %v4542_v37 = vmax.f32 %v14388_v57, 0.0  ;;  %v4543_v43 = vmax.f32 %v14389_v40, 0.0  ;;  %v4680_v20 = vld [vmem:[#allocation3 + $0x21] ss:$2 sm:$0xff]  ;;  %v13049_v24 = vpop.permute.xlu1 %5037 }
 0x5e4   :  { %4585 = vst.msk [vmem:[#allocation3 + $0x128] sm:$0xff] %vm2968_vm4, %v4521_v34  ;;  %4586 = vst.msk [vmem:[#allocation3 + $0x130] sm:$0xff] %vm2968_vm4, %v4522_v30  ;;  %v14391_v48 = vld [vmem:[#allocation20_spill] sm:$0xff]  ;;  %v4741_v44 = vmax.f32 %v4616_v19, %v4680_v20  ;;  %v14393_v34 = vld [vmem:[#allocation11_spill] sm:$0xff] }
 0x5e5   :  { %4587 = vst.msk [vmem:[#allocation3 + $0x138] sm:$0xff] %vm2968_vm4, %v4523_v28  ;;  %4588 = vst.msk [vmem:[#allocation3 + $0x140] sm:$0xff] %vm2968_vm4, %v4524_v41  ;;  %v4545_v38 = vmax.f32 %v14391_v48, 0.0  ;;  %v4618_v58 = vld [vmem:[#allocation3 + $0x30] ss:$2 sm:$0xff]  ;;  %v14398_v49 = vld [vmem:[#allocation23_spill] sm:$0xff] }
 0x5e6   :  { %4589 = vst.msk [vmem:[#allocation3 + $0x148] sm:$0xff] %vm2968_vm4, %v4525_v15  ;;  %4590 = vst.msk [vmem:[#allocation3 + $0x150] sm:$0xff] %vm2968_vm4, %v4526_v54  ;;  %v4682_v7 = vld [vmem:[#allocation3 + $0x31] ss:$2 sm:$0xff]  ;;  %v4620_v11 = vld [vmem:[#allocation3 + $0x40] ss:$2 sm:$0xff] }
 0x5e7   :  { %4591 = vst.msk [vmem:[#allocation3 + $0x158] sm:$0xff] %vm2968_vm4, %v4527_v2  ;;  %4592 = vst.msk [vmem:[#allocation3 + $0x160] sm:$0xff] %vm2968_vm4, %v4528_v50  ;;  %v4742_v10 = vmax.f32 %v4618_v58, %v4682_v7  ;;  %v4684_v13 = vld [vmem:[#allocation3 + $0x41] ss:$2 sm:$0xff]  ;;  %v4622_v3 = vld [vmem:[#allocation3 + $0x50] ss:$2 sm:$0xff] }
 0x5e8   :  { %4593 = vst.msk [vmem:[#allocation3 + $0x168] sm:$0xff] %vm2968_vm4, %v4529_v35  ;;  %4594 = vst.msk [vmem:[#allocation3 + $0x170] sm:$0xff] %vm2968_vm4, %v4530_v4  ;;  %v4743_v47 = vmax.f32 %v4620_v11, %v4684_v13  ;;  %v4686_v22 = vld [vmem:[#allocation3 + $0x51] ss:$2 sm:$0xff]  ;;  %v4624_v55 = vld [vmem:[#allocation3 + $0x60] ss:$2 sm:$0xff] }
 0x5e9   :  { %4595 = vst.msk [vmem:[#allocation3 + $0x178] sm:$0xff] %vm2968_vm4, %v4531_v16  ;;  %4596 = vst.msk [vmem:[#allocation3 + $0x180] sm:$0xff] %vm2968_vm4, %v4532_v6  ;;  %v4688_v21 = vld [vmem:[#allocation3 + $0x61] ss:$2 sm:$0xff]  ;;  %v4744_v30 = vmax.f32 %v4622_v3, %v4686_v22  ;;  %v4626_v41 = vld [vmem:[#allocation3 + $0x70] ss:$2 sm:$0xff] }
 0x5ea   :  { %4597 = vst.msk [vmem:[#allocation3 + $0x188] sm:$0xff] %vm2968_vm4, %v4533_v56  ;;  %4598 = vst.msk [vmem:[#allocation3 + $0x190] sm:$0xff] %vm2968_vm4, %v4534_v1  ;;  %v14392_v52 = vld [vmem:[#allocation12_spill] sm:$0xff]  ;;  %v4745_v28 = vmax.f32 %v4624_v55, %v4688_v21  ;;  %v14394_v2 = vld [vmem:[#allocation13_spill] sm:$0xff] }
 0x5eb   :  { %4599 = vst.msk [vmem:[#allocation3 + $0x198] sm:$0xff] %vm2968_vm4, %v4535_v31  ;;  %4600 = vst.msk [vmem:[#allocation3 + $0x1a0] sm:$0xff] %vm2968_vm4, %v4536_v18  ;;  %v4690_v15 = vld [vmem:[#allocation3 + $0x71] ss:$2 sm:$0xff]  ;;  %v4628_v54 = vld [vmem:[#allocation3 + $0x80] ss:$2 sm:$0xff]  ;;  %v13047_v18 = vpop.permute.xlu0 %5035 }
 0x5ec   :  { %4601 = vst.msk [vmem:[#allocation3 + $0x1a8] sm:$0xff] %vm2968_vm4, %v4537_v14  ;;  %4602 = vst.msk [vmem:[#allocation3 + $0x1b0] sm:$0xff] %vm2968_vm4, %v4538_v60  ;;  %v14395_v50 = vld [vmem:[#allocation16_spill] sm:$0xff]  ;;  %v4746_v32 = vmax.f32 %v4626_v41, %v4690_v15  ;;  %v14396_v46 = vld [vmem:[#allocation21_spill] sm:$0xff] }
 0x5ed   :  { %4603 = vst.msk [vmem:[#allocation3 + $0x1b8] sm:$0xff] %vm2968_vm4, %v4539_v53  ;;  %4604 = vst.msk [vmem:[#allocation3 + $0x1c0] sm:$0xff] %vm2968_vm4, %v4540_v33  ;;  %v4692_v8 = vld [vmem:[#allocation3 + $0x81] ss:$2 sm:$0xff]  ;;  %v4630_v35 = vld [vmem:[#allocation3 + $0x90] ss:$2 sm:$0xff] }
 0x5ee   :  { %4605 = vst.msk [vmem:[#allocation3 + $0x1c8] sm:$0xff] %vm2968_vm4, %v4541_v12  ;;  %4606 = vst.msk [vmem:[#allocation3 + $0x1d0] sm:$0xff] %vm2968_vm4, %v4542_v37  ;;  %v4694_v4 = vld [vmem:[#allocation3 + $0x91] ss:$2 sm:$0xff]  ;;  %v4747_v16 = vmax.f32 %v4628_v54, %v4692_v8  ;;  %v4632_v6 = vld [vmem:[#allocation3 + $0xa0] ss:$2 sm:$0xff] }
 0x5ef   :  { %4607 = vst.msk [vmem:[#allocation3 + $0x1d8] sm:$0xff] %vm2968_vm4, %v4543_v43  ;;  %4608 = vst.msk [vmem:[#allocation3 + $0x1e0] sm:$0xff] %vm2968_vm4, %v4544_v0  ;;  %v4748_v59 = vmax.f32 %v4630_v35, %v4694_v4  ;;  %v4696_v29 = vld [vmem:[#allocation3 + $0xa1] ss:$2 sm:$0xff]  ;;  %v4634_v63 = vld [vmem:[#allocation3 + $0xb0] ss:$2 sm:$0xff] }
 0x5f0   :  { %4609 = vst.msk [vmem:[#allocation3 + $0x1e8] sm:$0xff] %vm2968_vm4, %v4545_v38  ;;  %4611 = vst.msk [vmem:[#allocation3 + $0x1f8] sm:$0xff] %vm2968_vm4, %v4547_v39  ;;  %v14397_v56 = vld [vmem:[#allocation24_spill] sm:$0xff]  ;;  %v4749_v1 = vmax.f32 %v4632_v6, %v4696_v29  ;;  %v14399_v14 = vld [vmem:[#allocation26_spill] sm:$0xff] }
 0x5f1   :  { %4771 = vst.msk [vmem:[#allocation4] sm:$0xff] %vm2968_vm4, %v4739_v36  ;;  %4772 = vst.msk [vmem:[#allocation4 + $0x8] sm:$0xff] %vm2968_vm4, %v4740_v42  ;;  %v4698_v62 = vld [vmem:[#allocation3 + $0xb1] ss:$2 sm:$0xff]  ;;  %v4636_v31 = vld [vmem:[#allocation3 + $0xc0] ss:$2 sm:$0xff] }
 0x5f2   :  { %5092 = vst.msk [vmem:[#allocation4] sm:$0xff] %vm5091_vm12, %v14392_v52  ;;  %5093 = vst.msk [vmem:[#allocation4 + $0x8] sm:$0xff] %vm5091_vm12, %v14393_v34  ;;  %v4700_v27 = vld [vmem:[#allocation3 + $0xc1] ss:$2 sm:$0xff]  ;;  %v4750_v60 = vmax.f32 %v4634_v63, %v4698_v62  ;;  %v4638_v33 = vld [vmem:[#allocation3 + $0xd0] ss:$2 sm:$0xff] }
 0x5f3   :  { %4773 = vst.msk [vmem:[#allocation4 + $0x10] sm:$0xff] %vm2968_vm4, %v4741_v44  ;;  %4774 = vst.msk [vmem:[#allocation4 + $0x18] sm:$0xff] %vm2968_vm4, %v4742_v10  ;;  %v4751_v53 = vmax.f32 %v4636_v31, %v4700_v27  ;;  %v4702_v19 = vld [vmem:[#allocation3 + $0xd1] ss:$2 sm:$0xff]  ;;  %v4640_v12 = vld [vmem:[#allocation3 + $0xe0] ss:$2 sm:$0xff] }
 0x5f4   :  { %5094 = vst.msk [vmem:[#allocation4 + $0x10] sm:$0xff] %vm5091_vm12, %v14394_v2  ;;  %5095 = vst.msk [vmem:[#allocation4 + $0x18] sm:$0xff] %vm5091_vm12, %v14395_v50  ;;  %v14400_v57 = vld [vmem:[#allocation25_spill] sm:$0xff]  ;;  %v14401_v37 = vld [vmem:[#allocation28_spill] sm:$0xff]  ;;  %v4752_v40 = vmax.f32 %v4638_v33, %v4702_v19 }
 0x5f5   :  { %4775 = vst.msk [vmem:[#allocation4 + $0x20] sm:$0xff] %vm2968_vm4, %v4743_v47  ;;  %4776 = vst.msk [vmem:[#allocation4 + $0x28] sm:$0xff] %vm2968_vm4, %v4744_v30  ;;  %v4704_v43 = vld [vmem:[#allocation3 + $0xe1] ss:$2 sm:$0xff]  ;;  %v4642_v17 = vld [vmem:[#allocation3 + $0xf0] ss:$2 sm:$0xff]  ;;  %v5040_v30 = vpop.permute.xlu0 %5039 }
 0x5f6   :  { %5096 = vst.msk [vmem:[#allocation4 + $0x20] sm:$0xff] %vm5091_vm12, %v14396_v46  ;;  %5097 = vst.msk [vmem:[#allocation4 + $0x28] sm:$0xff] %vm5091_vm12, %v14397_v56  ;;  %v4706_v0 = vld [vmem:[#allocation3 + $0xf1] ss:$2 sm:$0xff]  ;;  %v4753_v48 = vmax.f32 %v4640_v12, %v4704_v43  ;;  %v4644_v39 = vld [vmem:[#allocation3 + $0x100] ss:$2 sm:$0xff] }
 0x5f7   :  { %4777 = vst.msk [vmem:[#allocation4 + $0x30] sm:$0xff] %vm2968_vm4, %v4745_v28  ;;  %4778 = vst.msk [vmem:[#allocation4 + $0x38] sm:$0xff] %vm2968_vm4, %v4746_v32  ;;  %v14402_v20 = vld [vmem:[#allocation29_spill] sm:$0xff]  ;;  %v4754_v38 = vmax.f32 %v4642_v17, %v4706_v0  ;;  %v4708_v36 = vld [vmem:[#allocation3 + $0x101] ss:$2 sm:$0xff] }
 0x5f8   :  { %5098 = vst.msk [vmem:[#allocation4 + $0x30] sm:$0xff] %vm5091_vm12, %v14398_v49  ;;  %5099 = vst.msk [vmem:[#allocation4 + $0x38] sm:$0xff] %vm5091_vm12, %v14399_v14  ;;  %v4648_v42 = vld [vmem:[#allocation3 + $0x120] ss:$2 sm:$0xff]  ;;  %v4755_v10 = vmax.f32 %v4644_v39, %v4708_v36  ;;  %v4712_v11 = vld [vmem:[#allocation3 + $0x121] ss:$2 sm:$0xff] }
 0x5f9   :  { %4779 = vst.msk [vmem:[#allocation4 + $0x40] sm:$0xff] %vm2968_vm4, %v4747_v16  ;;  %4780 = vst.msk [vmem:[#allocation4 + $0x48] sm:$0xff] %vm2968_vm4, %v4748_v59  ;;  %v5124_v58 = vld [vmem:[#allocation4] sm:$0xff]  ;;  %v5141_v7 = vld [vmem:[#allocation4 + $0x8] sm:$0xff]  ;;  %v4757_v22 = vmax.f32 %v4648_v42, %v4712_v11  ;;  %v5044_v31 = vpop.permute.xlu0 %5043 }
 0x5fa   :  { %5100 = vst.msk [vmem:[#allocation4 + $0x40] sm:$0xff] %vm5091_vm12, %v14400_v57  ;;  %5101 = vst.msk [vmem:[#allocation4 + $0x48] sm:$0xff] %vm5091_vm12, %v14401_v37  ;;  %v14403_v44 = vld [vmem:[#allocation14_spill] sm:$0xff]  ;;  %v5157_v13 = vmax.f32 %v5124_v58, %v5141_v7 }
 0x5fb   :  { %4781 = vst.msk [vmem:[#allocation4 + $0x50] sm:$0xff] %vm2968_vm4, %v4749_v1  ;;  %4782 = vst.msk [vmem:[#allocation4 + $0x58] sm:$0xff] %vm2968_vm4, %v4750_v60  ;;  %v5125_v3 = vld [vmem:[#allocation4 + $0x10] sm:$0xff]  ;;  %v5142_v47 = vld [vmem:[#allocation4 + $0x18] sm:$0xff] }
 0x5fc   :  { %5102 = vst.msk [vmem:[#allocation4 + $0x50] sm:$0xff] %vm5091_vm12, %v14402_v20  ;;  %5103 = vst.msk [vmem:[#allocation4 + $0x58] sm:$0xff] %vm5091_vm12, %v14403_v44  ;;  %v4646_v55 = vld [vmem:[#allocation3 + $0x110] ss:$2 sm:$0xff]  ;;  %v5158_v21 = vmax.f32 %v5125_v3, %v5142_v47  ;;  %v4652_v34 = vld [vmem:[#allocation3 + $0x140] ss:$2 sm:$0xff] }
 0x5fd   :  { %4783 = vst.msk [vmem:[#allocation4 + $0x60] sm:$0xff] %vm2968_vm4, %v4751_v53  ;;  %4784 = vst.msk [vmem:[#allocation4 + $0x68] sm:$0xff] %vm2968_vm4, %v4752_v40  ;;  %v5126_v52 = vld [vmem:[#allocation4 + $0x20] sm:$0xff]  ;;  %v5143_v28 = vld [vmem:[#allocation4 + $0x28] sm:$0xff] }
 0x5fe   :  { %5104 = vst.msk [vmem:[#allocation4 + $0x60] sm:$0xff] %vm5091_vm12, %v12884_v45  ;;  %5105 = vst.msk [vmem:[#allocation4 + $0x68] sm:$0xff] %vm5091_vm12, %v12895_v61  ;;  %v4710_v45 = vld [vmem:[#allocation3 + $0x111] ss:$2 sm:$0xff]  ;;  %v13078_v61 = vpop.permute.xlu1 %5041  ;;  %v4716_v15 = vld [vmem:[#allocation3 + $0x141] ss:$2 sm:$0xff] }
 0x5ff   :  { %4785 = vst.msk [vmem:[#allocation4 + $0x70] sm:$0xff] %vm2968_vm4, %v4753_v48  ;;  %4786 = vst.msk [vmem:[#allocation4 + $0x78] sm:$0xff] %vm2968_vm4, %v4754_v38  ;;  %v5127_v41 = vld [vmem:[#allocation4 + $0x30] sm:$0xff]  ;;  %v5144_v54 = vld [vmem:[#allocation4 + $0x38] sm:$0xff]  ;;  %v4759_v2 = vmax.f32 %v4652_v34, %v4716_v15  ;;  %v5048_v48 = vpop.permute.xlu0 %5047 }
 0x600   :  { %5106 = vst.msk [vmem:[#allocation4 + $0x70] sm:$0xff] %vm5091_vm12, %v12913_v9  ;;  %5107 = vst.msk [vmem:[#allocation4 + $0x78] sm:$0xff] %vm5091_vm12, %v12931_v5  ;;  %v4756_v9 = vmax.f32 %v4646_v55, %v4710_v45  ;;  %v5159_v5 = vmax.f32 %v5126_v52, %v5143_v28  ;;  %v4650_v50 = vld [vmem:[#allocation3 + $0x130] ss:$2 sm:$0xff]  ;;  %v4714_v32 = vld [vmem:[#allocation3 + $0x131] ss:$2 sm:$0xff]  ;;  %v5160_v8 = vmax.f32 %v5127_v41, %v5144_v54 }
 0x601   :  { %4787 = vst.msk [vmem:[#allocation4 + $0x80] sm:$0xff] %vm2968_vm4, %v4755_v10  ;;  %4789 = vst.msk [vmem:[#allocation4 + $0x90] sm:$0xff] %vm2968_vm4, %v4757_v22  ;;  %v5128_v35 = vld [vmem:[#allocation4 + $0x40] sm:$0xff]  ;;  %v5145_v4 = vld [vmem:[#allocation4 + $0x48] sm:$0xff] }
 0x602   :  { %5231 = vst.msk [vmem:[#allocation5 + $0x11] sm:$0xff] %vm3033_vm2, %v5157_v13  ;;  %5232 = vst.msk [vmem:[#allocation5 + $0x21] sm:$0xff] %vm3033_vm2, %v5158_v21  ;;  %v4656_v46 = vld [vmem:[#allocation3 + $0x160] ss:$2 sm:$0xff]  ;;  %v5161_v16 = vmax.f32 %v5128_v35, %v5145_v4  ;;  %v4654_v6 = vld [vmem:[#allocation3 + $0x150] ss:$2 sm:$0xff]  ;;  %v13099_v60 = vpop.permute.xlu1 %5045 }
 0x603   :  { %5108 = vst.msk [vmem:[#allocation4 + $0x80] sm:$0xff] %vm5091_vm12, %v12965_v26  ;;  %5110 = vst.msk [vmem:[#allocation4 + $0x90] sm:$0xff] %vm5091_vm12, %v13015_v51  ;;  %v4758_v26 = vmax.f32 %v4650_v50, %v4714_v32  ;;  %v5129_v59 = vld [vmem:[#allocation4 + $0x50] sm:$0xff]  ;;  %v4720_v51 = vld [vmem:[#allocation3 + $0x161] ss:$2 sm:$0xff]  ;;  %v5052_v55 = vpop.permute.xlu0 %5051 }
 0x604   :  { %4788 = vst.msk [vmem:[#allocation4 + $0x88] sm:$0xff] %vm2968_vm4, %v4756_v9  ;;  %4791 = vst.msk [vmem:[#allocation4 + $0xa0] sm:$0xff] %vm2968_vm4, %v4759_v2  ;;  %v5146_v29 = vld [vmem:[#allocation4 + $0x58] sm:$0xff]  ;;  %v4761_v56 = vmax.f32 %v4656_v46, %v4720_v51  ;;  %v4660_v27 = vld [vmem:[#allocation3 + $0x180] ss:$2 sm:$0xff] }
 0x605   :  { %5233 = vst.msk [vmem:[#allocation5 + $0x31] sm:$0xff] %vm3033_vm2, %v5159_v5  ;;  %5234 = vst.msk [vmem:[#allocation5 + $0x41] sm:$0xff] %vm3033_vm2, %v5160_v8  ;;  %v5130_v63 = vld [vmem:[#allocation4 + $0x60] sm:$0xff]  ;;  %v4718_v49 = vld [vmem:[#allocation3 + $0x151] ss:$2 sm:$0xff]  ;;  %v5162_v1 = vmax.f32 %v5129_v59, %v5146_v29 }
 0x606   :  { %5109 = vst.msk [vmem:[#allocation4 + $0x88] sm:$0xff] %vm5091_vm12, %v12967_v25  ;;  %5112 = vst.msk [vmem:[#allocation4 + $0xa0] sm:$0xff] %vm5091_vm12, %v13047_v18  ;;  %v5147_v62 = vld [vmem:[#allocation4 + $0x68] sm:$0xff]  ;;  %v4760_v25 = vmax.f32 %v4654_v6, %v4718_v49  ;;  %v4722_v40 = vld [vmem:[#allocation3 + $0x171] ss:$2 sm:$0xff]  ;;  %v5050_v38 = vpop.permute.xlu1 %5049 }
 0x607   :  { %4790 = vst.msk [vmem:[#allocation4 + $0x98] sm:$0xff] %vm2968_vm4, %v4758_v26  ;;  %v4724_v14 = vld [vmem:[#allocation3 + $0x181] ss:$2 sm:$0xff]  ;;  %v5163_v53 = vmax.f32 %v5130_v63, %v5147_v62  ;;  %v5131_v33 = vld [vmem:[#allocation4 + $0x70] sm:$0xff]  ;;  %v5148_v18 = vld [vmem:[#allocation4 + $0x78] sm:$0xff]  ;;  %v5056_v51 = vpop.permute.xlu0 %5055 }
 0x608   :  { %5235 = vst.msk [vmem:[#allocation5 + $0x51] sm:$0xff] %vm3033_vm2, %v5161_v16  ;;  %v4763_v19 = vmax.f32 %v4660_v27, %v4724_v14  ;;  %5236 = vst.msk [vmem:[#allocation5 + $0x61] sm:$0xff] %vm3033_vm2, %v5162_v1  ;;  %v5164_v37 = vmax.f32 %v5131_v33, %v5148_v18  ;;  %v4664_v47 = vld [vmem:[#allocation3 + $0x1a0] ss:$2 sm:$0xff]  ;;  %v4728_v22 = vld [vmem:[#allocation3 + $0x1a1] ss:$2 sm:$0xff] }
 0x609   :  { %5111 = vst.msk [vmem:[#allocation4 + $0x98] sm:$0xff] %vm5091_vm12, %v13017_v23  ;;  %v13102_v12 = vld [vmem:[#allocation5 + $0x10] sm:$0xff]  ;;  %v13124_v39 = vld [vmem:[#allocation5 + $0x20] sm:$0xff]  ;;  %v4765_v52 = vmax.f32 %v4664_v47, %v4728_v22  ;;  %v5174_v49 = vld [vmem:[%s14261_s4 + $0x8] sm:$0xff] }
 0x60a   :  { %4793 = vst.msk [vmem:[#allocation4 + $0xb0] sm:$0xff] %vm2968_vm4, %v4761_v56  ;;  %v5264_v57 = vld [vmem:[#allocation5 + $0x11] sm:$0xff]  ;;  %4792 = vst.msk [vmem:[#allocation4 + $0xa8] sm:$0xff] %vm2968_vm4, %v4760_v25  ;;  %5536 = vrot.lane.b32.xlu0 %v13102_v12, %s9109_s2  ;;  %v5132_v0 = vld [vmem:[#allocation4 + $0x80] sm:$0xff]  ;;  %v5054_v21 = vpop.permute.xlu1 %5053 }
 0x60b   :  { %5114 = vst.msk [vmem:[#allocation4 + $0xb0] sm:$0xff] %vm5091_vm12, %v5040_v30  ;;  %v4658_v23 = vld [vmem:[#allocation3 + $0x170] ss:$2 sm:$0xff]  ;;  %5410 = vrot.lane.b32.xlu1 %v5264_v57, %s9103_s14  ;;  %5113 = vst.msk [vmem:[#allocation4 + $0xa8] sm:$0xff] %vm5091_vm12, %v13049_v24  ;;  %v13121_v24 = vld [vmem:[#allocation5 + $0x21] sm:$0xff] }
 0x60c   :  { %5237 = vst.msk [vmem:[#allocation5 + $0x71] sm:$0xff] %vm3033_vm2, %v5163_v53  ;;  %5238 = vst.msk [vmem:[#allocation5 + $0x81] sm:$0xff] %vm3033_vm2, %v5164_v37  ;;  %v4762_v43 = vmax.f32 %v4658_v23, %v4722_v40  ;;  %v13116_v17 = vld [vmem:[#allocation5 + $0x12] sm:$0xff]  ;;  %v4668_v30 = vld [vmem:[#allocation3 + $0x1c0] ss:$2 sm:$0xff] }
 0x60d   :  { %4795 = vst.msk [vmem:[#allocation4 + $0xc0] sm:$0xff] %vm2968_vm4, %v4763_v19  ;;  %v5133_v20 = vld [vmem:[#allocation4 + $0x90] sm:$0xff]  ;;  %v5149_v36 = vld [vmem:[#allocation4 + $0x88] sm:$0xff]  ;;  %v5134_v7 = vld [vmem:[#allocation4 + $0xa0] sm:$0xff] }
 0x60e   :  { %5116 = vst.msk [vmem:[#allocation4 + $0xc0] sm:$0xff] %vm5091_vm12, %v5044_v31  ;;  %5600 = vrot.lane.b32.xlu0 %v5264_v57, %s9110_s3  ;;  %v5165_v58 = vmax.f32 %v5132_v0, %v5149_v36  ;;  %v13132_v10 = vld [vmem:[#allocation5 + $0x31] sm:$0xff]  ;;  %v4732_v28 = vld [vmem:[#allocation3 + $0x1c1] ss:$2 sm:$0xff]  ;;  %v4672_v2 = vld [vmem:[#allocation3 + $0x1e0] ss:$2 sm:$0xff]  ;;  %v5058_v6 = vpop.permute.xlu1 %5057 }
 0x60f   :  { %5474 = vrot.lane.b32.xlu1 %v13116_v17, %s9106_s21  ;;  %4794 = vst.msk [vmem:[#allocation4 + $0xb8] sm:$0xff] %vm2968_vm4, %v4762_v43  ;;  %v4662_v45 = vld [vmem:[#allocation3 + $0x190] ss:$2 sm:$0xff]  ;;  %v4726_v34 = vld [vmem:[#allocation3 + $0x191] ss:$2 sm:$0xff]  ;;  %4797 = vst.msk [vmem:[#allocation4 + $0xd0] sm:$0xff] %vm2968_vm4, %v4765_v52  ;;  %v4767_v5 = vmax.f32 %v4668_v30, %v4732_v28 }
 0x610   :  { %v5150_v42 = vld [vmem:[#allocation4 + $0x98] sm:$0xff]  ;;  %5115 = vst.msk [vmem:[#allocation4 + $0xb8] sm:$0xff] %vm5091_vm12, %v13078_v61  ;;  %v4764_v61 = vmax.f32 %v4662_v45, %v4726_v34  ;;  %v4736_v50 = vld [vmem:[#allocation3 + $0x1e1] ss:$2 sm:$0xff]  ;;  %5118 = vst.msk [vmem:[#allocation4 + $0xd0] sm:$0xff] %vm5091_vm12, %v5048_v48 }
 0x611   :  { %v5166_v44 = vmax.f32 %v5133_v20, %v5150_v42  ;;  %5239 = vst.msk [vmem:[#allocation5 + $0xb1] sm:$0xff] %vm3033_vm2, %v5165_v58  ;;  %v4666_v41 = vld [vmem:[#allocation3 + $0x1b0] ss:$2 sm:$0xff]  ;;  %v4730_v9 = vld [vmem:[#allocation3 + $0x1b1] ss:$2 sm:$0xff]  ;;  %v4769_v8 = vmax.f32 %v4672_v2, %v4736_v50  ;;  %v13148_v59 = vld [vmem:[#allocation5 + $0x22] sm:$0xff]  ;;  %v5409_v50 = vpop.permute.xlu0 %5408 }
 0x612   :  { %5602 = vrot.lane.b32.xlu0 %v13121_v24, %s9110_s3  ;;  %v5151_v11 = vld [vmem:[#allocation4 + $0xa8] sm:$0xff]  ;;  %v5135_v13 = vld [vmem:[#allocation4 + $0xb0] sm:$0xff]  ;;  %v4766_v54 = vmax.f32 %v4666_v41, %v4730_v9  ;;  %4796 = vst.msk [vmem:[#allocation4 + $0xc8] sm:$0xff] %vm2968_vm4, %v4764_v61  ;;  %4799 = vst.msk [vmem:[#allocation4 + $0xe0] sm:$0xff] %vm2968_vm4, %v4767_v5 }
 0x613   :  { %5538 = vrot.lane.b32.xlu1 %v13124_v39, %s9109_s2  ;;  %5240 = vst.msk [vmem:[#allocation5 + $0xc1] sm:$0xff] %vm3033_vm2, %v5166_v44  ;;  %v5167_v3 = vmax.f32 %v5134_v7, %v5151_v11  ;;  %v4670_v35 = vld [vmem:[#allocation3 + $0x1d0] ss:$2 sm:$0xff]  ;;  %v4734_v4 = vld [vmem:[#allocation3 + $0x1d1] ss:$2 sm:$0xff]  ;;  %v5173_v56 = vld [vmem:[%s14261_s4] sm:$0xff] }
 0x614   :  { %5117 = vst.msk [vmem:[#allocation4 + $0xc8] sm:$0xff] %vm5091_vm12, %v13099_v60  ;;  %v4768_v26 = vmax.f32 %v4670_v35, %v4734_v4  ;;  %v4674_v46 = vld [vmem:[#allocation3 + $0x1f0] ss:$2 sm:$0xff]  ;;  %v4738_v16 = vld [vmem:[#allocation3 + $0x1f1] ss:$2 sm:$0xff]  ;;  %5120 = vst.msk [vmem:[#allocation4 + $0xe0] sm:$0xff] %vm5091_vm12, %v5052_v55  ;;  %v8862_v25 = vpack.c.bf16 %v5174_v49, %v5173_v56 }
 0x615   :  { %5241 = vst.msk [vmem:[#allocation5 + $0xd1] sm:$0xff] %vm3033_vm2, %v5167_v3  ;;  %v4770_v29 = vmax.f32 %v4674_v46, %v4738_v16  ;;  %v13160_v63 = vld [vmem:[#allocation5 + $0x32] sm:$0xff]  ;;  %v5136_v62 = vld [vmem:[#allocation4 + $0xc0] sm:$0xff]  ;;  %v5178_v53 = vld [vmem:[%s14261_s4 + $0x28] sm:$0xff]  ;;  %v5473_v35 = vpop.permute.xlu0 %5472 }
 0x616   :  { %5414 = vrot.lane.b32.xlu0 %v13132_v10, %s9103_s14  ;;  %4798 = vst.msk [vmem:[#allocation4 + $0xd8] sm:$0xff] %vm2968_vm4, %v4766_v54  ;;  %4801 = vst.msk [vmem:[#allocation4 + $0xf0] sm:$0xff] %vm2968_vm4, %v4769_v8  ;;  %v5175_v1 = vld [vmem:[%s14261_s4 + $0x10] sm:$0xff]  ;;  %v5176_v31 = vld [vmem:[%s14261_s4 + $0x18] sm:$0xff]  ;;  %8863 = vmatprep.subr.bf16.mxu0 %v8862_v25 }
 0x617   :  { %5412 = vrot.lane.b32.xlu1 %v13121_v24, %s9103_s14  ;;  %v5152_v15 = vld [vmem:[#allocation4 + $0xb8] sm:$0xff]  ;;  %5119 = vst.msk [vmem:[#allocation4 + $0xd8] sm:$0xff] %vm5091_vm12, %v5050_v38  ;;  %5122 = vst.msk [vmem:[#allocation4 + $0xf0] sm:$0xff] %vm5091_vm12, %v5056_v51  ;;  %v5137_v27 = vld [vmem:[#allocation4 + $0xd0] sm:$0xff]  ;;  %v8866_v14 = vpack.c.bf16 %v5176_v31, %v5175_v1  ;;  %9004 = vmatprep.subr.bf16.mxu1 %v8862_v25 }
 0x618   :  { %v5168_v32 = vmax.f32 %v5135_v13, %v5152_v15  ;;  %4800 = vst.msk [vmem:[#allocation4 + $0xe8] sm:$0xff] %vm2968_vm4, %v4768_v26  ;;  %4802 = vst.msk [vmem:[#allocation4 + $0xf8] sm:$0xff] %vm2968_vm4, %v4770_v29  ;;  %v5177_v60 = vld [vmem:[%s14261_s4 + $0x20] sm:$0xff]  ;;  %8865 = vmatpush3.bf16.msra.mxu0 %v8862_v25  ;;  %9011 = vmatpush3.bf16.msra.mxu1 %v8862_v25  ;;  %v13187_v37 = vld [vmem:[#allocation5 + $0x30] sm:$0xff]  ;;  %vm6020_vm4 = vcmask 785408  }
 0x619   :  { %5121 = vst.msk [vmem:[#allocation4 + $0xe8] sm:$0xff] %vm5091_vm12, %v5054_v21  ;;  %5123 = vst.msk [vmem:[#allocation4 + $0xf8] sm:$0xff] %vm5091_vm12, %v5058_v6  ;;  %8867 = vmatprep.subr.bf16.mxu0 %v8866_v14  ;;  %v8870_v43 = vpack.c.bf16 %v5178_v53, %v5177_v60  ;;  %9005 = vmatprep.subr.bf16.mxu1 %v8866_v14  ;;  %v5179_v0 = vld [vmem:[%s14261_s4 + $0x30] sm:$0xff]  ;;  %v5180_v20 = vld [vmem:[%s14261_s4 + $0x38] sm:$0xff] }
 0x61a   :  { %5242 = vst.msk [vmem:[#allocation5 + $0xe1] sm:$0xff] %vm3033_vm2, %v5168_v32  ;;  %5666 = vrot.lane.b32.xlu0 %v13148_v59, %s9111_s28  ;;  %v13200_v48 = vld [vmem:[#allocation5 + $0x40] sm:$0xff]  ;;  %v8874_v58 = vpack.c.bf16 %v5180_v20, %v5179_v0  ;;  %v5182_v44 = vld [vmem:[%s14261_s4 + $0x48] sm:$0xff]  ;;  %v5183_v13 = vld [vmem:[%s14261_s4 + $0x50] sm:$0xff] }
 0x61b   :  { %5664 = vrot.lane.b32.xlu1 %v13116_v17, %s9111_s28  ;;  %v5153_v33 = vld [vmem:[#allocation4 + $0xc8] sm:$0xff]  ;;  %v5138_v19 = vld [vmem:[#allocation4 + $0xe0] sm:$0xff]  ;;  %v5184_v3 = vld [vmem:[%s14261_s4 + $0x58] sm:$0xff] }
 0x61c   :  { %v5169_v18 = vmax.f32 %v5136_v62, %v5153_v33  ;;  %8869 = vmatpush3.bf16.msra.mxu0 %v8866_v14  ;;  %9012 = vmatpush3.bf16.msra.mxu1 %v8866_v14  ;;  %v5181_v7 = vld [vmem:[%s14261_s4 + $0x40] sm:$0xff]  ;;  %v8882_v22 = vpack.c.bf16 %v5184_v3, %v5183_v13  ;;  %v5186_v55 = vld [vmem:[%s14261_s4 + $0x68] sm:$0xf]  ;;  %v5284_v34 = vld [vmem:[#allocation5 + $0x52] sm:$0xff] }
 0x61d   :  { %8871 = vmatprep.subr.bf16.mxu0 %v8870_v43  ;;  %9006 = vmatprep.subr.bf16.mxu1 %v8870_v43  ;;  %v8878_v11 = vpack.c.bf16 %v5182_v44, %v5181_v7  ;;  %v5267_v47 = vld [vmem:[#allocation5 + $0x41] sm:$0xff]  ;;  %v13258_v30 = vld [vmem:[#allocation5 + $0x50] sm:$0xff] }
 0x61e   :  { %5478 = vrot.lane.b32.xlu0 %v13160_v63, %s9106_s21  ;;  %v5154_v57 = vld [vmem:[#allocation4 + $0xd8] sm:$0xff]  ;;  %v5139_v40 = vld [vmem:[#allocation4 + $0xf0] sm:$0xff]  ;;  %5243 = vst.msk [vmem:[#allocation5 + $0xf1] sm:$0xff] %vm3033_vm2, %v5169_v18  ;;  %v5330_v45 = vld [vmem:[#allocation5 + $0x42] sm:$0xff] }
 0x61f   :  { %5476 = vrot.lane.b32.xlu1 %v13148_v59, %s9106_s21  ;;  %v5170_v23 = vmax.f32 %v5137_v27, %v5154_v57  ;;  %v13264_v61 = vld [vmem:[#allocation5 + $0x60] sm:$0xff]  ;;  %v5270_v41 = vld [vmem:[#allocation5 + $0x71] sm:$0xff] }
 0x620   :  { %v5155_v17 = vld [vmem:[#allocation4 + $0xe8] sm:$0xff]  ;;  %v5156_v36 = vld [vmem:[#allocation4 + $0xf8] sm:$0xff]  ;;  %8873 = vmatpush3.bf16.msra.mxu0 %v8870_v43  ;;  %9013 = vmatpush3.bf16.msra.mxu1 %v8870_v43  ;;  %v13282_v5 = vld [vmem:[#allocation5 + $0x70] sm:$0xff] }
 0x621   :  { %5244 = vst.msk [vmem:[#allocation5 + $0x101] sm:$0xff] %vm3033_vm2, %v5170_v23  ;;  %v5171_v38 = vmax.f32 %v5138_v19, %v5155_v17  ;;  %v5172_v42 = vmax.f32 %v5139_v40, %v5156_v36  ;;  %8875 = vmatprep.subr.bf16.mxu0 %v8874_v58  ;;  %9007 = vmatprep.subr.bf16.mxu1 %v8874_v58  ;;  %v5269_v28 = vld [vmem:[#allocation5 + $0x61] sm:$0xff]  ;;  %v5286_v15 = vld [vmem:[#allocation5 + $0x72] sm:$0xff] }
 0x622   :  { %5730 = vrot.lane.b32.xlu0 %v13187_v37, %s9112_s12  ;;  %v5332_v9 = vld [vmem:[#allocation5 + $0x62] sm:$0xff]  ;;  %v5272_v32 = vld [vmem:[#allocation5 + $0xb1] sm:$0xff] }
 0x623   :  { %5728 = vrot.lane.b32.xlu1 %v13124_v39, %s9112_s12  ;;  %5245 = vst.msk [vmem:[#allocation5 + $0x111] sm:$0xff] %vm3033_vm2, %v5171_v38  ;;  %5246 = vst.msk [vmem:[#allocation5 + $0x121] sm:$0xff] %vm3033_vm2, %v5172_v42  ;;  %v5302_v54 = vld [vmem:[#allocation5 + $0x80] sm:$0xff]  ;;  %v5351_v51 = vld [vmem:[#allocation5 + $0x90] sm:$0xff] }
 0x624   :  { %8877 = vmatpush3.bf16.msra.mxu0 %v8874_v58  ;;  %9014 = vmatpush3.bf16.msra.mxu1 %v8874_v58  ;;  %v5271_v2 = vld [vmem:[#allocation5 + $0xa1] sm:$0xff]  ;;  %v13311_v1 = vld [vmem:[#allocation5 + $0xb0] sm:$0xff] }
 0x625   :  { %8879 = vmatprep.subr.bf16.mxu0 %v8878_v11  ;;  %9008 = vmatprep.subr.bf16.mxu1 %v8878_v11  ;;  %v5318_v8 = vld [vmem:[#allocation5 + $0x81] sm:$0xff]  ;;  %v5367_v62 = vld [vmem:[#allocation5 + $0x91] sm:$0xff] }
 0x626   :  { %5542 = vrot.lane.b32.xlu0 %v13200_v48, %s9109_s2  ;;  %v5334_v4 = vld [vmem:[#allocation5 + $0x82] sm:$0xff]  ;;  %v5274_v57 = vld [vmem:[#allocation5 + $0xd1] sm:$0xff] }
 0x627   :  { %5540 = vrot.lane.b32.xlu1 %v13187_v37, %s9109_s2  ;;  %v5287_v26 = vld [vmem:[#allocation5 + $0xa2] sm:$0xff]  ;;  %v5383_v40 = vld [vmem:[#allocation5 + $0x92] sm:$0xff] }
 0x628   :  { %8881 = vmatpush3.bf16.msra.mxu0 %v8878_v11  ;;  %9015 = vmatpush3.bf16.msra.mxu1 %v8878_v11  ;;  %v13309_v49 = vld [vmem:[#allocation5 + $0xc0] sm:$0xff]  ;;  %v5290_v58 = vld [vmem:[#allocation5 + $0xd2] sm:$0xff] }
 0x629   :  { %8883 = vmatprep.subr.bf16.mxu0 %v8882_v22  ;;  %9009 = vmatprep.subr.bf16.mxu1 %v8882_v22  ;;  %v5273_v60 = vld [vmem:[#allocation5 + $0xc1] sm:$0xff]  ;;  %v13347_v3 = vld [vmem:[#allocation5 + $0xd0] sm:$0xff] }
 0x62a   :  { %5794 = vrot.lane.b32.xlu0 %v13132_v10, %s9113_s20  ;;  %v5247_v23 = vld [vmem:[#allocation5] sm:$0xff] }
 0x62b   :  { %5792 = vrot.lane.b32.xlu1 %v13121_v24, %s9113_s20  ;;  %v5185_v24 = vld [vmem:[%s14261_s4 + $0x60] sm:$0xff]  ;;  %v5904_v20 = vsel %vm3033_vm2, %v5247_v23, %v5409_v50 }
 0x62c   :  { %v8886_v21 = vpack.c.bf16 %v5186_v55, %v5185_v24  ;;  %8885 = vmatpush3.bf16.msra.mxu0 %v8882_v22  ;;  %9016 = vmatpush3.bf16.msra.mxu1 %v8882_v22  ;;  %v5336_v0 = vld [vmem:[#allocation5 + $0xc2] sm:$0xff]  ;;  %v5920_v42 = vsel %vm3228_vm7, %v5904_v20, %v5473_v35 }
 0x62e   :  { %5416 = vrot.lane.b32.xlu0 %v5267_v47, %s9103_s14  ;;  %8888 = vmatprep.subr.msk.bf16.mxu0 %vm13235_vm14, %v8886_v21 }
 0x62f   :  { %5604 = vrot.lane.b32.xlu1 %v13132_v10, %s9110_s3  ;;  %v5268_v10 = vld [vmem:[#allocation5 + $0x51] sm:$0xff]  ;;  %9010 = vmatprep.subr.msk.bf16.mxu1 %vm13235_vm14, %v8886_v21 }
 0x630   :  { %8891 = vmatpush3.bf16.msk.msra.mxu0 %vm13235_vm14, %v8886_v21  ;;  %9017 = vmatpush3.bf16.msk.msra.mxu1 %vm13235_vm14, %v8886_v21 }
 0x632   :  { %5668 = vrot.lane.b32.xlu0 %v13160_v63, %s9111_s28 }
 0x633   :  { %5856 = vrot.lane.b32.xlu1 %v13148_v59, %s9115_s11  ;;  %v5288_v59 = vld [vmem:[#allocation5 + $0xb2] sm:$0xff] }
 0x636   :  { %5418 = vrot.lane.b32.xlu0 %v5268_v10, %s9103_s14 }
 0x637   :  { %5606 = vrot.lane.b32.xlu1 %v5267_v47, %s9110_s3 }
 0x63a   :  { %5670 = vrot.lane.b32.xlu0 %v5330_v45, %s9111_s28 }
 0x63b   :  { %5858 = vrot.lane.b32.xlu1 %v13160_v63, %s9115_s11 }
 0x63e   :  { %5482 = vrot.lane.b32.xlu0 %v5284_v34, %s9106_s21 }
 0x63f   :  { %5480 = vrot.lane.b32.xlu1 %v5330_v45, %s9106_s21 }
 0x642   :  { %5734 = vrot.lane.b32.xlu0 %v13258_v30, %s9112_s12 }
 0x643   :  { %5732 = vrot.lane.b32.xlu1 %v13200_v48, %s9112_s12 }
 0x646   :  { %5546 = vrot.lane.b32.xlu0 %v13264_v61, %s9109_s2 }
 0x647   :  { %5544 = vrot.lane.b32.xlu1 %v13258_v30, %s9109_s2 }
 0x64a   :  { %5798 = vrot.lane.b32.xlu0 %v5268_v10, %s9113_s20 }
 0x64b   :  { %5796 = vrot.lane.b32.xlu1 %v5267_v47, %s9113_s20 }
 0x64e   :  { %5420 = vrot.lane.b32.xlu0 %v5269_v28, %s9103_s14 }
 0x64f   :  { %5608 = vrot.lane.b32.xlu1 %v5268_v10, %s9110_s3 }
 0x652   :  { %5672 = vrot.lane.b32.xlu0 %v5284_v34, %s9111_s28 }
 0x653   :  { %5860 = vrot.lane.b32.xlu1 %v5330_v45, %s9115_s11 }
 0x656   :  { %5422 = vrot.lane.b32.xlu0 %v5270_v41, %s9103_s14 }
 0x657   :  { %5610 = vrot.lane.b32.xlu1 %v5269_v28, %s9110_s3 }
 0x65a   :  { %5674 = vrot.lane.b32.xlu0 %v5332_v9, %s9111_s28 }
 0x65b   :  { %5862 = vrot.lane.b32.xlu1 %v5284_v34, %s9115_s11 }
 0x65e   :  { %5486 = vrot.lane.b32.xlu0 %v5286_v15, %s9106_s21 }
 0x65f   :  { %5484 = vrot.lane.b32.xlu1 %v5332_v9, %s9106_s21 }
 0x662   :  { %5738 = vrot.lane.b32.xlu0 %v13282_v5, %s9112_s12 }
 0x663   :  { %5736 = vrot.lane.b32.xlu1 %v13264_v61, %s9112_s12 }
 0x666   :  { %5550 = vrot.lane.b32.xlu0 %v5302_v54, %s9109_s2 }
 0x667   :  { %5548 = vrot.lane.b32.xlu1 %v13282_v5, %s9109_s2 }
 0x66a   :  { %5802 = vrot.lane.b32.xlu0 %v5270_v41, %s9113_s20 }
 0x66b   :  { %5800 = vrot.lane.b32.xlu1 %v5269_v28, %s9113_s20  ;;  %v13361_v28 = vld [vmem:[#allocation5 + $0xe0] sm:$0xff] }
 0x66e   :  { %5424 = vrot.lane.b32.xlu0 %v5271_v2, %s9103_s14 }
 0x66f   :  { %5612 = vrot.lane.b32.xlu1 %v5270_v41, %s9110_s3 }
 0x672   :  { %5676 = vrot.lane.b32.xlu0 %v5286_v15, %s9111_s28 }
 0x673   :  { %5864 = vrot.lane.b32.xlu1 %v5332_v9, %s9115_s11 }
 0x676   :  { %5426 = vrot.lane.b32.xlu0 %v5272_v32, %s9103_s14 }
 0x677   :  { %5614 = vrot.lane.b32.xlu1 %v5318_v8, %s9110_s3 }
 0x67a   :  { %5678 = vrot.lane.b32.xlu0 %v5334_v4, %s9111_s28 }
 0x67b   :  { %5866 = vrot.lane.b32.xlu1 %v5286_v15, %s9115_s11 }
 0x67c   :  { %v5537_v46 = vpop.permute.xlu0 %5536 }
 0x67d   :  { %v13301_v16 = vpop.permute.xlu1 %5410  ;;  %v5936_v7 = vsel %vm3423_vm10, %v5920_v42, %v5537_v46 }
 0x67e   :  { %5490 = vrot.lane.b32.xlu0 %v5288_v59, %s9106_s21  ;;  %v5905_v24 = vsel %vm3033_vm2, %v13102_v12, %v13301_v16 }
 0x67f   :  { %5488 = vrot.lane.b32.xlu1 %v5287_v26, %s9106_s21 }
 0x680   :  { %v5601_v6 = vpop.permute.xlu0 %5600 }
 0x681   :  { %v5475_v29 = vpop.permute.xlu1 %5474  ;;  %v5953_v13 = vsel %vm5952_vm15, %v5936_v7, %v5601_v6 }
 0x682   :  { %5742 = vrot.lane.b32.xlu0 %v5351_v51, %s9112_s12  ;;  %v5921_v45 = vsel %vm3228_vm7, %v5905_v24, %v5475_v29  ;;  %v5276_v51 = vld [vmem:[#allocation5 + $0xf1] sm:$0xff] }
 0x683   :  { %5740 = vrot.lane.b32.xlu1 %v5302_v54, %s9112_s12 }
 0x684   :  { %v13307_v63 = vpop.permute.xlu0 %5602 }
 0x685   :  { %v5539_v56 = vpop.permute.xlu1 %5538 }
 0x686   :  { %5554 = vrot.lane.b32.xlu0 %v13309_v49, %s9109_s2  ;;  %v5937_v41 = vsel %vm3423_vm10, %v5921_v45, %v5539_v56 }
 0x687   :  { %5552 = vrot.lane.b32.xlu1 %v13311_v1, %s9109_s2  ;;  %v5954_v15 = vsel %vm5952_vm15, %v5937_v41, %v13307_v63  ;;  %v5338_v63 = vld [vmem:[#allocation5 + $0xe2] sm:$0xff] }
 0x688   :  { %v13317_v25 = vpop.permute.xlu0 %5414 }
 0x689   :  { %v13319_v31 = vpop.permute.xlu1 %5412 }
 0x68a   :  { %5806 = vrot.lane.b32.xlu0 %v5367_v62, %s9113_s20 }
 0x68b   :  { %5804 = vrot.lane.b32.xlu1 %v5318_v8, %s9113_s20 }
 0x68c   :  { %v5667_v27 = vpop.permute.xlu0 %5666 }
 0x68d   :  { %v5665_v14 = vpop.permute.xlu1 %5664  ;;  %v5971_v54 = vsel %vm5969_vm0, %v5954_v15, %v5667_v27  ;;  %v5292_v27 = vld [vmem:[#allocation5 + $0xf2] sm:$0xff]  ;;  %v5340_v15 = vld [vmem:[#allocation5 + $0x102] sm:$0xff] }
 0x68e   :  { %5428 = vrot.lane.b32.xlu0 %v5273_v60, %s9103_s14  ;;  %v5970_v47 = vsel %vm5969_vm0, %v5953_v13, %v5665_v14  ;;  %v5906_v14 = vsel %vm3033_vm2, %v13124_v39, %v13319_v31 }
 0x68f   :  { %5616 = vrot.lane.b32.xlu1 %v5272_v32, %s9110_s3 }
 0x690   :  { %v13325_v53 = vpop.permute.xlu0 %5478 }
 0x691   :  { %v13327_v33 = vpop.permute.xlu1 %5476 }
 0x692   :  { %5680 = vrot.lane.b32.xlu0 %v5288_v59, %s9111_s28 }
 0x693   :  { %5868 = vrot.lane.b32.xlu1 %v5334_v4, %s9115_s11  ;;  %v5275_v4 = vld [vmem:[#allocation5 + $0xe1] sm:$0xff] }
 0x694   :  { %v5731_v18 = vpop.permute.xlu0 %5730 }
 0x695   :  { %v5729_v19 = vpop.permute.xlu1 %5728  ;;  %v5988_v2 = vsel %vm5986_vm1, %v5971_v54, %v5731_v18 }
 0x696   :  { %5430 = vrot.lane.b32.xlu0 %v5274_v57, %s9103_s14  ;;  %v5987_v22 = vsel %vm5986_vm1, %v5970_v47, %v5729_v19 }
 0x697   :  { %5618 = vrot.lane.b32.xlu1 %v5273_v60, %s9110_s3 }
 0x698   :  { %v13333_v43 = vpop.permute.xlu0 %5542 }
 0x699   :  { %v13335_v17 = vpop.permute.xlu1 %5540 }
 0x69a   :  { %5682 = vrot.lane.b32.xlu0 %v5336_v0, %s9111_s28 }
 0x69b   :  { %5870 = vrot.lane.b32.xlu1 %v5383_v40, %s9115_s11  ;;  %v13408_v40 = vld [vmem:[#allocation5 + $0xf0] sm:$0xff] }
 0x69c   :  { %v5795_v38 = vpop.permute.xlu0 %5794 }
 0x69d   :  { %v5793_v36 = vpop.permute.xlu1 %5792  ;;  %v6005_v50 = vsel %vm6003_vm3, %v5988_v2, %v5795_v38  ;;  %v13418_v38 = vld [vmem:[#allocation5 + $0x100] sm:$0xff] }
 0x69e   :  { %5494 = vrot.lane.b32.xlu0 %v5290_v58, %s9106_s21  ;;  %v6004_v55 = vsel %vm6003_vm3, %v5987_v22, %v5793_v36  ;;  %v5907_v36 = vsel %vm3033_vm2, %v13187_v37, %v13317_v25 }
 0x69f   :  { %5492 = vrot.lane.b32.xlu1 %v5336_v0, %s9106_s21  ;;  %v5923_v42 = vsel %vm3228_vm7, %v5907_v36, %v13325_v53 }
 0x6a0   :  { %v13344_v44 = vpop.permute.xlu0 %5416 }
 0x6a1   :  { %v5605_v11 = vpop.permute.xlu1 %5604 }
 0x6a2   :  { %5746 = vrot.lane.b32.xlu0 %v13347_v3, %s9112_s12 }
 0x6a3   :  { %5744 = vrot.lane.b32.xlu1 %v13309_v49, %s9112_s12 }
 0x6a4   :  { %v5669_v21 = vpop.permute.xlu0 %5668 }
 0x6a5   :  { %v5857_v10 = vpop.permute.xlu1 %5856 }
 0x6a6   :  { %v6021_v34 = vsel %vm6020_vm4, %v6004_v55, %v5857_v10  ;;  %5558 = vrot.lane.b32.xlu0 %v13361_v28, %s9109_s2 }
 0x6a7   :  { %5556 = vrot.lane.b32.xlu1 %v13347_v3, %s9109_s2  ;;  %8654 = vmatprep.mubr.msk.f32.mxu0 %vm6037_vm6, %v6021_v34  ;;  %v5278_v34 = vld [vmem:[#allocation5 + $0x111] sm:$0xff] }
 0x6a8   :  { %v13369_v12 = vpop.permute.xlu0 %5418 }
 0x6a9   :  { %v5607_v9 = vpop.permute.xlu1 %5606 }
 0x6aa   :  { %5810 = vrot.lane.b32.xlu0 %v5274_v57, %s9113_s20 }
 0x6ab   :  { %5808 = vrot.lane.b32.xlu1 %v5273_v60, %s9113_s20  ;;  %v5922_v60 = vsel %vm3228_vm7, %v5906_v14, %v13327_v33 }
 0x6ac   :  { %v5671_v32 = vpop.permute.xlu0 %5670  ;;  %v5938_v18 = vsel %vm3423_vm10, %v5922_v60, %v13335_v17 }
 0x6ad   :  { %v5859_v8 = vpop.permute.xlu1 %5858  ;;  %v5955_v23 = vsel %vm5952_vm15, %v5938_v18, %v5605_v11 }
 0x6ae   :  { %v6022_v35 = vsel %vm6020_vm4, %v6005_v50, %v5859_v8  ;;  %5432 = vrot.lane.b32.xlu0 %v5275_v4, %s9103_s14  ;;  %v5294_v50 = vld [vmem:[#allocation5 + $0x112] sm:$0xff] }
 0x6af   :  { %5620 = vrot.lane.b32.xlu1 %v5274_v57, %s9110_s3  ;;  %8655 = vmatmul.mubr.msk.f32.vlgmr.msra.gmra.mrb[64].mxu0 %vm6037_vm6, %v6022_v35 }
 0x6b0   :  { %v13382_v26 = vpop.permute.xlu0 %5482 }
 0x6b1   :  { %v13384_v46 = vpop.permute.xlu1 %5480 }
 0x6b2   :  { %5684 = vrot.lane.b32.xlu0 %v5290_v58, %s9111_s28 }
 0x6b3   :  { %5872 = vrot.lane.b32.xlu1 %v5336_v0, %s9115_s11  ;;  %v5972_v0 = vsel %vm5969_vm0, %v5955_v23, %v5669_v21 }
 0x6b4   :  { %v5735_v16 = vpop.permute.xlu0 %5734 }
 0x6b5   :  { %v5733_v59 = vpop.permute.xlu1 %5732 }
 0x6b6   :  { %5434 = vrot.lane.b32.xlu0 %v5276_v51, %s9103_s14  ;;  %v5989_v39 = vsel %vm5986_vm1, %v5972_v0, %v5733_v59 }
 0x6b7   :  { %5622 = vrot.lane.b32.xlu1 %v5275_v4, %s9110_s3 }
 0x6b8   :  { %v13390_v6 = vpop.permute.xlu0 %5546 }
 0x6b9   :  { %v13392_v29 = vpop.permute.xlu1 %5544 }
 0x6ba   :  { %5686 = vrot.lane.b32.xlu0 %v5338_v63, %s9111_s28 }
 0x6bb   :  { %5874 = vrot.lane.b32.xlu1 %v5290_v58, %s9115_s11  ;;  %v5939_v58 = vsel %vm3423_vm10, %v5923_v42, %v13333_v43  ;;  %v5277_v43 = vld [vmem:[#allocation5 + $0x101] sm:$0xff] }
 0x6bc   :  { %v5799_v56 = vpop.permute.xlu0 %5798  ;;  %v5956_v13 = vsel %vm5952_vm15, %v5939_v58, %v5607_v9 }
 0x6bd   :  { %v5797_v62 = vpop.permute.xlu1 %5796  ;;  %v5973_v37 = vsel %vm5969_vm0, %v5956_v13, %v5671_v32  ;;  %v5908_v32 = vsel %vm3033_vm2, %v13200_v48, %v13344_v44  ;;  %v5359_v13 = vld [vmem:[#allocation5 + $0x130] sm:$0xff] }
 0x6be   :  { %5498 = vrot.lane.b32.xlu0 %v5292_v27, %s9106_s21  ;;  %v6006_v31 = vsel %vm6003_vm3, %v5989_v39, %v5797_v62  ;;  %v5990_v25 = vsel %vm5986_vm1, %v5973_v37, %v5735_v16  ;;  %v5924_v8 = vsel %vm3228_vm7, %v5908_v32, %v13384_v46  ;;  %v5310_v62 = vld [vmem:[#allocation5 + $0x120] sm:$0xff] }
 0x6bf   :  { %5496 = vrot.lane.b32.xlu1 %v5338_v63, %s9106_s21  ;;  %v6007_v53 = vsel %vm6003_vm3, %v5990_v25, %v5799_v56  ;;  %v5940_v35 = vsel %vm3423_vm10, %v5924_v8, %v13392_v29 }
 0x6c0   :  { %v13405_v19 = vpop.permute.xlu0 %5420 }
 0x6c1   :  { %v5609_v57 = vpop.permute.xlu1 %5608 }
 0x6c2   :  { %5750 = vrot.lane.b32.xlu0 %v13408_v40, %s9112_s12  ;;  %v5957_v59 = vsel %vm5952_vm15, %v5940_v35, %v5609_v57 }
 0x6c3   :  { %5748 = vrot.lane.b32.xlu1 %v13361_v28, %s9112_s12 }
 0x6c4   :  { %v5673_v33 = vpop.permute.xlu0 %5672 }
 0x6c5   :  { %v5861_v17 = vpop.permute.xlu1 %5860 }
 0x6c6   :  { %v6023_v20 = vsel %vm6020_vm4, %v6006_v31, %v5861_v17  ;;  %5562 = vrot.lane.b32.xlu0 %v13418_v38, %s9109_s2  ;;  %v5326_v31 = vld [vmem:[#allocation5 + $0x121] sm:$0xff] }
 0x6c7   :  { %5560 = vrot.lane.b32.xlu1 %v13408_v40, %s9109_s2  ;;  %8657 = vmatprep.mubr.msk.f32.mxu0 %vm6037_vm6, %v6023_v20 }
 0x6c8   :  { %v13432_v7 = vpop.permute.xlu0 %5422 }
 0x6c9   :  { %v5611_v11 = vpop.permute.xlu1 %5610 }
 0x6ca   :  { %5814 = vrot.lane.b32.xlu0 %v5276_v51, %s9113_s20 }
 0x6cb   :  { %5812 = vrot.lane.b32.xlu1 %v5275_v4, %s9113_s20 }
 0x6cc   :  { %v5675_v47 = vpop.permute.xlu0 %5674 }
 0x6cd   :  { %v5863_v22 = vpop.permute.xlu1 %5862 }
 0x6ce   :  { %v6024_v24 = vsel %vm6020_vm4, %v6007_v53, %v5863_v22  ;;  %5436 = vrot.lane.b32.xlu0 %v5277_v43, %s9103_s14  ;;  %v6522_v53 = vld [vmem:[#allocation5 + $0xb1] ss:$2 sm:$0xf]  ;;  %v5910_v22 = vsel %vm3033_vm2, %v13264_v61, %v13405_v19  ;;  %v6538_v61 = vld [vmem:[#allocation5 + $0x12] ss:$2 sm:$0xf] }
 0x6cf   :  { %5624 = vrot.lane.b32.xlu1 %v5276_v51, %s9110_s3  ;;  %8658 = vmatmul.mubr.msk.f32.gmra.mrb[66].mxu0 %vm6037_vm6, %v6024_v24  ;;  %v13470_v51 = vld [vmem:[#allocation5 + $0x110] sm:$0xff] }
 0x6d0   :  { %v13444_v55 = vpop.permute.xlu0 %5486 }
 0x6d1   :  { %v13446_v21 = vpop.permute.xlu1 %5484 }
 0x6d2   :  { %5688 = vrot.lane.b32.xlu0 %v5292_v27, %s9111_s28  ;;  %v5926_v24 = vsel %vm3228_vm7, %v5910_v22, %v13446_v21  ;;  %v6514_v22 = vld [vmem:[#allocation5 + $0x51] ss:$2 sm:$0xf] }
 0x6d3   :  { %5876 = vrot.lane.b32.xlu1 %v5338_v63, %s9115_s11  ;;  %v5974_v63 = vsel %vm5969_vm0, %v5957_v59, %v5673_v33  ;;  %v6526_v59 = vld [vmem:[#allocation5 + $0xd1] ss:$2 sm:$0xf] }
 0x6d4   :  { %v5739_v10 = vpop.permute.xlu0 %5738 }
 0x6d5   :  { %v5737_v45 = vpop.permute.xlu1 %5736 }
 0x6d6   :  { %5438 = vrot.lane.b32.xlu0 %v5278_v34, %s9103_s14  ;;  %v5991_v48 = vsel %vm5986_vm1, %v5974_v63, %v5737_v45  ;;  %v6558_v63 = vld [vmem:[#allocation5 + $0xd2] ss:$2 sm:$0xf] }
 0x6d7   :  { %5626 = vrot.lane.b32.xlu1 %v5277_v43, %s9110_s3 }
 0x6d8   :  { %v13452_v41 = vpop.permute.xlu0 %5550 }
 0x6d9   :  { %v13454_v9 = vpop.permute.xlu1 %5548 }
 0x6da   :  { %5690 = vrot.lane.b32.xlu0 %v5340_v15, %s9111_s28 }
 0x6db   :  { %5878 = vrot.lane.b32.xlu1 %v5292_v27, %s9115_s11  ;;  %v5909_v27 = vsel %vm3033_vm2, %v13258_v30, %v13369_v12 }
 0x6dc   :  { %v5803_v54 = vpop.permute.xlu0 %5802  ;;  %v5925_v14 = vsel %vm3228_vm7, %v5909_v27, %v13382_v26 }
 0x6dd   :  { %v5801_v2 = vpop.permute.xlu1 %5800  ;;  %v5941_v60 = vsel %vm3423_vm10, %v5925_v14, %v13390_v6  ;;  %v6579_v14 = vmax.f32 %v6526_v59, %v6558_v63 }
 0x6de   :  { %5502 = vrot.lane.b32.xlu0 %v5294_v50, %s9106_s21  ;;  %v6008_v44 = vsel %vm6003_vm3, %v5991_v48, %v5801_v2  ;;  %v5958_v23 = vsel %vm5952_vm15, %v5941_v60, %v5611_v11  ;;  %v5342_v11 = vld [vmem:[#allocation5 + $0x122] sm:$0xff]  ;;  %v6506_v2 = vld [vmem:[#allocation5 + $0x11] ss:$2 sm:$0xf] }
 0x6df   :  { %5500 = vrot.lane.b32.xlu1 %v5340_v15, %s9106_s21  ;;  %v5975_v30 = vsel %vm5969_vm0, %v5958_v23, %v5675_v47  ;;  %v6554_v47 = vld [vmem:[#allocation5 + $0xb2] ss:$2 sm:$0xf]  ;;  %v6569_v35 = vmax.f32 %v6506_v2, %v6538_v61  ;;  %v6524_v48 = vld [vmem:[#allocation5 + $0xc1] ss:$2 sm:$0xf] }
 0x6e0   :  { %v13467_v4 = vpop.permute.xlu0 %5424  ;;  %v5992_v12 = vsel %vm5986_vm1, %v5975_v30, %v5739_v10  ;;  %v5942_v10 = vsel %vm3423_vm10, %v5926_v24, %v13454_v9  ;;  %v6510_v23 = vld [vmem:[#allocation5 + $0x31] ss:$2 sm:$0xf]  ;;  %v6508_v30 = vld [vmem:[#allocation5 + $0x21] ss:$2 sm:$0xf] }
 0x6e1   :  { %v5613_v16 = vpop.permute.xlu1 %5612  ;;  %v6009_v26 = vsel %vm6003_vm3, %v5992_v12, %v5803_v54  ;;  %v6540_v12 = vld [vmem:[#allocation5 + $0x22] ss:$2 sm:$0xf]  ;;  %v6546_v24 = vld [vmem:[#allocation5 + $0x52] ss:$2 sm:$0xf] }
 0x6e2   :  { %5754 = vrot.lane.b32.xlu0 %v13470_v51, %s9112_s12  ;;  %v5959_v54 = vsel %vm5952_vm15, %v5942_v10, %v5613_v16  ;;  %v6544_v10 = vld [vmem:[#allocation5 + $0x42] ss:$2 sm:$0xf]  ;;  %v6573_v2 = vmax.f32 %v6514_v22, %v6546_v24 }
 0x6e3   :  { %5752 = vrot.lane.b32.xlu1 %v13418_v38, %s9112_s12 }
 0x6e4   :  { %v5677_v46 = vpop.permute.xlu0 %5676 }
 0x6e5   :  { %v5865_v29 = vpop.permute.xlu1 %5864  ;;  %v5976_v19 = vsel %vm5969_vm0, %v5959_v54, %v5677_v46  ;;  %v5911_v46 = vsel %vm3033_vm2, %v13282_v5, %v13432_v7  ;;  %v6542_v5 = vld [vmem:[#allocation5 + $0x32] ss:$2 sm:$0xf] }
 0x6e6   :  { %v6025_v56 = vsel %vm6020_vm4, %v6008_v44, %v5865_v29  ;;  %5566 = vrot.lane.b32.xlu0 %v5310_v62, %s9109_s2  ;;  %v6556_v44 = vld [vmem:[#allocation5 + $0xc2] ss:$2 sm:$0xf]  ;;  %v5927_v29 = vsel %vm3228_vm7, %v5911_v46, %v13444_v55 }
 0x6e7   :  { %5564 = vrot.lane.b32.xlu1 %v13470_v51, %s9109_s2  ;;  %8660 = vmatprep.mubr.msk.f32.mxu0 %vm6037_vm6, %v6025_v56  ;;  %v5943_v56 = vsel %vm3423_vm10, %v5927_v29, %v13452_v41  ;;  %v6578_v60 = vmax.f32 %v6524_v48, %v6556_v44  ;;  %v6550_v48 = vld [vmem:[#allocation5 + $0x72] ss:$2 sm:$0xf]  ;;  %v6516_v44 = vld [vmem:[#allocation5 + $0x61] ss:$2 sm:$0xf] }
 0x6e8   :  { %v13491_v18 = vpop.permute.xlu0 %5426  ;;  %v6548_v46 = vld [vmem:[#allocation5 + $0x62] ss:$2 sm:$0xf] }
 0x6e9   :  { %v13493_v57 = vpop.permute.xlu1 %5614  ;;  %v5255_v29 = vld [vmem:[#allocation5 + $0xa0] sm:$0xff] }
 0x6ea   :  { %5818 = vrot.lane.b32.xlu0 %v5278_v34, %s9113_s20  ;;  %v5960_v7 = vsel %vm5952_vm15, %v5943_v56, %v13493_v57  ;;  %v6562_v57 = vld [vmem:[#allocation5 + $0xf2] ss:$2 sm:$0xf] }
 0x6eb   :  { %5816 = vrot.lane.b32.xlu1 %v5277_v43, %s9113_s20  ;;  %v5375_v43 = vld [vmem:[#allocation5 + $0x131] sm:$0xff] }
 0x6ec   :  { %v13501_v0 = vpop.permute.xlu0 %5678 }
 0x6ed   :  { %v5867_v39 = vpop.permute.xlu1 %5866  ;;  %v5977_v55 = vsel %vm5969_vm0, %v5960_v7, %v13501_v0  ;;  %v6568_v7 = vld [vmem:[#allocation5 + $0x122] ss:$2 sm:$0xf] }
 0x6ee   :  { %v6026_v6 = vsel %vm6020_vm4, %v6009_v26, %v5867_v39  ;;  %5630 = vrot.lane.b32.xlu0 %v5326_v31, %s9110_s3 }
 0x6ef   :  { %5628 = vrot.lane.b32.xlu1 %v5278_v34, %s9110_s3  ;;  %8661 = vmatmul.mubr.msk.f32.gmra.mrb[68].mxu0 %vm6037_vm6, %v6026_v6 }
 0x6f0   :  { %v13507_v33 = vpop.permute.xlu0 %5490 }
 0x6f1   :  { %v13509_v17 = vpop.permute.xlu1 %5488 }
 0x6f2   :  { %5882 = vrot.lane.b32.xlu0 %v5294_v50, %s9115_s11 }
 0x6f3   :  { %5880 = vrot.lane.b32.xlu1 %v5340_v15, %s9115_s11  ;;  %v6577_v15 = vmax.f32 %v6522_v53, %v6554_v47  ;;  %v6560_v53 = vld [vmem:[#allocation5 + $0xe2] ss:$2 sm:$0xf] }
 0x6f4   :  { %v5743_v20 = vpop.permute.xlu0 %5742 }
 0x6f5   :  { %v5741_v36 = vpop.permute.xlu1 %5740  ;;  %v5994_v41 = vsel %vm5986_vm1, %v5977_v55, %v5743_v20 }
 0x6f6   :  { %5756 = vrot.lane.b32.xlu0 %v5310_v62, %s9112_s12  ;;  %v5993_v21 = vsel %vm5986_vm1, %v5976_v19, %v5741_v36  ;;  %v6570_v36 = vmax.f32 %v6508_v30, %v6540_v12  ;;  %v6534_v19 = vld [vmem:[#allocation5 + $0x111] ss:$2 sm:$0xf]  ;;  %v5912_v30 = vsel %vm3033_vm2, %v5255_v29, %v13467_v4 }
 0x6f7   :  { %5692 = vrot.lane.b32.xlu1 %v5294_v50, %s9111_s28  ;;  %v5391_v50 = vld [vmem:[#allocation5 + $0x132] sm:$0xff]  ;;  %v5928_v12 = vsel %vm3228_vm7, %v5912_v30, %v13509_v17 }
 0x6f8   :  { %v13515_v42 = vpop.permute.xlu0 %5554 }
 0x6f9   :  { %v13517_v58 = vpop.permute.xlu1 %5552 }
 0x6fa   :  { %5820 = vrot.lane.b32.xlu0 %v5326_v31, %s9113_s20  ;;  %v6571_v31 = vmax.f32 %v6510_v23, %v6542_v5  ;;  %v6574_v23 = vmax.f32 %v6516_v44, %v6548_v46  ;;  %v6536_v5 = vld [vmem:[#allocation5 + $0x121] ss:$2 sm:$0xf]  ;;  %v5944_v55 = vsel %vm3423_vm10, %v5928_v12, %v13517_v58 }
 0x6fb   :  { %5694 = vrot.lane.b32.xlu1 %v5342_v11, %s9111_s28 }
 0x6fc   :  { %v5807_v37 = vpop.permute.xlu0 %5806 }
 0x6fd   :  { %v5805_v25 = vpop.permute.xlu1 %5804  ;;  %v6011_v26 = vsel %vm6003_vm3, %v5994_v41, %v5807_v37 }
 0x6fe   :  { %5884 = vrot.lane.b32.xlu0 %v5342_v11, %s9115_s11  ;;  %v6010_v9 = vsel %vm6003_vm3, %v5993_v21, %v5805_v25  ;;  %v6530_v11 = vld [vmem:[#allocation5 + $0xf1] ss:$2 sm:$0xf]  ;;  %v6528_v25 = vld [vmem:[#allocation5 + $0xe1] ss:$2 sm:$0xf] }
 0x6ff   :  { %5758 = vrot.lane.b32.xlu1 %v5359_v13, %s9112_s12  ;;  %v6581_v37 = vmax.f32 %v6530_v11, %v6562_v57  ;;  %v6580_v47 = vmax.f32 %v6528_v25, %v6560_v53  ;;  %v6566_v21 = vld [vmem:[#allocation5 + $0x112] ss:$2 sm:$0xf]  ;;  %v6552_v11 = vld [vmem:[#allocation5 + $0x82] ss:$2 sm:$0xf] }
 0x700   :  { %v13530_v45 = vpop.permute.xlu0 %5428  ;;  %v6583_v59 = vmax.f32 %v6534_v19, %v6566_v21 }
 0x701   :  { %v13532_v34 = vpop.permute.xlu1 %5616 }
 0x702   :  { %6617 = vrot.lane.b32.xlu0 %v6577_v15, %s9104_s15 }
 0x703   :  { %5822 = vrot.lane.b32.xlu1 %v5375_v43, %s9113_s20  ;;  %v6512_v43 = vld [vmem:[#allocation5 + $0x41] ss:$2 sm:$0xf] }
 0x704   :  { %v13540_v32 = vpop.permute.xlu0 %5680  ;;  %v6572_v61 = vmax.f32 %v6512_v43, %v6544_v10 }
 0x705   :  { %v5869_v8 = vpop.permute.xlu1 %5868 }
 0x706   :  { %v6027_v16 = vsel %vm6020_vm4, %v6010_v9, %v5869_v8  ;;  %6601 = vrot.lane.b32.xlu0 %v6569_v35, %s9104_s15  ;;  %v6564_v9 = vld [vmem:[#allocation5 + $0x102] ss:$2 sm:$0xf] }
 0x707   :  { %5886 = vrot.lane.b32.xlu1 %v5391_v50, %s9115_s11  ;;  %8663 = vmatprep.mubr.msk.f32.mxu0 %vm6037_vm6, %v6027_v16  ;;  %v6532_v50 = vld [vmem:[#allocation5 + $0x101] ss:$2 sm:$0xf]  ;;  %v6518_v16 = vld [vmem:[#allocation5 + $0x71] ss:$2 sm:$0xf] }
 0x708   :  { %v13553_v62 = vpop.permute.xlu0 %5430  ;;  %v6582_v63 = vmax.f32 %v6532_v50, %v6564_v9 }
 0x709   :  { %v13555_v27 = vpop.permute.xlu1 %5618 }
 0x70a   :  { %6621 = vrot.lane.b32.xlu0 %v6579_v14, %s9104_s15 }
 0x70b   :  { %6619 = vrot.lane.b32.xlu1 %v6578_v60, %s9104_s15  ;;  %v6575_v60 = vmax.f32 %v6518_v16, %v6550_v48 }
 0x70c   :  { %v13565_v39 = vpop.permute.xlu0 %5682 }
 0x70d   :  { %v5871_v6 = vpop.permute.xlu1 %5870 }
 0x70e   :  { %v6028_v13 = vsel %vm6020_vm4, %v6011_v26, %v5871_v6  ;;  %6605 = vrot.lane.b32.xlu0 %v6571_v31, %s9104_s15  ;;  %v6584_v6 = vmax.f32 %v6536_v5, %v6568_v7  ;;  %v5961_v31 = vsel %vm5952_vm15, %v5944_v55, %v13532_v34  ;;  %v5913_v34 = vsel %vm3033_vm2, %v13311_v1, %v13491_v18 }
 0x70f   :  { %6603 = vrot.lane.b32.xlu1 %v6570_v36, %s9104_s15  ;;  %8664 = vmatmul.mubr.msk.f32.gmra.mrb[70].mxu0 %vm6037_vm6, %v6028_v13  ;;  %v6520_v36 = vld [vmem:[#allocation5 + $0x81] ss:$2 sm:$0xf]  ;;  %v5978_v4 = vsel %vm5969_vm0, %v5961_v31, %v13540_v32  ;;  %v5929_v32 = vsel %vm3228_vm7, %v5913_v34, %v13507_v33 }
 0x710   :  { %v13571_v0 = vpop.permute.xlu0 %5494  ;;  %v6576_v25 = vmax.f32 %v6520_v36, %v6552_v11 }
 0x711   :  { %v13573_v20 = vpop.permute.xlu1 %5492 }
 0x712   :  { %6625 = vrot.lane.b32.xlu0 %v6581_v37, %s9104_s15  ;;  %v5945_v37 = vsel %vm3423_vm10, %v5929_v32, %v13515_v42 }
 0x713   :  { %6623 = vrot.lane.b32.xlu1 %v6580_v47, %s9104_s15  ;;  %v5962_v24 = vsel %vm5952_vm15, %v5945_v37, %v13555_v27 }
 0x714   :  { %v5747_v15 = vpop.permute.xlu0 %5746  ;;  %v5979_v43 = vsel %vm5969_vm0, %v5962_v24, %v13565_v39  ;;  %v5914_v39 = vsel %vm3033_vm2, %v13309_v49, %v13530_v45  ;;  %v5915_v49 = vsel %vm3033_vm2, %v13347_v3, %v13553_v62 }
 0x715   :  { %v5745_v54 = vpop.permute.xlu1 %5744  ;;  %v5996_v1 = vsel %vm5986_vm1, %v5979_v43, %v5747_v15  ;;  %v5930_v15 = vsel %vm3228_vm7, %v5914_v39, %v13573_v20  ;;  %v5931_v45 = vsel %vm3228_vm7, %v5915_v49, %v13571_v0 }
 0x716   :  { %6609 = vrot.lane.b32.xlu0 %v6573_v2, %s9104_s15  ;;  %v5995_v57 = vsel %vm5986_vm1, %v5978_v4, %v5745_v54 }
 0x717   :  { %6607 = vrot.lane.b32.xlu1 %v6572_v61, %s9104_s15 }
 0x718   :  { %v13579_v8 = vpop.permute.xlu0 %5558 }
 0x719   :  { %v5557_v35 = vpop.permute.xlu1 %5556  ;;  %v5947_v20 = vsel %vm3423_vm10, %v5931_v45, %v13579_v8 }
 0x71a   :  { %6629 = vrot.lane.b32.xlu0 %v6583_v59, %s9104_s15  ;;  %v5946_v59 = vsel %vm3423_vm10, %v5930_v15, %v5557_v35 }
 0x71b   :  { %6627 = vrot.lane.b32.xlu1 %v6582_v63, %s9104_s15 }
 0x71c   :  { %v5811_v56 = vpop.permute.xlu0 %5810 }
 0x71d   :  { %v5809_v14 = vpop.permute.xlu1 %5808  ;;  %v6013_v18 = vsel %vm6003_vm3, %v5996_v1, %v5811_v56 }
 0x71e   :  { %6613 = vrot.lane.b32.xlu0 %v6575_v60, %s9104_s15  ;;  %v6012_v17 = vsel %vm6003_vm3, %v5995_v57, %v5809_v14 }
 0x71f   :  { %6611 = vrot.lane.b32.xlu1 %v6574_v23, %s9104_s15 }
 0x720   :  { %v13591_v41 = vpop.permute.xlu0 %5432 }
 0x721   :  { %v5621_v26 = vpop.permute.xlu1 %5620  ;;  %v5916_v57 = vsel %vm3033_vm2, %v13361_v28, %v13591_v41 }
 0x722   :  { %v5963_v48 = vsel %vm5952_vm15, %v5946_v59, %v5621_v26 }
 0x723   :  { %6631 = vrot.lane.b32.xlu1 %v6584_v6, %s9104_s15 }
 0x724   :  { %v5685_v13 = vpop.permute.xlu0 %5684 }
 0x725   :  { %v5873_v58 = vpop.permute.xlu1 %5872  ;;  %v5980_v44 = vsel %vm5969_vm0, %v5963_v48, %v5685_v13 }
 0x726   :  { %v6029_v53 = vsel %vm6020_vm4, %v6012_v17, %v5873_v58 }
 0x727   :  { %6615 = vrot.lane.b32.xlu1 %v6576_v25, %s9104_s15  ;;  %8666 = vmatprep.mubr.msk.f32.mxu0 %vm6037_vm6, %v6029_v53 }
 0x728   :  { %v5435_v47 = vpop.permute.xlu0 %5434 }
 0x729   :  { %v5623_v22 = vpop.permute.xlu1 %5622  ;;  %v5917_v17 = vsel %vm3033_vm2, %v13408_v40, %v5435_v47 }
 0x72a   :  { %v5964_v5 = vsel %vm5952_vm15, %v5947_v20, %v5623_v22 }
 0x72c   :  { %v5687_v10 = vpop.permute.xlu0 %5686 }
 0x72d   :  { %v5875_v54 = vpop.permute.xlu1 %5874  ;;  %v5981_v7 = vsel %vm5969_vm0, %v5964_v5, %v5687_v10 }
 0x72e   :  { %v6030_v2 = vsel %vm6020_vm4, %v6013_v18, %v5875_v54 }
 0x72f   :  { %8667 = vmatmul.mubr.msk.f32.gmra.mrb[72].mxu0 %vm6037_vm6, %v6030_v2 }
 0x730   :  { %v5499_v33 = vpop.permute.xlu0 %5498 }
 0x731   :  { %v5497_v42 = vpop.permute.xlu1 %5496  ;;  %v5933_v13 = vsel %vm3228_vm7, %v5917_v17, %v5499_v33 }
 0x732   :  { %v5932_v58 = vsel %vm3228_vm7, %v5916_v57, %v5497_v42 }
 0x734   :  { %v5751_v61 = vpop.permute.xlu0 %5750 }
 0x735   :  { %v5749_v19 = vpop.permute.xlu1 %5748  ;;  %v5998_v30 = vsel %vm5986_vm1, %v5981_v7, %v5751_v61 }
 0x736   :  { %v5997_v46 = vsel %vm5986_vm1, %v5980_v44, %v5749_v19 }
 0x738   :  { %v5563_v21 = vpop.permute.xlu0 %5562 }
 0x739   :  { %v5561_v50 = vpop.permute.xlu1 %5560  ;;  %v5949_v25 = vsel %vm3423_vm10, %v5933_v13, %v5563_v21 }
 0x73a   :  { %v5948_v53 = vsel %vm3423_vm10, %v5932_v58, %v5561_v50 }
 0x73c   :  { %v5815_v27 = vpop.permute.xlu0 %5814 }
 0x73d   :  { %v5813_v9 = vpop.permute.xlu1 %5812  ;;  %v6015_v12 = vsel %vm6003_vm3, %v5998_v30, %v5815_v27 }
 0x73e   :  { %v6014_v29 = vsel %vm6003_vm3, %v5997_v46, %v5813_v9 }
 0x740   :  { %v5437_v63 = vpop.permute.xlu0 %5436 }
 0x741   :  { %v5625_v16 = vpop.permute.xlu1 %5624  ;;  %v5918_v2 = vsel %vm3033_vm2, %v13418_v38, %v5437_v63 }
 0x742   :  { %v5965_v37 = vsel %vm5952_vm15, %v5948_v53, %v5625_v16 }
 0x744   :  { %v5689_v56 = vpop.permute.xlu0 %5688 }
 0x745   :  { %v5877_v14 = vpop.permute.xlu1 %5876  ;;  %v5982_v24 = vsel %vm5969_vm0, %v5965_v37, %v5689_v56 }
 0x746   :  { %v6031_v60 = vsel %vm6020_vm4, %v6014_v29, %v5877_v14 }
 0x747   :  { %8669 = vmatprep.mubr.msk.f32.mxu0 %vm6037_vm6, %v6031_v60 }
 0x748   :  { %v5439_v35 = vpop.permute.xlu0 %5438 }
 0x749   :  { %v5627_v23 = vpop.permute.xlu1 %5626  ;;  %v5919_v63 = vsel %vm3033_vm2, %v13470_v51, %v5439_v35  ;;  %vm9117_vm2 = vmmov 0  }
 0x74a   :  { %v5966_v22 = vsel %vm5952_vm15, %v5949_v25, %v5627_v23 }
 0x74c   :  { %v5691_v55 = vpop.permute.xlu0 %5690 }
 0x74d   :  { %v5879_v3 = vpop.permute.xlu1 %5878  ;;  %v5983_v28 = vsel %vm5969_vm0, %v5966_v22, %v5691_v55 }
 0x74e   :  { %v6032_v62 = vsel %vm6020_vm4, %v6015_v12, %v5879_v3 }
 0x74f   :  { %8670 = vmatmul.mubr.msk.f32.gmra.mrb[74].mxu0 %vm6037_vm6, %v6032_v62 }
 0x750   :  { %v5503_v0 = vpop.permute.xlu0 %5502 }
 0x751   :  { %v5501_v26 = vpop.permute.xlu1 %5500  ;;  %v5935_v48 = vsel %vm3228_vm7, %v5919_v63, %v5503_v0 }
 0x752   :  { %v5934_v61 = vsel %vm3228_vm7, %v5918_v2, %v5501_v26  ;;  %vm6488_vm7 = vcmask 125952  }
 0x754   :  { %v5755_v6 = vpop.permute.xlu0 %5754 }
 0x755   :  { %v5753_v8 = vpop.permute.xlu1 %5752  ;;  %v6000_v40 = vsel %vm5986_vm1, %v5983_v28, %v5755_v6 }
 0x756   :  { %v5999_v41 = vsel %vm5986_vm1, %v5982_v24, %v5753_v8 }
 0x758   :  { %v5567_v31 = vpop.permute.xlu0 %5566 }
 0x759   :  { %v5565_v36 = vpop.permute.xlu1 %5564  ;;  %v5951_v44 = vsel %vm3423_vm10, %v5935_v48, %v5567_v31 }
 0x75a   :  { %v5950_v19 = vsel %vm3423_vm10, %v5934_v61, %v5565_v36  ;;  %vm8042_vm10 = vcmask 41984  }
 0x75c   :  { %v5819_v11 = vpop.permute.xlu0 %5818 }
 0x75d   :  { %v5817_v4 = vpop.permute.xlu1 %5816  ;;  %v6017_v47 = vsel %vm6003_vm3, %v6000_v40, %v5819_v11 }
 0x75e   :  { %v6016_v43 = vsel %vm6003_vm3, %v5999_v41, %v5817_v4 }
 0x760   :  { %v5631_v34 = vpop.permute.xlu0 %5630 }
 0x761   :  { %v5629_v32 = vpop.permute.xlu1 %5628  ;;  %v5968_v29 = vsel %vm5952_vm15, %v5951_v44, %v5631_v34 }
 0x762   :  { %v5967_v21 = vsel %vm5952_vm15, %v5950_v19, %v5629_v32 }
 0x764   :  { %v5883_v1 = vpop.permute.xlu0 %5882 }
 0x765   :  { %v5881_v18 = vpop.permute.xlu1 %5880  ;;  %v6034_v10 = vsel %vm6020_vm4, %v6017_v47, %v5883_v1 }
 0x766   :  { %v6033_v54 = vsel %vm6020_vm4, %v6016_v43, %v5881_v18 }
 0x767   :  { %8672 = vmatprep.mubr.msk.f32.mxu1 %vm6037_vm6, %v6033_v54 }
 0x768   :  { %8673 = vmatmul.mubr.msk.f32.vlgmr.msra.gmra.mrb[0].mxu1 %vm6037_vm6, %v6034_v10  ;;  %v5757_v33 = vpop.permute.xlu0 %5756 }
 0x769   :  { %v5693_v42 = vpop.permute.xlu1 %5692 }
 0x76a   :  { %v5984_v50 = vsel %vm5969_vm0, %v5967_v21, %v5693_v42 }
 0x76b   :  { %v6001_v39 = vsel %vm5986_vm1, %v5984_v50, %v5757_v33 }
 0x76c   :  { %v5821_v27 = vpop.permute.xlu0 %5820 }
 0x76d   :  { %v5695_v9 = vpop.permute.xlu1 %5694  ;;  %v6018_v15 = vsel %vm6003_vm3, %v6001_v39, %v5821_v27 }
 0x76e   :  { %v5985_v56 = vsel %vm5969_vm0, %v5968_v29, %v5695_v9 }
 0x770   :  { %v5885_v59 = vpop.permute.xlu0 %5884 }
 0x771   :  { %v5759_v16 = vpop.permute.xlu1 %5758  ;;  %v6035_v38 = vsel %vm6020_vm4, %v6018_v15, %v5885_v59 }
 0x772   :  { %8675 = vmatprep.mubr.msk.f32.mxu1 %vm6037_vm6, %v6035_v38  ;;  %v6002_v14 = vsel %vm5986_vm1, %v5985_v56, %v5759_v16  ;;  %v6698_v56 = vld [vmem:[%s14264_s7] sm:$0xff] }
 0x775   :  { %v5823_v46 = vpop.permute.xlu1 %5822 }
 0x776   :  { %v6019_v60 = vsel %vm6003_vm3, %v6002_v14, %v5823_v46  ;;  %v6699_v14 = vld [vmem:[%s14264_s7 + $0x8] sm:$0xff] }
 0x779   :  { %v5887_v49 = vpop.permute.xlu1 %5886 }
 0x77a   :  { %v6036_v45 = vsel %vm6020_vm4, %v6019_v60, %v5887_v49  ;;  %v6700_v60 = vld [vmem:[%s14264_s7 + $0x10] sm:$0xff]  ;;  %v9116_v49 = vmov 0.0|0.0  }
 0x77b   :  { %8676 = vmatmul.mubr.msk.f32.gmra.mrb[2].mxu1 %vm6037_vm6, %v6036_v45  ;;  %8892 = vmatprep.subr.bf16.mxu1 %v9116_v49  ;;  %v8893_v45 = vpack.c.bf16 %v6699_v14, %v6698_v56 }
 0x77d   :  { %8894 = vmatpush3.bf16.msra.mxu1 %v8893_v45 }
 0x77e   :  { %8895 = vmatprep.subr.bf16.mxu1 %v9116_v49 }
 0x782   :  { %v13684_v51 = vpop.f32.mrb[64].mxu0 }
 0x783   :  { %v6235_v20 = vsel %vm3098_vm5, %v13684_v51, 0.0  ;;  %v6272_v35 = vmul.f32 %v13684_v51, %v13684_v51  ;;  %v13690_v23 = vpop.f32.mrb[65].mxu0 }
 0x784   :  { %v6234_v5 = vsel %vm3098_vm5, %v13690_v23, 0.0  ;;  %v6271_v7 = vmul.f32 %v13690_v23, %v13690_v23 }
 0x785   :  { %v6288_v30 = vsel %vm3098_vm5, %v6272_v35, 0.0  ;;  %v6236_v12 = vadd.f32 %v6235_v20, %v6234_v5  ;;  %v6701_v20 = vld [vmem:[%s14264_s7 + $0x18] sm:$0xf]  ;;  %v14406_v35 = vmov 0.0  }
 0x786   :  { %v6287_v55 = vsel %vm3098_vm5, %v6271_v7, 0.0  ;;  %8686 = vmatprep.mubr.msk.f32.mxu1 %vm9117_vm2, %v14406_v35  ;;  %v8896_v5 = vpack.c.bf16 %v6701_v20, %v6700_v60 }
 0x787   :  { %v6289_v3 = vadd.f32 %v6288_v30, %v6287_v55 }
 0x788   :  { %8898 = vmatpush3.bf16.msk.msra.mxu1 %vm13235_vm14, %v8896_v5 }
 0x789   :  { %8899 = vmatprep.subr.bf16.mxu1 %v9116_v49 }
 0x7a2   :  { %v13698_v62 = vpop.f32.mrb[66].mxu0 }
 0x7a3   :  { %v13700_v0 = vpop.f32.mrb[67].mxu0  ;;  %v6274_v26 = vmul.f32 %v13698_v62, %v13698_v62  ;;  %v6239_v36 = vsel %vm3098_vm5, %v13698_v62, 0.0 }
 0x7a4   :  { %v6237_v6 = vsel %vm3098_vm5, %v13700_v0, 0.0  ;;  %v6273_v8 = vmul.f32 %v13700_v0, %v13700_v0 }
 0x7a5   :  { %v6238_v31 = vadd.f32 %v6237_v6, %v6236_v12  ;;  %v6292_v17 = vsel %vm3098_vm5, %v6274_v26, 0.0 }
 0x7a6   :  { %v6290_v11 = vsel %vm3098_vm5, %v6273_v8, 0.0 }
 0x7a7   :  { %v6291_v4 = vadd.f32 %v6290_v11, %v6289_v3  ;;  %v6240_v57 = vadd.f32 %v6239_v36, %v6238_v31 }
 0x7a9   :  { %v6293_v13 = vadd.f32 %v6292_v17, %v6291_v4 }
 0x7c2   :  { %v13712_v58 = vpop.f32.mrb[68].mxu0 }
 0x7c3   :  { %v13714_v25 = vpop.f32.mrb[69].mxu0  ;;  %v6276_v53 = vmul.f32 %v13712_v58, %v13712_v58  ;;  %v6243_v22 = vsel %vm3098_vm5, %v13712_v58, 0.0 }
 0x7c4   :  { %v6241_v34 = vsel %vm3098_vm5, %v13714_v25, 0.0  ;;  %v6275_v32 = vmul.f32 %v13714_v25, %v13714_v25 }
 0x7c5   :  { %v6242_v37 = vadd.f32 %v6241_v34, %v6240_v57  ;;  %v6296_v41 = vsel %vm3098_vm5, %v6276_v53, 0.0 }
 0x7c6   :  { %v6294_v24 = vsel %vm3098_vm5, %v6275_v32, 0.0 }
 0x7c7   :  { %v6295_v28 = vadd.f32 %v6294_v24, %v6293_v13  ;;  %v6244_v40 = vadd.f32 %v6243_v22, %v6242_v37 }
 0x7c9   :  { %v6297_v47 = vadd.f32 %v6296_v41, %v6295_v28 }
 0x7e2   :  { %v13726_v43 = vpop.f32.mrb[70].mxu0 }
 0x7e3   :  { %v13728_v1 = vpop.f32.mrb[71].mxu0  ;;  %v6278_v18 = vmul.f32 %v13726_v43, %v13726_v43  ;;  %v6247_v33 = vsel %vm3098_vm5, %v13726_v43, 0.0 }
 0x7e4   :  { %v6245_v10 = vsel %vm3098_vm5, %v13728_v1, 0.0  ;;  %v6277_v54 = vmul.f32 %v13728_v1, %v13728_v1 }
 0x7e5   :  { %v6246_v2 = vadd.f32 %v6245_v10, %v6244_v40  ;;  %v6300_v21 = vsel %vm3098_vm5, %v6278_v18, 0.0 }
 0x7e6   :  { %v6298_v42 = vsel %vm3098_vm5, %v6277_v54, 0.0 }
 0x7e7   :  { %v6299_v61 = vadd.f32 %v6298_v42, %v6297_v47  ;;  %v6248_v19 = vadd.f32 %v6247_v33, %v6246_v2 }
 0x7e9   :  { %v6301_v50 = vadd.f32 %v6300_v21, %v6299_v61 }
 0x802   :  { %v13740_v27 = vpop.f32.mrb[72].mxu0 }
 0x803   :  { %v13742_v9 = vpop.f32.mrb[73].mxu0  ;;  %v6280_v39 = vmul.f32 %v13740_v27, %v13740_v27  ;;  %v6251_v38 = vsel %vm3098_vm5, %v13740_v27, 0.0 }
 0x804   :  { %v6249_v15 = vsel %vm3098_vm5, %v13742_v9, 0.0  ;;  %v6279_v59 = vmul.f32 %v13742_v9, %v13742_v9 }
 0x805   :  { %v6250_v16 = vadd.f32 %v6249_v15, %v6248_v19  ;;  %v6304_v46 = vsel %vm3098_vm5, %v6280_v39, 0.0 }
 0x806   :  { %v6302_v63 = vsel %vm3098_vm5, %v6279_v59, 0.0 }
 0x807   :  { %v6303_v48 = vadd.f32 %v6302_v63, %v6301_v50  ;;  %v6252_v44 = vadd.f32 %v6251_v38, %v6250_v16 }
 0x809   :  { %v6305_v29 = vadd.f32 %v6304_v46, %v6303_v48 }
 0x822   :  { %v13773_v7 = vpop.f32.mrb[74].mxu0 }
 0x823   :  { %v13775_v30 = vpop.f32.mrb[75].mxu0  ;;  %v6282_v12 = vmul.f32 %v13773_v7, %v13773_v7  ;;  %v6255_v6 = vsel %vm3098_vm5, %v13773_v7, 0.0 }
 0x824   :  { %v6253_v55 = vsel %vm3098_vm5, %v13775_v30, 0.0  ;;  %v6281_v3 = vmul.f32 %v13775_v30, %v13775_v30 }
 0x825   :  { %v6254_v26 = vadd.f32 %v6253_v55, %v6252_v44  ;;  %v6308_v11 = vsel %vm3098_vm5, %v6282_v12, 0.0  ;;  %v13810_v55 = vpop.permute.xlu0 %6617 }
 0x826   :  { %v6306_v8 = vsel %vm3098_vm5, %v6281_v3, 0.0 }
 0x827   :  { %v6256_v31 = vadd.f32 %v6255_v6, %v6254_v26  ;;  %v6307_v36 = vadd.f32 %v6306_v8, %v6305_v29  ;;  %v13814_v6 = vpop.permute.xlu1 %6619  ;;  %v5187_v8 = vld [vmem:[%s14262_s5] sm:$0x1] }
 0x829   :  { %v6309_v4 = vadd.f32 %v6308_v11, %v6307_v36  ;;  %v13812_v26 = vpop.permute.xlu0 %6601 }
 0x83b   :  { %v13787_v57 = vpop.f32.mrb[0].mxu1 }
 0x83c   :  { %v13789_v17 = vpop.f32.mrb[1].mxu1  ;;  %v6284_v13 = vmul.f32 %v13787_v57, %v13787_v57  ;;  %v6259_v37 = vsel %vm3098_vm5, %v13787_v57, 0.0 }
 0x83d   :  { %v6257_v53 = vsel %vm3098_vm5, %v13789_v17, 0.0  ;;  %v6283_v34 = vmul.f32 %v13789_v17, %v13789_v17 }
 0x83e   :  { %v6258_v32 = vadd.f32 %v6257_v53, %v6256_v31  ;;  %v6312_v40 = vsel %vm3098_vm5, %v6284_v13, 0.0  ;;  %v13819_v31 = vpop.permute.xlu0 %6621  ;;  %v14407_v53 = vld [vmem:[#allocation35_spill] sm:$0xff] }
 0x83f   :  { %v6310_v22 = vsel %vm3098_vm5, %v6283_v34, 0.0 }
 0x840   :  { %v6311_v24 = vadd.f32 %v6310_v22, %v6309_v4  ;;  %v6260_v28 = vadd.f32 %v6259_v37, %v6258_v32  ;;  %v5188_v4 = vld [vmem:[%s14263_s6] sm:$0x1]  ;;  %v13825_v32 = vpop.permute.xlu1 %6603 }
 0x842   :  { %v6313_v41 = vadd.f32 %v6312_v40, %v6311_v24  ;;  %v13827_v37 = vpop.permute.xlu0 %6605 }
 0x84e   :  { %v13801_v47 = vpop.f32.mrb[2].mxu1 }
 0x84f   :  { %v6225_v18 = vpop.f32.mrb[3].mxu1  ;;  %v6286_v10 = vmul.f32 %v13801_v47, %v13801_v47  ;;  %v6263_v42 = vsel %vm3098_vm5, %v13801_v47, 0.0 }
 0x850   :  { %v6261_v54 = vsel %vm3098_vm5, %v6225_v18, 0.0  ;;  %v6285_v2 = vmul.f32 %v6225_v18, %v6225_v18 }
 0x851   :  { %v6262_v33 = vadd.f32 %v6261_v54, %v6260_v28  ;;  %v6316_v50 = vsel %vm3098_vm5, %v6286_v10, 0.0 }
 0x852   :  { %v6314_v61 = vsel %vm3098_vm5, %v6285_v2, 0.0 }
 0x853   :  { %v6264_v19 = vadd.f32 %v6263_v42, %v6262_v33  ;;  %v6315_v21 = vadd.f32 %v6314_v61, %v6313_v41 }
 0x855   :  { %v6265_v39 = vrot.slane %v6264_v19, 4  ;;  %v6317_v15 = vadd.f32 %v6316_v50, %v6315_v21  ;;  %v13843_v50 = vpop.permute.xlu1 %6623 }
 0x857   :  { %v6266_v59 = vadd.f32 %v6265_v39, %v6264_v19  ;;  %v6318_v16 = vrot.slane %v6317_v15, 4 }
 0x859   :  { %v6267_v38 = vrot.slane %v6266_v59, 2  ;;  %v6319_v63 = vadd.f32 %v6318_v16, %v6317_v15 }
 0x85b   :  { %v6268_v48 = vadd.f32 %v6267_v38, %v6266_v59  ;;  %v6320_v44 = vrot.slane %v6319_v63, 2  ;;  %v13845_v59 = vpop.permute.xlu0 %6625 }
 0x85d   :  { %v6269_v46 = vrot.slane %v6268_v48, 1  ;;  %v6321_v29 = vadd.f32 %v6320_v44, %v6319_v63 }
 0x85f   :  { %v6270_v56 = vadd.f32 %v6269_v46, %v6268_v48  ;;  %v6322_v14 = vrot.slane %v6321_v29, 1 }
 0x861   :  { %v6323_v60 = vadd.f32 %v6322_v14, %v6321_v29  ;;  %v6324_v45 = vmul.f32 0.0078125, %v6270_v56 }
 0x863   :  { %v6325_v20 = vmul.f32 0.0078125, %v6323_v60  ;;  %v6326_v5 = vmul.f32 %v6324_v45, %v6324_v45 }
 0x865   :  { %v6327_v12 = vsub.f32 %v6325_v20, %v6326_v5 }
 0x867   :  { %v6328_v3 = vadd.f32 1e-05, %v6327_v12 }
 0x869   :  { %9070 = vrsqrt.f32 %v6328_v3 }
 0x873   :  { %v9071_v36 = vpop.eup %9070 }
 0x874   :  { %v6330_v11 = vmul.f32 %v9071_v36, %v5187_v8  ;;  %v13857_v8 = vpop.permute.xlu1 %6607 }
 0x876   :  { %v6331_v13 = vmul.f32 %v6330_v11, %v6324_v45  ;;  %v6337_v34 = vrot.slane %v6330_v11, %v14407_v53 }
 0x878   :  { %v6332_v22 = vsub.f32 %v5188_v4, %v6331_v13  ;;  %v6353_v24 = vmul.f32 %v6337_v34, %v6225_v18  ;;  %v6339_v28 = vmul.f32 %v6337_v34, %v13690_v23  ;;  %v6340_v40 = vmul.f32 %v13684_v51, %v6337_v34  ;;  %v13860_v13 = vpop.permute.xlu0 %6609 }
 0x879   :  { %v6347_v41 = vmul.f32 %v6337_v34, %v13742_v9  ;;  %v6348_v10 = vmul.f32 %v13740_v27, %v6337_v34  ;;  %v6341_v54 = vmul.f32 %v6337_v34, %v13700_v0  ;;  %v6342_v2 = vmul.f32 %v13698_v62, %v6337_v34 }
 0x87a   :  { %v6359_v33 = vrot.slane %v6332_v22, %v14407_v53  ;;  %v6349_v42 = vmul.f32 %v6337_v34, %v13775_v30  ;;  %v6350_v61 = vmul.f32 %v13773_v7, %v6337_v34  ;;  %v6343_v18 = vmul.f32 %v6337_v34, %v13714_v25 }
 0x87b   :  { %v6344_v23 = vmul.f32 %v13712_v58, %v6337_v34  ;;  %v6351_v51 = vmul.f32 %v6337_v34, %v13789_v17  ;;  %v6352_v9 = vmul.f32 %v13787_v57, %v6337_v34  ;;  %v6345_v27 = vmul.f32 %v6337_v34, %v13728_v1 }
 0x87c   :  { %v6375_v19 = vadd.f32 %v6359_v33, %v6353_v24  ;;  %v6361_v0 = vadd.f32 %v6359_v33, %v6339_v28  ;;  %v6362_v21 = vadd.f32 %v6359_v33, %v6340_v40  ;;  %v6369_v62 = vadd.f32 %v6359_v33, %v6347_v41  ;;  %v13869_v41 = vpop.permute.xlu1 %6627 }
 0x87d   :  { %v6370_v39 = vadd.f32 %v6359_v33, %v6348_v10  ;;  %v6363_v30 = vadd.f32 %v6359_v33, %v6341_v54  ;;  %v6364_v15 = vadd.f32 %v6359_v33, %v6342_v2  ;;  %v6371_v7 = vadd.f32 %v6359_v33, %v6349_v42  ;;  %v6630_v2 = vpop.permute.xlu0 %6629 }
 0x87e   :  { %v6391_v25 = vmax.f32 %v6375_v19, 0.0  ;;  %v6377_v58 = vmax.f32 %v6361_v0, 0.0  ;;  %v6378_v16 = vmax.f32 %v6362_v21, 0.0  ;;  %v6385_v17 = vmax.f32 %v6369_v62, 0.0 }
 0x87f   :  { %v6386_v38 = vmax.f32 %v6370_v39, 0.0  ;;  %v6372_v57 = vadd.f32 %v6359_v33, %v6350_v61  ;;  %v6379_v63 = vmax.f32 %v6363_v30, 0.0  ;;  %v6380_v1 = vmax.f32 %v6364_v15, 0.0 }
 0x880   :  { %6407 = vst.msk [vmem:[#allocation6 + $0x70] sm:$0xff] %vm3098_vm5, %v6391_v25  ;;  %6393 = vst.msk [vmem:[#allocation6] sm:$0xff] %vm3098_vm5, %v6377_v58  ;;  %v6387_v48 = vmax.f32 %v6371_v7, 0.0  ;;  %v6365_v44 = vadd.f32 %v6359_v33, %v6343_v18  ;;  %v6366_v46 = vadd.f32 %v6359_v33, %v6344_v23  ;;  %v6373_v29 = vadd.f32 %v6359_v33, %v6351_v51  ;;  %v6612_v15 = vpop.permute.xlu1 %6611 }
 0x881   :  { %6394 = vst.msk [vmem:[#allocation6 + $0x8] sm:$0xff] %vm3098_vm5, %v6378_v16  ;;  %6401 = vst.msk [vmem:[#allocation6 + $0x40] sm:$0xff] %vm3098_vm5, %v6385_v17  ;;  %v6388_v56 = vmax.f32 %v6372_v57, 0.0  ;;  %v6374_v14 = vadd.f32 %v6359_v33, %v6352_v9  ;;  %v6346_v60 = vmul.f32 %v13726_v43, %v6337_v34  ;;  %v6354_v45 = vmul.f32 %v13801_v47, %v6337_v34 }
 0x882   :  { %6402 = vst.msk [vmem:[#allocation6 + $0x48] sm:$0xff] %vm3098_vm5, %v6386_v38  ;;  %6395 = vst.msk [vmem:[#allocation6 + $0x10] sm:$0xff] %vm3098_vm5, %v6379_v63  ;;  %v6381_v20 = vmax.f32 %v6365_v44, 0.0  ;;  %v6382_v5 = vmax.f32 %v6366_v46, 0.0  ;;  %v6389_v12 = vmax.f32 %v6373_v29, 0.0  ;;  %v6367_v3 = vadd.f32 %v6359_v33, %v6345_v27  ;;  %v8251_v29 = vld [vmem:[%s14264_s7 + $0x20] sm:$0xff] }
 0x883   :  { %6396 = vst.msk [vmem:[#allocation6 + $0x18] sm:$0xff] %vm3098_vm5, %v6380_v1  ;;  %6403 = vst.msk [vmem:[#allocation6 + $0x50] sm:$0xff] %vm3098_vm5, %v6387_v48  ;;  %v6390_v36 = vmax.f32 %v6374_v14, 0.0  ;;  %v6368_v11 = vadd.f32 %v6359_v33, %v6346_v60  ;;  %v6376_v4 = vadd.f32 %v6359_v33, %v6354_v45 }
 0x884   :  { %6404 = vst.msk [vmem:[#allocation6 + $0x58] sm:$0xff] %vm3098_vm5, %v6388_v56  ;;  %6397 = vst.msk [vmem:[#allocation6 + $0x20] sm:$0xff] %vm3098_vm5, %v6381_v20  ;;  %v6383_v43 = vmax.f32 %v6367_v3, 0.0  ;;  %v6632_v60 = vpop.permute.xlu1 %6631 }
 0x885   :  { %6398 = vst.msk [vmem:[#allocation6 + $0x28] sm:$0xff] %vm3098_vm5, %v6382_v5  ;;  %6405 = vst.msk [vmem:[#allocation6 + $0x60] sm:$0xff] %vm3098_vm5, %v6389_v12  ;;  %v6384_v47 = vmax.f32 %v6368_v11, 0.0  ;;  %v6392_v53 = vmax.f32 %v6376_v4, 0.0 }
 0x886   :  { %6406 = vst.msk [vmem:[#allocation6 + $0x68] sm:$0xff] %vm3098_vm5, %v6390_v36  ;;  %6399 = vst.msk [vmem:[#allocation6 + $0x30] sm:$0xff] %vm3098_vm5, %v6383_v43 }
 0x887   :  { %v6437_v34 = vld [vmem:[#allocation6 + $0x70] ss:$2 sm:$0xf]  ;;  %v6469_v22 = vld [vmem:[#allocation6 + $0x71] ss:$2 sm:$0xf] }
 0x888   :  { %6400 = vst.msk [vmem:[#allocation6 + $0x38] sm:$0xff] %vm3098_vm5, %v6384_v47  ;;  %6408 = vst.msk [vmem:[#allocation6 + $0x78] sm:$0xff] %vm3098_vm5, %v6392_v53  ;;  %v6486_v24 = vmax.f32 %v6437_v34, %v6469_v22  ;;  %v6409_v28 = vld [vmem:[#allocation6] ss:$2 sm:$0xf]  ;;  %vm6705_vm5 = vcmask 1041409   ;;  %v6614_v34 = vpop.permute.xlu0 %6613 }
 0x889   :  { %v6411_v40 = vld [vmem:[#allocation6 + $0x8] ss:$2 sm:$0xf]  ;;  %v6425_v10 = vld [vmem:[#allocation6 + $0x40] ss:$2 sm:$0xf] }
 0x88a   :  { %v6427_v54 = vld [vmem:[#allocation6 + $0x48] ss:$2 sm:$0xf]  ;;  %6503 = vst.msk [vmem:[#allocation7 + $0x38] sm:$0xf] %vm6488_vm7, %v6486_v24  ;;  %v8253_v22 = vld [vmem:[%s14264_s7 + $0x30] sm:$0xff]  ;;  %v6616_v24 = vpop.permute.xlu1 %6615 }
 0x88b   :  { %v6441_v33 = vld [vmem:[#allocation6 + $0x1] ss:$2 sm:$0xf]  ;;  %v6443_v42 = vld [vmem:[#allocation6 + $0x9] ss:$2 sm:$0xf] }
 0x88c   :  { %6664 = vst.msk [vmem:[#allocation7 + $0x38] sm:$0xf] %vm6649_vm9, %v6630_v2  ;;  %v6457_v61 = vld [vmem:[#allocation6 + $0x41] ss:$2 sm:$0xf]  ;;  %v6472_v23 = vmax.f32 %v6409_v28, %v6441_v33  ;;  %v6473_v51 = vmax.f32 %v6411_v40, %v6443_v42  ;;  %v8258_v2 = vld [vmem:[%s14264_s7 + $0x48] sm:$0xff] }
 0x88d   :  { %v6459_v18 = vld [vmem:[#allocation6 + $0x49] ss:$2 sm:$0xf]  ;;  %v6480_v9 = vmax.f32 %v6425_v10, %v6457_v61  ;;  %v6413_v19 = vld [vmem:[#allocation6 + $0x10] ss:$2 sm:$0xf] }
 0x88e   :  { %v6481_v27 = vmax.f32 %v6427_v54, %v6459_v18  ;;  %v6415_v0 = vld [vmem:[#allocation6 + $0x18] ss:$2 sm:$0xf]  ;;  %6489 = vst.msk [vmem:[#allocation7] sm:$0xf] %vm6488_vm7, %v6472_v23  ;;  %v8257_v54 = vld [vmem:[%s14264_s7 + $0x40] sm:$0xff] }
 0x88f   :  { %6490 = vst.msk [vmem:[#allocation7 + $0x4] sm:$0xf] %vm6488_vm7, %v6473_v51  ;;  %v6429_v21 = vld [vmem:[#allocation6 + $0x50] ss:$2 sm:$0xf]  ;;  %v8907_v42 = vpack.c.bf16 %v8258_v2, %v8257_v54 }
 0x890   :  { %v6431_v62 = vld [vmem:[#allocation6 + $0x58] ss:$2 sm:$0xf]  ;;  %6497 = vst.msk [vmem:[#allocation7 + $0x20] sm:$0xf] %vm6488_vm7, %v6480_v9  ;;  %v8259_v61 = vld [vmem:[%s14264_s7 + $0x50] sm:$0xff] }
 0x891   :  { %6498 = vst.msk [vmem:[#allocation7 + $0x24] sm:$0xf] %vm6488_vm7, %v6481_v27  ;;  %v6445_v39 = vld [vmem:[#allocation6 + $0x11] ss:$2 sm:$0xf]  ;;  %v8263_v9 = vld [vmem:[%s14264_s7 + $0x60] sm:$0xff] }
 0x892   :  { %6650 = vst.msk [vmem:[#allocation7] sm:$0xf] %vm6649_vm9, %v13812_v26  ;;  %6651 = vst.msk [vmem:[#allocation7 + $0x4] sm:$0xf] %vm6649_vm9, %v13825_v32  ;;  %v6474_v58 = vmax.f32 %v6413_v19, %v6445_v39  ;;  %v8260_v18 = vld [vmem:[%s14264_s7 + $0x58] sm:$0xf] }
 0x893   :  { %v6447_v30 = vld [vmem:[#allocation6 + $0x19] ss:$2 sm:$0xf]  ;;  %6658 = vst.msk [vmem:[#allocation7 + $0x20] sm:$0xf] %vm6649_vm9, %v13810_v55  ;;  %v8910_v51 = vpack.c.bf16 %v8260_v18, %v8259_v61  ;;  %v8264_v27 = vld [vmem:[%s14264_s7 + $0x68] sm:$0xff] }
 0x894   :  { %6659 = vst.msk [vmem:[#allocation7 + $0x24] sm:$0xf] %vm6649_vm9, %v13814_v6  ;;  %v6461_v7 = vld [vmem:[#allocation6 + $0x51] ss:$2 sm:$0xf]  ;;  %v6475_v16 = vmax.f32 %v6415_v0, %v6447_v30 }
 0x895   :  { %v6463_v25 = vld [vmem:[#allocation6 + $0x59] ss:$2 sm:$0xf]  ;;  %v6482_v17 = vmax.f32 %v6429_v21, %v6461_v7  ;;  %v6417_v57 = vld [vmem:[#allocation6 + $0x20] ss:$2 sm:$0xf]  ;;  %v8914_v21 = vpack.c.bf16 %v8264_v27, %v8263_v9 }
 0x896   :  { %v6483_v38 = vmax.f32 %v6431_v62, %v6463_v25  ;;  %v6419_v26 = vld [vmem:[#allocation6 + $0x28] ss:$2 sm:$0xf]  ;;  %6491 = vst.msk [vmem:[#allocation7 + $0x8] sm:$0xf] %vm6488_vm7, %v6474_v58  ;;  %v8265_v62 = vld [vmem:[%s14264_s7 + $0x70] sm:$0xff] }
 0x897   :  { %6492 = vst.msk [vmem:[#allocation7 + $0xc] sm:$0xf] %vm6488_vm7, %v6475_v16  ;;  %v6433_v32 = vld [vmem:[#allocation6 + $0x60] ss:$2 sm:$0xf]  ;;  %v8270_v25 = vld [vmem:[%s14264_s7 + $0x88] sm:$0xff] }
 0x898   :  { %v6435_v63 = vld [vmem:[#allocation6 + $0x68] ss:$2 sm:$0xf]  ;;  %6499 = vst.msk [vmem:[#allocation7 + $0x28] sm:$0xf] %vm6488_vm7, %v6482_v17  ;;  %v8269_v7 = vld [vmem:[%s14264_s7 + $0x80] sm:$0xff] }
 0x899   :  { %6500 = vst.msk [vmem:[#allocation7 + $0x2c] sm:$0xf] %vm6488_vm7, %v6483_v38  ;;  %v6449_v55 = vld [vmem:[#allocation6 + $0x21] ss:$2 sm:$0xf] }
 0x89a   :  { %6652 = vst.msk [vmem:[#allocation7 + $0x8] sm:$0xf] %vm6649_vm9, %v13827_v37  ;;  %6653 = vst.msk [vmem:[#allocation7 + $0xc] sm:$0xf] %vm6649_vm9, %v13857_v8  ;;  %v6476_v44 = vmax.f32 %v6417_v57, %v6449_v55  ;;  %v6666_v45 = vld [vmem:[#allocation7] sm:$0xf]  ;;  %v8921_v57 = vpack.c.bf16 %v8270_v25, %v8269_v7 }
 0x89b   :  { %v6451_v6 = vld [vmem:[#allocation6 + $0x29] ss:$2 sm:$0xf]  ;;  %6660 = vst.msk [vmem:[#allocation7 + $0x28] sm:$0xf] %vm6649_vm9, %v13819_v31  ;;  %v8299_v9 = vld [vmem:[%s14264_s7 + $0x120] sm:$0xff] }
 0x89c   :  { %6661 = vst.msk [vmem:[#allocation7 + $0x2c] sm:$0xf] %vm6649_vm9, %v13843_v50  ;;  %v6465_v1 = vld [vmem:[#allocation6 + $0x61] ss:$2 sm:$0xf]  ;;  %v6477_v46 = vmax.f32 %v6419_v26, %v6451_v6  ;;  %v8252_v31 = vld [vmem:[%s14264_s7 + $0x28] sm:$0xff] }
 0x89d   :  { %v6467_v48 = vld [vmem:[#allocation6 + $0x69] ss:$2 sm:$0xf]  ;;  %v6484_v37 = vmax.f32 %v6433_v32, %v6465_v1  ;;  %v6421_v14 = vld [vmem:[#allocation6 + $0x30] ss:$2 sm:$0xf]  ;;  %v8900_v47 = vpack.c.bf16 %v8252_v31, %v8251_v29 }
 0x89e   :  { %v6485_v56 = vmax.f32 %v6435_v63, %v6467_v48  ;;  %6493 = vst.msk [vmem:[#allocation7 + $0x10] sm:$0xf] %vm6488_vm7, %v6476_v44  ;;  %6494 = vst.msk [vmem:[#allocation7 + $0x14] sm:$0xf] %vm6488_vm7, %v6477_v46  ;;  %v6670_v20 = vld [vmem:[#allocation7 + $0x20] sm:$0xf] }
 0x89f   :  { %v6423_v50 = vld [vmem:[#allocation6 + $0x38] ss:$2 sm:$0xf]  ;;  %v6675_v5 = vld [vmem:[#allocation7 + $0x4] sm:$0xf]  ;;  %v8271_v26 = vld [vmem:[%s14264_s7 + $0x90] sm:$0xff] }
 0x8a0   :  { %v6679_v12 = vld [vmem:[#allocation7 + $0x24] sm:$0xf]  ;;  %6501 = vst.msk [vmem:[#allocation7 + $0x30] sm:$0xf] %vm6488_vm7, %v6484_v37  ;;  %6502 = vst.msk [vmem:[#allocation7 + $0x34] sm:$0xf] %vm6488_vm7, %v6485_v56  ;;  %v13916_v4 = vmax.f32 %v6666_v45, %v6675_v5 }
 0x8a1   :  { %6654 = vst.msk [vmem:[#allocation7 + $0x10] sm:$0xf] %vm6649_vm9, %v13860_v13  ;;  %6655 = vst.msk [vmem:[#allocation7 + $0x14] sm:$0xf] %vm6649_vm9, %v6612_v15  ;;  %v13910_v3 = vmax.f32 %v6670_v20, %v6679_v12  ;;  %v8266_v39 = vld [vmem:[%s14264_s7 + $0x78] sm:$0xf] }
 0x8a2   :  { %6662 = vst.msk [vmem:[#allocation7 + $0x30] sm:$0xf] %vm6649_vm9, %v13845_v59  ;;  %6663 = vst.msk [vmem:[#allocation7 + $0x34] sm:$0xf] %vm6649_vm9, %v13869_v41  ;;  %v8254_v59 = vld [vmem:[%s14264_s7 + $0x38] sm:$0xf]  ;;  %v8917_v15 = vpack.c.bf16 %v8266_v39, %v8265_v62 }
 0x8a3   :  { %v6453_v8 = vld [vmem:[#allocation6 + $0x31] ss:$2 sm:$0xf]  ;;  %v6455_v36 = vld [vmem:[#allocation6 + $0x39] ss:$2 sm:$0xf]  ;;  %v8903_v10 = vpack.c.bf16 %v8254_v59, %v8253_v22 }
 0x8a4   :  { %v6478_v11 = vmax.f32 %v6421_v14, %v6453_v8  ;;  %v6704_v43 = vrot.slane %v13910_v3, 7  ;;  %v6439_v13 = vld [vmem:[#allocation6 + $0x78] ss:$2 sm:$0xf]  ;;  %v6479_v53 = vmax.f32 %v6423_v50, %v6455_v36  ;;  %v6788_v33 = vrot.slane %v13916_v4, 1  ;;  %v8275_v1 = vld [vmem:[%s14264_s7 + $0xa0] sm:$0xff] }
 0x8a5   :  { %v6471_v40 = vld [vmem:[#allocation6 + $0x79] ss:$2 sm:$0xf]  ;;  %v6871_v19 = vrot.slane %v13916_v4, 2  ;;  %v6872_v0 = vrot.slane %v13910_v3, 1  ;;  %v6955_v58 = vrot.slane %v13916_v4, 3 }
 0x8a6   :  { %6495 = vst.msk [vmem:[#allocation7 + $0x18] sm:$0xf] %vm6488_vm7, %v6478_v11  ;;  %v6706_v28 = vsel %vm6705_vm5, %v6704_v43, %v13916_v4  ;;  %6496 = vst.msk [vmem:[#allocation7 + $0x1c] sm:$0xf] %vm6488_vm7, %v6479_v53  ;;  %v6487_v41 = vmax.f32 %v6439_v13, %v6471_v40  ;;  %v6789_v23 = vsel %vm6705_vm5, %v13910_v3, %v6788_v33  ;;  %v6956_v16 = vrot.slane %v13910_v3, 2  ;;  %v8276_v46 = vld [vmem:[%s14264_s7 + $0xa8] sm:$0xff] }
 0x8a7   :  { %6656 = vst.msk [vmem:[#allocation7 + $0x18] sm:$0xf] %vm6649_vm9, %v6614_v34  ;;  %8687 = vmatmul.mubr.msk.f32.vlgmr.msra.gmra.mrb[4].mxu1 %vm3293_vm8, %v6706_v28  ;;  %6657 = vst.msk [vmem:[#allocation7 + $0x1c] sm:$0xf] %vm6649_vm9, %v6616_v24  ;;  %v6873_v30 = vsel %vm6705_vm5, %v6872_v0, %v6871_v19  ;;  %v6671_v17 = vld [vmem:[#allocation7 + $0x28] sm:$0xf]  ;;  %v8928_v56 = vpack.c.bf16 %v8276_v46, %v8275_v1 }
 0x8a8   :  { %8901 = vmatpush3.bf16.msra.mxu1 %v8900_v47  ;;  %8697 = vmatprep.mubr.msk.f32.mxu1 %vm9117_vm2, %v14406_v35  ;;  %6504 = vst.msk [vmem:[#allocation7 + $0x3c] sm:$0xf] %vm6488_vm7, %v6487_v41  ;;  %v6680_v38 = vld [vmem:[#allocation7 + $0x2c] sm:$0xf]  ;;  %v8272_v32 = vld [vmem:[%s14264_s7 + $0x98] sm:$0xf]  ;;  %v6957_v63 = vsel %vm6705_vm5, %v6956_v16, %v6955_v58 }
 0x8a9   :  { %8902 = vmatprep.subr.bf16.mxu1 %v9116_v49  ;;  %6665 = vst.msk [vmem:[#allocation7 + $0x3c] sm:$0xf] %vm6649_vm9, %v6632_v60  ;;  %v13999_v55 = vmax.f32 %v6671_v17, %v6680_v38  ;;  %v8924_v6 = vpack.c.bf16 %v8272_v32, %v8271_v26  ;;  %v6667_v48 = vld [vmem:[#allocation7 + $0x8] sm:$0xf]  ;;  %v6676_v44 = vld [vmem:[#allocation7 + $0xc] sm:$0xf] }
 0x8aa   :  { %v6684_v37 = vmax.f32 %v6667_v48, %v6676_v44  ;;  %v8277_v14 = vld [vmem:[%s14264_s7 + $0xb0] sm:$0xff]  ;;  %v8278_v60 = vld [vmem:[%s14264_s7 + $0xb8] sm:$0xf]  ;;  %v8281_v50 = vld [vmem:[%s14264_s7 + $0xc0] sm:$0xff] }
 0x8ab   :  { %v7041_v29 = vrot.slane %v13999_v55, 7  ;;  %v8931_v31 = vpack.c.bf16 %v8278_v60, %v8277_v14  ;;  %v8282_v20 = vld [vmem:[%s14264_s7 + $0xc8] sm:$0xff]  ;;  %v8283_v3 = vld [vmem:[%s14264_s7 + $0xd0] sm:$0xff]  ;;  %v8284_v8 = vld [vmem:[%s14264_s7 + $0xd8] sm:$0xf]  ;;  %v7208_v13 = vrot.slane %v13999_v55, 1 }
 0x8ac   :  { %8905 = vmatpush3.bf16.msk.msra.mxu1 %vm13235_vm14, %v8903_v10  ;;  %v7124_v5 = vrot.slane %v6684_v37, 1  ;;  %v8935_v12 = vpack.c.bf16 %v8282_v20, %v8281_v50  ;;  %v8938_v11 = vpack.c.bf16 %v8284_v8, %v8283_v3  ;;  %v8287_v4 = vld [vmem:[%s14264_s7 + $0xe0] sm:$0xff]  ;;  %v8288_v43 = vld [vmem:[%s14264_s7 + $0xe8] sm:$0xff]  ;;  %v7207_v47 = vrot.slane %v6684_v37, 2  ;;  %v8289_v34 = vld [vmem:[%s14264_s7 + $0xf0] sm:$0xff] }
 0x8ad   :  { %8906 = vmatprep.subr.bf16.mxu1 %v9116_v49  ;;  %v7042_v45 = vsel %vm6705_vm5, %v7041_v29, %v6684_v37  ;;  %v8942_v53 = vpack.c.bf16 %v8288_v43, %v8287_v4  ;;  %v8290_v22 = vld [vmem:[%s14264_s7 + $0xf8] sm:$0xf]  ;;  %v8293_v28 = vld [vmem:[%s14264_s7 + $0x100] sm:$0xff]  ;;  %v8294_v40 = vld [vmem:[%s14264_s7 + $0x108] sm:$0xff]  ;;  %v7291_v41 = vrot.slane %v6684_v37, 3  ;;  %v7292_v10 = vrot.slane %v13999_v55, 2 }
 0x8ae   :  { %v7125_v36 = vsel %vm6705_vm5, %v13999_v55, %v7124_v5  ;;  %v7209_v59 = vsel %vm6705_vm5, %v7208_v13, %v7207_v47  ;;  %v8945_v24 = vpack.c.bf16 %v8290_v22, %v8289_v34  ;;  %v6672_v54 = vld [vmem:[#allocation7 + $0x30] sm:$0xf]  ;;  %v6681_v2 = vld [vmem:[#allocation7 + $0x34] sm:$0xf]  ;;  %v8949_v33 = vpack.c.bf16 %v8294_v40, %v8293_v28  ;;  %v8296_v61 = vld [vmem:[%s14264_s7 + $0x118] sm:$0xf] }
 0x8af   :  { %8698 = vmatmul.mubr.msk.f32.vlgmr.msra.gmra.mrb[4].mxu1 %vm3293_vm8, %v6789_v23  ;;  %v7293_v18 = vsel %vm6705_vm5, %v7292_v10, %v7291_v41  ;;  %v14085_v23 = vmax.f32 %v6672_v54, %v6681_v2  ;;  %v6668_v27 = vld [vmem:[#allocation7 + $0x10] sm:$0xf]  ;;  %v6677_v19 = vld [vmem:[#allocation7 + $0x14] sm:$0xf]  ;;  %v8300_v0 = vld [vmem:[%s14264_s7 + $0x128] sm:$0xff] }
 0x8b0   :  { %8908 = vmatpush3.bf16.msra.mxu1 %v8907_v42  ;;  %8708 = vmatprep.mubr.msk.f32.mxu1 %vm9117_vm2, %v14406_v35  ;;  %v8295_v42 = vld [vmem:[%s14264_s7 + $0x110] sm:$0xff]  ;;  %v6685_v62 = vmax.f32 %v6668_v27, %v6677_v19  ;;  %v8956_v39 = vpack.c.bf16 %v8300_v0, %v8299_v9  ;;  %v8305_v58 = vld [vmem:[%s14264_s7 + $0x140] sm:$0xff]  ;;  %v8306_v16 = vld [vmem:[%s14264_s7 + $0x148] sm:$0xff] }
 0x8b1   :  { %8909 = vmatprep.subr.bf16.mxu1 %v9116_v49  ;;  %v8963_v38 = vpack.c.bf16 %v8306_v16, %v8305_v58  ;;  %v8308_v26 = vld [vmem:[%s14264_s7 + $0x158] sm:$0xf]  ;;  %v8311_v55 = vld [vmem:[%s14264_s7 + $0x160] sm:$0xff]  ;;  %v7544_v48 = vrot.slane %v14085_v23, 1  ;;  %v8313_v46 = vld [vmem:[%s14264_s7 + $0x170] sm:$0xff] }
 0x8b2   :  { %v7460_v17 = vrot.slane %v6685_v62, 1  ;;  %v7543_v1 = vrot.slane %v6685_v62, 2  ;;  %v8314_v29 = vld [vmem:[%s14264_s7 + $0x178] sm:$0xf]  ;;  %v8317_v14 = vld [vmem:[%s14264_s7 + $0x180] sm:$0xff]  ;;  %v8318_v60 = vld [vmem:[%s14264_s7 + $0x188] sm:$0xff] }
 0x8b3   :  { %v6673_v50 = vld [vmem:[#allocation7 + $0x38] sm:$0xf]  ;;  %v6682_v20 = vld [vmem:[#allocation7 + $0x3c] sm:$0xf]  ;;  %v8977_v5 = vpack.c.bf16 %v8318_v60, %v8317_v14  ;;  %v8323_v4 = vld [vmem:[%s14264_s7 + $0x1a0] sm:$0xff] }
 0x8b4   :  { %8912 = vmatpush3.bf16.msk.msra.mxu1 %vm13235_vm14, %v8910_v51  ;;  %v8952_v51 = vpack.c.bf16 %v8296_v61, %v8295_v42  ;;  %v7461_v32 = vsel %vm6705_vm5, %v14085_v23, %v7460_v17  ;;  %v7545_v37 = vsel %vm6705_vm5, %v7544_v48, %v7543_v1  ;;  %v8320_v3 = vld [vmem:[%s14264_s7 + $0x198] sm:$0xf]  ;;  %v6678_v47 = vld [vmem:[#allocation7 + $0x1c] sm:$0xf]  ;;  %v8324_v13 = vld [vmem:[%s14264_s7 + $0x1a8] sm:$0xff] }
 0x8b5   :  { %8913 = vmatprep.subr.bf16.mxu1 %v9116_v49  ;;  %v6669_v43 = vld [vmem:[#allocation7 + $0x18] sm:$0xf]  ;;  %v8984_v22 = vpack.c.bf16 %v8324_v13, %v8323_v4  ;;  %v8329_v41 = vld [vmem:[%s14264_s7 + $0x1c0] sm:$0xff]  ;;  %v8330_v10 = vld [vmem:[%s14264_s7 + $0x1c8] sm:$0xff] }
 0x8b6   :  { %v6686_v34 = vmax.f32 %v6669_v43, %v6678_v47  ;;  %v8991_v2 = vpack.c.bf16 %v8330_v10, %v8329_v41  ;;  %v8332_v42 = vld [vmem:[%s14264_s7 + $0x1d8] sm:$0xf]  ;;  %v8337_v0 = vld [vmem:[%s14264_s7 + $0x1f0] sm:$0xff] }
 0x8b7   :  { %8709 = vmatmul.mubr.msk.f32.vlgmr.msra.gmra.mrb[4].mxu1 %vm3293_vm8, %v6873_v30  ;;  %v8301_v30 = vld [vmem:[%s14264_s7 + $0x130] sm:$0xff] }
 0x8b8   :  { %8915 = vmatpush3.bf16.msra.mxu1 %v8914_v21  ;;  %8719 = vmatprep.mubr.msk.f32.mxu1 %vm9117_vm2, %v14406_v35  ;;  %v7377_v21 = vrot.slane %v14085_v23, 7  ;;  %v7796_v54 = vrot.slane %v6686_v34, 1  ;;  %v7879_v9 = vrot.slane %v6686_v34, 2 }
 0x8b9   :  { %8916 = vmatprep.subr.bf16.mxu1 %v9116_v49 }
 0x8ba   :  { %v7378_v7 = vsel %vm6705_vm5, %v7377_v21, %v6685_v62  ;;  %v8338_v21 = vld [vmem:[%s14264_s7 + $0x1f8] sm:$0xf] }
 0x8bc   :  { %8919 = vmatpush3.bf16.msk.msra.mxu1 %vm13235_vm14, %v8917_v15  ;;  %v8302_v15 = vld [vmem:[%s14264_s7 + $0x138] sm:$0xf] }
 0x8bd   :  { %8920 = vmatprep.subr.bf16.mxu1 %v9116_v49  ;;  %v8959_v25 = vpack.c.bf16 %v8302_v15, %v8301_v30  ;;  %v7963_v30 = vrot.slane %v6686_v34, 3 }
 0x8bf   :  { %8720 = vmatmul.mubr.msk.f32.vlgmr.msra.gmra.mrb[4].mxu1 %vm3293_vm8, %v6957_v63 }
 0x8c0   :  { %8922 = vmatpush3.bf16.msra.mxu1 %v8921_v57  ;;  %8730 = vmatprep.mubr.msk.f32.mxu1 %vm9117_vm2, %v14406_v35  ;;  %v8307_v57 = vld [vmem:[%s14264_s7 + $0x150] sm:$0xff] }
 0x8c1   :  { %8923 = vmatprep.subr.bf16.mxu1 %v9116_v49  ;;  %v8966_v63 = vpack.c.bf16 %v8308_v26, %v8307_v57 }
 0x8c4   :  { %8926 = vmatpush3.bf16.msk.msra.mxu1 %vm13235_vm14, %v8924_v6  ;;  %v8312_v6 = vld [vmem:[%s14264_s7 + $0x168] sm:$0xff] }
 0x8c5   :  { %8927 = vmatprep.subr.bf16.mxu1 %v9116_v49  ;;  %v8970_v44 = vpack.c.bf16 %v8312_v6, %v8311_v55 }
 0x8c7   :  { %8731 = vmatmul.mubr.msk.f32.vlgmr.msra.gmra.mrb[4].mxu1 %vm3293_vm8, %v7042_v45  ;;  %v7627_v45 = vrot.slane %v6685_v62, 3 }
 0x8c8   :  { %8929 = vmatpush3.bf16.msra.mxu1 %v8928_v56  ;;  %8741 = vmatprep.mubr.msk.f32.mxu1 %vm9117_vm2, %v14406_v35  ;;  %v8973_v56 = vpack.c.bf16 %v8314_v29, %v8313_v46 }
 0x8c9   :  { %8930 = vmatprep.subr.bf16.mxu1 %v9116_v49 }
 0x8cc   :  { %8933 = vmatpush3.bf16.msk.msra.mxu1 %vm13235_vm14, %v8931_v31  ;;  %v7628_v31 = vrot.slane %v14085_v23, 2  ;;  %v8335_v23 = vld [vmem:[%s14264_s7 + $0x1e0] sm:$0xff] }
 0x8cd   :  { %8934 = vmatprep.subr.bf16.mxu1 %v9116_v49 }
 0x8ce   :  { %v7629_v8 = vsel %vm6705_vm5, %v7628_v31, %v7627_v45 }
 0x8cf   :  { %8742 = vmatmul.mubr.msk.f32.vlgmr.msra.gmra.mrb[4].mxu1 %vm3293_vm8, %v7125_v36  ;;  %v6690_v36 = vmax.f32 %v6673_v50, %v6682_v20 }
 0x8d0   :  { %8936 = vmatpush3.bf16.msra.mxu1 %v8935_v12  ;;  %8752 = vmatprep.mubr.msk.f32.mxu1 %vm9117_vm2, %v14406_v35  ;;  %v8319_v12 = vld [vmem:[%s14264_s7 + $0x190] sm:$0xff] }
 0x8d1   :  { %8937 = vmatprep.subr.bf16.mxu1 %v9116_v49  ;;  %v7797_v61 = vsel %vm6705_vm5, %v6690_v36, %v7796_v54  ;;  %v7880_v27 = vrot.slane %v6690_v36, 1  ;;  %v7964_v15 = vrot.slane %v6690_v36, 2 }
 0x8d3   :  { %v7881_v62 = vsel %vm6705_vm5, %v7880_v27, %v7879_v9 }
 0x8d4   :  { %8940 = vmatpush3.bf16.msk.msra.mxu1 %vm13235_vm14, %v8938_v11  ;;  %v8980_v11 = vpack.c.bf16 %v8320_v3, %v8319_v12 }
 0x8d5   :  { %8941 = vmatprep.subr.bf16.mxu1 %v9116_v49 }
 0x8d7   :  { %8753 = vmatmul.mubr.msk.f32.vlgmr.msra.gmra.mrb[4].mxu1 %vm3293_vm8, %v7209_v59  ;;  %v8325_v59 = vld [vmem:[%s14264_s7 + $0x1b0] sm:$0xff] }
 0x8d8   :  { %8943 = vmatpush3.bf16.msra.mxu1 %v8942_v53  ;;  %8763 = vmatprep.mubr.msk.f32.mxu1 %vm9117_vm2, %v14406_v35  ;;  %v7713_v53 = vrot.slane %v6690_v36, 7 }
 0x8d9   :  { %8944 = vmatprep.subr.bf16.mxu1 %v9116_v49 }
 0x8da   :  { %v7714_v28 = vsel %vm6705_vm5, %v7713_v53, %v6686_v34 }
 0x8dc   :  { %8947 = vmatpush3.bf16.msk.msra.mxu1 %vm13235_vm14, %v8945_v24  ;;  %v8326_v24 = vld [vmem:[%s14264_s7 + $0x1b8] sm:$0xf] }
 0x8dd   :  { %8948 = vmatprep.subr.bf16.mxu1 %v9116_v49  ;;  %v8987_v40 = vpack.c.bf16 %v8326_v24, %v8325_v59 }
 0x8df   :  { %8764 = vmatmul.mubr.msk.f32.vlgmr.msra.gmra.mrb[4].mxu1 %vm3293_vm8, %v7293_v18 }
 0x8e0   :  { %8950 = vmatpush3.bf16.msra.mxu1 %v8949_v33  ;;  %8774 = vmatprep.mubr.msk.f32.mxu1 %vm9117_vm2, %v14406_v35  ;;  %v8331_v33 = vld [vmem:[%s14264_s7 + $0x1d0] sm:$0xff] }
 0x8e1   :  { %8951 = vmatprep.subr.bf16.mxu1 %v9116_v49  ;;  %v8994_v18 = vpack.c.bf16 %v8332_v42, %v8331_v33 }
 0x8e4   :  { %8954 = vmatpush3.bf16.msk.msra.mxu1 %vm13235_vm14, %v8952_v51  ;;  %v8336_v51 = vld [vmem:[%s14264_s7 + $0x1e8] sm:$0xff] }
 0x8e5   :  { %8955 = vmatprep.subr.bf16.mxu1 %v9116_v49  ;;  %v8998_v19 = vpack.c.bf16 %v8336_v51, %v8335_v23 }
 0x8e7   :  { %8775 = vmatmul.mubr.msk.f32.vlgmr.msra.gmra.mrb[4].mxu1 %vm3293_vm8, %v7378_v7  ;;  %v7965_v7 = vsel %vm6705_vm5, %v7964_v15, %v7963_v30 }
 0x8e8   :  { %8957 = vmatpush3.bf16.msra.mxu1 %v8956_v39  ;;  %8785 = vmatprep.mubr.msk.f32.mxu1 %vm9117_vm2, %v14406_v35  ;;  %v9001_v39 = vpack.c.bf16 %v8338_v21, %v8337_v0 }
 0x8e9   :  { %8958 = vmatprep.subr.bf16.mxu1 %v9116_v49 }
 0x8ec   :  { %8961 = vmatpush3.bf16.msk.msra.mxu1 %vm13235_vm14, %v8959_v25  ;;  %v8248_v25 = vld [vmem:[%s14265_s8] ss:$0 sm:$0xff]  ;;  %s8062_s8 = sshll.u32 %s9118_s24, 4  ;;  %s8063_s8 = int_to_ptr.vmem [resolvable:$true] %s8062_s8 }
 0x8ed   :  { %8962 = vmatprep.subr.bf16.mxu1 %v9116_v49  ;;  %s9076_s25 = scalar_lea.vmem %s8063_s8, 32  ;;  %p9081_p1 = scmp.lt.s32.totalorder %s8063_s8, %s8063_s8 }
 0x8ee   :  { %p9077_p0 = scmp.ne.s32.totalorder %s8063_s8, %s9076_s25  ;;  %p9082_p2 = scmp.lt.s32.totalorder %s9076_s25, %s9076_s25 }
 0x8ef   :  { %8786 = vmatmul.mubr.msk.f32.vlgmr.msra.gmra.mrb[4].mxu1 %vm3293_vm8, %v7461_v32 }
 0x8f0   :  { %8964 = vmatpush3.bf16.msra.mxu1 %v8963_v38  ;;  %8796 = vmatprep.mubr.msk.f32.mxu1 %vm9117_vm2, %v14406_v35  ;;  %p9083_p3 = por %p9082_p2, %p9081_p1 }
 0x8f1   :  { %8965 = vmatprep.subr.bf16.mxu1 %v9116_v49 }
 0x8f2   :  { %p9084_p4 = pnand %p9083_p3, %p9077_p0 }
 0x8f4   :  { %8968 = vmatpush3.bf16.msk.msra.mxu1 %vm13235_vm14, %v8966_v63 }
 0x8f5   :  { %8969 = vmatprep.subr.bf16.mxu1 %v9116_v49 }
 0x8f7   :  { %8797 = vmatmul.mubr.msk.f32.vlgmr.msra.gmra.mrb[4].mxu1 %vm3293_vm8, %v7545_v37 }
 0x8f8   :  { %8971 = vmatpush3.bf16.msra.mxu1 %v8970_v44  ;;  %8807 = vmatprep.mubr.msk.f32.mxu1 %vm9117_vm2, %v14406_v35 }
 0x8f9   :  { %8972 = vmatprep.subr.bf16.mxu1 %v9116_v49 }
 0x8fc   :  { %8975 = vmatpush3.bf16.msk.msra.mxu1 %vm13235_vm14, %v8973_v56 }
 0x8fd   :  { %8976 = vmatprep.subr.bf16.mxu1 %v9116_v49 }
 0x8ff   :  { %8808 = vmatmul.mubr.msk.f32.vlgmr.msra.gmra.mrb[4].mxu1 %vm3293_vm8, %v7629_v8 }
 0x900   :  { %8978 = vmatpush3.bf16.msra.mxu1 %v8977_v5  ;;  %8818 = vmatprep.mubr.msk.f32.mxu1 %vm9117_vm2, %v14406_v35 }
 0x901   :  { %8979 = vmatprep.subr.bf16.mxu1 %v9116_v49 }
 0x904   :  { %8982 = vmatpush3.bf16.msk.msra.mxu1 %vm13235_vm14, %v8980_v11 }
 0x905   :  { %8983 = vmatprep.subr.bf16.mxu1 %v9116_v49 }
 0x907   :  { %8819 = vmatmul.mubr.msk.f32.vlgmr.msra.gmra.mrb[4].mxu1 %vm3293_vm8, %v7714_v28 }
 0x908   :  { %8985 = vmatpush3.bf16.msra.mxu1 %v8984_v22  ;;  %8829 = vmatprep.mubr.msk.f32.mxu1 %vm9117_vm2, %v14406_v35 }
 0x909   :  { %8986 = vmatprep.subr.bf16.mxu1 %v9116_v49 }
 0x90c   :  { %8989 = vmatpush3.bf16.msk.msra.mxu1 %vm13235_vm14, %v8987_v40 }
 0x90d   :  { %8990 = vmatprep.subr.bf16.mxu1 %v9116_v49 }
 0x90f   :  { %8830 = vmatmul.mubr.msk.f32.vlgmr.msra.gmra.mrb[4].mxu1 %vm3293_vm8, %v7797_v61 }
 0x910   :  { %8992 = vmatpush3.bf16.msra.mxu1 %v8991_v2  ;;  %8840 = vmatprep.mubr.msk.f32.mxu1 %vm9117_vm2, %v14406_v35 }
 0x911   :  { %8993 = vmatprep.subr.bf16.mxu1 %v9116_v49 }
 0x914   :  { %8996 = vmatpush3.bf16.msk.msra.mxu1 %vm13235_vm14, %v8994_v18 }
 0x915   :  { %8997 = vmatprep.subr.bf16.mxu1 %v9116_v49 }
 0x917   :  { %8841 = vmatmul.mubr.msk.f32.vlgmr.msra.gmra.mrb[4].mxu1 %vm3293_vm8, %v7881_v62 }
 0x918   :  { %8999 = vmatpush3.bf16.msra.mxu1 %v8998_v19  ;;  %8851 = vmatprep.mubr.msk.f32.mxu1 %vm9117_vm2, %v14406_v35 }
 0x919   :  { %9000 = vmatprep.subr.bf16.mxu1 %v9116_v49 }
 0x91c   :  { %9003 = vmatpush3.bf16.msk.msra.mxu1 %vm13235_vm14, %v9001_v39 }
 0x91f   :  { %8852 = vmatmul.mubr.msk.f32.vlgmr.msra.gmra.mrb[4].mxu1 %vm3293_vm8, %v7965_v7 }
 0x9f2   :  { %v8037_v58 = vpop.f32.mrb[4].mxu1 }
 0x9f3   :  { %v9018_v16 = vadd.f32 %v8248_v25, %v8037_v58  ;;  %v8853_v17 = vpop.f32.mrb[5].mxu1 }
 0x9f5   :  { %v8043_v35 = vsel %vm8042_vm10, %v9018_v16, -inf }
 0x9f6   :  { %8044 = vmax.xlane.f32.xlu0 %v8043_v35 }
 0xa83   :  { %v8045_v49 = vpop.xlane.xlu0 %8044 }
 0xa84   :  { %v8046_v38 = vsub.f32 %v9018_v16, %v8045_v49 }
 0xa86   :  { %v8047_v57 = vmul.f32 1.442695, %v8046_v38 }
 0xa88   :  { %9072 = vpow2.f32 %v8047_v57 }
 0xa92   :  { %v9073_v52 = vpop.eup %9072 }
 0xa93   :  { %v8049_v26 = vsel %vm8042_vm10, %v9073_v52, 0.0 }
 0xa94   :  { %8050 = vadd.xlane.f32.xlu1 %v8049_v26 }
 0xb21   :  { %v8051_v32 = vpop.xlane.xlu1 %8050 }
 0xb22   :  { %9074 = vlog2.f32 %v8051_v32 }
 0xb2c   :  { %v9075_v63 = vpop.eup %9074 }
 0xb2d   :  { %v8053_v55 = vmul.f32 0.6931472, %v9075_v63 }
 0xb2f   :  { %v8054_v6 = vsub.f32 %v8046_v38, %v8053_v55 }
 0xb31   :  { %8055 = vst.msk [vmem:[#allocation8] sm:$0x3] %vm8042_vm10, %v8054_v6 }
 0xb32   :  { %9087 = shalt.err (!%p9084_p4)
}
 0xb33   :  { %s9088_s30 = scalar_lea.hbm %s14266_s9, 32 }
 0xb34   :  { %p9089_p5 = scmp.ne.s32.totalorder %s14266_s9, %s9088_s30  ;;  %p9092_p6 = scmp.lt.u32.totalorder %s9088_s30, %s14266_s9 }
 0xb36   :  { %p9094_p7 = pnand %p9092_p6, %p9089_p5 }
 0xb38   :  { %9097 = shalt.err (!%p9094_p7)
}
 0xb39   :  { %8065 = dma.vmem_to_hbm [thread:$0]  %s8063_s8, 32, %s14266_s9, [#allocation9]  }
 0xb3a   :  { %9098 = dma.done.wait [#allocation9], 32  }
 0xb3b   :  { %9099 = vsyncadd [#allocation9], 4294967264 }
 0xb3c   :  { %8069 = vsyncpa [#allocation9], 1 }

</bundles_post_ra>
